<compile_context>
chip_gen: v7x
topology: tpu7x:2x2x1
jax: 0.10.0
libtpu: 0.0.40
codegen_flags: <defaults>
</compile_context>

<pallas_src>
import functools

import jax
import jax.numpy as jnp
from jax.experimental import pallas as pl
from jax.experimental.pallas import tpu as pltpu


COMPUTE_DTYPE = jnp.bfloat16   # matmul input dtype (f32 MXU accumulation kept)


def _round_up(x, m):
    return (x + m - 1) // m * m


# ------------------- fused matmul + bias (+ReLU) kernels -------------------

def _mm_bias_1k_kernel(a_ref, b_ref, bias_ref, o_ref, *, relu):
    # Single-K fast path: no accumulator scratch, direct store.
    y = jnp.dot(a_ref[...], b_ref[...], preferred_element_type=jnp.float32)
    y = y + bias_ref[...]
    if relu:
        y = jnp.maximum(y, 0.0)
    o_ref[...] = y.astype(o_ref.dtype)


def _mm_bias_acc_kernel(a_ref, b_ref, bias_ref, o_ref, acc_ref, *, relu):
    # Generic multi-K fallback (not used for these shapes).
    @pl.when(pl.program_id(2) == 0)
    def _():
        acc_ref[...] = jnp.zeros_like(acc_ref)

    acc_ref[...] += jnp.dot(a_ref[...], b_ref[...],
                            preferred_element_type=jnp.float32)

    @pl.when(pl.program_id(2) == pl.num_programs(2) - 1)
    def _():
        y = acc_ref[...] + bias_ref[...]
        if relu:
            y = jnp.maximum(y, 0.0)
        o_ref[...] = y.astype(o_ref.dtype)


def pallas_matmul_bias(a, b, bias, *, relu=False, out_dtype=jnp.float32,
                       tk_max=4096, b_tile_budget=4 * 1024 * 1024):
    """(M,K)@(K,N) + bias (+ReLU) with f32 MXU accumulation."""
    M, K = a.shape
    Kb, N = b.shape
    assert K == Kb
    itemsize = jnp.dtype(b.dtype).itemsize

    # tm: few, large row tiles (these GEMMs are step-overhead bound, not VMEM
    # bound).  Keep exactly 2 i-steps when M is big so v7x's 2 TensorCores
    # both get work; bf16 tiles want 16-multiples.
    Mp16 = _round_up(M, 16)
    if Mp16 <= 128:
        tm = Mp16
    else:
        tm = min(1024, _round_up((Mp16 + 1) // 2, 16))
    Mp = _round_up(M, tm)

    # tk: single full-K step whenever K is modest -> single-K fast path.
    tk = K if K <= tk_max else 512
    Kp = _round_up(K, tk)

    # tn: full-extent single j-step when the B tile is modest, else 256/128.
    if N <= 128 or K * N * itemsize <= b_tile_budget:
        tn = N
    elif N % 256 == 0:
        tn = 256
    elif N % 128 == 0:
        tn = 128
    else:
        tn = N

    # pad only when actually needed
    if Mp != M or Kp != K:
        a = jnp.pad(a, ((0, Mp - M), (0, Kp - K)))
    if Kp != K:
        b = jnp.pad(b, ((0, Kp - K), (0, 0)))
    bias2 = bias.reshape(1, N).astype(jnp.float32)

    gi, gj, gk = Mp // tm, N // tn, Kp // tk

    if gk == 1:
        kernel = functools.partial(_mm_bias_1k_kernel, relu=relu)
        out = pl.pallas_call(
            kernel,
            out_shape=jax.ShapeDtypeStruct((Mp, N), out_dtype),
            grid_spec=pltpu.PrefetchScalarGridSpec(
                num_scalar_prefetch=0,
                grid=(gi, gj),
                in_specs=[pl.BlockSpec((tm, tk), lambda i, j: (i, 0)),
                          pl.BlockSpec((tk, tn), lambda i, j: (0, j)),
                          pl.BlockSpec((1, tn), lambda i, j: (0, j))],
                out_specs=pl.BlockSpec((tm, tn), lambda i, j: (i, j))),
            compiler_params=pltpu.CompilerParams(
                dimension_semantics=("parallel", "parallel")),
        )(a, b, bias2)
    else:
        kernel = functools.partial(_mm_bias_acc_kernel, relu=relu)
        out = pl.pallas_call(
            kernel,
            out_shape=jax.ShapeDtypeStruct((Mp, N), out_dtype),
            grid_spec=pltpu.PrefetchScalarGridSpec(
                num_scalar_prefetch=0,
                grid=(gi, gj, gk),
                in_specs=[pl.BlockSpec((tm, tk), lambda i, j, k: (i, k)),
                          pl.BlockSpec((tk, tn), lambda i, j, k: (k, j)),
                          pl.BlockSpec((1, tn), lambda i, j, k: (0, j))],
                out_specs=pl.BlockSpec((tm, tn), lambda i, j, k: (i, j)),
                scratch_shapes=[pltpu.VMEM((tm, tn), jnp.float32)]),
            compiler_params=pltpu.CompilerParams(
                dimension_semantics=("parallel", "parallel", "arbitrary")),
        )(a, b, bias2)

    if Mp != M:
        out = out[:M]
    return out


# --------------- fused tail: conv4 + global mean + ReLU + FC ---------------

def _conv4_pool_fc_kernel(cols_ref, w4_ref, b4_ref, wfc_ref, bfc_ref, o_ref):
    # conv4 as a GEMM; its output spatial size is 1x1 here so the global mean
    # is the identity.  ReLU (PyTorch applies it after the mean) then FC.
    h = jnp.dot(cols_ref[...], w4_ref[...], preferred_element_type=jnp.float32)
    h = jnp.maximum(h + b4_ref[...], 0.0)
    y = jnp.dot(h.astype(wfc_ref.dtype), wfc_ref[...],
                preferred_element_type=jnp.float32)
    o_ref[...] = (y + bfc_ref[...]).astype(o_ref.dtype)


def pallas_conv4_pool_fc(cols, w4, b4, fc_w, fc_b):
    """cols: (B, 9*Cin) flattened 3x3 patches (conv4 output is 1x1 spatial)."""
    M, K4 = cols.shape
    C4 = w4.shape[1]
    c_dim = fc_w.shape[1]
    Mp = _round_up(M, 8)
    if Mp != M:
        cols = jnp.pad(cols, ((0, Mp - M), (0, 0)))
    b4r = b4.reshape(1, C4).astype(jnp.float32)
    bfr = fc_b.reshape(1, c_dim).astype(jnp.float32)
    out = pl.pallas_call(
        _conv4_pool_fc_kernel,
        out_shape=jax.ShapeDtypeStruct((Mp, c_dim), jnp.float32),
        grid_spec=pltpu.PrefetchScalarGridSpec(
            num_scalar_prefetch=0,
            grid=(1,),
            in_specs=[pl.BlockSpec((Mp, K4), lambda i: (0, 0)),
                      pl.BlockSpec((K4, C4), lambda i: (0, 0)),
                      pl.BlockSpec((1, C4), lambda i: (0, 0)),
                      pl.BlockSpec((C4, c_dim), lambda i: (0, 0)),
                      pl.BlockSpec((1, c_dim), lambda i: (0, 0))],
            out_specs=pl.BlockSpec((Mp, c_dim), lambda i: (0, 0))),
        compiler_params=pltpu.CompilerParams(
            dimension_semantics=("arbitrary",)),
    )(cols, w4, b4r, fc_w, bfr)
    return out[:M]


# --------------- fallback: fused global mean + ReLU + FC kernel ---------------

def _pool_fc_kernel(x_ref, w_ref, bias_ref, o_ref):
    pooled = jnp.maximum(
        jnp.mean(x_ref[...].astype(jnp.float32), axis=1), 0.0)   # (B, C)
    y = jnp.dot(pooled.astype(w_ref.dtype), w_ref[...],
                preferred_element_type=jnp.float32)
    o_ref[...] = (y + bias_ref[...]).astype(o_ref.dtype)


def pallas_pool_fc(x, fc_w, fc_b):
    """x: (B, HW, C) -> relu(mean over HW) @ fc_w + fc_b, one pallas_call."""
    B, HW, C = x.shape
    K, N = fc_w.shape
    assert C == K
    Bp = _round_up(B, 8)
    if Bp != B:
        x = jnp.pad(x, ((0, Bp - B), (0, 0), (0, 0)))
    bias2 = fc_b.reshape(1, N).astype(jnp.float32)
    out = pl.pallas_call(
        _pool_fc_kernel,
        out_shape=jax.ShapeDtypeStruct((Bp, N), jnp.float32),
        grid_spec=pltpu.PrefetchScalarGridSpec(
            num_scalar_prefetch=0,
            grid=(1,),
            in_specs=[pl.BlockSpec((Bp, HW, C), lambda i: (0, 0, 0)),
                      pl.BlockSpec((K, N), lambda i: (0, 0)),
                      pl.BlockSpec((1, N), lambda i: (0, 0))],
            out_specs=pl.BlockSpec((Bp, N), lambda i: (0, 0))),
        compiler_params=pltpu.CompilerParams(
            dimension_semantics=("arbitrary",)),
    )(x, fc_w, bias2)
    return out[:B]


# ------------------------------ conv glue ------------------------------

def _im2col_3x3(x, stride, dtype):
    """x: (B,H,W,C) NHWC, valid 3x3 conv -> (B*OH*OW, 9*C) in `dtype`."""
    B, H, W, C = x.shape
    OH = (H - 3) // stride + 1
    OW = (W - 3) // stride + 1
    cols = []
    for i in range(3):
        for j in range(3):
            cols.append(x[:, i:i + stride * OH:stride,
                          j:j + stride * OW:stride, :])
    cols = jnp.stack(cols, axis=3)                    # (B, OH, OW, 9, C)
    return cols.reshape(B * OH * OW, 9 * C).astype(dtype), OH, OW


def conv3x3_s2(x, w_mat, bias, *, relu, compute_dtype):
    """x: (B,H,W,Cin), w_mat: (9*Cin, Cout) pre-reshaped; bias+ReLU fused."""
    B = x.shape[0]
    cols, OH, OW = _im2col_3x3(x, 2, compute_dtype)
    y = pallas_matmul_bias(cols, w_mat, bias, relu=relu,
                           out_dtype=compute_dtype)
    return y.reshape(B, OH, OW, w_mat.shape[1])


# ------------------------------ parameters ------------------------------

_CHANNELS = [(3, 32), (32, 64), (64, 128), (128, 256), (256, 512)]


def init_params(key, c_dim=128, compute_dtype=COMPUTE_DTYPE):
    keys = jax.random.split(key, 2 * len(_CHANNELS) + 2)
    convs = []
    ki = 0
    for cin, cout in _CHANNELS:
        k = 9 * cin
        std = (2.0 / k) ** 0.5
        w = jax.random.normal(keys[ki], (3, 3, cin, cout), jnp.float32) * std
        b = jax.random.normal(keys[ki + 1], (cout,), jnp.float32) * 0.01
        ki += 2
        # pre-reshape HWIO -> (K, Cout) and pre-cast ONCE
        convs.append({'w': w.reshape(k, cout).astype(compute_dtype),
                      'b': b})
    fc_w = (jax.random.normal(keys[ki], (512, c_dim), jnp.float32)
            * (1.0 / 512) ** 0.5).astype(compute_dtype)
    fc_b = jax.random.normal(keys[ki + 1], (c_dim,), jnp.float32) * 0.01
    return {'convs': convs, 'fc_w': fc_w, 'fc_b': fc_b}


# ------------------------------ forward pass ------------------------------

def conv_encoder_forward(params, x_nchw, compute_dtype=COMPUTE_DTYPE):
    """Matches ConvEncoder.forward: 5 valid 3x3/s2 convs with ReLU between
    them, global spatial mean, ReLU, Linear(512, c_dim)."""
    x = jnp.transpose(x_nchw, (0, 2, 3, 1)).astype(compute_dtype)   # NHWC
    convs = params['convs']
    # ReLU of conv_i's output is fused into conv_i's matmul epilogue.
    for li in range(4):
        x = conv3x3_s2(x, convs[li]['w'], convs[li]['b'], relu=True,
                       compute_dtype=compute_dtype)

    B, H4, W4, C4 = x.shape                       # input to conv4
    if H4 == 3 and W4 == 3:
        # conv4 output is 1x1: its im2col is a pure reshape and the global
        # mean is the identity -> fuse conv4 + pool + ReLU + FC in ONE call.
        cols4 = x.reshape(B, 9 * C4)
        out = pallas_conv4_pool_fc(cols4, convs[4]['w'], convs[4]['b'],
                                   params['fc_w'], params['fc_b'])
    else:
        x = conv3x3_s2(x, convs[4]['w'], convs[4]['b'], relu=False,
                       compute_dtype=compute_dtype)   # no ReLU on conv4
        B, H, W, C = x.shape
        out = pallas_pool_fc(x.reshape(B, H * W, C),
                             params['fc_w'], params['fc_b'])
    return out


# ------------------------------ main ------------------------------

if __name__ == "__main__":
    c_dim = 128
    key = jax.random.PRNGKey(0)
    k_params, k_x = jax.random.split(key)

    # smallest convenient input that survives 5 stride-2 valid 3x3 convs
    x = jax.random.uniform(k_x, (2, 3, 64, 64), jnp.float32)
    params = init_params(k_params, c_dim=c_dim)

    fwd = jax.jit(conv_encoder_forward)
    out = fwd(params, x)
    out = jax.block_until_ready(out)

    assert out.shape == (2, c_dim), out.shape
    assert bool(jnp.all(jnp.isfinite(out)))
    print("KERNEL_OK")
</pallas_src>

<mosaic_0001>
module attributes {stable_mosaic.version = 11 : i64} {
  func.func @_mm_bias_1k_kernel(%arg0: i32, %arg1: i32, %arg2: memref<976x27xbf16, #tpu.memory_space<vmem>>, %arg3: memref<27x32xbf16, #tpu.memory_space<vmem>>, %arg4: memref<1x32xf32, #tpu.memory_space<vmem>>, %arg5: memref<976x32xbf16, #tpu.memory_space<vmem>>) attributes {dimension_semantics = [#tpu.dimension_semantics<parallel>, #tpu.dimension_semantics<parallel>], iteration_bounds = array<i64: 2, 1>, scalar_prefetch = 0 : i64, scratch_operands = 0 : i64, tpu.core_type = #tpu.core_type<tc>, window_params = [{transform_indices = @transform_0, window_bounds = array<i64: 976, 27>}, {transform_indices = @transform_1, window_bounds = array<i64: 27, 32>}, {transform_indices = @transform_2, window_bounds = array<i64: 1, 32>}, {transform_indices = @transform_3, window_bounds = array<i64: 976, 32>}]} {
    %c0 = arith.constant 0 : index
    %c0_0 = arith.constant 0 : index
    %0 = vector.load %arg2[%c0, %c0_0] : memref<976x27xbf16, #tpu.memory_space<vmem>>, vector<976x27xbf16>
    %c0_1 = arith.constant 0 : index
    %c0_2 = arith.constant 0 : index
    %1 = vector.load %arg3[%c0_1, %c0_2] : memref<27x32xbf16, #tpu.memory_space<vmem>>, vector<27x32xbf16>
    %cst = arith.constant dense<0.000000e+00> : vector<976x32xf32>
    %2 = tpu.matmul %0, %1, %cst {dimension_numbers = #tpu.dot_dimension_numbers<[1], [0], [0], [1], [0, 0, 1, 1], [], []>} : vector<976x27xbf16>, vector<27x32xbf16>, vector<976x32xf32> -> vector<976x32xf32>
    %c0_3 = arith.constant 0 : index
    %c0_4 = arith.constant 0 : index
    %3 = vector.load %arg4[%c0_3, %c0_4] : memref<1x32xf32, #tpu.memory_space<vmem>>, vector<1x32xf32>
    %4 = vector.broadcast %3 : vector<1x32xf32> to vector<976x32xf32>
    %5 = arith.addf %2, %4 : vector<976x32xf32>
    %cst_5 = arith.constant 0.000000e+00 : f32
    %6 = vector.broadcast %cst_5 : f32 to vector<976x32xf32>
    %7 = arith.maximumf %5, %6 : vector<976x32xf32>
    %8 = arith.truncf %7 : vector<976x32xf32> to vector<976x32xbf16>
    %c0_6 = arith.constant 0 : index
    %c0_7 = arith.constant 0 : index
    %9 = vector.load %arg5[%c0_6, %c0_7] : memref<976x32xbf16, #tpu.memory_space<vmem>>, vector<976x32xbf16>
    tpu.vector_store %arg5[%c0_6, %c0_7], %8 {strides = array<i32>} : memref<976x32xbf16, #tpu.memory_space<vmem>>, vector<976x32xbf16>,
    return
  }
  func.func @transform_0(%arg0: i32, %arg1: i32) -> (i32, i32) {
    %c0_i32 = arith.constant 0 : i32
    %c0_i32_0 = arith.constant 0 : i32
    return %arg0, %c0_i32 : i32, i32
  }
  func.func @transform_1(%arg0: i32, %arg1: i32) -> (i32, i32) {
    %c0_i32 = arith.constant 0 : i32
    %c0_i32_0 = arith.constant 0 : i32
    return %c0_i32, %arg1 : i32, i32
  }
  func.func @transform_2(%arg0: i32, %arg1: i32) -> (i32, i32) {
    %c0_i32 = arith.constant 0 : i32
    %c0_i32_0 = arith.constant 0 : i32
    return %c0_i32, %arg1 : i32, i32
  }
  func.func @transform_3(%arg0: i32, %arg1: i32) -> (i32, i32) {
    %c0_i32 = arith.constant 0 : i32
    return %arg0, %arg1 : i32, i32
  }
}

module attributes {stable_mosaic.version = 11 : i64} {
  func.func @_mm_bias_1k_kernel(%arg0: i32, %arg1: i32, %arg2: memref<240x288xbf16, #tpu.memory_space<vmem>>, %arg3: memref<288x64xbf16, #tpu.memory_space<vmem>>, %arg4: memref<1x64xf32, #tpu.memory_space<vmem>>, %arg5: memref<240x64xbf16, #tpu.memory_space<vmem>>) attributes {dimension_semantics = [#tpu.dimension_semantics<parallel>, #tpu.dimension_semantics<parallel>], iteration_bounds = array<i64: 2, 1>, scalar_prefetch = 0 : i64, scratch_operands = 0 : i64, tpu.core_type = #tpu.core_type<tc>, window_params = [{transform_indices = @transform_0, window_bounds = array<i64: 240, 288>}, {transform_indices = @transform_1, window_bounds = array<i64: 288, 64>}, {transform_indices = @transform_2, window_bounds = array<i64: 1, 64>}, {transform_indices = @transform_3, window_bounds = array<i64: 240, 64>}]} {
    %c0 = arith.constant 0 : index
    %c0_0 = arith.constant 0 : index
    %0 = vector.load %arg2[%c0, %c0_0] : memref<240x288xbf16, #tpu.memory_space<vmem>>, vector<240x288xbf16>
    %c0_1 = arith.constant 0 : index
    %c0_2 = arith.constant 0 : index
    %1 = vector.load %arg3[%c0_1, %c0_2] : memref<288x64xbf16, #tpu.memory_space<vmem>>, vector<288x64xbf16>
    %cst = arith.constant dense<0.000000e+00> : vector<240x64xf32>
    %2 = tpu.matmul %0, %1, %cst {dimension_numbers = #tpu.dot_dimension_numbers<[1], [0], [0], [1], [0, 0, 1, 1], [], []>} : vector<240x288xbf16>, vector<288x64xbf16>, vector<240x64xf32> -> vector<240x64xf32>
    %c0_3 = arith.constant 0 : index
    %c0_4 = arith.constant 0 : index
    %3 = vector.load %arg4[%c0_3, %c0_4] : memref<1x64xf32, #tpu.memory_space<vmem>>, vector<1x64xf32>
    %4 = vector.broadcast %3 : vector<1x64xf32> to vector<240x64xf32>
    %5 = arith.addf %2, %4 : vector<240x64xf32>
    %cst_5 = arith.constant 0.000000e+00 : f32
    %6 = vector.broadcast %cst_5 : f32 to vector<240x64xf32>
    %7 = arith.maximumf %5, %6 : vector<240x64xf32>
    %8 = arith.truncf %7 : vector<240x64xf32> to vector<240x64xbf16>
    %c0_6 = arith.constant 0 : index
    %c0_7 = arith.constant 0 : index
    %9 = vector.load %arg5[%c0_6, %c0_7] : memref<240x64xbf16, #tpu.memory_space<vmem>>, vector<240x64xbf16>
    tpu.vector_store %arg5[%c0_6, %c0_7], %8 {strides = array<i32>} : memref<240x64xbf16, #tpu.memory_space<vmem>>, vector<240x64xbf16>,
    return
  }
  func.func @transform_0(%arg0: i32, %arg1: i32) -> (i32, i32) {
    %c0_i32 = arith.constant 0 : i32
    %c0_i32_0 = arith.constant 0 : i32
    return %arg0, %c0_i32 : i32, i32
  }
  func.func @transform_1(%arg0: i32, %arg1: i32) -> (i32, i32) {
    %c0_i32 = arith.constant 0 : i32
    %c0_i32_0 = arith.constant 0 : i32
    return %c0_i32, %arg1 : i32, i32
  }
  func.func @transform_2(%arg0: i32, %arg1: i32) -> (i32, i32) {
    %c0_i32 = arith.constant 0 : i32
    %c0_i32_0 = arith.constant 0 : i32
    return %c0_i32, %arg1 : i32, i32
  }
  func.func @transform_3(%arg0: i32, %arg1: i32) -> (i32, i32) {
    %c0_i32 = arith.constant 0 : i32
    return %arg0, %arg1 : i32, i32
  }
}

module attributes {stable_mosaic.version = 11 : i64} {
  func.func @_mm_bias_1k_kernel(%arg0: i32, %arg1: i32, %arg2: memref<112x576xbf16, #tpu.memory_space<vmem>>, %arg3: memref<576x128xbf16, #tpu.memory_space<vmem>>, %arg4: memref<1x128xf32, #tpu.memory_space<vmem>>, %arg5: memref<112x128xbf16, #tpu.memory_space<vmem>>) attributes {dimension_semantics = [#tpu.dimension_semantics<parallel>, #tpu.dimension_semantics<parallel>], iteration_bounds = array<i64: 1, 1>, scalar_prefetch = 0 : i64, scratch_operands = 0 : i64, tpu.core_type = #tpu.core_type<tc>, window_params = [{transform_indices = @transform_0, window_bounds = array<i64: 112, 576>}, {transform_indices = @transform_1, window_bounds = array<i64: 576, 128>}, {transform_indices = @transform_2, window_bounds = array<i64: 1, 128>}, {transform_indices = @transform_3, window_bounds = array<i64: 112, 128>}]} {
    %c0 = arith.constant 0 : index
    %c0_0 = arith.constant 0 : index
    %0 = vector.load %arg2[%c0, %c0_0] : memref<112x576xbf16, #tpu.memory_space<vmem>>, vector<112x576xbf16>
    %c0_1 = arith.constant 0 : index
    %c0_2 = arith.constant 0 : index
    %1 = vector.load %arg3[%c0_1, %c0_2] : memref<576x128xbf16, #tpu.memory_space<vmem>>, vector<576x128xbf16>
    %cst = arith.constant dense<0.000000e+00> : vector<112x128xf32>
    %2 = tpu.matmul %0, %1, %cst {dimension_numbers = #tpu.dot_dimension_numbers<[1], [0], [0], [1], [0, 0, 1, 1], [], []>} : vector<112x576xbf16>, vector<576x128xbf16>, vector<112x128xf32> -> vector<112x128xf32>
    %c0_3 = arith.constant 0 : index
    %c0_4 = arith.constant 0 : index
    %3 = vector.load %arg4[%c0_3, %c0_4] : memref<1x128xf32, #tpu.memory_space<vmem>>, vector<1x128xf32>
    %4 = vector.broadcast %3 : vector<1x128xf32> to vector<112x128xf32>
    %5 = arith.addf %2, %4 : vector<112x128xf32>
    %cst_5 = arith.constant 0.000000e+00 : f32
    %6 = vector.broadcast %cst_5 : f32 to vector<112x128xf32>
    %7 = arith.maximumf %5, %6 : vector<112x128xf32>
    %8 = arith.truncf %7 : vector<112x128xf32> to vector<112x128xbf16>
    %c0_6 = arith.constant 0 : index
    %c0_7 = arith.constant 0 : index
    %9 = vector.load %arg5[%c0_6, %c0_7] : memref<112x128xbf16, #tpu.memory_space<vmem>>, vector<112x128xbf16>
    tpu.vector_store %arg5[%c0_6, %c0_7], %8 {strides = array<i32>} : memref<112x128xbf16, #tpu.memory_space<vmem>>, vector<112x128xbf16>,
    return
  }
  func.func @transform_0(%arg0: i32, %arg1: i32) -> (i32, i32) {
    %c0_i32 = arith.constant 0 : i32
    %c0_i32_0 = arith.constant 0 : i32
    return %arg0, %c0_i32 : i32, i32
  }
  func.func @transform_1(%arg0: i32, %arg1: i32) -> (i32, i32) {
    %c0_i32 = arith.constant 0 : i32
    %c0_i32_0 = arith.constant 0 : i32
    return %c0_i32, %arg1 : i32, i32
  }
  func.func @transform_2(%arg0: i32, %arg1: i32) -> (i32, i32) {
    %c0_i32 = arith.constant 0 : i32
    %c0_i32_0 = arith.constant 0 : i32
    return %c0_i32, %arg1 : i32, i32
  }
  func.func @transform_3(%arg0: i32, %arg1: i32) -> (i32, i32) {
    %c0_i32 = arith.constant 0 : i32
    return %arg0, %arg1 : i32, i32
  }
}

module attributes {stable_mosaic.version = 11 : i64} {
  func.func @_mm_bias_1k_kernel(%arg0: i32, %arg1: i32, %arg2: memref<32x1152xbf16, #tpu.memory_space<vmem>>, %arg3: memref<1152x256xbf16, #tpu.memory_space<vmem>>, %arg4: memref<1x256xf32, #tpu.memory_space<vmem>>, %arg5: memref<32x256xbf16, #tpu.memory_space<vmem>>) attributes {dimension_semantics = [#tpu.dimension_semantics<parallel>, #tpu.dimension_semantics<parallel>], iteration_bounds = array<i64: 1, 1>, scalar_prefetch = 0 : i64, scratch_operands = 0 : i64, tpu.core_type = #tpu.core_type<tc>, window_params = [{transform_indices = @transform_0, window_bounds = array<i64: 32, 1152>}, {transform_indices = @transform_1, window_bounds = array<i64: 1152, 256>}, {transform_indices = @transform_2, window_bounds = array<i64: 1, 256>}, {transform_indices = @transform_3, window_bounds = array<i64: 32, 256>}]} {
    %c0 = arith.constant 0 : index
    %c0_0 = arith.constant 0 : index
    %0 = vector.load %arg2[%c0, %c0_0] : memref<32x1152xbf16, #tpu.memory_space<vmem>>, vector<32x1152xbf16>
    %c0_1 = arith.constant 0 : index
    %c0_2 = arith.constant 0 : index
    %1 = vector.load %arg3[%c0_1, %c0_2] : memref<1152x256xbf16, #tpu.memory_space<vmem>>, vector<1152x256xbf16>
    %cst = arith.constant dense<0.000000e+00> : vector<32x256xf32>
    %2 = tpu.matmul %0, %1, %cst {dimension_numbers = #tpu.dot_dimension_numbers<[1], [0], [0], [1], [0, 0, 1, 1], [], []>} : vector<32x1152xbf16>, vector<1152x256xbf16>, vector<32x256xf32> -> vector<32x256xf32>
    %c0_3 = arith.constant 0 : index
    %c0_4 = arith.constant 0 : index
    %3 = vector.load %arg4[%c0_3, %c0_4] : memref<1x256xf32, #tpu.memory_space<vmem>>, vector<1x256xf32>
    %4 = vector.broadcast %3 : vector<1x256xf32> to vector<32x256xf32>
    %5 = arith.addf %2, %4 : vector<32x256xf32>
    %cst_5 = arith.constant 0.000000e+00 : f32
    %6 = vector.broadcast %cst_5 : f32 to vector<32x256xf32>
    %7 = arith.maximumf %5, %6 : vector<32x256xf32>
    %8 = arith.truncf %7 : vector<32x256xf32> to vector<32x256xbf16>
    %c0_6 = arith.constant 0 : index
    %c0_7 = arith.constant 0 : index
    %9 = vector.load %arg5[%c0_6, %c0_7] : memref<32x256xbf16, #tpu.memory_space<vmem>>, vector<32x256xbf16>
    tpu.vector_store %arg5[%c0_6, %c0_7], %8 {strides = array<i32>} : memref<32x256xbf16, #tpu.memory_space<vmem>>, vector<32x256xbf16>,
    return
  }
  func.func @transform_0(%arg0: i32, %arg1: i32) -> (i32, i32) {
    %c0_i32 = arith.constant 0 : i32
    %c0_i32_0 = arith.constant 0 : i32
    return %arg0, %c0_i32 : i32, i32
  }
  func.func @transform_1(%arg0: i32, %arg1: i32) -> (i32, i32) {
    %c0_i32 = arith.constant 0 : i32
    %c0_i32_0 = arith.constant 0 : i32
    return %c0_i32, %arg1 : i32, i32
  }
  func.func @transform_2(%arg0: i32, %arg1: i32) -> (i32, i32) {
    %c0_i32 = arith.constant 0 : i32
    %c0_i32_0 = arith.constant 0 : i32
    return %c0_i32, %arg1 : i32, i32
  }
  func.func @transform_3(%arg0: i32, %arg1: i32) -> (i32, i32) {
    %c0_i32 = arith.constant 0 : i32
    return %arg0, %arg1 : i32, i32
  }
}

module attributes {stable_mosaic.version = 11 : i64} {
  func.func @_conv4_pool_fc_kernel(%arg0: i32, %arg1: memref<8x2304xbf16, #tpu.memory_space<vmem>>, %arg2: memref<2304x512xbf16, #tpu.memory_space<vmem>>, %arg3: memref<1x512xf32, #tpu.memory_space<vmem>>, %arg4: memref<512x128xbf16, #tpu.memory_space<vmem>>, %arg5: memref<1x128xf32, #tpu.memory_space<vmem>>, %arg6: memref<8x128xf32, #tpu.memory_space<vmem>>) attributes {dimension_semantics = [#tpu.dimension_semantics<arbitrary>], iteration_bounds = array<i64: 1>, scalar_prefetch = 0 : i64, scratch_operands = 0 : i64, tpu.core_type = #tpu.core_type<tc>, window_params = [{pipeline_mode = #tpu.pipeline_mode<synchronous>, transform_indices = @transform_0, window_bounds = array<i64: 8, 2304>}, {pipeline_mode = #tpu.pipeline_mode<synchronous>, transform_indices = @transform_1, window_bounds = array<i64: 2304, 512>}, {pipeline_mode = #tpu.pipeline_mode<synchronous>, transform_indices = @transform_2, window_bounds = array<i64: 1, 512>}, {pipeline_mode = #tpu.pipeline_mode<synchronous>, transform_indices = @transform_3, window_bounds = array<i64: 512, 128>}, {pipeline_mode = #tpu.pipeline_mode<synchronous>, transform_indices = @transform_4, window_bounds = array<i64: 1, 128>}, {pipeline_mode = #tpu.pipeline_mode<synchronous>, transform_indices = @transform_5, window_bounds = array<i64: 8, 128>}]} {
    %c0 = arith.constant 0 : index
    %c0_0 = arith.constant 0 : index
    %0 = vector.load %arg1[%c0, %c0_0] : memref<8x2304xbf16, #tpu.memory_space<vmem>>, vector<8x2304xbf16>
    %c0_1 = arith.constant 0 : index
    %c0_2 = arith.constant 0 : index
    %1 = vector.load %arg2[%c0_1, %c0_2] : memref<2304x512xbf16, #tpu.memory_space<vmem>>, vector<2304x512xbf16>
    %cst = arith.constant dense<0.000000e+00> : vector<8x512xf32>
    %2 = tpu.matmul %0, %1, %cst {dimension_numbers = #tpu.dot_dimension_numbers<[1], [0], [0], [1], [0, 0, 1, 1], [], []>} : vector<8x2304xbf16>, vector<2304x512xbf16>, vector<8x512xf32> -> vector<8x512xf32>
    %c0_3 = arith.constant 0 : index
    %c0_4 = arith.constant 0 : index
    %3 = vector.load %arg3[%c0_3, %c0_4] : memref<1x512xf32, #tpu.memory_space<vmem>>, vector<1x512xf32>
    %4 = vector.broadcast %3 : vector<1x512xf32> to vector<8x512xf32>
    %5 = arith.addf %2, %4 : vector<8x512xf32>
    %cst_5 = arith.constant 0.000000e+00 : f32
    %6 = vector.broadcast %cst_5 : f32 to vector<8x512xf32>
    %7 = arith.maximumf %5, %6 : vector<8x512xf32>
    %8 = arith.truncf %7 : vector<8x512xf32> to vector<8x512xbf16>
    %c0_6 = arith.constant 0 : index
    %c0_7 = arith.constant 0 : index
    %9 = vector.load %arg4[%c0_6, %c0_7] : memref<512x128xbf16, #tpu.memory_space<vmem>>, vector<512x128xbf16>
    %cst_8 = arith.constant dense<0.000000e+00> : vector<8x128xf32>
    %10 = tpu.matmul %8, %9, %cst_8 {dimension_numbers = #tpu.dot_dimension_numbers<[1], [0], [0], [1], [0, 0, 1, 1], [], []>} : vector<8x512xbf16>, vector<512x128xbf16>, vector<8x128xf32> -> vector<8x128xf32>
    %c0_9 = arith.constant 0 : index
    %c0_10 = arith.constant 0 : index
    %11 = vector.load %arg5[%c0_9, %c0_10] : memref<1x128xf32, #tpu.memory_space<vmem>>, vector<1x128xf32>
    %12 = vector.broadcast %11 : vector<1x128xf32> to vector<8x128xf32>
    %13 = arith.addf %10, %12 : vector<8x128xf32>
    %c0_11 = arith.constant 0 : index
    %c0_12 = arith.constant 0 : index
    %14 = vector.load %arg6[%c0_11, %c0_12] : memref<8x128xf32, #tpu.memory_space<vmem>>, vector<8x128xf32>
    tpu.vector_store %arg6[%c0_11, %c0_12], %13 {strides = array<i32>} : memref<8x128xf32, #tpu.memory_space<vmem>>, vector<8x128xf32>,
    return
  }
  func.func @transform_0(%arg0: i32) -> (i32, i32) {
    %c0_i32 = arith.constant 0 : i32
    %c0_i32_0 = arith.constant 0 : i32
    %c0_i32_1 = arith.constant 0 : i32
    return %c0_i32, %c0_i32_0 : i32, i32
  }
  func.func @transform_1(%arg0: i32) -> (i32, i32) {
    %c0_i32 = arith.constant 0 : i32
    %c0_i32_0 = arith.constant 0 : i32
    %c0_i32_1 = arith.constant 0 : i32
    return %c0_i32, %c0_i32_0 : i32, i32
  }
  func.func @transform_2(%arg0: i32) -> (i32, i32) {
    %c0_i32 = arith.constant 0 : i32
    %c0_i32_0 = arith.constant 0 : i32
    %c0_i32_1 = arith.constant 0 : i32
    return %c0_i32, %c0_i32_0 : i32, i32
  }
  func.func @transform_3(%arg0: i32) -> (i32, i32) {
    %c0_i32 = arith.constant 0 : i32
    %c0_i32_0 = arith.constant 0 : i32
    %c0_i32_1 = arith.constant 0 : i32
    return %c0_i32, %c0_i32_0 : i32, i32
  }
  func.func @transform_4(%arg0: i32) -> (i32, i32) {
    %c0_i32 = arith.constant 0 : i32
    %c0_i32_0 = arith.constant 0 : i32
    %c0_i32_1 = arith.constant 0 : i32
    return %c0_i32, %c0_i32_0 : i32, i32
  }
  func.func @transform_5(%arg0: i32) -> (i32, i32) {
    %c0_i32 = arith.constant 0 : i32
    %c0_i32_0 = arith.constant 0 : i32
    %c0_i32_1 = arith.constant 0 : i32
    return %c0_i32, %c0_i32_0 : i32, i32
  }
}

</mosaic_0001>

<bundles_post_ra>
// kernel: conv_encoder_forward.5
= control target key start
LH: loop header
LB: loop body
LE: loop exit
PB: predicated region body
PF: predicated region fallthrough
CT: control target
= control target key end

     0   :  { %s3055_s12 = smov 0   ;;  %s3057_s13 = smov 0   ;;  %s3732_s0 = inlined_call_operand.vmem [shape: bf16[1952,27], index: 0, kind: input, shape index: {}]   ;;  %s3733_s1 = inlined_call_operand.vmem [shape: bf16[27,32], index: 1, kind: input, shape index: {}]   ;;  %s3734_s2 = inlined_call_operand.vmem [shape: f32[1,32], index: 2, kind: input, shape index: {}]   ;;  %s3735_s3 = inlined_call_operand.vmem [shape: bf16[1952,32], index: 3, kind: output, shape index: {}]  }
   0x1   :  { %s3059_s14 = smov 0  }
   0x2 LB: > { %s25_s15 = sadd.s32 1, %s3026_s13  ;;  %p2228_p0 = scmp.ge.s32.totalorder %s3030_s14, 1  ;;  %s3030_s14 = sphi %s3059_s14, %s13_s14   ;;  %s3026_s13 = sphi %s3057_s13, %s3737_s13   ;;  %s3022_s12 = sphi %s3055_s12, %s3736_s12  }
   0x3   : > { %p27_p1 = scmp.ge.s32.totalorder %s25_s15, 2  ;;  %p169_p2 = scmp.lt.s32.totalorder %s3030_s14, 3 }
   0x5   : > { %s3739_s15 = smov (%p27_p1, %s25_s15), 0  ;;  %p170_p3 = pnand %p2228_p0, %p169_p2 }
   0x6   : > { %v2944_v0 = vld [vmem:[%s3733_s1] sm:$0xff] (!%p170_p3)   ;;  %v3032_v1 = vmov (!%p170_p3), 0.0   ;;  %v2945_v2 = vld [vmem:[%s3733_s1 + $0x8] sm:$0x3f] (!%p170_p3)   ;;  %vm859_vm0 = vcmask (!%p170_p3), 1044480   ;;  %vm860_vm1 = vcmask (!%p170_p3), 1045504  }
   0x7   : > { %173 = sbr.rel (%p170_p3) target bundleno = 479 (0x1df), region = 32  ;;  %2665 = vmatprep.subr.bf16.mxu0 (!%p170_p3), %v3032_v1  ;;  %2913 = vmatprep.subr.bf16.mxu1 (!%p170_p3), %v3032_v1  ;;  %v3033_v3 = vmov (!%p170_p3), 65535   ;;  %vm3034_vm2 = vmmov (!%p170_p3), 0   ;;  %vm675_vm3 = vcmask (!%p170_p3), 220160   ;;  %v3314_v61 = vld [vmem:[%s3734_s2] ss:$0 sm:$0xff] (!%p170_p3) }
   0x8   : > { %2666 = vmatpush3.bf16.msra.mxu0 (!%p170_p3), %v2944_v0  ;;  %2915 = vmatpush3.bf16.msra.mxu1 (!%p170_p3), %v2944_v0  ;;  %s203_s20 = smul.u32 (!%p170_p3), 122, %s3022_s12  ;;  %v861_v4 = vsel (!%p170_p3), %vm859_vm0, 4294967295, %v3033_v3  ;;  %vm1997_vm4 = vcmask (!%p170_p3), 257024  }
   0x9   : > { %2667 = vmatprep.subr.bf16.mxu0 (!%p170_p3), %v3032_v1  ;;  %2669 = vmatprep.mubr.msk.bf16.mxu0 (!%p170_p3), %vm3034_vm2, %v3032_v1  ;;  %v862_v5 = vsel (!%p170_p3), %vm860_vm1, %v861_v4, 0 }
   0xa   : > { %p204_p4 = scmp.lt.s32.totalorder (!%p170_p3), %s203_s20, 243  ;;  %2914 = vmatprep.subr.bf16.mxu1 (!%p170_p3), %v3032_v1  ;;  %2793 = vmatprep.mubr.msk.bf16.mxu1 (!%p170_p3), %vm3034_vm2, %v3032_v1  ;;  %v864_v6 = vand.u32 (!%p170_p3), %v2945_v2, %v862_v5 }
   0xc   : > { %2668 = vmatpush3.bf16.msra.mxu0 (!%p170_p3), %v864_v6  ;;  %2916 = vmatpush3.bf16.msra.mxu1 (!%p170_p3), %v864_v6 }
   0xe   : > { %s3741_s20 = smov (!%p204_p4, %s203_s20), 243 }
   0xf   : > { %s2229_s21 = sshll.u32 %s3741_s20, 2 }
  0x10   : > { %s3098_s24 = scalar_lea.vmem %s3732_s0, %s2229_s21  ;;  %s3331_s29 = scalar_lea.vmem %s3735_s3, %s2229_s21 }
  0x11   : > { %v2946_v7 = vld [vmem:[%s3098_s24] sm:$0xff]   ;;  %v2947_v8 = vld [vmem:[%s3098_s24 + $0xf8] sm:$0xff]   ;;  %v2948_v9 = vld [vmem:[%s3098_s24 + $0x8] sm:$0xff]  }
  0x12   : > { %2670 = vmatmul.mubr.msk.bf16.vlgmr.msra.gmra.mrb[0].mxu0 %vm675_vm3, %v2946_v7  ;;  %2794 = vmatmul.mubr.msk.bf16.vlgmr.msra.gmra.mrb[0].mxu1 %vm675_vm3, %v2947_v8  ;;  %v2949_v10 = vld [vmem:[%s3098_s24 + $0x100] sm:$0xff]   ;;  %v2950_v11 = vld [vmem:[%s3098_s24 + $0x10] sm:$0xff]   ;;  %v2951_v12 = vld [vmem:[%s3098_s24 + $0x108] sm:$0xff]  }
  0x13   : > { %2673 = vmatprep.mubr.msk.bf16.mxu0 %vm3034_vm2, %v3032_v1  ;;  %2797 = vmatprep.mubr.msk.bf16.mxu1 %vm3034_vm2, %v3032_v1  ;;  %v2952_v13 = vld [vmem:[%s3098_s24 + $0x18] sm:$0xff]   ;;  %v2953_v14 = vld [vmem:[%s3098_s24 + $0x110] sm:$0xff]   ;;  %v2954_v15 = vld [vmem:[%s3098_s24 + $0x20] sm:$0xff]  }
  0x14   : > { %v2955_v16 = vld [vmem:[%s3098_s24 + $0x118] sm:$0xff]   ;;  %v2956_v17 = vld [vmem:[%s3098_s24 + $0x28] sm:$0xff]   ;;  %v2957_v18 = vld [vmem:[%s3098_s24 + $0x120] sm:$0xff]  }
  0x15   : > { %v2958_v19 = vld [vmem:[%s3098_s24 + $0x30] sm:$0xff]   ;;  %v2959_v20 = vld [vmem:[%s3098_s24 + $0x128] sm:$0xff]   ;;  %v2960_v21 = vld [vmem:[%s3098_s24 + $0x38] sm:$0xff]  }
  0x16   : > { %v2961_v22 = vld [vmem:[%s3098_s24 + $0x130] sm:$0xff]   ;;  %v2962_v23 = vld [vmem:[%s3098_s24 + $0x40] sm:$0xff]   ;;  %v2963_v24 = vld [vmem:[%s3098_s24 + $0x138] sm:$0xff]  }
  0x17   : > { %v2964_v25 = vld [vmem:[%s3098_s24 + $0x48] sm:$0xff]   ;;  %v2965_v26 = vld [vmem:[%s3098_s24 + $0x140] sm:$0xff]   ;;  %v2966_v27 = vld [vmem:[%s3098_s24 + $0x50] sm:$0xff]  }
  0x18   : > { %v2967_v28 = vld [vmem:[%s3098_s24 + $0x148] sm:$0xff]   ;;  %v2968_v29 = vld [vmem:[%s3098_s24 + $0x58] sm:$0xff]   ;;  %v2969_v30 = vld [vmem:[%s3098_s24 + $0x150] sm:$0xff]  }
  0x19   : > { %v2970_v31 = vld [vmem:[%s3098_s24 + $0x60] sm:$0xff]   ;;  %v2971_v32 = vld [vmem:[%s3098_s24 + $0x158] sm:$0xff]   ;;  %v2972_v33 = vld [vmem:[%s3098_s24 + $0x68] sm:$0xff]  }
  0x1a   : > { %2674 = vmatmul.mubr.msk.bf16.gmra.mrb[4].mxu0 %vm675_vm3, %v2948_v9  ;;  %2798 = vmatmul.mubr.msk.bf16.gmra.mrb[4].mxu1 %vm675_vm3, %v2949_v10  ;;  %v2973_v34 = vld [vmem:[%s3098_s24 + $0x160] sm:$0xff]   ;;  %v2974_v35 = vld [vmem:[%s3098_s24 + $0x70] sm:$0xff]   ;;  %v2975_v36 = vld [vmem:[%s3098_s24 + $0x168] sm:$0xff]  }
  0x1b   : > { %2677 = vmatprep.mubr.msk.bf16.mxu0 %vm3034_vm2, %v3032_v1  ;;  %2801 = vmatprep.mubr.msk.bf16.mxu1 %vm3034_vm2, %v3032_v1  ;;  %v2976_v37 = vld [vmem:[%s3098_s24 + $0x78] sm:$0xff]   ;;  %v2977_v38 = vld [vmem:[%s3098_s24 + $0x170] sm:$0xff]   ;;  %v2978_v39 = vld [vmem:[%s3098_s24 + $0x80] sm:$0xff]  }
  0x1c   : > { %v2979_v40 = vld [vmem:[%s3098_s24 + $0x178] sm:$0xff]   ;;  %v2980_v41 = vld [vmem:[%s3098_s24 + $0x88] sm:$0xff]   ;;  %v2981_v42 = vld [vmem:[%s3098_s24 + $0x180] sm:$0xff]  }
  0x1d   : > { %v2982_v43 = vld [vmem:[%s3098_s24 + $0x90] sm:$0xff]   ;;  %v2983_v44 = vld [vmem:[%s3098_s24 + $0x188] sm:$0xff]   ;;  %v2984_v45 = vld [vmem:[%s3098_s24 + $0x98] sm:$0xff]  }
  0x1e   : > { %v2985_v46 = vld [vmem:[%s3098_s24 + $0x190] sm:$0xff]   ;;  %v2986_v47 = vld [vmem:[%s3098_s24 + $0xa0] sm:$0xff]   ;;  %v2987_v48 = vld [vmem:[%s3098_s24 + $0x198] sm:$0xff]  }
  0x1f   : > { %v2988_v49 = vld [vmem:[%s3098_s24 + $0xa8] sm:$0xff]   ;;  %v2989_v50 = vld [vmem:[%s3098_s24 + $0x1a0] sm:$0xff]   ;;  %v2990_v51 = vld [vmem:[%s3098_s24 + $0xb0] sm:$0xff]  }
  0x20   : > { %v2991_v52 = vld [vmem:[%s3098_s24 + $0x1a8] sm:$0xff]   ;;  %v2992_v53 = vld [vmem:[%s3098_s24 + $0xb8] sm:$0xff]   ;;  %v2993_v54 = vld [vmem:[%s3098_s24 + $0x1b0] sm:$0xff]  }
  0x21   : > { %v2994_v55 = vld [vmem:[%s3098_s24 + $0xc0] sm:$0xff]   ;;  %v2995_v56 = vld [vmem:[%s3098_s24 + $0x1b8] sm:$0xff]   ;;  %v2996_v57 = vld [vmem:[%s3098_s24 + $0xc8] sm:$0xff]  }
  0x22   : > { %2678 = vmatmul.mubr.msk.bf16.gmra.mrb[8].mxu0 %vm675_vm3, %v2950_v11  ;;  %2802 = vmatmul.mubr.msk.bf16.gmra.mrb[8].mxu1 %vm675_vm3, %v2951_v12  ;;  %v2997_v58 = vld [vmem:[%s3098_s24 + $0x1c0] sm:$0xff]   ;;  %v2998_v59 = vld [vmem:[%s3098_s24 + $0xd0] sm:$0xff]   ;;  %v2999_v60 = vld [vmem:[%s3098_s24 + $0x1c8] sm:$0xff]  }
  0x23   : > { %2681 = vmatprep.mubr.msk.bf16.mxu0 %vm3034_vm2, %v3032_v1  ;;  %2805 = vmatprep.mubr.msk.bf16.mxu1 %vm3034_vm2, %v3032_v1  ;;  %v3000_v2 = vld [vmem:[%s3098_s24 + $0xd8] sm:$0xff]   ;;  %v3001_v7 = vld [vmem:[%s3098_s24 + $0x1d0] sm:$0xff]  }
  0x2a   : > { %2682 = vmatmul.mubr.msk.bf16.gmra.mrb[12].mxu0 %vm675_vm3, %v2952_v13  ;;  %2806 = vmatmul.mubr.msk.bf16.gmra.mrb[12].mxu1 %vm675_vm3, %v2953_v14 }
  0x2b   : > { %2685 = vmatprep.mubr.msk.bf16.mxu0 %vm3034_vm2, %v3032_v1  ;;  %2809 = vmatprep.mubr.msk.bf16.mxu1 %vm3034_vm2, %v3032_v1 }
  0x32   : > { %2686 = vmatmul.mubr.msk.bf16.gmra.mrb[16].mxu0 %vm675_vm3, %v2954_v15  ;;  %2810 = vmatmul.mubr.msk.bf16.gmra.mrb[16].mxu1 %vm675_vm3, %v2955_v16 }
  0x33   : > { %2689 = vmatprep.mubr.msk.bf16.mxu0 %vm3034_vm2, %v3032_v1  ;;  %2813 = vmatprep.mubr.msk.bf16.mxu1 %vm3034_vm2, %v3032_v1 }
  0x3a   : > { %2690 = vmatmul.mubr.msk.bf16.gmra.mrb[20].mxu0 %vm675_vm3, %v2956_v17  ;;  %2814 = vmatmul.mubr.msk.bf16.gmra.mrb[20].mxu1 %vm675_vm3, %v2957_v18 }
  0x3b   : > { %2693 = vmatprep.mubr.msk.bf16.mxu0 %vm3034_vm2, %v3032_v1  ;;  %2817 = vmatprep.mubr.msk.bf16.mxu1 %vm3034_vm2, %v3032_v1 }
  0x42   : > { %2694 = vmatmul.mubr.msk.bf16.gmra.mrb[24].mxu0 %vm675_vm3, %v2958_v19  ;;  %2818 = vmatmul.mubr.msk.bf16.gmra.mrb[24].mxu1 %vm675_vm3, %v2959_v20 }
  0x43   : > { %2697 = vmatprep.mubr.msk.bf16.mxu0 %vm3034_vm2, %v3032_v1  ;;  %2821 = vmatprep.mubr.msk.bf16.mxu1 %vm3034_vm2, %v3032_v1 }
  0x4a   : > { %2698 = vmatmul.mubr.msk.bf16.gmra.mrb[28].mxu0 %vm675_vm3, %v2960_v21  ;;  %2822 = vmatmul.mubr.msk.bf16.gmra.mrb[28].mxu1 %vm675_vm3, %v2961_v22 }
  0x4b   : > { %2701 = vmatprep.mubr.msk.bf16.mxu0 %vm3034_vm2, %v3032_v1  ;;  %2825 = vmatprep.mubr.msk.bf16.mxu1 %vm3034_vm2, %v3032_v1 }
  0x52   : > { %2702 = vmatmul.mubr.msk.bf16.gmra.mrb[32].mxu0 %vm675_vm3, %v2962_v23  ;;  %2826 = vmatmul.mubr.msk.bf16.gmra.mrb[32].mxu1 %vm675_vm3, %v2963_v24  ;;  %v3002_v24 = vld [vmem:[%s3098_s24 + $0xe0] sm:$0xff]  }
  0x53   : > { %2705 = vmatprep.mubr.msk.bf16.mxu0 %vm3034_vm2, %v3032_v1  ;;  %2829 = vmatprep.mubr.msk.bf16.mxu1 %vm3034_vm2, %v3032_v1 }
  0x5a   : > { %2706 = vmatmul.mubr.msk.bf16.gmra.mrb[36].mxu0 %vm675_vm3, %v2964_v25  ;;  %2830 = vmatmul.mubr.msk.bf16.gmra.mrb[36].mxu1 %vm675_vm3, %v2965_v26 }
  0x5b   : > { %2709 = vmatprep.mubr.msk.bf16.mxu0 %vm3034_vm2, %v3032_v1  ;;  %2833 = vmatprep.mubr.msk.bf16.mxu1 %vm3034_vm2, %v3032_v1 }
  0x62   : > { %2710 = vmatmul.mubr.msk.bf16.gmra.mrb[40].mxu0 %vm675_vm3, %v2966_v27  ;;  %2834 = vmatmul.mubr.msk.bf16.gmra.mrb[40].mxu1 %vm675_vm3, %v2967_v28 }
  0x63   : > { %2713 = vmatprep.mubr.msk.bf16.mxu0 %vm3034_vm2, %v3032_v1  ;;  %2837 = vmatprep.mubr.msk.bf16.mxu1 %vm3034_vm2, %v3032_v1 }
  0x6a   : > { %2714 = vmatmul.mubr.msk.bf16.gmra.mrb[44].mxu0 %vm675_vm3, %v2968_v29  ;;  %2838 = vmatmul.mubr.msk.bf16.gmra.mrb[44].mxu1 %vm675_vm3, %v2969_v30  ;;  %v3003_v29 = vld [vmem:[%s3098_s24 + $0x1d8] sm:$0xff]  }
  0x6b   : > { %2717 = vmatprep.mubr.msk.bf16.mxu0 %vm3034_vm2, %v3032_v1  ;;  %2841 = vmatprep.mubr.msk.bf16.mxu1 %vm3034_vm2, %v3032_v1 }
  0x72   : > { %2718 = vmatmul.mubr.msk.bf16.gmra.mrb[48].mxu0 %vm675_vm3, %v2970_v31  ;;  %2842 = vmatmul.mubr.msk.bf16.gmra.mrb[48].mxu1 %vm675_vm3, %v2971_v32 }
  0x73   : > { %2721 = vmatprep.mubr.msk.bf16.mxu0 %vm3034_vm2, %v3032_v1  ;;  %2845 = vmatprep.mubr.msk.bf16.mxu1 %vm3034_vm2, %v3032_v1 }
  0x7a   : > { %2722 = vmatmul.mubr.msk.bf16.gmra.mrb[52].mxu0 %vm675_vm3, %v2972_v33  ;;  %2846 = vmatmul.mubr.msk.bf16.gmra.mrb[52].mxu1 %vm675_vm3, %v2973_v34 }
  0x7b   : > { %2725 = vmatprep.mubr.msk.bf16.mxu0 %vm3034_vm2, %v3032_v1  ;;  %2849 = vmatprep.mubr.msk.bf16.mxu1 %vm3034_vm2, %v3032_v1 }
  0x82   : > { %2726 = vmatmul.mubr.msk.bf16.gmra.mrb[56].mxu0 %vm675_vm3, %v2974_v35  ;;  %2850 = vmatmul.mubr.msk.bf16.gmra.mrb[56].mxu1 %vm675_vm3, %v2975_v36 }
  0x83   : > { %2729 = vmatprep.mubr.msk.bf16.mxu0 %vm3034_vm2, %v3032_v1  ;;  %2853 = vmatprep.mubr.msk.bf16.mxu1 %vm3034_vm2, %v3032_v1 }
  0x8a   : > { %2730 = vmatmul.mubr.msk.bf16.gmra.mrb[60].mxu0 %vm675_vm3, %v2976_v37  ;;  %2854 = vmatmul.mubr.msk.bf16.gmra.mrb[60].mxu1 %vm675_vm3, %v2977_v38 }
  0x8b   : > { %2733 = vmatprep.mubr.msk.bf16.mxu0 %vm3034_vm2, %v3032_v1  ;;  %2857 = vmatprep.mubr.msk.bf16.mxu1 %vm3034_vm2, %v3032_v1 }
  0x92   : > { %2734 = vmatmul.mubr.msk.bf16.gmra.mrb[64].mxu0 %vm675_vm3, %v2978_v39  ;;  %2858 = vmatmul.mubr.msk.bf16.gmra.mrb[64].mxu1 %vm675_vm3, %v2979_v40 }
  0x93   : > { %2737 = vmatprep.mubr.msk.bf16.mxu0 %vm3034_vm2, %v3032_v1  ;;  %2861 = vmatprep.mubr.msk.bf16.mxu1 %vm3034_vm2, %v3032_v1 }
  0x9a   : > { %2738 = vmatmul.mubr.msk.bf16.gmra.mrb[68].mxu0 %vm675_vm3, %v2980_v41  ;;  %2862 = vmatmul.mubr.msk.bf16.gmra.mrb[68].mxu1 %vm675_vm3, %v2981_v42 }
  0x9b   : > { %2741 = vmatprep.mubr.msk.bf16.mxu0 %vm3034_vm2, %v3032_v1  ;;  %2865 = vmatprep.mubr.msk.bf16.mxu1 %vm3034_vm2, %v3032_v1 }
  0xa2   : > { %2742 = vmatmul.mubr.msk.bf16.gmra.mrb[72].mxu0 %vm675_vm3, %v2982_v43  ;;  %2866 = vmatmul.mubr.msk.bf16.gmra.mrb[72].mxu1 %vm675_vm3, %v2983_v44 }
  0xa3   : > { %2745 = vmatprep.mubr.msk.bf16.mxu0 %vm3034_vm2, %v3032_v1  ;;  %2869 = vmatprep.mubr.msk.bf16.mxu1 %vm3034_vm2, %v3032_v1 }
  0xaa   : > { %2746 = vmatmul.mubr.msk.bf16.gmra.mrb[76].mxu0 %vm675_vm3, %v2984_v45  ;;  %2870 = vmatmul.mubr.msk.bf16.gmra.mrb[76].mxu1 %vm675_vm3, %v2985_v46  ;;  %v3004_v46 = vld [vmem:[%s3098_s24 + $0xe8] sm:$0xff]  }
  0xab   : > { %2749 = vmatprep.mubr.msk.bf16.mxu0 %vm3034_vm2, %v3032_v1  ;;  %2873 = vmatprep.mubr.msk.bf16.mxu1 %vm3034_vm2, %v3032_v1 }
  0xb2   : > { %2750 = vmatmul.mubr.msk.bf16.gmra.mrb[80].mxu0 %vm675_vm3, %v2986_v47  ;;  %2874 = vmatmul.mubr.msk.bf16.gmra.mrb[80].mxu1 %vm675_vm3, %v2987_v48 }
  0xb3   : > { %2753 = vmatprep.mubr.msk.bf16.mxu0 %vm3034_vm2, %v3032_v1  ;;  %2877 = vmatprep.mubr.msk.bf16.mxu1 %vm3034_vm2, %v3032_v1 }
  0xba   : > { %2754 = vmatmul.mubr.msk.bf16.gmra.mrb[84].mxu0 %vm675_vm3, %v2988_v49  ;;  %2878 = vmatmul.mubr.msk.bf16.gmra.mrb[84].mxu1 %vm675_vm3, %v2989_v50 }
  0xbb   : > { %2757 = vmatprep.mubr.msk.bf16.mxu0 %vm3034_vm2, %v3032_v1  ;;  %2881 = vmatprep.mubr.msk.bf16.mxu1 %vm3034_vm2, %v3032_v1 }
  0xc2   : > { %2758 = vmatmul.mubr.msk.bf16.gmra.mrb[88].mxu0 %vm675_vm3, %v2990_v51  ;;  %2882 = vmatmul.mubr.msk.bf16.gmra.mrb[88].mxu1 %vm675_vm3, %v2991_v52  ;;  %v3005_v51 = vld [vmem:[%s3098_s24 + $0x1e0] sm:$0xff]  }
  0xc3   : > { %2761 = vmatprep.mubr.msk.bf16.mxu0 %vm3034_vm2, %v3032_v1  ;;  %2885 = vmatprep.mubr.msk.bf16.mxu1 %vm3034_vm2, %v3032_v1 }
  0xca   : > { %2762 = vmatmul.mubr.msk.bf16.gmra.mrb[92].mxu0 %vm675_vm3, %v2992_v53  ;;  %2886 = vmatmul.mubr.msk.bf16.gmra.mrb[92].mxu1 %vm675_vm3, %v2993_v54 }
  0xcb   : > { %2765 = vmatprep.mubr.msk.bf16.mxu0 %vm3034_vm2, %v3032_v1  ;;  %2889 = vmatprep.mubr.msk.bf16.mxu1 %vm3034_vm2, %v3032_v1 }
  0xd2   : > { %2766 = vmatmul.mubr.msk.bf16.gmra.mrb[96].mxu0 %vm675_vm3, %v2994_v55  ;;  %2890 = vmatmul.mubr.msk.bf16.gmra.mrb[96].mxu1 %vm675_vm3, %v2995_v56 }
  0xd3   : > { %2769 = vmatprep.mubr.msk.bf16.mxu0 %vm3034_vm2, %v3032_v1  ;;  %2893 = vmatprep.mubr.msk.bf16.mxu1 %vm3034_vm2, %v3032_v1 }
  0xda   : > { %2770 = vmatmul.mubr.msk.bf16.gmra.mrb[100].mxu0 %vm675_vm3, %v2996_v57  ;;  %2894 = vmatmul.mubr.msk.bf16.gmra.mrb[100].mxu1 %vm675_vm3, %v2997_v58 }
  0xdb   : > { %2773 = vmatprep.mubr.msk.bf16.mxu0 %vm3034_vm2, %v3032_v1  ;;  %2897 = vmatprep.mubr.msk.bf16.mxu1 %vm3034_vm2, %v3032_v1 }
  0xe2   : > { %2774 = vmatmul.mubr.msk.bf16.gmra.mrb[104].mxu0 %vm675_vm3, %v2998_v59  ;;  %2898 = vmatmul.mubr.msk.bf16.gmra.mrb[104].mxu1 %vm675_vm3, %v2999_v60 }
  0xe3   : > { %2777 = vmatprep.mubr.msk.bf16.mxu0 %vm3034_vm2, %v3032_v1  ;;  %2901 = vmatprep.mubr.msk.bf16.mxu1 %vm3034_vm2, %v3032_v1 }
  0xe5   : > { %v900_v62 = vpop.f32.mrb[0].mxu0  ;;  %v1148_v3 = vpop.f32.mrb[0].mxu1 }
  0xe6   : > { %v901_v63 = vadd.f32 %v3314_v61, %v900_v62  ;;  %v2671_v0 = vpop.f32.mrb[1].mxu0  ;;  %v1149_v5 = vadd.f32 %v3314_v61, %v1148_v3  ;;  %v2795_v6 = vpop.f32.mrb[1].mxu1 }
  0xe7   : > { %v903_v4 = vpop.f32.mrb[2].mxu0  ;;  %v1151_v11 = vpop.f32.mrb[2].mxu1  ;;  %v3006_v6 = vld [vmem:[%s3098_s24 + $0xf0] sm:$0xff]  }
  0xe8   : > { %v1387_v8 = vmax.f32 %v901_v63, 0.0  ;;  %v904_v9 = vadd.f32 %v3314_v61, %v903_v4  ;;  %v2672_v10 = vpop.f32.mrb[3].mxu0  ;;  %v1449_v12 = vmax.f32 %v1149_v5, 0.0  ;;  %v1152_v13 = vadd.f32 %v3314_v61, %v1151_v11  ;;  %v2796_v14 = vpop.f32.mrb[3].mxu1 }
  0xea   : > { %v2480_v15 = vpack.c.bf16 %v1387_v8, %v1387_v8  ;;  %v1388_v16 = vmax.f32 %v904_v9, 0.0  ;;  %2778 = vmatmul.mubr.msk.bf16.gmra.mrb[108].mxu0 %vm675_vm3, %v3000_v2  ;;  %v2542_v17 = vpack.c.bf16 %v1449_v12, %v1449_v12  ;;  %v1450_v18 = vmax.f32 %v1152_v13, 0.0  ;;  %2902 = vmatmul.mubr.msk.bf16.gmra.mrb[108].mxu1 %vm675_vm3, %v3001_v7 }
  0xeb   : > { %2781 = vmatprep.mubr.msk.bf16.mxu0 %vm3034_vm2, %v3032_v1  ;;  %2905 = vmatprep.mubr.msk.bf16.mxu1 %vm3034_vm2, %v3032_v1 }
  0xec   : > { %1998 = vst.msk [vmem:[%s3331_s29] sm:$0xf] %vm1997_vm4, %v2480_v15  ;;  %v2481_v19 = vpack.c.bf16 %v1388_v16, %v1388_v16  ;;  %2060 = vst.msk [vmem:[%s3331_s29 + $0xf8] sm:$0xf] %vm1997_vm4, %v2542_v17  ;;  %v2543_v20 = vpack.c.bf16 %v1450_v18, %v1450_v18 }
  0xed   : > { %v908_v21 = vpop.f32.mrb[4].mxu0  ;;  %v1156_v25 = vpop.f32.mrb[4].mxu1 }
  0xee   : > { %1999 = vst.msk [vmem:[%s3331_s29 + $0x4] sm:$0xf] %vm1997_vm4, %v2481_v19  ;;  %v909_v22 = vadd.f32 %v3314_v61, %v908_v21  ;;  %v2675_v23 = vpop.f32.mrb[5].mxu0  ;;  %2061 = vst.msk [vmem:[%s3331_s29 + $0xfc] sm:$0xf] %vm1997_vm4, %v2543_v20  ;;  %v1157_v27 = vadd.f32 %v3314_v61, %v1156_v25  ;;  %v2799_v28 = vpop.f32.mrb[5].mxu1 }
  0xef   : > { %v911_v26 = vpop.f32.mrb[6].mxu0  ;;  %v1159_v33 = vpop.f32.mrb[6].mxu1 }
  0xf0   : > { %v1389_v30 = vmax.f32 %v909_v22, 0.0  ;;  %v912_v31 = vadd.f32 %v3314_v61, %v911_v26  ;;  %v2676_v32 = vpop.f32.mrb[7].mxu0  ;;  %v1451_v34 = vmax.f32 %v1157_v27, 0.0  ;;  %v1160_v35 = vadd.f32 %v3314_v61, %v1159_v33  ;;  %v2800_v36 = vpop.f32.mrb[7].mxu1 }
  0xf2   : > { %v2482_v37 = vpack.c.bf16 %v1389_v30, %v1389_v30  ;;  %v1390_v38 = vmax.f32 %v912_v31, 0.0  ;;  %2782 = vmatmul.mubr.msk.bf16.gmra.mrb[112].mxu0 %vm675_vm3, %v3002_v24  ;;  %v2544_v39 = vpack.c.bf16 %v1451_v34, %v1451_v34  ;;  %v1452_v40 = vmax.f32 %v1160_v35, 0.0  ;;  %2906 = vmatmul.mubr.msk.bf16.gmra.mrb[112].mxu1 %vm675_vm3, %v3003_v29 }
  0xf3   : > { %2785 = vmatprep.mubr.msk.bf16.mxu0 %vm3034_vm2, %v3032_v1  ;;  %2909 = vmatprep.mubr.msk.bf16.mxu1 %vm3034_vm2, %v3032_v1 }
  0xf4   : > { %2000 = vst.msk [vmem:[%s3331_s29 + $0x8] sm:$0xf] %vm1997_vm4, %v2482_v37  ;;  %v2483_v41 = vpack.c.bf16 %v1390_v38, %v1390_v38  ;;  %2062 = vst.msk [vmem:[%s3331_s29 + $0x100] sm:$0xf] %vm1997_vm4, %v2544_v39  ;;  %v2545_v42 = vpack.c.bf16 %v1452_v40, %v1452_v40 }
  0xf5   : > { %v916_v43 = vpop.f32.mrb[8].mxu0  ;;  %v1164_v47 = vpop.f32.mrb[8].mxu1 }
  0xf6   : > { %2001 = vst.msk [vmem:[%s3331_s29 + $0xc] sm:$0xf] %vm1997_vm4, %v2483_v41  ;;  %v917_v44 = vadd.f32 %v3314_v61, %v916_v43  ;;  %v2679_v45 = vpop.f32.mrb[9].mxu0  ;;  %2063 = vst.msk [vmem:[%s3331_s29 + $0x104] sm:$0xf] %vm1997_vm4, %v2545_v42  ;;  %v1165_v49 = vadd.f32 %v3314_v61, %v1164_v47  ;;  %v2803_v50 = vpop.f32.mrb[9].mxu1 }
  0xf7   : > { %v919_v48 = vpop.f32.mrb[10].mxu0  ;;  %v1167_v55 = vpop.f32.mrb[10].mxu1 }
  0xf8   : > { %v1391_v52 = vmax.f32 %v917_v44, 0.0  ;;  %v920_v53 = vadd.f32 %v3314_v61, %v919_v48  ;;  %v2680_v54 = vpop.f32.mrb[11].mxu0  ;;  %v1453_v56 = vmax.f32 %v1165_v49, 0.0  ;;  %v1168_v57 = vadd.f32 %v3314_v61, %v1167_v55  ;;  %v2804_v58 = vpop.f32.mrb[11].mxu1 }
  0xfa   : > { %v2484_v59 = vpack.c.bf16 %v1391_v52, %v1391_v52  ;;  %v1392_v60 = vmax.f32 %v920_v53, 0.0  ;;  %2786 = vmatmul.mubr.msk.bf16.gmra.mrb[116].mxu0 %vm675_vm3, %v3004_v46  ;;  %v2546_v62 = vpack.c.bf16 %v1453_v56, %v1453_v56  ;;  %v1454_v63 = vmax.f32 %v1168_v57, 0.0  ;;  %2910 = vmatmul.mubr.msk.bf16.gmra.mrb[116].mxu1 %vm675_vm3, %v3005_v51 }
  0xfb   : > { %2789 = vmatprep.mubr.msk.bf16.mxu0 %vm3034_vm2, %v3032_v1 }
  0xfc   : > { %2002 = vst.msk [vmem:[%s3331_s29 + $0x10] sm:$0xf] %vm1997_vm4, %v2484_v59  ;;  %v2485_v0 = vpack.c.bf16 %v1392_v60, %v1392_v60  ;;  %2064 = vst.msk [vmem:[%s3331_s29 + $0x108] sm:$0xf] %vm1997_vm4, %v2546_v62  ;;  %v2547_v2 = vpack.c.bf16 %v1454_v63, %v1454_v63 }
  0xfd   : > { %v924_v3 = vpop.f32.mrb[12].mxu0  ;;  %v1172_v7 = vpop.f32.mrb[12].mxu1 }
  0xfe   : > { %2003 = vst.msk [vmem:[%s3331_s29 + $0x14] sm:$0xf] %vm1997_vm4, %v2485_v0  ;;  %v925_v4 = vadd.f32 %v3314_v61, %v924_v3  ;;  %v2683_v5 = vpop.f32.mrb[13].mxu0  ;;  %2065 = vst.msk [vmem:[%s3331_s29 + $0x10c] sm:$0xf] %vm1997_vm4, %v2547_v2  ;;  %v1173_v1 = vadd.f32 %v3314_v61, %v1172_v7  ;;  %v2807_v9 = vpop.f32.mrb[13].mxu1 }
  0xff   : > { %v927_v8 = vpop.f32.mrb[14].mxu0  ;;  %v1175_v13 = vpop.f32.mrb[14].mxu1 }
 0x100   : > { %v1393_v10 = vmax.f32 %v925_v4, 0.0  ;;  %v928_v11 = vadd.f32 %v3314_v61, %v927_v8  ;;  %v2684_v12 = vpop.f32.mrb[15].mxu0  ;;  %v1455_v14 = vmax.f32 %v1173_v1, 0.0  ;;  %v1176_v15 = vadd.f32 %v3314_v61, %v1175_v13  ;;  %v2808_v16 = vpop.f32.mrb[15].mxu1 }
 0x102   : > { %v2486_v17 = vpack.c.bf16 %v1393_v10, %v1393_v10  ;;  %v1394_v18 = vmax.f32 %v928_v11, 0.0  ;;  %2790 = vmatmul.mubr.msk.bf16.gmra.mrb[120].mxu0 %vm675_vm3, %v3006_v6  ;;  %v2548_v19 = vpack.c.bf16 %v1455_v14, %v1455_v14  ;;  %v1456_v20 = vmax.f32 %v1176_v15, 0.0 }
 0x104   : > { %2004 = vst.msk [vmem:[%s3331_s29 + $0x18] sm:$0xf] %vm1997_vm4, %v2486_v17  ;;  %v2487_v21 = vpack.c.bf16 %v1394_v18, %v1394_v18  ;;  %2066 = vst.msk [vmem:[%s3331_s29 + $0x110] sm:$0xf] %vm1997_vm4, %v2548_v19  ;;  %v2549_v22 = vpack.c.bf16 %v1456_v20, %v1456_v20 }
 0x105   : > { %v932_v23 = vpop.f32.mrb[16].mxu0  ;;  %v1180_v26 = vpop.f32.mrb[16].mxu1 }
 0x106   : > { %2005 = vst.msk [vmem:[%s3331_s29 + $0x1c] sm:$0xf] %vm1997_vm4, %v2487_v21  ;;  %v933_v24 = vadd.f32 %v3314_v61, %v932_v23  ;;  %v2687_v25 = vpop.f32.mrb[17].mxu0  ;;  %2067 = vst.msk [vmem:[%s3331_s29 + $0x114] sm:$0xf] %vm1997_vm4, %v2549_v22  ;;  %v1181_v28 = vadd.f32 %v3314_v61, %v1180_v26  ;;  %v2811_v29 = vpop.f32.mrb[17].mxu1 }
 0x107   : > { %v935_v27 = vpop.f32.mrb[18].mxu0  ;;  %v1183_v33 = vpop.f32.mrb[18].mxu1 }
 0x108   : > { %v1395_v30 = vmax.f32 %v933_v24, 0.0  ;;  %v936_v31 = vadd.f32 %v3314_v61, %v935_v27  ;;  %v2688_v32 = vpop.f32.mrb[19].mxu0  ;;  %v1457_v34 = vmax.f32 %v1181_v28, 0.0  ;;  %v1184_v35 = vadd.f32 %v3314_v61, %v1183_v33  ;;  %v2812_v36 = vpop.f32.mrb[19].mxu1 }
 0x10a   : > { %v2488_v37 = vpack.c.bf16 %v1395_v30, %v1395_v30  ;;  %v1396_v38 = vmax.f32 %v936_v31, 0.0  ;;  %v2550_v39 = vpack.c.bf16 %v1457_v34, %v1457_v34  ;;  %v1458_v40 = vmax.f32 %v1184_v35, 0.0 }
 0x10c   : > { %2006 = vst.msk [vmem:[%s3331_s29 + $0x20] sm:$0xf] %vm1997_vm4, %v2488_v37  ;;  %v2489_v41 = vpack.c.bf16 %v1396_v38, %v1396_v38  ;;  %2068 = vst.msk [vmem:[%s3331_s29 + $0x118] sm:$0xf] %vm1997_vm4, %v2550_v39  ;;  %v2551_v42 = vpack.c.bf16 %v1458_v40, %v1458_v40 }
 0x10d   : > { %v940_v43 = vpop.f32.mrb[20].mxu0  ;;  %v1188_v46 = vpop.f32.mrb[20].mxu1 }
 0x10e   : > { %2007 = vst.msk [vmem:[%s3331_s29 + $0x24] sm:$0xf] %vm1997_vm4, %v2489_v41  ;;  %v941_v44 = vadd.f32 %v3314_v61, %v940_v43  ;;  %v2691_v45 = vpop.f32.mrb[21].mxu0  ;;  %2069 = vst.msk [vmem:[%s3331_s29 + $0x11c] sm:$0xf] %vm1997_vm4, %v2551_v42  ;;  %v1189_v48 = vadd.f32 %v3314_v61, %v1188_v46  ;;  %v2815_v49 = vpop.f32.mrb[21].mxu1 }
 0x10f   : > { %v943_v47 = vpop.f32.mrb[22].mxu0  ;;  %v1191_v53 = vpop.f32.mrb[22].mxu1 }
 0x110   : > { %v1397_v50 = vmax.f32 %v941_v44, 0.0  ;;  %v944_v51 = vadd.f32 %v3314_v61, %v943_v47  ;;  %v2692_v52 = vpop.f32.mrb[23].mxu0  ;;  %v1459_v54 = vmax.f32 %v1189_v48, 0.0  ;;  %v1192_v55 = vadd.f32 %v3314_v61, %v1191_v53  ;;  %v2816_v56 = vpop.f32.mrb[23].mxu1 }
 0x112   : > { %v2490_v57 = vpack.c.bf16 %v1397_v50, %v1397_v50  ;;  %v1398_v58 = vmax.f32 %v944_v51, 0.0  ;;  %v2552_v59 = vpack.c.bf16 %v1459_v54, %v1459_v54  ;;  %v1460_v60 = vmax.f32 %v1192_v55, 0.0 }
 0x114   : > { %2008 = vst.msk [vmem:[%s3331_s29 + $0x28] sm:$0xf] %vm1997_vm4, %v2490_v57  ;;  %v2491_v62 = vpack.c.bf16 %v1398_v58, %v1398_v58  ;;  %2070 = vst.msk [vmem:[%s3331_s29 + $0x120] sm:$0xf] %vm1997_vm4, %v2552_v59  ;;  %v2553_v63 = vpack.c.bf16 %v1460_v60, %v1460_v60 }
 0x115   : > { %v948_v0 = vpop.f32.mrb[24].mxu0  ;;  %v1196_v4 = vpop.f32.mrb[24].mxu1 }
 0x116   : > { %2009 = vst.msk [vmem:[%s3331_s29 + $0x2c] sm:$0xf] %vm1997_vm4, %v2491_v62  ;;  %v949_v2 = vadd.f32 %v3314_v61, %v948_v0  ;;  %v2695_v3 = vpop.f32.mrb[25].mxu0  ;;  %2071 = vst.msk [vmem:[%s3331_s29 + $0x124] sm:$0xf] %vm1997_vm4, %v2553_v63  ;;  %v1197_v6 = vadd.f32 %v3314_v61, %v1196_v4  ;;  %v2819_v7 = vpop.f32.mrb[25].mxu1 }
 0x117   : > { %v951_v5 = vpop.f32.mrb[26].mxu0  ;;  %v1199_v10 = vpop.f32.mrb[26].mxu1 }
 0x118   : > { %v1399_v8 = vmax.f32 %v949_v2, 0.0  ;;  %v952_v1 = vadd.f32 %v3314_v61, %v951_v5  ;;  %v2696_v9 = vpop.f32.mrb[27].mxu0  ;;  %v1461_v11 = vmax.f32 %v1197_v6, 0.0  ;;  %v1200_v12 = vadd.f32 %v3314_v61, %v1199_v10  ;;  %v2820_v13 = vpop.f32.mrb[27].mxu1 }
 0x11a   : > { %v2492_v14 = vpack.c.bf16 %v1399_v8, %v1399_v8  ;;  %v1400_v15 = vmax.f32 %v952_v1, 0.0  ;;  %v2554_v16 = vpack.c.bf16 %v1461_v11, %v1461_v11  ;;  %v1462_v17 = vmax.f32 %v1200_v12, 0.0 }
 0x11c   : > { %2010 = vst.msk [vmem:[%s3331_s29 + $0x30] sm:$0xf] %vm1997_vm4, %v2492_v14  ;;  %v2493_v18 = vpack.c.bf16 %v1400_v15, %v1400_v15  ;;  %2072 = vst.msk [vmem:[%s3331_s29 + $0x128] sm:$0xf] %vm1997_vm4, %v2554_v16  ;;  %v2555_v19 = vpack.c.bf16 %v1462_v17, %v1462_v17 }
 0x11d   : > { %v956_v20 = vpop.f32.mrb[28].mxu0  ;;  %v1204_v23 = vpop.f32.mrb[28].mxu1 }
 0x11e   : > { %2011 = vst.msk [vmem:[%s3331_s29 + $0x34] sm:$0xf] %vm1997_vm4, %v2493_v18  ;;  %v957_v21 = vadd.f32 %v3314_v61, %v956_v20  ;;  %v2699_v22 = vpop.f32.mrb[29].mxu0  ;;  %2073 = vst.msk [vmem:[%s3331_s29 + $0x12c] sm:$0xf] %vm1997_vm4, %v2555_v19  ;;  %v1205_v25 = vadd.f32 %v3314_v61, %v1204_v23  ;;  %v2823_v26 = vpop.f32.mrb[29].mxu1 }
 0x11f   : > { %v959_v24 = vpop.f32.mrb[30].mxu0  ;;  %v1207_v30 = vpop.f32.mrb[30].mxu1 }
 0x120   : > { %v1401_v27 = vmax.f32 %v957_v21, 0.0  ;;  %v960_v28 = vadd.f32 %v3314_v61, %v959_v24  ;;  %v2700_v29 = vpop.f32.mrb[31].mxu0  ;;  %v1463_v31 = vmax.f32 %v1205_v25, 0.0  ;;  %v1208_v32 = vadd.f32 %v3314_v61, %v1207_v30  ;;  %v2824_v33 = vpop.f32.mrb[31].mxu1 }
 0x122   : > { %v2494_v34 = vpack.c.bf16 %v1401_v27, %v1401_v27  ;;  %v1402_v35 = vmax.f32 %v960_v28, 0.0  ;;  %v2556_v36 = vpack.c.bf16 %v1463_v31, %v1463_v31  ;;  %v1464_v37 = vmax.f32 %v1208_v32, 0.0 }
 0x124   : > { %2012 = vst.msk [vmem:[%s3331_s29 + $0x38] sm:$0xf] %vm1997_vm4, %v2494_v34  ;;  %v2495_v38 = vpack.c.bf16 %v1402_v35, %v1402_v35  ;;  %2074 = vst.msk [vmem:[%s3331_s29 + $0x130] sm:$0xf] %vm1997_vm4, %v2556_v36  ;;  %v2557_v39 = vpack.c.bf16 %v1464_v37, %v1464_v37 }
 0x125   : > { %v964_v40 = vpop.f32.mrb[32].mxu0  ;;  %v1212_v43 = vpop.f32.mrb[32].mxu1 }
 0x126   : > { %2013 = vst.msk [vmem:[%s3331_s29 + $0x3c] sm:$0xf] %vm1997_vm4, %v2495_v38  ;;  %v965_v41 = vadd.f32 %v3314_v61, %v964_v40  ;;  %v2703_v42 = vpop.f32.mrb[33].mxu0  ;;  %2075 = vst.msk [vmem:[%s3331_s29 + $0x134] sm:$0xf] %vm1997_vm4, %v2557_v39  ;;  %v1213_v45 = vadd.f32 %v3314_v61, %v1212_v43  ;;  %v2827_v46 = vpop.f32.mrb[33].mxu1 }
 0x127   : > { %v967_v44 = vpop.f32.mrb[34].mxu0  ;;  %v1215_v50 = vpop.f32.mrb[34].mxu1 }
 0x128   : > { %v1403_v47 = vmax.f32 %v965_v41, 0.0  ;;  %v968_v48 = vadd.f32 %v3314_v61, %v967_v44  ;;  %v2704_v49 = vpop.f32.mrb[35].mxu0  ;;  %v1465_v51 = vmax.f32 %v1213_v45, 0.0  ;;  %v1216_v52 = vadd.f32 %v3314_v61, %v1215_v50  ;;  %v2828_v53 = vpop.f32.mrb[35].mxu1 }
 0x12a   : > { %v2496_v54 = vpack.c.bf16 %v1403_v47, %v1403_v47  ;;  %v1404_v55 = vmax.f32 %v968_v48, 0.0  ;;  %v2558_v56 = vpack.c.bf16 %v1465_v51, %v1465_v51  ;;  %v1466_v57 = vmax.f32 %v1216_v52, 0.0 }
 0x12c   : > { %2014 = vst.msk [vmem:[%s3331_s29 + $0x40] sm:$0xf] %vm1997_vm4, %v2496_v54  ;;  %v2497_v58 = vpack.c.bf16 %v1404_v55, %v1404_v55  ;;  %2076 = vst.msk [vmem:[%s3331_s29 + $0x138] sm:$0xf] %vm1997_vm4, %v2558_v56  ;;  %v2559_v59 = vpack.c.bf16 %v1466_v57, %v1466_v57 }
 0x12d   : > { %v972_v60 = vpop.f32.mrb[36].mxu0  ;;  %v1220_v0 = vpop.f32.mrb[36].mxu1 }
 0x12e   : > { %2015 = vst.msk [vmem:[%s3331_s29 + $0x44] sm:$0xf] %vm1997_vm4, %v2497_v58  ;;  %v973_v62 = vadd.f32 %v3314_v61, %v972_v60  ;;  %v2707_v63 = vpop.f32.mrb[37].mxu0  ;;  %2077 = vst.msk [vmem:[%s3331_s29 + $0x13c] sm:$0xf] %vm1997_vm4, %v2559_v59  ;;  %v1221_v3 = vadd.f32 %v3314_v61, %v1220_v0  ;;  %v2831_v4 = vpop.f32.mrb[37].mxu1 }
 0x12f   : > { %v975_v2 = vpop.f32.mrb[38].mxu0  ;;  %v1223_v8 = vpop.f32.mrb[38].mxu1 }
 0x130   : > { %v1405_v5 = vmax.f32 %v973_v62, 0.0  ;;  %v976_v6 = vadd.f32 %v3314_v61, %v975_v2  ;;  %v2708_v7 = vpop.f32.mrb[39].mxu0  ;;  %v1467_v1 = vmax.f32 %v1221_v3, 0.0  ;;  %v1224_v9 = vadd.f32 %v3314_v61, %v1223_v8  ;;  %v2832_v10 = vpop.f32.mrb[39].mxu1 }
 0x132   : > { %v2498_v11 = vpack.c.bf16 %v1405_v5, %v1405_v5  ;;  %v1406_v12 = vmax.f32 %v976_v6, 0.0  ;;  %v2560_v13 = vpack.c.bf16 %v1467_v1, %v1467_v1  ;;  %v1468_v14 = vmax.f32 %v1224_v9, 0.0 }
 0x134   : > { %2016 = vst.msk [vmem:[%s3331_s29 + $0x48] sm:$0xf] %vm1997_vm4, %v2498_v11  ;;  %v2499_v15 = vpack.c.bf16 %v1406_v12, %v1406_v12  ;;  %2078 = vst.msk [vmem:[%s3331_s29 + $0x140] sm:$0xf] %vm1997_vm4, %v2560_v13  ;;  %v2561_v16 = vpack.c.bf16 %v1468_v14, %v1468_v14 }
 0x135   : > { %v980_v17 = vpop.f32.mrb[40].mxu0  ;;  %v1228_v20 = vpop.f32.mrb[40].mxu1 }
 0x136   : > { %2017 = vst.msk [vmem:[%s3331_s29 + $0x4c] sm:$0xf] %vm1997_vm4, %v2499_v15  ;;  %v981_v18 = vadd.f32 %v3314_v61, %v980_v17  ;;  %v2711_v19 = vpop.f32.mrb[41].mxu0  ;;  %2079 = vst.msk [vmem:[%s3331_s29 + $0x144] sm:$0xf] %vm1997_vm4, %v2561_v16  ;;  %v1229_v22 = vadd.f32 %v3314_v61, %v1228_v20  ;;  %v2835_v23 = vpop.f32.mrb[41].mxu1 }
 0x137   : > { %v983_v21 = vpop.f32.mrb[42].mxu0  ;;  %v1231_v27 = vpop.f32.mrb[42].mxu1 }
 0x138   : > { %v1407_v24 = vmax.f32 %v981_v18, 0.0  ;;  %v984_v25 = vadd.f32 %v3314_v61, %v983_v21  ;;  %v2712_v26 = vpop.f32.mrb[43].mxu0  ;;  %v1469_v28 = vmax.f32 %v1229_v22, 0.0  ;;  %v1232_v29 = vadd.f32 %v3314_v61, %v1231_v27  ;;  %v2836_v30 = vpop.f32.mrb[43].mxu1 }
 0x13a   : > { %v2500_v31 = vpack.c.bf16 %v1407_v24, %v1407_v24  ;;  %v1408_v32 = vmax.f32 %v984_v25, 0.0  ;;  %v2562_v33 = vpack.c.bf16 %v1469_v28, %v1469_v28  ;;  %v1470_v34 = vmax.f32 %v1232_v29, 0.0 }
 0x13c   : > { %2018 = vst.msk [vmem:[%s3331_s29 + $0x50] sm:$0xf] %vm1997_vm4, %v2500_v31  ;;  %v2501_v35 = vpack.c.bf16 %v1408_v32, %v1408_v32  ;;  %2080 = vst.msk [vmem:[%s3331_s29 + $0x148] sm:$0xf] %vm1997_vm4, %v2562_v33  ;;  %v2563_v36 = vpack.c.bf16 %v1470_v34, %v1470_v34 }
 0x13d   : > { %v988_v37 = vpop.f32.mrb[44].mxu0  ;;  %v1236_v40 = vpop.f32.mrb[44].mxu1 }
 0x13e   : > { %2019 = vst.msk [vmem:[%s3331_s29 + $0x54] sm:$0xf] %vm1997_vm4, %v2501_v35  ;;  %v989_v38 = vadd.f32 %v3314_v61, %v988_v37  ;;  %v2715_v39 = vpop.f32.mrb[45].mxu0  ;;  %2081 = vst.msk [vmem:[%s3331_s29 + $0x14c] sm:$0xf] %vm1997_vm4, %v2563_v36  ;;  %v1237_v42 = vadd.f32 %v3314_v61, %v1236_v40  ;;  %v2839_v43 = vpop.f32.mrb[45].mxu1 }
 0x13f   : > { %v991_v41 = vpop.f32.mrb[46].mxu0  ;;  %v1239_v47 = vpop.f32.mrb[46].mxu1 }
 0x140   : > { %v1409_v44 = vmax.f32 %v989_v38, 0.0  ;;  %v992_v45 = vadd.f32 %v3314_v61, %v991_v41  ;;  %v2716_v46 = vpop.f32.mrb[47].mxu0  ;;  %v1471_v48 = vmax.f32 %v1237_v42, 0.0  ;;  %v1240_v49 = vadd.f32 %v3314_v61, %v1239_v47  ;;  %v2840_v50 = vpop.f32.mrb[47].mxu1 }
 0x142   : > { %v2502_v51 = vpack.c.bf16 %v1409_v44, %v1409_v44  ;;  %v1410_v52 = vmax.f32 %v992_v45, 0.0  ;;  %v2564_v53 = vpack.c.bf16 %v1471_v48, %v1471_v48  ;;  %v1472_v54 = vmax.f32 %v1240_v49, 0.0 }
 0x144   : > { %2020 = vst.msk [vmem:[%s3331_s29 + $0x58] sm:$0xf] %vm1997_vm4, %v2502_v51  ;;  %v2503_v55 = vpack.c.bf16 %v1410_v52, %v1410_v52  ;;  %2082 = vst.msk [vmem:[%s3331_s29 + $0x150] sm:$0xf] %vm1997_vm4, %v2564_v53  ;;  %v2565_v56 = vpack.c.bf16 %v1472_v54, %v1472_v54 }
 0x145   : > { %v996_v57 = vpop.f32.mrb[48].mxu0  ;;  %v1244_v60 = vpop.f32.mrb[48].mxu1 }
 0x146   : > { %2021 = vst.msk [vmem:[%s3331_s29 + $0x5c] sm:$0xf] %vm1997_vm4, %v2503_v55  ;;  %v997_v58 = vadd.f32 %v3314_v61, %v996_v57  ;;  %v2719_v59 = vpop.f32.mrb[49].mxu0  ;;  %2083 = vst.msk [vmem:[%s3331_s29 + $0x154] sm:$0xf] %vm1997_vm4, %v2565_v56  ;;  %v1245_v63 = vadd.f32 %v3314_v61, %v1244_v60  ;;  %v2843_v0 = vpop.f32.mrb[49].mxu1 }
 0x147   : > { %v999_v62 = vpop.f32.mrb[50].mxu0  ;;  %v1247_v5 = vpop.f32.mrb[50].mxu1 }
 0x148   : > { %v1411_v2 = vmax.f32 %v997_v58, 0.0  ;;  %v1000_v3 = vadd.f32 %v3314_v61, %v999_v62  ;;  %v2720_v4 = vpop.f32.mrb[51].mxu0  ;;  %v1473_v6 = vmax.f32 %v1245_v63, 0.0  ;;  %v1248_v7 = vadd.f32 %v3314_v61, %v1247_v5  ;;  %v2844_v8 = vpop.f32.mrb[51].mxu1 }
 0x14a   : > { %v2504_v1 = vpack.c.bf16 %v1411_v2, %v1411_v2  ;;  %v1412_v9 = vmax.f32 %v1000_v3, 0.0  ;;  %v2566_v10 = vpack.c.bf16 %v1473_v6, %v1473_v6  ;;  %v1474_v11 = vmax.f32 %v1248_v7, 0.0 }
 0x14c   : > { %2022 = vst.msk [vmem:[%s3331_s29 + $0x60] sm:$0xf] %vm1997_vm4, %v2504_v1  ;;  %v2505_v12 = vpack.c.bf16 %v1412_v9, %v1412_v9  ;;  %2084 = vst.msk [vmem:[%s3331_s29 + $0x158] sm:$0xf] %vm1997_vm4, %v2566_v10  ;;  %v2567_v13 = vpack.c.bf16 %v1474_v11, %v1474_v11 }
 0x14d   : > { %v1004_v14 = vpop.f32.mrb[52].mxu0  ;;  %v1252_v17 = vpop.f32.mrb[52].mxu1 }
 0x14e   : > { %2023 = vst.msk [vmem:[%s3331_s29 + $0x64] sm:$0xf] %vm1997_vm4, %v2505_v12  ;;  %v1005_v15 = vadd.f32 %v3314_v61, %v1004_v14  ;;  %v2723_v16 = vpop.f32.mrb[53].mxu0  ;;  %2085 = vst.msk [vmem:[%s3331_s29 + $0x15c] sm:$0xf] %vm1997_vm4, %v2567_v13  ;;  %v1253_v19 = vadd.f32 %v3314_v61, %v1252_v17  ;;  %v2847_v20 = vpop.f32.mrb[53].mxu1 }
 0x14f   : > { %v1007_v18 = vpop.f32.mrb[54].mxu0  ;;  %v1255_v24 = vpop.f32.mrb[54].mxu1 }
 0x150   : > { %v1413_v21 = vmax.f32 %v1005_v15, 0.0  ;;  %v1008_v22 = vadd.f32 %v3314_v61, %v1007_v18  ;;  %v2724_v23 = vpop.f32.mrb[55].mxu0  ;;  %v1475_v25 = vmax.f32 %v1253_v19, 0.0  ;;  %v1256_v26 = vadd.f32 %v3314_v61, %v1255_v24  ;;  %v2848_v27 = vpop.f32.mrb[55].mxu1 }
 0x152   : > { %v2506_v28 = vpack.c.bf16 %v1413_v21, %v1413_v21  ;;  %v1414_v29 = vmax.f32 %v1008_v22, 0.0  ;;  %v2568_v30 = vpack.c.bf16 %v1475_v25, %v1475_v25  ;;  %v1476_v31 = vmax.f32 %v1256_v26, 0.0 }
 0x154   : > { %2024 = vst.msk [vmem:[%s3331_s29 + $0x68] sm:$0xf] %vm1997_vm4, %v2506_v28  ;;  %v2507_v32 = vpack.c.bf16 %v1414_v29, %v1414_v29  ;;  %2086 = vst.msk [vmem:[%s3331_s29 + $0x160] sm:$0xf] %vm1997_vm4, %v2568_v30  ;;  %v2569_v33 = vpack.c.bf16 %v1476_v31, %v1476_v31 }
 0x155   : > { %v1012_v34 = vpop.f32.mrb[56].mxu0  ;;  %v1260_v37 = vpop.f32.mrb[56].mxu1 }
 0x156   : > { %2025 = vst.msk [vmem:[%s3331_s29 + $0x6c] sm:$0xf] %vm1997_vm4, %v2507_v32  ;;  %v1013_v35 = vadd.f32 %v3314_v61, %v1012_v34  ;;  %v2727_v36 = vpop.f32.mrb[57].mxu0  ;;  %2087 = vst.msk [vmem:[%s3331_s29 + $0x164] sm:$0xf] %vm1997_vm4, %v2569_v33  ;;  %v1261_v39 = vadd.f32 %v3314_v61, %v1260_v37  ;;  %v2851_v40 = vpop.f32.mrb[57].mxu1 }
 0x157   : > { %v1015_v38 = vpop.f32.mrb[58].mxu0  ;;  %v1263_v44 = vpop.f32.mrb[58].mxu1 }
 0x158   : > { %v1415_v41 = vmax.f32 %v1013_v35, 0.0  ;;  %v1016_v42 = vadd.f32 %v3314_v61, %v1015_v38  ;;  %v2728_v43 = vpop.f32.mrb[59].mxu0  ;;  %v1477_v45 = vmax.f32 %v1261_v39, 0.0  ;;  %v1264_v46 = vadd.f32 %v3314_v61, %v1263_v44  ;;  %v2852_v47 = vpop.f32.mrb[59].mxu1 }
 0x15a   : > { %v2508_v48 = vpack.c.bf16 %v1415_v41, %v1415_v41  ;;  %v1416_v49 = vmax.f32 %v1016_v42, 0.0  ;;  %v2570_v50 = vpack.c.bf16 %v1477_v45, %v1477_v45  ;;  %v1478_v51 = vmax.f32 %v1264_v46, 0.0 }
 0x15c   : > { %2026 = vst.msk [vmem:[%s3331_s29 + $0x70] sm:$0xf] %vm1997_vm4, %v2508_v48  ;;  %v2509_v52 = vpack.c.bf16 %v1416_v49, %v1416_v49  ;;  %2088 = vst.msk [vmem:[%s3331_s29 + $0x168] sm:$0xf] %vm1997_vm4, %v2570_v50  ;;  %v2571_v53 = vpack.c.bf16 %v1478_v51, %v1478_v51 }
 0x15d   : > { %v1020_v54 = vpop.f32.mrb[60].mxu0  ;;  %v1268_v57 = vpop.f32.mrb[60].mxu1 }
 0x15e   : > { %2027 = vst.msk [vmem:[%s3331_s29 + $0x74] sm:$0xf] %vm1997_vm4, %v2509_v52  ;;  %v1021_v55 = vadd.f32 %v3314_v61, %v1020_v54  ;;  %v2731_v56 = vpop.f32.mrb[61].mxu0  ;;  %2089 = vst.msk [vmem:[%s3331_s29 + $0x16c] sm:$0xf] %vm1997_vm4, %v2571_v53  ;;  %v1269_v59 = vadd.f32 %v3314_v61, %v1268_v57  ;;  %v2855_v60 = vpop.f32.mrb[61].mxu1 }
 0x15f   : > { %v1023_v58 = vpop.f32.mrb[62].mxu0  ;;  %v1271_v2 = vpop.f32.mrb[62].mxu1 }
 0x160   : > { %v1417_v62 = vmax.f32 %v1021_v55, 0.0  ;;  %v1024_v63 = vadd.f32 %v3314_v61, %v1023_v58  ;;  %v2732_v0 = vpop.f32.mrb[63].mxu0  ;;  %v1479_v3 = vmax.f32 %v1269_v59, 0.0  ;;  %v1272_v4 = vadd.f32 %v3314_v61, %v1271_v2  ;;  %v2856_v5 = vpop.f32.mrb[63].mxu1 }
 0x162   : > { %v2510_v6 = vpack.c.bf16 %v1417_v62, %v1417_v62  ;;  %v1418_v7 = vmax.f32 %v1024_v63, 0.0  ;;  %v2572_v8 = vpack.c.bf16 %v1479_v3, %v1479_v3  ;;  %v1480_v1 = vmax.f32 %v1272_v4, 0.0 }
 0x164   : > { %2028 = vst.msk [vmem:[%s3331_s29 + $0x78] sm:$0xf] %vm1997_vm4, %v2510_v6  ;;  %v2511_v9 = vpack.c.bf16 %v1418_v7, %v1418_v7  ;;  %2090 = vst.msk [vmem:[%s3331_s29 + $0x170] sm:$0xf] %vm1997_vm4, %v2572_v8  ;;  %v2573_v10 = vpack.c.bf16 %v1480_v1, %v1480_v1 }
 0x165   : > { %v1028_v11 = vpop.f32.mrb[64].mxu0  ;;  %v1276_v14 = vpop.f32.mrb[64].mxu1 }
 0x166   : > { %2029 = vst.msk [vmem:[%s3331_s29 + $0x7c] sm:$0xf] %vm1997_vm4, %v2511_v9  ;;  %v1029_v12 = vadd.f32 %v3314_v61, %v1028_v11  ;;  %v2735_v13 = vpop.f32.mrb[65].mxu0  ;;  %2091 = vst.msk [vmem:[%s3331_s29 + $0x174] sm:$0xf] %vm1997_vm4, %v2573_v10  ;;  %v1277_v16 = vadd.f32 %v3314_v61, %v1276_v14  ;;  %v2859_v17 = vpop.f32.mrb[65].mxu1 }
 0x167   : > { %v1031_v15 = vpop.f32.mrb[66].mxu0  ;;  %v1279_v21 = vpop.f32.mrb[66].mxu1 }
 0x168   : > { %v1419_v18 = vmax.f32 %v1029_v12, 0.0  ;;  %v1032_v19 = vadd.f32 %v3314_v61, %v1031_v15  ;;  %v2736_v20 = vpop.f32.mrb[67].mxu0  ;;  %v1481_v22 = vmax.f32 %v1277_v16, 0.0  ;;  %v1280_v23 = vadd.f32 %v3314_v61, %v1279_v21  ;;  %v2860_v24 = vpop.f32.mrb[67].mxu1 }
 0x16a   : > { %v2512_v25 = vpack.c.bf16 %v1419_v18, %v1419_v18  ;;  %v1420_v26 = vmax.f32 %v1032_v19, 0.0  ;;  %v2574_v27 = vpack.c.bf16 %v1481_v22, %v1481_v22  ;;  %v1482_v28 = vmax.f32 %v1280_v23, 0.0 }
 0x16c   : > { %2030 = vst.msk [vmem:[%s3331_s29 + $0x80] sm:$0xf] %vm1997_vm4, %v2512_v25  ;;  %v2513_v29 = vpack.c.bf16 %v1420_v26, %v1420_v26  ;;  %2092 = vst.msk [vmem:[%s3331_s29 + $0x178] sm:$0xf] %vm1997_vm4, %v2574_v27  ;;  %v2575_v30 = vpack.c.bf16 %v1482_v28, %v1482_v28 }
 0x16d   : > { %v1036_v31 = vpop.f32.mrb[68].mxu0  ;;  %v1284_v34 = vpop.f32.mrb[68].mxu1 }
 0x16e   : > { %2031 = vst.msk [vmem:[%s3331_s29 + $0x84] sm:$0xf] %vm1997_vm4, %v2513_v29  ;;  %v1037_v32 = vadd.f32 %v3314_v61, %v1036_v31  ;;  %v2739_v33 = vpop.f32.mrb[69].mxu0  ;;  %2093 = vst.msk [vmem:[%s3331_s29 + $0x17c] sm:$0xf] %vm1997_vm4, %v2575_v30  ;;  %v1285_v36 = vadd.f32 %v3314_v61, %v1284_v34  ;;  %v2863_v37 = vpop.f32.mrb[69].mxu1 }
 0x16f   : > { %v1039_v35 = vpop.f32.mrb[70].mxu0  ;;  %v1287_v41 = vpop.f32.mrb[70].mxu1 }
 0x170   : > { %v1421_v38 = vmax.f32 %v1037_v32, 0.0  ;;  %v1040_v39 = vadd.f32 %v3314_v61, %v1039_v35  ;;  %v2740_v40 = vpop.f32.mrb[71].mxu0  ;;  %v1483_v42 = vmax.f32 %v1285_v36, 0.0  ;;  %v1288_v43 = vadd.f32 %v3314_v61, %v1287_v41  ;;  %v2864_v44 = vpop.f32.mrb[71].mxu1  ;;  %v3597_v36 = vld [vmem:[%s3734_s2] ss:$0 sm:$0xff] }
 0x172   : > { %v2514_v45 = vpack.c.bf16 %v1421_v38, %v1421_v38  ;;  %v1422_v46 = vmax.f32 %v1040_v39, 0.0  ;;  %v2576_v47 = vpack.c.bf16 %v1483_v42, %v1483_v42  ;;  %v1484_v48 = vmax.f32 %v1288_v43, 0.0 }
 0x174   : > { %2032 = vst.msk [vmem:[%s3331_s29 + $0x88] sm:$0xf] %vm1997_vm4, %v2514_v45  ;;  %v2515_v49 = vpack.c.bf16 %v1422_v46, %v1422_v46  ;;  %2094 = vst.msk [vmem:[%s3331_s29 + $0x180] sm:$0xf] %vm1997_vm4, %v2576_v47  ;;  %v2577_v50 = vpack.c.bf16 %v1484_v48, %v1484_v48 }
 0x175   : > { %v1044_v51 = vpop.f32.mrb[72].mxu0  ;;  %v1292_v54 = vpop.f32.mrb[72].mxu1 }
 0x176   : > { %2033 = vst.msk [vmem:[%s3331_s29 + $0x8c] sm:$0xf] %vm1997_vm4, %v2515_v49  ;;  %v1045_v52 = vadd.f32 %v3314_v61, %v1044_v51  ;;  %v2743_v53 = vpop.f32.mrb[73].mxu0  ;;  %2095 = vst.msk [vmem:[%s3331_s29 + $0x184] sm:$0xf] %vm1997_vm4, %v2577_v50  ;;  %v1293_v56 = vadd.f32 %v3314_v61, %v1292_v54  ;;  %v2867_v57 = vpop.f32.mrb[73].mxu1 }
 0x177   : > { %v1047_v55 = vpop.f32.mrb[74].mxu0  ;;  %v1295_v62 = vpop.f32.mrb[74].mxu1 }
 0x178   : > { %v1423_v58 = vmax.f32 %v1045_v52, 0.0  ;;  %v1048_v59 = vadd.f32 %v3314_v61, %v1047_v55  ;;  %v2744_v60 = vpop.f32.mrb[75].mxu0  ;;  %v1485_v63 = vmax.f32 %v1293_v56, 0.0  ;;  %v1296_v0 = vadd.f32 %v3314_v61, %v1295_v62  ;;  %v2868_v2 = vpop.f32.mrb[75].mxu1 }
 0x17a   : > { %v2516_v3 = vpack.c.bf16 %v1423_v58, %v1423_v58  ;;  %v1424_v4 = vmax.f32 %v1048_v59, 0.0  ;;  %v2578_v5 = vpack.c.bf16 %v1485_v63, %v1485_v63  ;;  %v1486_v6 = vmax.f32 %v1296_v0, 0.0 }
 0x17c   : > { %2034 = vst.msk [vmem:[%s3331_s29 + $0x90] sm:$0xf] %vm1997_vm4, %v2516_v3  ;;  %v2517_v7 = vpack.c.bf16 %v1424_v4, %v1424_v4  ;;  %2096 = vst.msk [vmem:[%s3331_s29 + $0x188] sm:$0xf] %vm1997_vm4, %v2578_v5  ;;  %v2579_v8 = vpack.c.bf16 %v1486_v6, %v1486_v6 }
 0x17d   : > { %v1052_v1 = vpop.f32.mrb[76].mxu0  ;;  %v1300_v11 = vpop.f32.mrb[76].mxu1 }
 0x17e   : > { %2035 = vst.msk [vmem:[%s3331_s29 + $0x94] sm:$0xf] %vm1997_vm4, %v2517_v7  ;;  %v1053_v9 = vadd.f32 %v3314_v61, %v1052_v1  ;;  %v2747_v10 = vpop.f32.mrb[77].mxu0  ;;  %2097 = vst.msk [vmem:[%s3331_s29 + $0x18c] sm:$0xf] %vm1997_vm4, %v2579_v8  ;;  %v1301_v13 = vadd.f32 %v3314_v61, %v1300_v11  ;;  %v2871_v14 = vpop.f32.mrb[77].mxu1 }
 0x17f   : > { %v1055_v12 = vpop.f32.mrb[78].mxu0  ;;  %v1303_v18 = vpop.f32.mrb[78].mxu1 }
 0x180   : > { %v1425_v15 = vmax.f32 %v1053_v9, 0.0  ;;  %v1056_v16 = vadd.f32 %v3314_v61, %v1055_v12  ;;  %v2748_v17 = vpop.f32.mrb[79].mxu0  ;;  %v1487_v19 = vmax.f32 %v1301_v13, 0.0  ;;  %v1304_v20 = vadd.f32 %v3314_v61, %v1303_v18  ;;  %v2872_v21 = vpop.f32.mrb[79].mxu1 }
 0x182   : > { %v2518_v22 = vpack.c.bf16 %v1425_v15, %v1425_v15  ;;  %v1426_v23 = vmax.f32 %v1056_v16, 0.0  ;;  %v2580_v24 = vpack.c.bf16 %v1487_v19, %v1487_v19  ;;  %v1488_v25 = vmax.f32 %v1304_v20, 0.0 }
 0x184   : > { %2036 = vst.msk [vmem:[%s3331_s29 + $0x98] sm:$0xf] %vm1997_vm4, %v2518_v22  ;;  %v2519_v26 = vpack.c.bf16 %v1426_v23, %v1426_v23  ;;  %2098 = vst.msk [vmem:[%s3331_s29 + $0x190] sm:$0xf] %vm1997_vm4, %v2580_v24  ;;  %v2581_v27 = vpack.c.bf16 %v1488_v25, %v1488_v25 }
 0x185   : > { %v1060_v28 = vpop.f32.mrb[80].mxu0  ;;  %v1308_v31 = vpop.f32.mrb[80].mxu1 }
 0x186   : > { %2037 = vst.msk [vmem:[%s3331_s29 + $0x9c] sm:$0xf] %vm1997_vm4, %v2519_v26  ;;  %v1061_v29 = vadd.f32 %v3314_v61, %v1060_v28  ;;  %v2751_v30 = vpop.f32.mrb[81].mxu0  ;;  %2099 = vst.msk [vmem:[%s3331_s29 + $0x194] sm:$0xf] %vm1997_vm4, %v2581_v27  ;;  %v1309_v33 = vadd.f32 %v3314_v61, %v1308_v31  ;;  %v2875_v34 = vpop.f32.mrb[81].mxu1 }
 0x187   : > { %v1063_v32 = vpop.f32.mrb[82].mxu0  ;;  %v1311_v39 = vpop.f32.mrb[82].mxu1 }
 0x188   : > { %v1427_v35 = vmax.f32 %v1061_v29, 0.0  ;;  %v1064_v37 = vadd.f32 %v3597_v36, %v1063_v32  ;;  %v2752_v38 = vpop.f32.mrb[83].mxu0  ;;  %v1489_v40 = vmax.f32 %v1309_v33, 0.0  ;;  %v1312_v41 = vadd.f32 %v3597_v36, %v1311_v39  ;;  %v2876_v42 = vpop.f32.mrb[83].mxu1 }
 0x18a   : > { %v2520_v43 = vpack.c.bf16 %v1427_v35, %v1427_v35  ;;  %v1428_v61 = vmax.f32 %v1064_v37, 0.0  ;;  %v2582_v44 = vpack.c.bf16 %v1489_v40, %v1489_v40  ;;  %v1490_v45 = vmax.f32 %v1312_v41, 0.0 }
 0x18c   : > { %2038 = vst.msk [vmem:[%s3331_s29 + $0xa0] sm:$0xf] %vm1997_vm4, %v2520_v43  ;;  %v2521_v46 = vpack.c.bf16 %v1428_v61, %v1428_v61  ;;  %2100 = vst.msk [vmem:[%s3331_s29 + $0x198] sm:$0xf] %vm1997_vm4, %v2582_v44  ;;  %v2583_v47 = vpack.c.bf16 %v1490_v45, %v1490_v45 }
 0x18d   : > { %v1068_v48 = vpop.f32.mrb[84].mxu0  ;;  %v1316_v51 = vpop.f32.mrb[84].mxu1 }
 0x18e   : > { %2039 = vst.msk [vmem:[%s3331_s29 + $0xa4] sm:$0xf] %vm1997_vm4, %v2521_v46  ;;  %v1069_v49 = vadd.f32 %v3597_v36, %v1068_v48  ;;  %v2755_v50 = vpop.f32.mrb[85].mxu0  ;;  %2101 = vst.msk [vmem:[%s3331_s29 + $0x19c] sm:$0xf] %vm1997_vm4, %v2583_v47  ;;  %v1317_v53 = vadd.f32 %v3597_v36, %v1316_v51  ;;  %v2879_v54 = vpop.f32.mrb[85].mxu1 }
 0x18f   : > { %v1071_v52 = vpop.f32.mrb[86].mxu0  ;;  %v1319_v58 = vpop.f32.mrb[86].mxu1 }
 0x190   : > { %v1429_v55 = vmax.f32 %v1069_v49, 0.0  ;;  %v1072_v56 = vadd.f32 %v3597_v36, %v1071_v52  ;;  %v2756_v57 = vpop.f32.mrb[87].mxu0  ;;  %v1491_v59 = vmax.f32 %v1317_v53, 0.0  ;;  %v1320_v60 = vadd.f32 %v3597_v36, %v1319_v58  ;;  %v2880_v62 = vpop.f32.mrb[87].mxu1 }
 0x192   : > { %v2522_v63 = vpack.c.bf16 %v1429_v55, %v1429_v55  ;;  %v1430_v0 = vmax.f32 %v1072_v56, 0.0  ;;  %v2584_v2 = vpack.c.bf16 %v1491_v59, %v1491_v59  ;;  %v1492_v3 = vmax.f32 %v1320_v60, 0.0 }
 0x194   : > { %2040 = vst.msk [vmem:[%s3331_s29 + $0xa8] sm:$0xf] %vm1997_vm4, %v2522_v63  ;;  %v2523_v4 = vpack.c.bf16 %v1430_v0, %v1430_v0  ;;  %2102 = vst.msk [vmem:[%s3331_s29 + $0x1a0] sm:$0xf] %vm1997_vm4, %v2584_v2  ;;  %v2585_v5 = vpack.c.bf16 %v1492_v3, %v1492_v3 }
 0x195   : > { %v1076_v6 = vpop.f32.mrb[88].mxu0  ;;  %v1324_v1 = vpop.f32.mrb[88].mxu1 }
 0x196   : > { %2041 = vst.msk [vmem:[%s3331_s29 + $0xac] sm:$0xf] %vm1997_vm4, %v2523_v4  ;;  %v1077_v7 = vadd.f32 %v3597_v36, %v1076_v6  ;;  %v2759_v8 = vpop.f32.mrb[89].mxu0  ;;  %2103 = vst.msk [vmem:[%s3331_s29 + $0x1a4] sm:$0xf] %vm1997_vm4, %v2585_v5  ;;  %v1325_v10 = vadd.f32 %v3597_v36, %v1324_v1  ;;  %v2883_v11 = vpop.f32.mrb[89].mxu1 }
 0x197   : > { %v1079_v9 = vpop.f32.mrb[90].mxu0  ;;  %v1327_v15 = vpop.f32.mrb[90].mxu1 }
 0x198   : > { %v1431_v12 = vmax.f32 %v1077_v7, 0.0  ;;  %v1080_v13 = vadd.f32 %v3597_v36, %v1079_v9  ;;  %v2760_v14 = vpop.f32.mrb[91].mxu0  ;;  %v1493_v16 = vmax.f32 %v1325_v10, 0.0  ;;  %v1328_v17 = vadd.f32 %v3597_v36, %v1327_v15  ;;  %v2884_v18 = vpop.f32.mrb[91].mxu1 }
 0x19a   : > { %v2524_v19 = vpack.c.bf16 %v1431_v12, %v1431_v12  ;;  %v1432_v20 = vmax.f32 %v1080_v13, 0.0  ;;  %v2586_v21 = vpack.c.bf16 %v1493_v16, %v1493_v16  ;;  %v1494_v22 = vmax.f32 %v1328_v17, 0.0 }
 0x19c   : > { %2042 = vst.msk [vmem:[%s3331_s29 + $0xb0] sm:$0xf] %vm1997_vm4, %v2524_v19  ;;  %v2525_v23 = vpack.c.bf16 %v1432_v20, %v1432_v20  ;;  %2104 = vst.msk [vmem:[%s3331_s29 + $0x1a8] sm:$0xf] %vm1997_vm4, %v2586_v21  ;;  %v2587_v24 = vpack.c.bf16 %v1494_v22, %v1494_v22 }
 0x19d   : > { %v1084_v25 = vpop.f32.mrb[92].mxu0  ;;  %v1332_v28 = vpop.f32.mrb[92].mxu1 }
 0x19e   : > { %2043 = vst.msk [vmem:[%s3331_s29 + $0xb4] sm:$0xf] %vm1997_vm4, %v2525_v23  ;;  %v1085_v26 = vadd.f32 %v3597_v36, %v1084_v25  ;;  %v2763_v27 = vpop.f32.mrb[93].mxu0  ;;  %2105 = vst.msk [vmem:[%s3331_s29 + $0x1ac] sm:$0xf] %vm1997_vm4, %v2587_v24  ;;  %v1333_v30 = vadd.f32 %v3597_v36, %v1332_v28  ;;  %v2887_v31 = vpop.f32.mrb[93].mxu1 }
 0x19f   : > { %v1087_v29 = vpop.f32.mrb[94].mxu0  ;;  %v1335_v35 = vpop.f32.mrb[94].mxu1 }
 0x1a0   : > { %v1433_v32 = vmax.f32 %v1085_v26, 0.0  ;;  %v1088_v33 = vadd.f32 %v3597_v36, %v1087_v29  ;;  %v2764_v34 = vpop.f32.mrb[95].mxu0  ;;  %v1495_v37 = vmax.f32 %v1333_v30, 0.0  ;;  %v1336_v38 = vadd.f32 %v3597_v36, %v1335_v35  ;;  %v2888_v39 = vpop.f32.mrb[95].mxu1 }
 0x1a2   : > { %v2526_v40 = vpack.c.bf16 %v1433_v32, %v1433_v32  ;;  %v1434_v41 = vmax.f32 %v1088_v33, 0.0  ;;  %v2588_v42 = vpack.c.bf16 %v1495_v37, %v1495_v37  ;;  %v1496_v43 = vmax.f32 %v1336_v38, 0.0 }
 0x1a4   : > { %2044 = vst.msk [vmem:[%s3331_s29 + $0xb8] sm:$0xf] %vm1997_vm4, %v2526_v40  ;;  %v2527_v61 = vpack.c.bf16 %v1434_v41, %v1434_v41  ;;  %2106 = vst.msk [vmem:[%s3331_s29 + $0x1b0] sm:$0xf] %vm1997_vm4, %v2588_v42  ;;  %v2589_v44 = vpack.c.bf16 %v1496_v43, %v1496_v43 }
 0x1a5   : > { %v1092_v45 = vpop.f32.mrb[96].mxu0  ;;  %v1340_v48 = vpop.f32.mrb[96].mxu1 }
 0x1a6   : > { %2045 = vst.msk [vmem:[%s3331_s29 + $0xbc] sm:$0xf] %vm1997_vm4, %v2527_v61  ;;  %v1093_v46 = vadd.f32 %v3597_v36, %v1092_v45  ;;  %v2767_v47 = vpop.f32.mrb[97].mxu0  ;;  %2107 = vst.msk [vmem:[%s3331_s29 + $0x1b4] sm:$0xf] %vm1997_vm4, %v2589_v44  ;;  %v1341_v50 = vadd.f32 %v3597_v36, %v1340_v48  ;;  %v2891_v51 = vpop.f32.mrb[97].mxu1 }
 0x1a7   : > { %v1095_v49 = vpop.f32.mrb[98].mxu0  ;;  %v1343_v55 = vpop.f32.mrb[98].mxu1 }
 0x1a8   : > { %v1435_v52 = vmax.f32 %v1093_v46, 0.0  ;;  %v1096_v53 = vadd.f32 %v3597_v36, %v1095_v49  ;;  %v2768_v54 = vpop.f32.mrb[99].mxu0  ;;  %v1497_v56 = vmax.f32 %v1341_v50, 0.0  ;;  %v1344_v57 = vadd.f32 %v3597_v36, %v1343_v55  ;;  %v2892_v58 = vpop.f32.mrb[99].mxu1 }
 0x1aa   : > { %v2528_v59 = vpack.c.bf16 %v1435_v52, %v1435_v52  ;;  %v1436_v60 = vmax.f32 %v1096_v53, 0.0  ;;  %v2590_v62 = vpack.c.bf16 %v1497_v56, %v1497_v56  ;;  %v1498_v63 = vmax.f32 %v1344_v57, 0.0 }
 0x1ac   : > { %2046 = vst.msk [vmem:[%s3331_s29 + $0xc0] sm:$0xf] %vm1997_vm4, %v2528_v59  ;;  %v2529_v0 = vpack.c.bf16 %v1436_v60, %v1436_v60  ;;  %2108 = vst.msk [vmem:[%s3331_s29 + $0x1b8] sm:$0xf] %vm1997_vm4, %v2590_v62  ;;  %v2591_v2 = vpack.c.bf16 %v1498_v63, %v1498_v63 }
 0x1ad   : > { %v1100_v3 = vpop.f32.mrb[100].mxu0  ;;  %v1348_v6 = vpop.f32.mrb[100].mxu1 }
 0x1ae   : > { %2047 = vst.msk [vmem:[%s3331_s29 + $0xc4] sm:$0xf] %vm1997_vm4, %v2529_v0  ;;  %v1101_v4 = vadd.f32 %v3597_v36, %v1100_v3  ;;  %v2771_v5 = vpop.f32.mrb[101].mxu0  ;;  %2109 = vst.msk [vmem:[%s3331_s29 + $0x1bc] sm:$0xf] %vm1997_vm4, %v2591_v2  ;;  %v1349_v8 = vadd.f32 %v3597_v36, %v1348_v6  ;;  %v2895_v1 = vpop.f32.mrb[101].mxu1 }
 0x1af   : > { %v1103_v7 = vpop.f32.mrb[102].mxu0  ;;  %v1351_v12 = vpop.f32.mrb[102].mxu1 }
 0x1b0   : > { %v1437_v9 = vmax.f32 %v1101_v4, 0.0  ;;  %v1104_v10 = vadd.f32 %v3597_v36, %v1103_v7  ;;  %v2772_v11 = vpop.f32.mrb[103].mxu0  ;;  %v1499_v13 = vmax.f32 %v1349_v8, 0.0  ;;  %v1352_v14 = vadd.f32 %v3597_v36, %v1351_v12  ;;  %v2896_v15 = vpop.f32.mrb[103].mxu1 }
 0x1b2   : > { %v2530_v16 = vpack.c.bf16 %v1437_v9, %v1437_v9  ;;  %v1438_v17 = vmax.f32 %v1104_v10, 0.0  ;;  %v2592_v18 = vpack.c.bf16 %v1499_v13, %v1499_v13  ;;  %v1500_v19 = vmax.f32 %v1352_v14, 0.0 }
 0x1b4   : > { %2048 = vst.msk [vmem:[%s3331_s29 + $0xc8] sm:$0xf] %vm1997_vm4, %v2530_v16  ;;  %v2531_v20 = vpack.c.bf16 %v1438_v17, %v1438_v17  ;;  %2110 = vst.msk [vmem:[%s3331_s29 + $0x1c0] sm:$0xf] %vm1997_vm4, %v2592_v18  ;;  %v2593_v21 = vpack.c.bf16 %v1500_v19, %v1500_v19 }
 0x1b5   : > { %v1108_v22 = vpop.f32.mrb[104].mxu0  ;;  %v1356_v25 = vpop.f32.mrb[104].mxu1 }
 0x1b6   : > { %2049 = vst.msk [vmem:[%s3331_s29 + $0xcc] sm:$0xf] %vm1997_vm4, %v2531_v20  ;;  %v1109_v23 = vadd.f32 %v3597_v36, %v1108_v22  ;;  %v2775_v24 = vpop.f32.mrb[105].mxu0  ;;  %2111 = vst.msk [vmem:[%s3331_s29 + $0x1c4] sm:$0xf] %vm1997_vm4, %v2593_v21  ;;  %v1357_v27 = vadd.f32 %v3597_v36, %v1356_v25  ;;  %v2899_v28 = vpop.f32.mrb[105].mxu1 }
 0x1b7   : > { %v1111_v26 = vpop.f32.mrb[106].mxu0  ;;  %v1359_v32 = vpop.f32.mrb[106].mxu1 }
 0x1b8   : > { %v1439_v29 = vmax.f32 %v1109_v23, 0.0  ;;  %v1112_v30 = vadd.f32 %v3597_v36, %v1111_v26  ;;  %v2776_v31 = vpop.f32.mrb[107].mxu0  ;;  %v1501_v33 = vmax.f32 %v1357_v27, 0.0  ;;  %v1360_v34 = vadd.f32 %v3597_v36, %v1359_v32  ;;  %v2900_v35 = vpop.f32.mrb[107].mxu1 }
 0x1ba   : > { %v2532_v37 = vpack.c.bf16 %v1439_v29, %v1439_v29  ;;  %v1440_v38 = vmax.f32 %v1112_v30, 0.0  ;;  %v2594_v39 = vpack.c.bf16 %v1501_v33, %v1501_v33  ;;  %v1502_v40 = vmax.f32 %v1360_v34, 0.0 }
 0x1bc   : > { %2050 = vst.msk [vmem:[%s3331_s29 + $0xd0] sm:$0xf] %vm1997_vm4, %v2532_v37  ;;  %v2533_v41 = vpack.c.bf16 %v1440_v38, %v1440_v38  ;;  %2112 = vst.msk [vmem:[%s3331_s29 + $0x1c8] sm:$0xf] %vm1997_vm4, %v2594_v39  ;;  %v2595_v42 = vpack.c.bf16 %v1502_v40, %v1502_v40 }
 0x1bd   : > { %v1116_v43 = vpop.f32.mrb[108].mxu0  ;;  %v1364_v45 = vpop.f32.mrb[108].mxu1 }
 0x1be   : > { %2051 = vst.msk [vmem:[%s3331_s29 + $0xd4] sm:$0xf] %vm1997_vm4, %v2533_v41  ;;  %v1117_v61 = vadd.f32 %v3597_v36, %v1116_v43  ;;  %v2779_v44 = vpop.f32.mrb[109].mxu0  ;;  %2113 = vst.msk [vmem:[%s3331_s29 + $0x1cc] sm:$0xf] %vm1997_vm4, %v2595_v42  ;;  %v1365_v47 = vadd.f32 %v3597_v36, %v1364_v45  ;;  %v2903_v48 = vpop.f32.mrb[109].mxu1 }
 0x1bf   : > { %v1119_v46 = vpop.f32.mrb[110].mxu0  ;;  %v1367_v52 = vpop.f32.mrb[110].mxu1 }
 0x1c0   : > { %v1441_v49 = vmax.f32 %v1117_v61, 0.0  ;;  %v1120_v50 = vadd.f32 %v3597_v36, %v1119_v46  ;;  %v2780_v51 = vpop.f32.mrb[111].mxu0  ;;  %v1503_v53 = vmax.f32 %v1365_v47, 0.0  ;;  %v1368_v54 = vadd.f32 %v3597_v36, %v1367_v52  ;;  %v2904_v55 = vpop.f32.mrb[111].mxu1 }
 0x1c2   : > { %v2534_v56 = vpack.c.bf16 %v1441_v49, %v1441_v49  ;;  %v1442_v57 = vmax.f32 %v1120_v50, 0.0  ;;  %v2596_v58 = vpack.c.bf16 %v1503_v53, %v1503_v53  ;;  %v1504_v59 = vmax.f32 %v1368_v54, 0.0 }
 0x1c4   : > { %2052 = vst.msk [vmem:[%s3331_s29 + $0xd8] sm:$0xf] %vm1997_vm4, %v2534_v56  ;;  %v2535_v60 = vpack.c.bf16 %v1442_v57, %v1442_v57  ;;  %2114 = vst.msk [vmem:[%s3331_s29 + $0x1d0] sm:$0xf] %vm1997_vm4, %v2596_v58  ;;  %v2597_v62 = vpack.c.bf16 %v1504_v59, %v1504_v59 }
 0x1c5   : > { %v1124_v63 = vpop.f32.mrb[112].mxu0  ;;  %v1372_v3 = vpop.f32.mrb[112].mxu1 }
 0x1c6   : > { %2053 = vst.msk [vmem:[%s3331_s29 + $0xdc] sm:$0xf] %vm1997_vm4, %v2535_v60  ;;  %v1125_v0 = vadd.f32 %v3597_v36, %v1124_v63  ;;  %v2783_v2 = vpop.f32.mrb[113].mxu0  ;;  %2115 = vst.msk [vmem:[%s3331_s29 + $0x1d4] sm:$0xf] %vm1997_vm4, %v2597_v62  ;;  %v1373_v5 = vadd.f32 %v3597_v36, %v1372_v3  ;;  %v2907_v6 = vpop.f32.mrb[113].mxu1 }
 0x1c7   : > { %v1127_v4 = vpop.f32.mrb[114].mxu0  ;;  %v1375_v9 = vpop.f32.mrb[114].mxu1 }
 0x1c8   : > { %v1443_v7 = vmax.f32 %v1125_v0, 0.0  ;;  %v1128_v8 = vadd.f32 %v3597_v36, %v1127_v4  ;;  %v2784_v1 = vpop.f32.mrb[115].mxu0  ;;  %v1505_v10 = vmax.f32 %v1373_v5, 0.0  ;;  %v1376_v11 = vadd.f32 %v3597_v36, %v1375_v9  ;;  %v2908_v12 = vpop.f32.mrb[115].mxu1 }
 0x1ca   : > { %v2536_v13 = vpack.c.bf16 %v1443_v7, %v1443_v7  ;;  %v1444_v14 = vmax.f32 %v1128_v8, 0.0  ;;  %v2598_v15 = vpack.c.bf16 %v1505_v10, %v1505_v10  ;;  %v1506_v16 = vmax.f32 %v1376_v11, 0.0 }
 0x1cc   : > { %2054 = vst.msk [vmem:[%s3331_s29 + $0xe0] sm:$0xf] %vm1997_vm4, %v2536_v13  ;;  %v2537_v17 = vpack.c.bf16 %v1444_v14, %v1444_v14  ;;  %2116 = vst.msk [vmem:[%s3331_s29 + $0x1d8] sm:$0xf] %vm1997_vm4, %v2598_v15  ;;  %v2599_v18 = vpack.c.bf16 %v1506_v16, %v1506_v16 }
 0x1cd   : > { %v1132_v19 = vpop.f32.mrb[116].mxu0  ;;  %v1380_v22 = vpop.f32.mrb[116].mxu1 }
 0x1ce   : > { %2055 = vst.msk [vmem:[%s3331_s29 + $0xe4] sm:$0xf] %vm1997_vm4, %v2537_v17  ;;  %v1133_v20 = vadd.f32 %v3597_v36, %v1132_v19  ;;  %v2787_v21 = vpop.f32.mrb[117].mxu0  ;;  %2117 = vst.msk [vmem:[%s3331_s29 + $0x1dc] sm:$0xf] %vm1997_vm4, %v2599_v18  ;;  %v1381_v24 = vadd.f32 %v3597_v36, %v1380_v22  ;;  %v2911_v25 = vpop.f32.mrb[117].mxu1 }
 0x1cf   : > { %v1135_v23 = vpop.f32.mrb[118].mxu0  ;;  %v1383_v29 = vpop.f32.mrb[118].mxu1 }
 0x1d0   : > { %v1445_v26 = vmax.f32 %v1133_v20, 0.0  ;;  %v1136_v27 = vadd.f32 %v3597_v36, %v1135_v23  ;;  %v2788_v28 = vpop.f32.mrb[119].mxu0  ;;  %v1507_v30 = vmax.f32 %v1381_v24, 0.0  ;;  %v1384_v31 = vadd.f32 %v3597_v36, %v1383_v29  ;;  %v2912_v32 = vpop.f32.mrb[119].mxu1 }
 0x1d2   : > { %v2538_v33 = vpack.c.bf16 %v1445_v26, %v1445_v26  ;;  %v1446_v34 = vmax.f32 %v1136_v27, 0.0  ;;  %v2600_v35 = vpack.c.bf16 %v1507_v30, %v1507_v30  ;;  %v1508_v37 = vmax.f32 %v1384_v31, 0.0 }
 0x1d4   : > { %2056 = vst.msk [vmem:[%s3331_s29 + $0xe8] sm:$0xf] %vm1997_vm4, %v2538_v33  ;;  %v2539_v38 = vpack.c.bf16 %v1446_v34, %v1446_v34  ;;  %2118 = vst.msk [vmem:[%s3331_s29 + $0x1e0] sm:$0xf] %vm1997_vm4, %v2600_v35  ;;  %v2601_v39 = vpack.c.bf16 %v1508_v37, %v1508_v37 }
 0x1d5   : > { %v1140_v40 = vpop.f32.mrb[120].mxu0 }
 0x1d6   : > { %2057 = vst.msk [vmem:[%s3331_s29 + $0xec] sm:$0xf] %vm1997_vm4, %v2539_v38  ;;  %v1141_v41 = vadd.f32 %v3597_v36, %v1140_v40  ;;  %v2791_v42 = vpop.f32.mrb[121].mxu0  ;;  %2119 = vst.msk [vmem:[%s3331_s29 + $0x1e4] sm:$0xf] %vm1997_vm4, %v2601_v39 }
 0x1d7   : > { %v1143_v43 = vpop.f32.mrb[122].mxu0 }
 0x1d8   : > { %v1447_v61 = vmax.f32 %v1141_v41, 0.0  ;;  %v1144_v44 = vadd.f32 %v3597_v36, %v1143_v43  ;;  %v2792_v45 = vpop.f32.mrb[123].mxu0 }
 0x1da   : > { %v2540_v46 = vpack.c.bf16 %v1447_v61, %v1447_v61  ;;  %v1448_v47 = vmax.f32 %v1144_v44, 0.0 }
 0x1dc   : > { %2058 = vst.msk [vmem:[%s3331_s29 + $0xf0] sm:$0xf] %vm1997_vm4, %v2540_v46  ;;  %v2541_v48 = vpack.c.bf16 %v1448_v47, %v1448_v47 }
 0x1de   : > { %2059 = vst.msk [vmem:[%s3331_s29 + $0xf4] sm:$0xf] %vm1997_vm4, %v2541_v48 }
 0x1df PF: > { %s13_s14 = sadd.s32 1, %s3030_s14   ;;  %s3736_s12 = smov %s3026_s13 }
 0x1e0   : > { %p10_p5 = scmp.ge.s32.totalorder %s13_s14, 4   ;;  %s3737_s13 = smov %s3739_s15 }
 0x1e2   :  { %12 = sbr.rel (!%p10_p5) target bundleno = 2 (0x2), region = 68 }

// kernel: conv_encoder_forward.6
= control target key start
LH: loop header
LB: loop body
LE: loop exit
PB: predicated region body
PF: predicated region fallthrough
CT: control target
= control target key end

     0   :  { %s1788_s12 = smov 0   ;;  %s1790_s13 = smov 0   ;;  %s2070_s0 = inlined_call_operand.vmem [shape: bf16[480,288], index: 0, kind: input, shape index: {}]   ;;  %s2071_s1 = inlined_call_operand.vmem [shape: bf16[288,64], index: 1, kind: input, shape index: {}]   ;;  %s2072_s2 = inlined_call_operand.vmem [shape: f32[1,64], index: 2, kind: input, shape index: {}]   ;;  %s2073_s3 = inlined_call_operand.vmem [shape: bf16[480,64], index: 3, kind: output, shape index: {}]  }
   0x1   :  { %s1792_s14 = smov 0  }
   0x2 LB: > { %s25_s15 = sadd.s32 1, %s1760_s13  ;;  %p1306_p0 = scmp.ge.s32.totalorder %s1764_s14, 1  ;;  %s1764_s14 = sphi %s1792_s14, %s13_s14   ;;  %s1760_s13 = sphi %s1790_s13, %s2075_s13   ;;  %s1756_s12 = sphi %s1788_s12, %s2074_s12  }
   0x3   : > { %p27_p1 = scmp.ge.s32.totalorder %s25_s15, 2  ;;  %p170_p2 = scmp.lt.s32.totalorder %s1764_s14, 3 }
   0x5   : > { %s2077_s15 = smov (%p27_p1, %s25_s15), 0  ;;  %p171_p3 = pnand %p1306_p0, %p170_p2 }
   0x6   : > { %v1664_v0 = vld [vmem:[%s2071_s1 + $0x40] sm:$0xff] (!%p171_p3)   ;;  %v1766_v2 = vmov (!%p171_p3), 0.0   ;;  %s205_s20 = smul.u32 (!%p171_p3), 30, %s1756_s12  ;;  %v1666_v3 = vld [vmem:[%s2071_s1 + $0x48] sm:$0xff] (!%p171_p3)   ;;  %vm1767_vm0 = vmmov (!%p171_p3), 0   ;;  %v1668_v5 = vld [vmem:[%s2071_s1 + $0x50] sm:$0xff] (!%p171_p3)  }
   0x7   : > { %174 = sbr.rel (%p171_p3) target bundleno = 377 (0x179), region = 32  ;;  %v1665_v1 = vld [vmem:[%s2071_s1] sm:$0xff] (!%p171_p3)   ;;  %1573 = vmatprep.subr.bf16.mxu1 (!%p171_p3), %v1766_v2  ;;  %1450 = vmatprep.subr.bf16.mxu0 (!%p171_p3), %v1664_v0  ;;  %v1667_v4 = vld [vmem:[%s2071_s1 + $0x8] sm:$0xff] (!%p171_p3)   ;;  %v1669_v6 = vld [vmem:[%s2071_s1 + $0x10] sm:$0xff] (!%p171_p3)   ;;  %vm665_vm1 = vcmask (!%p171_p3), 261120   ;;  %vm1167_vm2 = vcmask (!%p171_p3), 519168  }
   0x8   : > { %1451 = vmatpush3.bf16.msra.mxu0 (!%p171_p3), %v1665_v1  ;;  %p206_p4 = scmp.lt.s32.totalorder (!%p171_p3), %s205_s20, 59  ;;  %1577 = vmatprep.mubr.msk.bf16.mxu1 (!%p171_p3), %vm1767_vm0, %v1766_v2  ;;  %v1670_v7 = vld [vmem:[%s2071_s1 + $0x58] sm:$0xff] (!%p171_p3)   ;;  %v1672_v9 = vld [vmem:[%s2071_s1 + $0x60] sm:$0xff] (!%p171_p3)   ;;  %v1674_v12 = vld [vmem:[%s2071_s1 + $0x68] sm:$0xff] (!%p171_p3)  }
   0x9   : > { %1452 = vmatprep.subr.bf16.mxu0 (!%p171_p3), %v1666_v3  ;;  %v1671_v8 = vld [vmem:[%s2071_s1 + $0x18] sm:$0xff] (!%p171_p3)   ;;  %v1678_v10 = vld [vmem:[%s2071_s1 + $0x80] sm:$0xff] (!%p171_p3)   ;;  %v1675_v13 = vld [vmem:[%s2071_s1 + $0x28] sm:$0xff] (!%p171_p3)  }
   0xa   : > { %v1673_v11 = vld [vmem:[%s2071_s1 + $0x20] sm:$0xff] (!%p171_p3)   ;;  %1574 = vmatpush3.bf16.msra.mxu1 (!%p171_p3), %v1678_v10  ;;  %v1676_v14 = vld [vmem:[%s2071_s1 + $0x70] sm:$0xff] (!%p171_p3)   ;;  %v1684_v16 = vld [vmem:[%s2071_s1 + $0x88] sm:$0xff] (!%p171_p3)  }
   0xb   : > { %1575 = vmatprep.subr.bf16.mxu1 (!%p171_p3), %v1766_v2  ;;  %v1677_v18 = vld [vmem:[%s2071_s1 + $0x30] sm:$0xff] (!%p171_p3)   ;;  %v1679_v19 = vld [vmem:[%s2071_s1 + $0x78] sm:$0xff] (!%p171_p3)  }
   0xc   : > { %1453 = vmatpush3.bf16.msra.mxu0 (!%p171_p3), %v1667_v4  ;;  %v1680_v20 = vld [vmem:[%s2071_s1 + $0x38] sm:$0xff] (!%p171_p3)  }
   0xd   : > { %1454 = vmatprep.subr.bf16.mxu0 (!%p171_p3), %v1668_v5 }
   0xe   : > { %s2079_s20 = smov (!%p206_p4, %s205_s20), 59  ;;  %1576 = vmatpush3.bf16.msra.mxu1 %v1684_v16 }
   0xf   : > { %s1637_s6 = smul.u32 12, %s2079_s20  ;;  %s1308_s9 = sshll.u32 %s2079_s20, 2 }
  0x10   : > { %1455 = vmatpush3.bf16.msra.mxu0 %v1669_v6  ;;  %s1971_s12 = scalar_lea.vmem %s2073_s3, %s1308_s9 }
  0x11   : > { %1456 = vmatprep.subr.bf16.mxu0 %v1670_v7  ;;  %s1848_s18 = scalar_lea.vmem %s2070_s0, %s1637_s6 }
  0x12   : > { %v1683_v15 = vld [vmem:[%s1848_s18 + $0x4] ss:$12 sps:$4 sm:$0xff]   ;;  %v1685_v17 = vld [vmem:[%s1848_s18 + $0x8] ss:$12 sps:$4 sm:$0xff]   ;;  %v1689_v21 = vld [vmem:[%s1848_s18 + $0x20] ss:$12 sps:$4 sm:$0xff]  }
  0x13   : > { %743 = vmatprep.mubr.bf16.mxu0 %v1683_v15  ;;  %1578 = vmatmul.mubr.msk.bf16.vlgmr.msra.gmra.mrb[0].mxu1 %vm665_vm1, %v1685_v17  ;;  %v1681_v22 = vld [vmem:[%s1848_s18] ss:$12 sps:$4 sm:$0xff]   ;;  %v1686_v23 = vld [vmem:[%s1848_s18 + $0x1c] ss:$12 sps:$4 sm:$0xff]   ;;  %v1693_v24 = vld [vmem:[%s1848_s18 + $0x38] ss:$12 sps:$4 sm:$0xff]  }
  0x14   : > { %1457 = vmatpush3.bf16.msra.mxu0 %v1671_v8  ;;  %1581 = vmatprep.mubr.msk.bf16.mxu1 %vm1767_vm0, %v1766_v2  ;;  %v1688_v25 = vld [vmem:[%s1848_s18 + $0x18] ss:$12 sps:$4 sm:$0xff]   ;;  %v1690_v26 = vld [vmem:[%s1848_s18 + $0x34] ss:$12 sps:$4 sm:$0xff]   ;;  %v1697_v27 = vld [vmem:[%s1848_s18 + $0x50] ss:$12 sps:$4 sm:$0xff]  }
  0x15   : > { %1458 = vmatprep.subr.bf16.mxu0 %v1672_v9  ;;  %v1692_v28 = vld [vmem:[%s1848_s18 + $0x30] ss:$12 sps:$4 sm:$0xff]   ;;  %v1694_v29 = vld [vmem:[%s1848_s18 + $0x4c] ss:$12 sps:$4 sm:$0xff]   ;;  %v1701_v30 = vld [vmem:[%s1848_s18 + $0x68] ss:$12 sps:$4 sm:$0xff]  }
  0x16   : > { %v1696_v31 = vld [vmem:[%s1848_s18 + $0x48] ss:$12 sps:$4 sm:$0xff]   ;;  %v1698_v32 = vld [vmem:[%s1848_s18 + $0x64] ss:$12 sps:$4 sm:$0xff]   ;;  %v1705_v33 = vld [vmem:[%s1848_s18 + $0x80] ss:$12 sps:$4 sm:$0xff]  }
  0x17   : > { %v1700_v34 = vld [vmem:[%s1848_s18 + $0x60] ss:$12 sps:$4 sm:$0xff]   ;;  %v1702_v35 = vld [vmem:[%s1848_s18 + $0x7c] ss:$12 sps:$4 sm:$0xff]   ;;  %v1709_v36 = vld [vmem:[%s1848_s18 + $0x98] ss:$12 sps:$4 sm:$0xff]  }
  0x18   : > { %1459 = vmatpush3.bf16.msra.mxu0 %v1673_v11  ;;  %v1704_v37 = vld [vmem:[%s1848_s18 + $0x78] ss:$12 sps:$4 sm:$0xff]   ;;  %v1706_v38 = vld [vmem:[%s1848_s18 + $0x94] ss:$12 sps:$4 sm:$0xff]   ;;  %v1713_v39 = vld [vmem:[%s1848_s18 + $0xb0] ss:$12 sps:$4 sm:$0xff]  }
  0x19   : > { %1460 = vmatprep.subr.bf16.mxu0 %v1674_v12  ;;  %v1708_v40 = vld [vmem:[%s1848_s18 + $0x90] ss:$12 sps:$4 sm:$0xff]   ;;  %v1710_v41 = vld [vmem:[%s1848_s18 + $0xac] ss:$12 sps:$4 sm:$0xff]   ;;  %v1717_v42 = vld [vmem:[%s1848_s18 + $0xc8] ss:$12 sps:$4 sm:$0xff]  }
  0x1a   : > { %v1712_v43 = vld [vmem:[%s1848_s18 + $0xa8] ss:$12 sps:$4 sm:$0xff]   ;;  %v1714_v44 = vld [vmem:[%s1848_s18 + $0xc4] ss:$12 sps:$4 sm:$0xff]   ;;  %v1721_v45 = vld [vmem:[%s1848_s18 + $0xe0] ss:$12 sps:$4 sm:$0xff]  }
  0x1b   : > { %1582 = vmatmul.mubr.msk.bf16.gmra.mrb[4].mxu1 %vm665_vm1, %v1689_v21  ;;  %v1716_v46 = vld [vmem:[%s1848_s18 + $0xc0] ss:$12 sps:$4 sm:$0xff]   ;;  %v1718_v47 = vld [vmem:[%s1848_s18 + $0xdc] ss:$12 sps:$4 sm:$0xff]   ;;  %v1725_v48 = vld [vmem:[%s1848_s18 + $0xf8] ss:$12 sps:$4 sm:$0xff]  }
  0x1c   : > { %1461 = vmatpush3.bf16.msra.mxu0 %v1675_v13  ;;  %1585 = vmatprep.mubr.msk.bf16.mxu1 %vm1767_vm0, %v1766_v2  ;;  %v1720_v49 = vld [vmem:[%s1848_s18 + $0xd8] ss:$12 sps:$4 sm:$0xff]   ;;  %v1722_v50 = vld [vmem:[%s1848_s18 + $0xf4] ss:$12 sps:$4 sm:$0xff]   ;;  %v1729_v51 = vld [vmem:[%s1848_s18 + $0x110] ss:$12 sps:$4 sm:$0xff]  }
  0x1d   : > { %1462 = vmatprep.subr.bf16.mxu0 %v1676_v14  ;;  %v1724_v52 = vld [vmem:[%s1848_s18 + $0xf0] ss:$12 sps:$4 sm:$0xff]   ;;  %v1726_v53 = vld [vmem:[%s1848_s18 + $0x10c] ss:$12 sps:$4 sm:$0xff]   ;;  %v1733_v54 = vld [vmem:[%s1848_s18 + $0x128] ss:$12 sps:$4 sm:$0xff]  }
  0x1e   : > { %v1728_v55 = vld [vmem:[%s1848_s18 + $0x108] ss:$12 sps:$4 sm:$0xff]   ;;  %v1730_v56 = vld [vmem:[%s1848_s18 + $0x124] ss:$12 sps:$4 sm:$0xff]   ;;  %v1737_v57 = vld [vmem:[%s1848_s18 + $0x140] ss:$12 sps:$4 sm:$0xff]  }
  0x1f   : > { %v1732_v58 = vld [vmem:[%s1848_s18 + $0x120] ss:$12 sps:$4 sm:$0xff]   ;;  %v1734_v59 = vld [vmem:[%s1848_s18 + $0x13c] ss:$12 sps:$4 sm:$0xff]   ;;  %v1741_v60 = vld [vmem:[%s1848_s18 + $0x158] ss:$12 sps:$4 sm:$0xff]  }
  0x20   : > { %1463 = vmatpush3.bf16.msra.mxu0 %v1677_v18  ;;  %v1736_v61 = vld [vmem:[%s1848_s18 + $0x138] ss:$12 sps:$4 sm:$0xff]   ;;  %v1738_v62 = vld [vmem:[%s1848_s18 + $0x154] ss:$12 sps:$4 sm:$0xff]   ;;  %v1740_v63 = vld [vmem:[%s1848_s18 + $0x150] ss:$12 sps:$4 sm:$0xff]  }
  0x21   : > { %1464 = vmatprep.subr.bf16.mxu0 %v1679_v19  ;;  %v1963_v9 = vld [vmem:[%s2072_s2] ss:$0 sm:$0xff] }
  0x23   : > { %1586 = vmatmul.mubr.msk.bf16.gmra.mrb[8].mxu1 %vm665_vm1, %v1693_v24 }
  0x24   : > { %1465 = vmatpush3.bf16.msra.mxu0 %v1680_v20  ;;  %1589 = vmatprep.mubr.msk.bf16.mxu1 %vm1767_vm0, %v1766_v2 }
  0x27   : > { %744 = vmatmul.mubr.bf16.vlgmr.msra.gmra.mrb[0].mxu0 %v1681_v22 }
  0x28   : > { %751 = vmatprep.mubr.bf16.mxu0 %v1686_v23 }
  0x2b   : > { %1590 = vmatmul.mubr.msk.bf16.gmra.mrb[12].mxu1 %vm665_vm1, %v1697_v27 }
  0x2c   : > { %1593 = vmatprep.mubr.msk.bf16.mxu1 %vm1767_vm0, %v1766_v2 }
  0x2f   : > { %752 = vmatmul.mubr.bf16.gmra.mrb[4].mxu0 %v1688_v25 }
  0x30   : > { %759 = vmatprep.mubr.bf16.mxu0 %v1690_v26 }
  0x33   : > { %1594 = vmatmul.mubr.msk.bf16.gmra.mrb[16].mxu1 %vm665_vm1, %v1701_v30 }
  0x34   : > { %1597 = vmatprep.mubr.msk.bf16.mxu1 %vm1767_vm0, %v1766_v2 }
  0x37   : > { %760 = vmatmul.mubr.bf16.gmra.mrb[8].mxu0 %v1692_v28 }
  0x38   : > { %767 = vmatprep.mubr.bf16.mxu0 %v1694_v29 }
  0x3b   : > { %1598 = vmatmul.mubr.msk.bf16.gmra.mrb[20].mxu1 %vm665_vm1, %v1705_v33 }
  0x3c   : > { %1601 = vmatprep.mubr.msk.bf16.mxu1 %vm1767_vm0, %v1766_v2 }
  0x3f   : > { %768 = vmatmul.mubr.bf16.gmra.mrb[12].mxu0 %v1696_v31 }
  0x40   : > { %775 = vmatprep.mubr.bf16.mxu0 %v1698_v32 }
  0x43   : > { %1602 = vmatmul.mubr.msk.bf16.gmra.mrb[24].mxu1 %vm665_vm1, %v1709_v36 }
  0x44   : > { %1605 = vmatprep.mubr.msk.bf16.mxu1 %vm1767_vm0, %v1766_v2 }
  0x47   : > { %776 = vmatmul.mubr.bf16.gmra.mrb[16].mxu0 %v1700_v34 }
  0x48   : > { %783 = vmatprep.mubr.bf16.mxu0 %v1702_v35 }
  0x4b   : > { %1606 = vmatmul.mubr.msk.bf16.gmra.mrb[28].mxu1 %vm665_vm1, %v1713_v39 }
  0x4c   : > { %1609 = vmatprep.mubr.msk.bf16.mxu1 %vm1767_vm0, %v1766_v2 }
  0x4f   : > { %784 = vmatmul.mubr.bf16.gmra.mrb[20].mxu0 %v1704_v37 }
  0x50   : > { %791 = vmatprep.mubr.bf16.mxu0 %v1706_v38 }
  0x53   : > { %1610 = vmatmul.mubr.msk.bf16.gmra.mrb[32].mxu1 %vm665_vm1, %v1717_v42 }
  0x54   : > { %1613 = vmatprep.mubr.msk.bf16.mxu1 %vm1767_vm0, %v1766_v2 }
  0x57   : > { %792 = vmatmul.mubr.bf16.gmra.mrb[24].mxu0 %v1708_v40 }
  0x58   : > { %799 = vmatprep.mubr.bf16.mxu0 %v1710_v41 }
  0x5b   : > { %1614 = vmatmul.mubr.msk.bf16.gmra.mrb[36].mxu1 %vm665_vm1, %v1721_v45 }
  0x5c   : > { %1617 = vmatprep.mubr.msk.bf16.mxu1 %vm1767_vm0, %v1766_v2 }
  0x5f   : > { %800 = vmatmul.mubr.bf16.gmra.mrb[28].mxu0 %v1712_v43 }
  0x60   : > { %807 = vmatprep.mubr.bf16.mxu0 %v1714_v44 }
  0x63   : > { %1618 = vmatmul.mubr.msk.bf16.gmra.mrb[40].mxu1 %vm665_vm1, %v1725_v48 }
  0x64   : > { %1621 = vmatprep.mubr.msk.bf16.mxu1 %vm1767_vm0, %v1766_v2 }
  0x67   : > { %808 = vmatmul.mubr.bf16.gmra.mrb[32].mxu0 %v1716_v46 }
  0x68   : > { %815 = vmatprep.mubr.bf16.mxu0 %v1718_v47 }
  0x6b   : > { %1622 = vmatmul.mubr.msk.bf16.gmra.mrb[44].mxu1 %vm665_vm1, %v1729_v51 }
  0x6c   : > { %1625 = vmatprep.mubr.msk.bf16.mxu1 %vm1767_vm0, %v1766_v2 }
  0x6f   : > { %816 = vmatmul.mubr.bf16.gmra.mrb[36].mxu0 %v1720_v49 }
  0x70   : > { %823 = vmatprep.mubr.bf16.mxu0 %v1722_v50 }
  0x73   : > { %1626 = vmatmul.mubr.msk.bf16.gmra.mrb[48].mxu1 %vm665_vm1, %v1733_v54 }
  0x74   : > { %1629 = vmatprep.mubr.msk.bf16.mxu1 %vm1767_vm0, %v1766_v2 }
  0x77   : > { %824 = vmatmul.mubr.bf16.gmra.mrb[40].mxu0 %v1724_v52 }
  0x78   : > { %831 = vmatprep.mubr.bf16.mxu0 %v1726_v53 }
  0x7b   : > { %1630 = vmatmul.mubr.msk.bf16.gmra.mrb[52].mxu1 %vm665_vm1, %v1737_v57 }
  0x7c   : > { %1633 = vmatprep.mubr.msk.bf16.mxu1 %vm1767_vm0, %v1766_v2 }
  0x7f   : > { %832 = vmatmul.mubr.bf16.gmra.mrb[44].mxu0 %v1728_v55 }
  0x80   : > { %839 = vmatprep.mubr.bf16.mxu0 %v1730_v56 }
  0x83   : > { %1634 = vmatmul.mubr.msk.bf16.gmra.mrb[56].mxu1 %vm665_vm1, %v1741_v60 }
  0x87   : > { %840 = vmatmul.mubr.bf16.gmra.mrb[48].mxu0 %v1732_v58 }
  0x88   : > { %847 = vmatprep.mubr.bf16.mxu0 %v1734_v59 }
  0x8f   : > { %848 = vmatmul.mubr.bf16.gmra.mrb[52].mxu0 %v1736_v61 }
  0x90   : > { %855 = vmatprep.mubr.bf16.mxu0 %v1738_v62 }
  0x97   : > { %856 = vmatmul.mubr.bf16.gmra.mrb[56].mxu0 %v1740_v63 }
  0xe6   : > { %v898_v0 = vpop.f32.mrb[0].mxu1 }
  0xe7   : > { %v1579_v1 = vpop.f32.mrb[1].mxu1 }
  0xe8   : > { %v901_v3 = vpop.f32.mrb[2].mxu1 }
  0xe9   : > { %v1580_v4 = vpop.f32.mrb[3].mxu1 }
  0xee   : > { %v906_v5 = vpop.f32.mrb[4].mxu1 }
  0xef   : > { %v1583_v6 = vpop.f32.mrb[5].mxu1 }
  0xf0   : > { %v909_v2 = vpop.f32.mrb[6].mxu1 }
  0xf1   : > { %v1584_v10 = vpop.f32.mrb[7].mxu1 }
  0xf6   : > { %v914_v18 = vpop.f32.mrb[8].mxu1 }
  0xf7   : > { %v1587_v19 = vpop.f32.mrb[9].mxu1 }
  0xf8   : > { %v917_v23 = vpop.f32.mrb[10].mxu1 }
  0xf9   : > { %v1588_v25 = vpop.f32.mrb[11].mxu1 }
  0xfa   : > { %v1466_v7 = vpop.f32.mrb[0].mxu0 }
  0xfb   : > { %v1467_v8 = vpop.f32.mrb[1].mxu0 }
  0xfc   : > { %v1468_v11 = vadd.f32 %v1467_v8, %v1466_v7  ;;  %v1469_v12 = vpop.f32.mrb[2].mxu0 }
  0xfd   : > { %v1470_v13 = vpop.f32.mrb[3].mxu0 }
  0xfe   : > { %v746_v14 = vadd.f32 %v1468_v11, %v1963_v9  ;;  %v1471_v15 = vadd.f32 %v1470_v13, %v1469_v12  ;;  %v922_v36 = vpop.f32.mrb[12].mxu1 }
  0xff   : > { %v1591_v37 = vpop.f32.mrb[13].mxu1 }
 0x100   : > { %v899_v16 = vadd.f32 %v898_v0, %v746_v14  ;;  %v749_v17 = vadd.f32 %v1471_v15, %v1963_v9  ;;  %v925_v41 = vpop.f32.mrb[14].mxu1 }
 0x101   : > { %v1592_v43 = vpop.f32.mrb[15].mxu1 }
 0x102   : > { %v1017_v20 = vmax.f32 %v899_v16, 0.0  ;;  %v902_v21 = vadd.f32 %v901_v3, %v749_v17  ;;  %v1472_v22 = vpop.f32.mrb[4].mxu0 }
 0x103   : > { %v1473_v24 = vpop.f32.mrb[5].mxu0 }
 0x104   : > { %v1420_v26 = vpack.c.bf16 %v1017_v20, %v1017_v20  ;;  %v1018_v27 = vmax.f32 %v902_v21, 0.0  ;;  %v1474_v28 = vadd.f32 %v1473_v24, %v1472_v22  ;;  %v1475_v29 = vpop.f32.mrb[6].mxu0 }
 0x105   : > { %v1476_v30 = vpop.f32.mrb[7].mxu0 }
 0x106   : > { %1168 = vst.msk [vmem:[%s1971_s12] sm:$0xf] %vm1167_vm2, %v1420_v26  ;;  %v1421_v31 = vpack.c.bf16 %v1018_v27, %v1018_v27  ;;  %v754_v32 = vadd.f32 %v1474_v28, %v1963_v9  ;;  %v1477_v33 = vadd.f32 %v1476_v30, %v1475_v29  ;;  %v930_v54 = vpop.f32.mrb[16].mxu1 }
 0x107   : > { %v1595_v55 = vpop.f32.mrb[17].mxu1 }
 0x108   : > { %1169 = vst.msk [vmem:[%s1971_s12 + $0x4] sm:$0xf] %vm1167_vm2, %v1421_v31  ;;  %v907_v34 = vadd.f32 %v906_v5, %v754_v32  ;;  %v757_v35 = vadd.f32 %v1477_v33, %v1963_v9  ;;  %v933_v59 = vpop.f32.mrb[18].mxu1 }
 0x109   : > { %v1596_v61 = vpop.f32.mrb[19].mxu1 }
 0x10a   : > { %v1019_v38 = vmax.f32 %v907_v34, 0.0  ;;  %v910_v39 = vadd.f32 %v909_v2, %v757_v35  ;;  %v1478_v40 = vpop.f32.mrb[8].mxu0 }
 0x10b   : > { %v1479_v42 = vpop.f32.mrb[9].mxu0 }
 0x10c   : > { %v1422_v44 = vpack.c.bf16 %v1019_v38, %v1019_v38  ;;  %v1020_v45 = vmax.f32 %v910_v39, 0.0  ;;  %v1480_v46 = vadd.f32 %v1479_v42, %v1478_v40  ;;  %v1481_v47 = vpop.f32.mrb[10].mxu0 }
 0x10d   : > { %v1482_v48 = vpop.f32.mrb[11].mxu0 }
 0x10e   : > { %1170 = vst.msk [vmem:[%s1971_s12 + $0x8] sm:$0xf] %vm1167_vm2, %v1422_v44  ;;  %v1423_v49 = vpack.c.bf16 %v1020_v45, %v1020_v45  ;;  %v762_v50 = vadd.f32 %v1480_v46, %v1963_v9  ;;  %v1483_v51 = vadd.f32 %v1482_v48, %v1481_v47  ;;  %v938_v8 = vpop.f32.mrb[20].mxu1 }
 0x10f   : > { %v1599_v10 = vpop.f32.mrb[21].mxu1 }
 0x110   : > { %1171 = vst.msk [vmem:[%s1971_s12 + $0xc] sm:$0xf] %vm1167_vm2, %v1423_v49  ;;  %v915_v52 = vadd.f32 %v914_v18, %v762_v50  ;;  %v765_v53 = vadd.f32 %v1483_v51, %v1963_v9  ;;  %v941_v14 = vpop.f32.mrb[22].mxu1 }
 0x111   : > { %v1600_v16 = vpop.f32.mrb[23].mxu1 }
 0x112   : > { %v1021_v56 = vmax.f32 %v915_v52, 0.0  ;;  %v918_v57 = vadd.f32 %v917_v23, %v765_v53  ;;  %v1484_v58 = vpop.f32.mrb[12].mxu0 }
 0x113   : > { %v1485_v60 = vpop.f32.mrb[13].mxu0 }
 0x114   : > { %v1424_v62 = vpack.c.bf16 %v1021_v56, %v1021_v56  ;;  %v1022_v63 = vmax.f32 %v918_v57, 0.0  ;;  %v1486_v0 = vadd.f32 %v1485_v60, %v1484_v58  ;;  %v1487_v1 = vpop.f32.mrb[14].mxu0 }
 0x115   : > { %v1488_v3 = vpop.f32.mrb[15].mxu0 }
 0x116   : > { %1172 = vst.msk [vmem:[%s1971_s12 + $0x10] sm:$0xf] %vm1167_vm2, %v1424_v62  ;;  %v1425_v4 = vpack.c.bf16 %v1022_v63, %v1022_v63  ;;  %v770_v5 = vadd.f32 %v1486_v0, %v1963_v9  ;;  %v1489_v6 = vadd.f32 %v1488_v3, %v1487_v1  ;;  %v946_v27 = vpop.f32.mrb[24].mxu1 }
 0x117   : > { %v1603_v28 = vpop.f32.mrb[25].mxu1 }
 0x118   : > { %1173 = vst.msk [vmem:[%s1971_s12 + $0x14] sm:$0xf] %vm1167_vm2, %v1425_v4  ;;  %v923_v7 = vadd.f32 %v922_v36, %v770_v5  ;;  %v773_v2 = vadd.f32 %v1489_v6, %v1963_v9  ;;  %v949_v32 = vpop.f32.mrb[26].mxu1 }
 0x119   : > { %v1604_v34 = vpop.f32.mrb[27].mxu1 }
 0x11a   : > { %v1023_v11 = vmax.f32 %v923_v7, 0.0  ;;  %v926_v12 = vadd.f32 %v925_v41, %v773_v2  ;;  %v1490_v13 = vpop.f32.mrb[16].mxu0 }
 0x11b   : > { %v1491_v15 = vpop.f32.mrb[17].mxu0 }
 0x11c   : > { %v1426_v17 = vpack.c.bf16 %v1023_v11, %v1023_v11  ;;  %v1024_v18 = vmax.f32 %v926_v12, 0.0  ;;  %v1492_v19 = vadd.f32 %v1491_v15, %v1490_v13  ;;  %v1493_v20 = vpop.f32.mrb[18].mxu0 }
 0x11d   : > { %v1494_v21 = vpop.f32.mrb[19].mxu0 }
 0x11e   : > { %1174 = vst.msk [vmem:[%s1971_s12 + $0x18] sm:$0xf] %vm1167_vm2, %v1426_v17  ;;  %v1427_v22 = vpack.c.bf16 %v1024_v18, %v1024_v18  ;;  %v778_v23 = vadd.f32 %v1492_v19, %v1963_v9  ;;  %v1495_v24 = vadd.f32 %v1494_v21, %v1493_v20  ;;  %v954_v45 = vpop.f32.mrb[28].mxu1 }
 0x11f   : > { %v1607_v46 = vpop.f32.mrb[29].mxu1 }
 0x120   : > { %1175 = vst.msk [vmem:[%s1971_s12 + $0x1c] sm:$0xf] %vm1167_vm2, %v1427_v22  ;;  %v931_v25 = vadd.f32 %v930_v54, %v778_v23  ;;  %v781_v26 = vadd.f32 %v1495_v24, %v1963_v9  ;;  %v957_v50 = vpop.f32.mrb[30].mxu1 }
 0x121   : > { %v1608_v52 = vpop.f32.mrb[31].mxu1 }
 0x122   : > { %v1025_v29 = vmax.f32 %v931_v25, 0.0  ;;  %v934_v30 = vadd.f32 %v933_v59, %v781_v26  ;;  %v1496_v31 = vpop.f32.mrb[20].mxu0 }
 0x123   : > { %v1497_v33 = vpop.f32.mrb[21].mxu0 }
 0x124   : > { %v1428_v35 = vpack.c.bf16 %v1025_v29, %v1025_v29  ;;  %v1026_v36 = vmax.f32 %v934_v30, 0.0  ;;  %v1498_v37 = vadd.f32 %v1497_v33, %v1496_v31  ;;  %v1499_v38 = vpop.f32.mrb[22].mxu0 }
 0x125   : > { %v1500_v39 = vpop.f32.mrb[23].mxu0 }
 0x126   : > { %1176 = vst.msk [vmem:[%s1971_s12 + $0x20] sm:$0xf] %vm1167_vm2, %v1428_v35  ;;  %v1429_v40 = vpack.c.bf16 %v1026_v36, %v1026_v36  ;;  %v786_v41 = vadd.f32 %v1498_v37, %v1963_v9  ;;  %v1501_v42 = vadd.f32 %v1500_v39, %v1499_v38  ;;  %v962_v63 = vpop.f32.mrb[32].mxu1 }
 0x127   : > { %v1611_v0 = vpop.f32.mrb[33].mxu1 }
 0x128   : > { %1177 = vst.msk [vmem:[%s1971_s12 + $0x24] sm:$0xf] %vm1167_vm2, %v1429_v40  ;;  %v939_v43 = vadd.f32 %v938_v8, %v786_v41  ;;  %v789_v44 = vadd.f32 %v1501_v42, %v1963_v9  ;;  %v965_v5 = vpop.f32.mrb[34].mxu1 }
 0x129   : > { %v1612_v7 = vpop.f32.mrb[35].mxu1 }
 0x12a   : > { %v1027_v47 = vmax.f32 %v939_v43, 0.0  ;;  %v942_v48 = vadd.f32 %v941_v14, %v789_v44  ;;  %v1502_v49 = vpop.f32.mrb[24].mxu0 }
 0x12b   : > { %v1503_v51 = vpop.f32.mrb[25].mxu0 }
 0x12c   : > { %v1430_v53 = vpack.c.bf16 %v1027_v47, %v1027_v47  ;;  %v1028_v54 = vmax.f32 %v942_v48, 0.0  ;;  %v1504_v55 = vadd.f32 %v1503_v51, %v1502_v49  ;;  %v1505_v56 = vpop.f32.mrb[26].mxu0 }
 0x12d   : > { %v1506_v57 = vpop.f32.mrb[27].mxu0 }
 0x12e   : > { %1178 = vst.msk [vmem:[%s1971_s12 + $0x28] sm:$0xf] %vm1167_vm2, %v1430_v53  ;;  %v1431_v58 = vpack.c.bf16 %v1028_v54, %v1028_v54  ;;  %v794_v59 = vadd.f32 %v1504_v55, %v1963_v9  ;;  %v1507_v60 = vadd.f32 %v1506_v57, %v1505_v56  ;;  %v970_v18 = vpop.f32.mrb[36].mxu1 }
 0x12f   : > { %v1615_v19 = vpop.f32.mrb[37].mxu1 }
 0x130   : > { %1179 = vst.msk [vmem:[%s1971_s12 + $0x2c] sm:$0xf] %vm1167_vm2, %v1431_v58  ;;  %v947_v61 = vadd.f32 %v946_v27, %v794_v59  ;;  %v797_v62 = vadd.f32 %v1507_v60, %v1963_v9  ;;  %v973_v23 = vpop.f32.mrb[38].mxu1 }
 0x131   : > { %v1616_v25 = vpop.f32.mrb[39].mxu1 }
 0x132   : > { %v1029_v1 = vmax.f32 %v947_v61, 0.0  ;;  %v950_v3 = vadd.f32 %v949_v32, %v797_v62  ;;  %v1508_v4 = vpop.f32.mrb[28].mxu0 }
 0x133   : > { %v1509_v6 = vpop.f32.mrb[29].mxu0 }
 0x134   : > { %v1432_v2 = vpack.c.bf16 %v1029_v1, %v1029_v1  ;;  %v1030_v8 = vmax.f32 %v950_v3, 0.0  ;;  %v1510_v10 = vadd.f32 %v1509_v6, %v1508_v4  ;;  %v1511_v11 = vpop.f32.mrb[30].mxu0 }
 0x135   : > { %v1512_v12 = vpop.f32.mrb[31].mxu0 }
 0x136   : > { %1180 = vst.msk [vmem:[%s1971_s12 + $0x30] sm:$0xf] %vm1167_vm2, %v1432_v2  ;;  %v1433_v13 = vpack.c.bf16 %v1030_v8, %v1030_v8  ;;  %v802_v14 = vadd.f32 %v1510_v10, %v1963_v9  ;;  %v1513_v15 = vadd.f32 %v1512_v12, %v1511_v11  ;;  %v978_v36 = vpop.f32.mrb[40].mxu1 }
 0x137   : > { %v1619_v37 = vpop.f32.mrb[41].mxu1 }
 0x138   : > { %1181 = vst.msk [vmem:[%s1971_s12 + $0x34] sm:$0xf] %vm1167_vm2, %v1433_v13  ;;  %v955_v16 = vadd.f32 %v954_v45, %v802_v14  ;;  %v805_v17 = vadd.f32 %v1513_v15, %v1963_v9  ;;  %v981_v41 = vpop.f32.mrb[42].mxu1 }
 0x139   : > { %v1620_v43 = vpop.f32.mrb[43].mxu1 }
 0x13a   : > { %v1031_v20 = vmax.f32 %v955_v16, 0.0  ;;  %v958_v21 = vadd.f32 %v957_v50, %v805_v17  ;;  %v1514_v22 = vpop.f32.mrb[32].mxu0 }
 0x13b   : > { %v1515_v24 = vpop.f32.mrb[33].mxu0 }
 0x13c   : > { %v1434_v26 = vpack.c.bf16 %v1031_v20, %v1031_v20  ;;  %v1032_v27 = vmax.f32 %v958_v21, 0.0  ;;  %v1516_v28 = vadd.f32 %v1515_v24, %v1514_v22  ;;  %v1517_v29 = vpop.f32.mrb[34].mxu0 }
 0x13d   : > { %v1518_v30 = vpop.f32.mrb[35].mxu0 }
 0x13e   : > { %1182 = vst.msk [vmem:[%s1971_s12 + $0x38] sm:$0xf] %vm1167_vm2, %v1434_v26  ;;  %v1435_v31 = vpack.c.bf16 %v1032_v27, %v1032_v27  ;;  %v810_v32 = vadd.f32 %v1516_v28, %v1963_v9  ;;  %v1519_v33 = vadd.f32 %v1518_v30, %v1517_v29  ;;  %v986_v54 = vpop.f32.mrb[44].mxu1 }
 0x13f   : > { %v1623_v55 = vpop.f32.mrb[45].mxu1 }
 0x140   : > { %1183 = vst.msk [vmem:[%s1971_s12 + $0x3c] sm:$0xf] %vm1167_vm2, %v1435_v31  ;;  %v963_v34 = vadd.f32 %v962_v63, %v810_v32  ;;  %v813_v35 = vadd.f32 %v1519_v33, %v1963_v9  ;;  %v989_v59 = vpop.f32.mrb[46].mxu1 }
 0x141   : > { %v1624_v61 = vpop.f32.mrb[47].mxu1 }
 0x142   : > { %v1033_v38 = vmax.f32 %v963_v34, 0.0  ;;  %v966_v39 = vadd.f32 %v965_v5, %v813_v35  ;;  %v1520_v40 = vpop.f32.mrb[36].mxu0 }
 0x143   : > { %v1521_v42 = vpop.f32.mrb[37].mxu0 }
 0x144   : > { %v1436_v44 = vpack.c.bf16 %v1033_v38, %v1033_v38  ;;  %v1034_v45 = vmax.f32 %v966_v39, 0.0  ;;  %v1522_v46 = vadd.f32 %v1521_v42, %v1520_v40  ;;  %v1523_v47 = vpop.f32.mrb[38].mxu0 }
 0x145   : > { %v1524_v48 = vpop.f32.mrb[39].mxu0 }
 0x146   : > { %1184 = vst.msk [vmem:[%s1971_s12 + $0x40] sm:$0xf] %vm1167_vm2, %v1436_v44  ;;  %v1437_v49 = vpack.c.bf16 %v1034_v45, %v1034_v45  ;;  %v818_v50 = vadd.f32 %v1522_v46, %v1963_v9  ;;  %v1525_v51 = vadd.f32 %v1524_v48, %v1523_v47  ;;  %v994_v8 = vpop.f32.mrb[48].mxu1 }
 0x147   : > { %v1627_v10 = vpop.f32.mrb[49].mxu1 }
 0x148   : > { %1185 = vst.msk [vmem:[%s1971_s12 + $0x44] sm:$0xf] %vm1167_vm2, %v1437_v49  ;;  %v971_v52 = vadd.f32 %v970_v18, %v818_v50  ;;  %v821_v53 = vadd.f32 %v1525_v51, %v1963_v9  ;;  %v997_v14 = vpop.f32.mrb[50].mxu1 }
 0x149   : > { %v1628_v16 = vpop.f32.mrb[51].mxu1 }
 0x14a   : > { %v1035_v56 = vmax.f32 %v971_v52, 0.0  ;;  %v974_v57 = vadd.f32 %v973_v23, %v821_v53  ;;  %v1526_v58 = vpop.f32.mrb[40].mxu0 }
 0x14b   : > { %v1527_v60 = vpop.f32.mrb[41].mxu0 }
 0x14c   : > { %v1438_v62 = vpack.c.bf16 %v1035_v56, %v1035_v56  ;;  %v1036_v63 = vmax.f32 %v974_v57, 0.0  ;;  %v1528_v0 = vadd.f32 %v1527_v60, %v1526_v58  ;;  %v1529_v1 = vpop.f32.mrb[42].mxu0 }
 0x14d   : > { %v1530_v3 = vpop.f32.mrb[43].mxu0 }
 0x14e   : > { %1186 = vst.msk [vmem:[%s1971_s12 + $0x48] sm:$0xf] %vm1167_vm2, %v1438_v62  ;;  %v1439_v4 = vpack.c.bf16 %v1036_v63, %v1036_v63  ;;  %v826_v5 = vadd.f32 %v1528_v0, %v1963_v9  ;;  %v1531_v6 = vadd.f32 %v1530_v3, %v1529_v1  ;;  %v1002_v27 = vpop.f32.mrb[52].mxu1 }
 0x14f   : > { %v1631_v28 = vpop.f32.mrb[53].mxu1 }
 0x150   : > { %1187 = vst.msk [vmem:[%s1971_s12 + $0x4c] sm:$0xf] %vm1167_vm2, %v1439_v4  ;;  %v979_v7 = vadd.f32 %v978_v36, %v826_v5  ;;  %v829_v2 = vadd.f32 %v1531_v6, %v1963_v9  ;;  %v1005_v32 = vpop.f32.mrb[54].mxu1 }
 0x151   : > { %v1632_v34 = vpop.f32.mrb[55].mxu1 }
 0x152   : > { %v1037_v11 = vmax.f32 %v979_v7, 0.0  ;;  %v982_v12 = vadd.f32 %v981_v41, %v829_v2  ;;  %v1532_v13 = vpop.f32.mrb[44].mxu0 }
 0x153   : > { %v1533_v15 = vpop.f32.mrb[45].mxu0 }
 0x154   : > { %v1440_v17 = vpack.c.bf16 %v1037_v11, %v1037_v11  ;;  %v1038_v18 = vmax.f32 %v982_v12, 0.0  ;;  %v1534_v19 = vadd.f32 %v1533_v15, %v1532_v13  ;;  %v1535_v20 = vpop.f32.mrb[46].mxu0 }
 0x155   : > { %v1536_v21 = vpop.f32.mrb[47].mxu0 }
 0x156   : > { %1188 = vst.msk [vmem:[%s1971_s12 + $0x50] sm:$0xf] %vm1167_vm2, %v1440_v17  ;;  %v1441_v22 = vpack.c.bf16 %v1038_v18, %v1038_v18  ;;  %v834_v23 = vadd.f32 %v1534_v19, %v1963_v9  ;;  %v1537_v24 = vadd.f32 %v1536_v21, %v1535_v20  ;;  %v1010_v45 = vpop.f32.mrb[56].mxu1 }
 0x157   : > { %v1635_v46 = vpop.f32.mrb[57].mxu1 }
 0x158   : > { %1189 = vst.msk [vmem:[%s1971_s12 + $0x54] sm:$0xf] %vm1167_vm2, %v1441_v22  ;;  %v987_v25 = vadd.f32 %v986_v54, %v834_v23  ;;  %v837_v26 = vadd.f32 %v1537_v24, %v1963_v9  ;;  %v1013_v50 = vpop.f32.mrb[58].mxu1 }
 0x159   : > { %v1636_v52 = vpop.f32.mrb[59].mxu1 }
 0x15a   : > { %v1039_v29 = vmax.f32 %v987_v25, 0.0  ;;  %v990_v30 = vadd.f32 %v989_v59, %v837_v26  ;;  %v1538_v31 = vpop.f32.mrb[48].mxu0 }
 0x15b   : > { %v1539_v33 = vpop.f32.mrb[49].mxu0 }
 0x15c   : > { %v1442_v35 = vpack.c.bf16 %v1039_v29, %v1039_v29  ;;  %v1040_v36 = vmax.f32 %v990_v30, 0.0  ;;  %v1540_v37 = vadd.f32 %v1539_v33, %v1538_v31  ;;  %v1541_v38 = vpop.f32.mrb[50].mxu0 }
 0x15d   : > { %v1542_v39 = vpop.f32.mrb[51].mxu0 }
 0x15e   : > { %1190 = vst.msk [vmem:[%s1971_s12 + $0x58] sm:$0xf] %vm1167_vm2, %v1442_v35  ;;  %v1443_v40 = vpack.c.bf16 %v1040_v36, %v1040_v36  ;;  %v842_v41 = vadd.f32 %v1540_v37, %v1963_v9  ;;  %v1543_v42 = vadd.f32 %v1542_v39, %v1541_v38 }
 0x160   : > { %1191 = vst.msk [vmem:[%s1971_s12 + $0x5c] sm:$0xf] %vm1167_vm2, %v1443_v40  ;;  %v995_v43 = vadd.f32 %v994_v8, %v842_v41  ;;  %v845_v44 = vadd.f32 %v1543_v42, %v1963_v9 }
 0x162   : > { %v1041_v47 = vmax.f32 %v995_v43, 0.0  ;;  %v998_v48 = vadd.f32 %v997_v14, %v845_v44  ;;  %v1544_v49 = vpop.f32.mrb[52].mxu0 }
 0x163   : > { %v1545_v51 = vpop.f32.mrb[53].mxu0 }
 0x164   : > { %v1444_v53 = vpack.c.bf16 %v1041_v47, %v1041_v47  ;;  %v1042_v54 = vmax.f32 %v998_v48, 0.0  ;;  %v1546_v55 = vadd.f32 %v1545_v51, %v1544_v49  ;;  %v1547_v56 = vpop.f32.mrb[54].mxu0 }
 0x165   : > { %v1548_v57 = vpop.f32.mrb[55].mxu0 }
 0x166   : > { %1192 = vst.msk [vmem:[%s1971_s12 + $0x60] sm:$0xf] %vm1167_vm2, %v1444_v53  ;;  %v1445_v58 = vpack.c.bf16 %v1042_v54, %v1042_v54  ;;  %v850_v59 = vadd.f32 %v1546_v55, %v1963_v9  ;;  %v1549_v60 = vadd.f32 %v1548_v57, %v1547_v56 }
 0x168   : > { %1193 = vst.msk [vmem:[%s1971_s12 + $0x64] sm:$0xf] %vm1167_vm2, %v1445_v58  ;;  %v1003_v61 = vadd.f32 %v1002_v27, %v850_v59  ;;  %v853_v62 = vadd.f32 %v1549_v60, %v1963_v9 }
 0x16a   : > { %v1043_v63 = vmax.f32 %v1003_v61, 0.0  ;;  %v1006_v0 = vadd.f32 %v1005_v32, %v853_v62  ;;  %v1550_v1 = vpop.f32.mrb[56].mxu0 }
 0x16b   : > { %v1551_v3 = vpop.f32.mrb[57].mxu0 }
 0x16c   : > { %v1446_v4 = vpack.c.bf16 %v1043_v63, %v1043_v63  ;;  %v1044_v5 = vmax.f32 %v1006_v0, 0.0  ;;  %v1552_v6 = vadd.f32 %v1551_v3, %v1550_v1  ;;  %v1553_v7 = vpop.f32.mrb[58].mxu0 }
 0x16d   : > { %v1554_v2 = vpop.f32.mrb[59].mxu0 }
 0x16e   : > { %1194 = vst.msk [vmem:[%s1971_s12 + $0x68] sm:$0xf] %vm1167_vm2, %v1446_v4  ;;  %v1447_v8 = vpack.c.bf16 %v1044_v5, %v1044_v5  ;;  %v858_v10 = vadd.f32 %v1552_v6, %v1963_v9  ;;  %v1555_v11 = vadd.f32 %v1554_v2, %v1553_v7 }
 0x170   : > { %1195 = vst.msk [vmem:[%s1971_s12 + $0x6c] sm:$0xf] %vm1167_vm2, %v1447_v8  ;;  %v1011_v12 = vadd.f32 %v1010_v45, %v858_v10  ;;  %v861_v13 = vadd.f32 %v1555_v11, %v1963_v9 }
 0x172   : > { %v1045_v14 = vmax.f32 %v1011_v12, 0.0  ;;  %v1014_v15 = vadd.f32 %v1013_v50, %v861_v13 }
 0x174   : > { %v1448_v16 = vpack.c.bf16 %v1045_v14, %v1045_v14  ;;  %v1046_v17 = vmax.f32 %v1014_v15, 0.0 }
 0x176   : > { %1196 = vst.msk [vmem:[%s1971_s12 + $0x70] sm:$0xf] %vm1167_vm2, %v1448_v16  ;;  %v1449_v18 = vpack.c.bf16 %v1046_v17, %v1046_v17 }
 0x178   : > { %1197 = vst.msk [vmem:[%s1971_s12 + $0x74] sm:$0xf] %vm1167_vm2, %v1449_v18 }
 0x179 PF: > { %s13_s14 = sadd.s32 1, %s1764_s14   ;;  %s2074_s12 = smov %s1760_s13 }
 0x17a   : > { %p10_p5 = scmp.ge.s32.totalorder %s13_s14, 4   ;;  %s2075_s13 = smov %s2077_s15 }
 0x17c   :  { %12 = sbr.rel (!%p10_p5) target bundleno = 2 (0x2), region = 68 }

// kernel: conv_encoder_forward.7
= control target key start
LH: loop header
LB: loop body
LE: loop exit
PB: predicated region body
PF: predicated region fallthrough
CT: control target
= control target key end

     0   :  { %v1310_v34 = vmov 0.0   ;;  %vm1311_vm0 = vmmov 0   ;;  %vm527_vm1 = vcmask 523264   ;;  %s1638_s1 = inlined_call_operand.vmem [shape: bf16[576,128], index: 1, kind: input, shape index: {}]   ;;  %s1639_s0 = inlined_call_operand.vmem [shape: bf16[112,576], index: 0, kind: input, shape index: {}]   ;;  %s1640_s2 = inlined_call_operand.vmem [shape: f32[1,128], index: 2, kind: input, shape index: {}]   ;;  %s1641_s3 = inlined_call_operand.vmem [shape: bf16[112,128], index: 3, kind: output, shape index: {}]  }
   0x1   :  { %v1225_v0 = vld [vmem:[%s1638_s1 + $0x40] sm:$0xff]   ;;  %v1229_v4 = vld [vmem:[%s1638_s1 + $0x48] sm:$0xff]   ;;  %v1233_v8 = vld [vmem:[%s1638_s1 + $0x50] sm:$0xff]  }
   0x2   :  { %v1226_v1 = vld [vmem:[%s1638_s1 + $0xc0] sm:$0xff]   ;;  %1052 = vmatprep.subr.bf16.mxu0 %v1225_v0  ;;  %v1230_v5 = vld [vmem:[%s1638_s1 + $0xc8] sm:$0xff]   ;;  %v1234_v9 = vld [vmem:[%s1638_s1 + $0xd0] sm:$0xff]  }
   0x3   :  { %v1227_v2 = vld [vmem:[%s1638_s1] sm:$0xff]   ;;  %1110 = vmatprep.subr.bf16.mxu1 %v1226_v1  ;;  %v1231_v6 = vld [vmem:[%s1638_s1 + $0x8] sm:$0xff]   ;;  %v1235_v10 = vld [vmem:[%s1638_s1 + $0x10] sm:$0xff]  }
   0x4   :  { %v1228_v3 = vld [vmem:[%s1638_s1 + $0x80] sm:$0xff]   ;;  %1053 = vmatpush3.bf16.msra.mxu0 %v1227_v2  ;;  %v1232_v7 = vld [vmem:[%s1638_s1 + $0x88] sm:$0xff]   ;;  %v1236_v11 = vld [vmem:[%s1638_s1 + $0x90] sm:$0xff]  }
   0x5   :  { %1111 = vmatpush3.bf16.msra.mxu1 %v1228_v3  ;;  %1054 = vmatprep.subr.bf16.mxu0 %v1229_v4  ;;  %v1237_v12 = vld [vmem:[%s1638_s1 + $0x58] sm:$0xff]   ;;  %v1241_v16 = vld [vmem:[%s1638_s1 + $0x60] sm:$0xff]   ;;  %v1245_v20 = vld [vmem:[%s1638_s1 + $0x68] sm:$0xff]  }
   0x6   :  { %1112 = vmatprep.subr.bf16.mxu1 %v1230_v5  ;;  %v1238_v13 = vld [vmem:[%s1638_s1 + $0xd8] sm:$0xff]   ;;  %v1242_v17 = vld [vmem:[%s1638_s1 + $0xe0] sm:$0xff]   ;;  %v1246_v21 = vld [vmem:[%s1638_s1 + $0xe8] sm:$0xff]  }
   0x7   :  { %v1239_v14 = vld [vmem:[%s1638_s1 + $0x18] sm:$0xff]   ;;  %v1243_v18 = vld [vmem:[%s1638_s1 + $0x20] sm:$0xff]   ;;  %v1247_v22 = vld [vmem:[%s1638_s1 + $0x28] sm:$0xff]  }
   0x8   :  { %1055 = vmatpush3.bf16.msra.mxu0 %v1231_v6  ;;  %v1240_v15 = vld [vmem:[%s1638_s1 + $0x98] sm:$0xff]   ;;  %v1244_v19 = vld [vmem:[%s1638_s1 + $0xa0] sm:$0xff]   ;;  %v1248_v23 = vld [vmem:[%s1638_s1 + $0xa8] sm:$0xff]  }
   0x9   :  { %1113 = vmatpush3.bf16.msra.mxu1 %v1232_v7  ;;  %1056 = vmatprep.subr.bf16.mxu0 %v1233_v8  ;;  %v1249_v24 = vld [vmem:[%s1638_s1 + $0x70] sm:$0xff]   ;;  %v1253_v28 = vld [vmem:[%s1638_s1 + $0x78] sm:$0xff]   ;;  %v1262_v36 = vld [vmem:[%s1639_s0 + $0xc] ss:$20 sps:$4 sm:$0xff]  }
   0xa   :  { %1114 = vmatprep.subr.bf16.mxu1 %v1234_v9  ;;  %v1250_v25 = vld [vmem:[%s1638_s1 + $0xf0] sm:$0xff]   ;;  %v1254_v29 = vld [vmem:[%s1638_s1 + $0xf8] sm:$0xff]   ;;  %v1263_v37 = vld [vmem:[%s1638_s1 + $0x100] sm:$0xff]   ;;  %670 = vmatprep.mubr.bf16.mxu1 %v1262_v36 }
   0xb   :  { %v1251_v26 = vld [vmem:[%s1638_s1 + $0x30] sm:$0xff]   ;;  %v1255_v30 = vld [vmem:[%s1638_s1 + $0x38] sm:$0xff]   ;;  %v1264_v38 = vld [vmem:[%s1639_s0 + $0x2c] ss:$20 sps:$4 sm:$0xff]  }
   0xc   :  { %1057 = vmatpush3.bf16.msra.mxu0 %v1235_v10  ;;  %v1252_v27 = vld [vmem:[%s1638_s1 + $0xb0] sm:$0xff]   ;;  %v1256_v31 = vld [vmem:[%s1638_s1 + $0xb8] sm:$0xff]   ;;  %v1274_v43 = vld [vmem:[%s1638_s1 + $0x108] sm:$0xff]  }
   0xd   :  { %1115 = vmatpush3.bf16.msra.mxu1 %v1236_v11  ;;  %1058 = vmatprep.subr.bf16.mxu0 %v1237_v12  ;;  %v1257_v32 = vld [vmem:[%s1639_s0] ss:$20 sps:$4 sm:$0xff]   ;;  %v1259_v33 = vld [vmem:[%s1639_s0 + $0x4] ss:$20 sps:$4 sm:$0xff]   ;;  %v1260_v35 = vld [vmem:[%s1639_s0 + $0x8] ss:$20 sps:$4 sm:$0xff]  }
   0xe   :  { %1116 = vmatprep.subr.bf16.mxu1 %v1238_v13  ;;  %581 = vmatprep.mubr.bf16.mxu0 %v1259_v33  ;;  %v1266_v39 = vld [vmem:[%s1639_s0 + $0x34] ss:$20 sps:$4 sm:$0xff]   ;;  %v1269_v41 = vld [vmem:[%s1639_s0 + $0x30] ss:$20 sps:$4 sm:$0xff]   ;;  %v1276_v47 = vld [vmem:[%s1639_s0 + $0x58] ss:$20 sps:$4 sm:$0xff]  }
   0xf   :  { %v1268_v40 = vld [vmem:[%s1639_s0 + $0x28] ss:$20 sps:$4 sm:$0xff]   ;;  %v1283_v45 = vld [vmem:[%s1638_s1 + $0x110] sm:$0xff]   ;;  %v1279_v49 = vld [vmem:[%s1639_s0 + $0x84] ss:$20 sps:$4 sm:$0xff]  }
  0x10   :  { %1059 = vmatpush3.bf16.msra.mxu0 %v1239_v14  ;;  %v1270_v42 = vld [vmem:[%s1639_s0 + $0x54] ss:$20 sps:$4 sm:$0xff]   ;;  %v1272_v44 = vld [vmem:[%s1639_s0 + $0x5c] ss:$20 sps:$4 sm:$0xff]   ;;  %v1281_v51 = vld [vmem:[%s1639_s0 + $0x78] ss:$20 sps:$4 sm:$0xff]  }
  0x11   :  { %1117 = vmatpush3.bf16.msra.mxu1 %v1240_v15  ;;  %1060 = vmatprep.subr.bf16.mxu0 %v1241_v16  ;;  %v1275_v46 = vld [vmem:[%s1639_s0 + $0x50] ss:$20 sps:$4 sm:$0xff]   ;;  %v1296_v50 = vld [vmem:[%s1638_s1 + $0x118] sm:$0xff]   ;;  %v1282_v52 = vld [vmem:[%s1639_s0 + $0x80] ss:$20 sps:$4 sm:$0xff]  }
  0x12   :  { %1118 = vmatprep.subr.bf16.mxu1 %v1242_v17  ;;  %v1277_v48 = vld [vmem:[%s1639_s0 + $0x7c] ss:$20 sps:$4 sm:$0xff]   ;;  %v1284_v53 = vld [vmem:[%s1639_s0 + $0xa4] ss:$20 sps:$4 sm:$0xff]   ;;  %v1286_v54 = vld [vmem:[%s1639_s0 + $0xac] ss:$20 sps:$4 sm:$0xff]  }
  0x13   :  { %v1288_v55 = vld [vmem:[%s1639_s0 + $0xa0] ss:$20 sps:$4 sm:$0xff]   ;;  %v1289_v56 = vld [vmem:[%s1639_s0 + $0xa8] ss:$20 sps:$4 sm:$0xff]   ;;  %v1295_v60 = vld [vmem:[%s1639_s0 + $0xd0] ss:$20 sps:$4 sm:$0xff]  }
  0x14   :  { %1061 = vmatpush3.bf16.msra.mxu0 %v1243_v18  ;;  %v1290_v57 = vld [vmem:[%s1639_s0 + $0xcc] ss:$20 sps:$4 sm:$0xff]   ;;  %v1292_v58 = vld [vmem:[%s1639_s0 + $0xd4] ss:$20 sps:$4 sm:$0xff]   ;;  %v1299_v62 = vld [vmem:[%s1639_s0 + $0xfc] ss:$20 sps:$4 sm:$0xff]  }
  0x15   :  { %1119 = vmatpush3.bf16.msra.mxu1 %v1244_v19  ;;  %1062 = vmatprep.subr.bf16.mxu0 %v1245_v20  ;;  %v1294_v59 = vld [vmem:[%s1639_s0 + $0xc8] ss:$20 sps:$4 sm:$0xff]   ;;  %v1301_v63 = vld [vmem:[%s1639_s0 + $0xf0] ss:$20 sps:$4 sm:$0xff]   ;;  %v1302_v0 = vld [vmem:[%s1639_s0 + $0xf8] ss:$20 sps:$4 sm:$0xff]  }
  0x16   :  { %1120 = vmatprep.subr.bf16.mxu1 %v1246_v21  ;;  %v1297_v61 = vld [vmem:[%s1639_s0 + $0xf4] ss:$20 sps:$4 sm:$0xff]   ;;  %v1303_v1 = vld [vmem:[%s1639_s0 + $0x10] ss:$20 sps:$4 sm:$0xff]   ;;  %v1305_v3 = vld [vmem:[%s1639_s0 + $0x38] ss:$20 sps:$4 sm:$0xff]  }
  0x17   :  { %v1304_v2 = vld [vmem:[%s1639_s0 + $0xb0] ss:$20 sps:$4 sm:$0xff]   ;;  %v1306_v4 = vld [vmem:[%s1639_s0 + $0xd8] ss:$20 sps:$4 sm:$0xff]   ;;  %v1307_v5 = vld [vmem:[%s1639_s0 + $0x60] ss:$20 sps:$4 sm:$0xff]  }
  0x18   :  { %1063 = vmatpush3.bf16.msra.mxu0 %v1247_v22  ;;  %v1308_v6 = vld [vmem:[%s1639_s0 + $0x100] ss:$20 sps:$4 sm:$0xff]   ;;  %v1309_v7 = vld [vmem:[%s1639_s0 + $0x88] ss:$20 sps:$4 sm:$0xff]  }
  0x19   :  { %1121 = vmatpush3.bf16.msra.mxu1 %v1248_v23  ;;  %1064 = vmatprep.subr.bf16.mxu0 %v1249_v24  ;;  %v1577_v9 = vld [vmem:[%s1640_s2] ss:$0 sm:$0xff] }
  0x1a   :  { %1122 = vmatprep.subr.bf16.mxu1 %v1250_v25 }
  0x1c   :  { %1065 = vmatpush3.bf16.msra.mxu0 %v1251_v26 }
  0x1d   :  { %1123 = vmatpush3.bf16.msra.mxu1 %v1252_v27  ;;  %1066 = vmatprep.subr.bf16.mxu0 %v1253_v28 }
  0x1e   :  { %1124 = vmatprep.subr.bf16.mxu1 %v1254_v29 }
  0x20   :  { %1067 = vmatpush3.bf16.msra.mxu0 %v1255_v30 }
  0x21   :  { %1125 = vmatpush3.bf16.msra.mxu1 %v1256_v31  ;;  %1179 = vmatprep.subr.bf16.mxu0 %v1310_v34 }
  0x22   :  { %1215 = vmatprep.subr.bf16.mxu1 %v1310_v34 }
  0x23   :  { %582 = vmatmul.mubr.bf16.vlgmr.msra.gmra.mrb[0].mxu0 %v1257_v32 }
  0x24   :  { %671 = vmatmul.mubr.bf16.vlgmr.msra.gmra.mrb[0].mxu1 %v1260_v35  ;;  %1180 = vmatpush3.bf16.msra.mxu0 %v1263_v37 }
  0x25   :  { %589 = vmatprep.mubr.bf16.mxu0 %v1264_v38  ;;  %1219 = vmatpush3.bf16.msra.mxu1 %v1263_v37 }
  0x26   :  { %678 = vmatprep.mubr.bf16.mxu1 %v1266_v39  ;;  %1181 = vmatprep.subr.bf16.mxu0 %v1310_v34 }
  0x27   :  { %1216 = vmatprep.subr.bf16.mxu1 %v1310_v34 }
  0x28   :  { %1182 = vmatpush3.bf16.msra.mxu0 %v1274_v43 }
  0x29   :  { %1220 = vmatpush3.bf16.msra.mxu1 %v1274_v43  ;;  %1183 = vmatprep.subr.bf16.mxu0 %v1310_v34 }
  0x2a   :  { %1217 = vmatprep.subr.bf16.mxu1 %v1310_v34 }
  0x2b   :  { %590 = vmatmul.mubr.bf16.gmra.mrb[4].mxu0 %v1268_v40 }
  0x2c   :  { %679 = vmatmul.mubr.bf16.gmra.mrb[4].mxu1 %v1269_v41  ;;  %597 = vmatprep.mubr.bf16.mxu0 %v1270_v42 }
  0x2d   :  { %686 = vmatprep.mubr.bf16.mxu1 %v1272_v44  ;;  %1184 = vmatpush3.bf16.msra.mxu0 %v1283_v45 }
  0x2e   :  { %1221 = vmatpush3.bf16.msra.mxu1 %v1283_v45  ;;  %1185 = vmatprep.subr.bf16.mxu0 %v1310_v34 }
  0x2f   :  { %1218 = vmatprep.subr.bf16.mxu1 %v1310_v34 }
  0x31   :  { %1186 = vmatpush3.bf16.msra.mxu0 %v1296_v50 }
  0x32   :  { %1222 = vmatpush3.bf16.msra.mxu1 %v1296_v50 }
  0x33   :  { %598 = vmatmul.mubr.bf16.gmra.mrb[8].mxu0 %v1275_v46 }
  0x34   :  { %687 = vmatmul.mubr.bf16.gmra.mrb[8].mxu1 %v1276_v47  ;;  %605 = vmatprep.mubr.bf16.mxu0 %v1277_v48 }
  0x35   :  { %694 = vmatprep.mubr.bf16.mxu1 %v1279_v49 }
  0x3b   :  { %606 = vmatmul.mubr.bf16.gmra.mrb[12].mxu0 %v1281_v51 }
  0x3c   :  { %695 = vmatmul.mubr.bf16.gmra.mrb[12].mxu1 %v1282_v52  ;;  %613 = vmatprep.mubr.bf16.mxu0 %v1284_v53 }
  0x3d   :  { %702 = vmatprep.mubr.bf16.mxu1 %v1286_v54 }
  0x43   :  { %614 = vmatmul.mubr.bf16.gmra.mrb[16].mxu0 %v1288_v55 }
  0x44   :  { %703 = vmatmul.mubr.bf16.gmra.mrb[16].mxu1 %v1289_v56  ;;  %621 = vmatprep.mubr.bf16.mxu0 %v1290_v57 }
  0x45   :  { %710 = vmatprep.mubr.bf16.mxu1 %v1292_v58 }
  0x4b   :  { %622 = vmatmul.mubr.bf16.gmra.mrb[20].mxu0 %v1294_v59 }
  0x4c   :  { %711 = vmatmul.mubr.bf16.gmra.mrb[20].mxu1 %v1295_v60  ;;  %629 = vmatprep.mubr.bf16.mxu0 %v1297_v61 }
  0x4d   :  { %718 = vmatprep.mubr.bf16.mxu1 %v1299_v62 }
  0x53   :  { %630 = vmatmul.mubr.bf16.gmra.mrb[24].mxu0 %v1301_v63 }
  0x54   :  { %719 = vmatmul.mubr.bf16.gmra.mrb[24].mxu1 %v1302_v0  ;;  %1187 = vmatprep.mubr.msk.bf16.mxu0 %vm1311_vm0, %v1310_v34 }
  0x55   :  { %1203 = vmatprep.mubr.msk.bf16.mxu1 %vm1311_vm0, %v1310_v34 }
  0x5b   :  { %1188 = vmatmul.mubr.msk.bf16.vlgmr.msra.gmra.mrb[28].mxu0 %vm527_vm1, %v1303_v1 }
  0x5c   :  { %1204 = vmatmul.mubr.msk.bf16.vlgmr.msra.gmra.mrb[28].mxu1 %vm527_vm1, %v1304_v2  ;;  %1191 = vmatprep.mubr.msk.bf16.mxu0 %vm1311_vm0, %v1310_v34 }
  0x5d   :  { %1207 = vmatprep.mubr.msk.bf16.mxu1 %vm1311_vm0, %v1310_v34 }
  0x63   :  { %1192 = vmatmul.mubr.msk.bf16.gmra.mrb[32].mxu0 %vm527_vm1, %v1305_v3 }
  0x64   :  { %1208 = vmatmul.mubr.msk.bf16.gmra.mrb[32].mxu1 %vm527_vm1, %v1306_v4  ;;  %1195 = vmatprep.mubr.msk.bf16.mxu0 %vm1311_vm0, %v1310_v34 }
  0x65   :  { %1211 = vmatprep.mubr.msk.bf16.mxu1 %vm1311_vm0, %v1310_v34 }
  0x6b   :  { %1196 = vmatmul.mubr.msk.bf16.gmra.mrb[36].mxu0 %vm527_vm1, %v1307_v5 }
  0x6c   :  { %1212 = vmatmul.mubr.msk.bf16.gmra.mrb[36].mxu1 %vm527_vm1, %v1308_v6  ;;  %1199 = vmatprep.mubr.msk.bf16.mxu0 %vm1311_vm0, %v1310_v34 }
  0x73   :  { %1200 = vmatmul.mubr.msk.bf16.gmra.mrb[40].mxu0 %vm527_vm1, %v1309_v7 }
  0xf6   :  { %v1068_v8 = vpop.f32.mrb[0].mxu0 }
  0xf7   :  { %v1069_v10 = vpop.f32.mrb[1].mxu0  ;;  %v1126_v11 = vpop.f32.mrb[0].mxu1 }
  0xf8   :  { %v1070_v12 = vadd.f32 %v1069_v10, %v1068_v8  ;;  %v1071_v13 = vpop.f32.mrb[2].mxu0  ;;  %v1127_v14 = vpop.f32.mrb[1].mxu1 }
  0xf9   :  { %v1072_v15 = vpop.f32.mrb[3].mxu0  ;;  %v1128_v16 = vadd.f32 %v1127_v14, %v1126_v11  ;;  %v1129_v17 = vpop.f32.mrb[2].mxu1 }
  0xfa   :  { %v584_v18 = vadd.f32 %v1070_v12, %v1577_v9  ;;  %v1073_v19 = vadd.f32 %v1072_v15, %v1071_v13  ;;  %v1130_v20 = vpop.f32.mrb[3].mxu1 }
  0xfb   :  { %v1131_v21 = vadd.f32 %v1130_v20, %v1129_v17 }
  0xfc   :  { %v587_v22 = vadd.f32 %v1073_v19, %v1577_v9  ;;  %v1581_v23 = vadd.f32 %v1128_v16, %v584_v18 }
  0xfe   :  { %v1074_v24 = vpop.f32.mrb[4].mxu0  ;;  %v1583_v25 = vadd.f32 %v1131_v21, %v587_v22 }
  0xff   :  { %v1075_v26 = vpop.f32.mrb[5].mxu0  ;;  %v1132_v27 = vpop.f32.mrb[4].mxu1 }
 0x100   :  { %v1076_v28 = vadd.f32 %v1075_v26, %v1074_v24  ;;  %v1077_v29 = vpop.f32.mrb[6].mxu0  ;;  %v1133_v30 = vpop.f32.mrb[5].mxu1 }
 0x101   :  { %v1078_v31 = vpop.f32.mrb[7].mxu0  ;;  %v1134_v32 = vadd.f32 %v1133_v30, %v1132_v27  ;;  %v1135_v33 = vpop.f32.mrb[6].mxu1 }
 0x102   :  { %v592_v34 = vadd.f32 %v1076_v28, %v1577_v9  ;;  %v1079_v35 = vadd.f32 %v1078_v31, %v1077_v29  ;;  %v1136_v36 = vpop.f32.mrb[7].mxu1 }
 0x103   :  { %v1137_v37 = vadd.f32 %v1136_v36, %v1135_v33 }
 0x104   :  { %v595_v38 = vadd.f32 %v1079_v35, %v1577_v9  ;;  %v1587_v39 = vadd.f32 %v1134_v32, %v592_v34 }
 0x106   :  { %v1080_v40 = vpop.f32.mrb[8].mxu0  ;;  %v1589_v41 = vadd.f32 %v1137_v37, %v595_v38 }
 0x107   :  { %v1081_v42 = vpop.f32.mrb[9].mxu0  ;;  %v1138_v43 = vpop.f32.mrb[8].mxu1 }
 0x108   :  { %v1082_v44 = vadd.f32 %v1081_v42, %v1080_v40  ;;  %v1083_v45 = vpop.f32.mrb[10].mxu0  ;;  %v1139_v46 = vpop.f32.mrb[9].mxu1 }
 0x109   :  { %v1084_v47 = vpop.f32.mrb[11].mxu0  ;;  %v1140_v48 = vadd.f32 %v1139_v46, %v1138_v43  ;;  %v1141_v49 = vpop.f32.mrb[10].mxu1 }
 0x10a   :  { %v600_v50 = vadd.f32 %v1082_v44, %v1577_v9  ;;  %v1085_v51 = vadd.f32 %v1084_v47, %v1083_v45  ;;  %v1142_v52 = vpop.f32.mrb[11].mxu1 }
 0x10b   :  { %v1143_v53 = vadd.f32 %v1142_v52, %v1141_v49 }
 0x10c   :  { %v603_v54 = vadd.f32 %v1085_v51, %v1577_v9  ;;  %v1593_v55 = vadd.f32 %v1140_v48, %v600_v50 }
 0x10e   :  { %v1086_v56 = vpop.f32.mrb[12].mxu0  ;;  %v1595_v57 = vadd.f32 %v1143_v53, %v603_v54 }
 0x10f   :  { %v1087_v58 = vpop.f32.mrb[13].mxu0  ;;  %v1144_v59 = vpop.f32.mrb[12].mxu1 }
 0x110   :  { %v1088_v60 = vadd.f32 %v1087_v58, %v1086_v56  ;;  %v1089_v61 = vpop.f32.mrb[14].mxu0  ;;  %v1145_v62 = vpop.f32.mrb[13].mxu1 }
 0x111   :  { %v1090_v63 = vpop.f32.mrb[15].mxu0  ;;  %v1146_v0 = vadd.f32 %v1145_v62, %v1144_v59  ;;  %v1147_v1 = vpop.f32.mrb[14].mxu1 }
 0x112   :  { %v608_v2 = vadd.f32 %v1088_v60, %v1577_v9  ;;  %v1091_v3 = vadd.f32 %v1090_v63, %v1089_v61  ;;  %v1148_v4 = vpop.f32.mrb[15].mxu1 }
 0x113   :  { %v1149_v5 = vadd.f32 %v1148_v4, %v1147_v1 }
 0x114   :  { %v611_v6 = vadd.f32 %v1091_v3, %v1577_v9  ;;  %v1599_v7 = vadd.f32 %v1146_v0, %v608_v2 }
 0x116   :  { %v1092_v8 = vpop.f32.mrb[16].mxu0  ;;  %v1601_v10 = vadd.f32 %v1149_v5, %v611_v6 }
 0x117   :  { %v1093_v11 = vpop.f32.mrb[17].mxu0  ;;  %v1150_v12 = vpop.f32.mrb[16].mxu1 }
 0x118   :  { %v1094_v13 = vadd.f32 %v1093_v11, %v1092_v8  ;;  %v1095_v14 = vpop.f32.mrb[18].mxu0  ;;  %v1151_v15 = vpop.f32.mrb[17].mxu1 }
 0x119   :  { %v1096_v16 = vpop.f32.mrb[19].mxu0  ;;  %v1152_v17 = vadd.f32 %v1151_v15, %v1150_v12  ;;  %v1153_v18 = vpop.f32.mrb[18].mxu1 }
 0x11a   :  { %v616_v19 = vadd.f32 %v1094_v13, %v1577_v9  ;;  %v1097_v20 = vadd.f32 %v1096_v16, %v1095_v14  ;;  %v1154_v21 = vpop.f32.mrb[19].mxu1 }
 0x11b   :  { %v1155_v22 = vadd.f32 %v1154_v21, %v1153_v18 }
 0x11c   :  { %v619_v24 = vadd.f32 %v1097_v20, %v1577_v9  ;;  %v705_v26 = vadd.f32 %v1152_v17, %v616_v19 }
 0x11e   :  { %v1098_v27 = vpop.f32.mrb[20].mxu0  ;;  %v708_v28 = vadd.f32 %v1155_v22, %v619_v24 }
 0x11f   :  { %v1099_v29 = vpop.f32.mrb[21].mxu0  ;;  %v1156_v30 = vpop.f32.mrb[20].mxu1 }
 0x120   :  { %v1100_v31 = vadd.f32 %v1099_v29, %v1098_v27  ;;  %v1101_v32 = vpop.f32.mrb[22].mxu0  ;;  %v1157_v33 = vpop.f32.mrb[21].mxu1 }
 0x121   :  { %v1102_v34 = vpop.f32.mrb[23].mxu0  ;;  %v1158_v35 = vadd.f32 %v1157_v33, %v1156_v30  ;;  %v1159_v36 = vpop.f32.mrb[22].mxu1 }
 0x122   :  { %v624_v37 = vadd.f32 %v1100_v31, %v1577_v9  ;;  %v1103_v38 = vadd.f32 %v1102_v34, %v1101_v32  ;;  %v1160_v40 = vpop.f32.mrb[23].mxu1 }
 0x123   :  { %v1161_v42 = vadd.f32 %v1160_v40, %v1159_v36 }
 0x124   :  { %v627_v43 = vadd.f32 %v1103_v38, %v1577_v9  ;;  %v713_v44 = vadd.f32 %v1158_v35, %v624_v37 }
 0x126   :  { %v1104_v45 = vpop.f32.mrb[24].mxu0  ;;  %v716_v46 = vadd.f32 %v1161_v42, %v627_v43 }
 0x127   :  { %v1105_v47 = vpop.f32.mrb[25].mxu0  ;;  %v1162_v48 = vpop.f32.mrb[24].mxu1 }
 0x128   :  { %v1106_v49 = vadd.f32 %v1105_v47, %v1104_v45  ;;  %v1107_v50 = vpop.f32.mrb[26].mxu0  ;;  %v1163_v51 = vpop.f32.mrb[25].mxu1 }
 0x129   :  { %v1108_v52 = vpop.f32.mrb[27].mxu0  ;;  %v1164_v53 = vadd.f32 %v1163_v51, %v1162_v48  ;;  %v1165_v54 = vpop.f32.mrb[26].mxu1 }
 0x12a   :  { %v632_v56 = vadd.f32 %v1106_v49, %v1577_v9  ;;  %v1109_v58 = vadd.f32 %v1108_v52, %v1107_v50  ;;  %v1166_v59 = vpop.f32.mrb[27].mxu1 }
 0x12b   :  { %v1167_v60 = vadd.f32 %v1166_v59, %v1165_v54 }
 0x12c   :  { %v635_v61 = vadd.f32 %v1109_v58, %v1577_v9  ;;  %v721_v62 = vadd.f32 %v1164_v53, %v632_v56 }
 0x12e   :  { %v761_v63 = vpop.f32.mrb[28].mxu0  ;;  %v724_v0 = vadd.f32 %v1167_v60, %v635_v61 }
 0x12f   :  { %v762_v1 = vadd.f32 %v761_v63, %v1581_v23  ;;  %v793_v2 = vpop.f32.mrb[28].mxu1  ;;  %v1189_v3 = vpop.f32.mrb[29].mxu0 }
 0x130   :  { %v794_v4 = vadd.f32 %v793_v2, %v705_v26  ;;  %v1205_v5 = vpop.f32.mrb[29].mxu1  ;;  %v764_v6 = vpop.f32.mrb[30].mxu0 }
 0x131   :  { %v765_v8 = vadd.f32 %v764_v6, %v1583_v25  ;;  %v796_v11 = vpop.f32.mrb[30].mxu1  ;;  %v1190_v12 = vpop.f32.mrb[31].mxu0  ;;  %v816_v15 = vmax.f32 %v762_v1, 0.0 }
 0x132   :  { %v797_v13 = vadd.f32 %v796_v11, %v708_v28  ;;  %v1206_v14 = vpop.f32.mrb[31].mxu1  ;;  %v824_v17 = vmax.f32 %v794_v4, 0.0 }
 0x133   :  { %v817_v16 = vmax.f32 %v765_v8, 0.0 }
 0x134   :  { %v825_v9 = vmax.f32 %v797_v13, 0.0 }
 0x135   :  { %v1014_v18 = vpack.c.bf16 %v817_v16, %v816_v15 }
 0x136   :  { %v1034_v19 = vpack.c.bf16 %v825_v9, %v824_v17  ;;  %v769_v20 = vpop.f32.mrb[32].mxu0 }
 0x137   :  { %1015 = vst [vmem:[%s1641_s3] sm:$0xff] %v1014_v18   ;;  %v770_v23 = vadd.f32 %v769_v20, %v1587_v39  ;;  %v801_v21 = vpop.f32.mrb[32].mxu1  ;;  %v1193_v22 = vpop.f32.mrb[33].mxu0 }
 0x138   :  { %1049 = vst [vmem:[%s1641_s3 + $0x20] sm:$0xff] %v1034_v19   ;;  %v802_v25 = vadd.f32 %v801_v21, %v713_v44  ;;  %v1209_v24 = vpop.f32.mrb[33].mxu1  ;;  %v772_v26 = vpop.f32.mrb[34].mxu0 }
 0x139   :  { %v773_v27 = vadd.f32 %v772_v26, %v1589_v41  ;;  %v804_v28 = vpop.f32.mrb[34].mxu1  ;;  %v1194_v29 = vpop.f32.mrb[35].mxu0  ;;  %v818_v32 = vmax.f32 %v770_v23, 0.0 }
 0x13a   :  { %v805_v30 = vadd.f32 %v804_v28, %v716_v46  ;;  %v1210_v31 = vpop.f32.mrb[35].mxu1  ;;  %v826_v34 = vmax.f32 %v802_v25, 0.0 }
 0x13b   :  { %v819_v33 = vmax.f32 %v773_v27, 0.0 }
 0x13c   :  { %v827_v35 = vmax.f32 %v805_v30, 0.0 }
 0x13d   :  { %v1019_v39 = vpack.c.bf16 %v819_v33, %v818_v32 }
 0x13e   :  { %v1039_v36 = vpack.c.bf16 %v827_v35, %v826_v34  ;;  %v777_v37 = vpop.f32.mrb[36].mxu0 }
 0x13f   :  { %1046 = vst [vmem:[%s1641_s3 + $0x8] sm:$0xff] %v1019_v39   ;;  %v778_v38 = vadd.f32 %v777_v37, %v1593_v55  ;;  %v809_v40 = vpop.f32.mrb[36].mxu1  ;;  %v1197_v42 = vpop.f32.mrb[37].mxu0 }
 0x140   :  { %1050 = vst [vmem:[%s1641_s3 + $0x28] sm:$0xff] %v1039_v36   ;;  %v810_v41 = vadd.f32 %v809_v40, %v721_v62  ;;  %v1213_v43 = vpop.f32.mrb[37].mxu1  ;;  %v780_v44 = vpop.f32.mrb[38].mxu0 }
 0x141   :  { %v781_v45 = vadd.f32 %v780_v44, %v1595_v57  ;;  %v812_v46 = vpop.f32.mrb[38].mxu1  ;;  %v1198_v47 = vpop.f32.mrb[39].mxu0  ;;  %v820_v50 = vmax.f32 %v778_v38, 0.0 }
 0x142   :  { %v813_v48 = vadd.f32 %v812_v46, %v724_v0  ;;  %v1214_v49 = vpop.f32.mrb[39].mxu1  ;;  %v828_v52 = vmax.f32 %v810_v41, 0.0 }
 0x143   :  { %v821_v51 = vmax.f32 %v781_v45, 0.0 }
 0x144   :  { %v829_v53 = vmax.f32 %v813_v48, 0.0 }
 0x145   :  { %v1024_v55 = vpack.c.bf16 %v821_v51, %v820_v50 }
 0x146   :  { %v1044_v54 = vpack.c.bf16 %v829_v53, %v828_v52  ;;  %v785_v56 = vpop.f32.mrb[40].mxu0 }
 0x147   :  { %1047 = vst [vmem:[%s1641_s3 + $0x10] sm:$0xff] %v1024_v55   ;;  %v786_v58 = vadd.f32 %v785_v56, %v1599_v7  ;;  %v1201_v59 = vpop.f32.mrb[41].mxu0 }
 0x148   :  { %1051 = vst [vmem:[%s1641_s3 + $0x30] sm:$0xff] %v1044_v54   ;;  %v788_v57 = vpop.f32.mrb[42].mxu0 }
 0x149   :  { %v789_v60 = vadd.f32 %v788_v57, %v1601_v10  ;;  %v1202_v61 = vpop.f32.mrb[43].mxu0  ;;  %v822_v62 = vmax.f32 %v786_v58, 0.0 }
 0x14b   :  { %v823_v63 = vmax.f32 %v789_v60, 0.0 }
 0x14d   :  { %v1029_v0 = vpack.c.bf16 %v823_v63, %v822_v62 }
 0x14f   :  { %1048 = vst [vmem:[%s1641_s3 + $0x18] sm:$0xff] %v1029_v0  }

// kernel: conv_encoder_forward.8
= control target key start
LH: loop header
LB: loop body
LE: loop exit
PB: predicated region body
PF: predicated region fallthrough
CT: control target
= control target key end

     0   :  { %s2299_s1 = inlined_call_operand.vmem [shape: bf16[1152,256], index: 1, kind: input, shape index: {}]   ;;  %s2300_s0 = inlined_call_operand.vmem [shape: bf16[32,1152], index: 0, kind: input, shape index: {}]   ;;  %s2301_s2 = inlined_call_operand.vmem [shape: f32[1,256], index: 2, kind: input, shape index: {}]   ;;  %s2302_s3 = inlined_call_operand.vmem [shape: bf16[32,256], index: 3, kind: output, shape index: {}]  }
   0x1   :  { %v1535_v0 = vld [vmem:[%s2299_s1 + $0x4] ss:$8 sps:$4 sm:$0xff]   ;;  %v1539_v2 = vld [vmem:[%s2299_s1] ss:$8 sps:$4 sm:$0xff]   ;;  %v1541_v4 = vld [vmem:[%s2299_s1 + $0x14] ss:$8 sps:$4 sm:$0xff]  }
   0x2   :  { %v1537_v1 = vld [vmem:[%s2299_s1 + $0x204] ss:$8 sps:$4 sm:$0xff]   ;;  %1003 = vmatprep.subr.bf16.mxu1 %v1535_v0  ;;  %v1540_v3 = vld [vmem:[%s2299_s1 + $0x200] ss:$8 sps:$4 sm:$0xff]   ;;  %v1543_v5 = vld [vmem:[%s2299_s1 + $0x214] ss:$8 sps:$4 sm:$0xff]  }
   0x3   :  { %1109 = vmatprep.subr.bf16.mxu0 %v1537_v1  ;;  %1004 = vmatpush1.bf16.msra.mxu1 %v1539_v2  ;;  %v1545_v6 = vld [vmem:[%s2299_s1 + $0x10] ss:$8 sps:$4 sm:$0xff]   ;;  %v1547_v8 = vld [vmem:[%s2299_s1 + $0x24] ss:$8 sps:$4 sm:$0xff]   ;;  %v1551_v10 = vld [vmem:[%s2299_s1 + $0x20] ss:$8 sps:$4 sm:$0xff]  }
   0x4   :  { %1110 = vmatpush1.bf16.msra.mxu0 %v1540_v3  ;;  %1005 = vmatprep.subr.bf16.mxu1 %v1541_v4  ;;  %v1546_v7 = vld [vmem:[%s2299_s1 + $0x210] ss:$8 sps:$4 sm:$0xff]   ;;  %v1549_v9 = vld [vmem:[%s2299_s1 + $0x224] ss:$8 sps:$4 sm:$0xff]   ;;  %v1552_v11 = vld [vmem:[%s2299_s1 + $0x220] ss:$8 sps:$4 sm:$0xff]  }
   0x5   :  { %1111 = vmatprep.subr.bf16.mxu0 %v1543_v5  ;;  %v1553_v12 = vld [vmem:[%s2299_s1 + $0x34] ss:$8 sps:$4 sm:$0xff]   ;;  %v1557_v14 = vld [vmem:[%s2299_s1 + $0x30] ss:$8 sps:$4 sm:$0xff]   ;;  %v1559_v16 = vld [vmem:[%s2299_s1 + $0x44] ss:$8 sps:$4 sm:$0xff]  }
   0x6   :  { %v1555_v13 = vld [vmem:[%s2299_s1 + $0x234] ss:$8 sps:$4 sm:$0xff]   ;;  %v1558_v15 = vld [vmem:[%s2299_s1 + $0x230] ss:$8 sps:$4 sm:$0xff]   ;;  %v1561_v17 = vld [vmem:[%s2299_s1 + $0x244] ss:$8 sps:$4 sm:$0xff]  }
   0x7   :  { %1006 = vmatpush1.bf16.msra.mxu1 %v1545_v6  ;;  %v1563_v18 = vld [vmem:[%s2299_s1 + $0x40] ss:$8 sps:$4 sm:$0xff]   ;;  %v1565_v20 = vld [vmem:[%s2299_s1 + $0x54] ss:$8 sps:$4 sm:$0xff]   ;;  %v1569_v22 = vld [vmem:[%s2299_s1 + $0x50] ss:$8 sps:$4 sm:$0xff]  }
   0x8   :  { %1112 = vmatpush1.bf16.msra.mxu0 %v1546_v7  ;;  %1007 = vmatprep.subr.bf16.mxu1 %v1547_v8  ;;  %v1564_v19 = vld [vmem:[%s2299_s1 + $0x240] ss:$8 sps:$4 sm:$0xff]   ;;  %v1567_v21 = vld [vmem:[%s2299_s1 + $0x254] ss:$8 sps:$4 sm:$0xff]   ;;  %v1570_v23 = vld [vmem:[%s2299_s1 + $0x250] ss:$8 sps:$4 sm:$0xff]  }
   0x9   :  { %1113 = vmatprep.subr.bf16.mxu0 %v1549_v9  ;;  %v1571_v24 = vld [vmem:[%s2299_s1 + $0x64] ss:$8 sps:$4 sm:$0xff]   ;;  %v1575_v26 = vld [vmem:[%s2299_s1 + $0x60] ss:$8 sps:$4 sm:$0xff]   ;;  %v1577_v28 = vld [vmem:[%s2299_s1 + $0x74] ss:$8 sps:$4 sm:$0xff]  }
   0xa   :  { %v1573_v25 = vld [vmem:[%s2299_s1 + $0x264] ss:$8 sps:$4 sm:$0xff]   ;;  %v1576_v27 = vld [vmem:[%s2299_s1 + $0x260] ss:$8 sps:$4 sm:$0xff]   ;;  %v1579_v29 = vld [vmem:[%s2299_s1 + $0x274] ss:$8 sps:$4 sm:$0xff]  }
   0xb   :  { %1008 = vmatpush1.bf16.msra.mxu1 %v1551_v10  ;;  %v1581_v30 = vld [vmem:[%s2299_s1 + $0x70] ss:$8 sps:$4 sm:$0xff]   ;;  %v1583_v32 = vld [vmem:[%s2299_s1 + $0x84] ss:$8 sps:$4 sm:$0xff]   ;;  %v1587_v34 = vld [vmem:[%s2299_s1 + $0x80] ss:$8 sps:$4 sm:$0xff]  }
   0xc   :  { %1114 = vmatpush1.bf16.msra.mxu0 %v1552_v11  ;;  %1009 = vmatprep.subr.bf16.mxu1 %v1553_v12  ;;  %v1582_v31 = vld [vmem:[%s2299_s1 + $0x270] ss:$8 sps:$4 sm:$0xff]   ;;  %v1585_v33 = vld [vmem:[%s2299_s1 + $0x284] ss:$8 sps:$4 sm:$0xff]   ;;  %v1588_v35 = vld [vmem:[%s2299_s1 + $0x280] ss:$8 sps:$4 sm:$0xff]  }
   0xd   :  { %1115 = vmatprep.subr.bf16.mxu0 %v1555_v13  ;;  %v1589_v36 = vld [vmem:[%s2299_s1 + $0x94] ss:$8 sps:$4 sm:$0xff]   ;;  %v1593_v38 = vld [vmem:[%s2299_s1 + $0x90] ss:$8 sps:$4 sm:$0xff]   ;;  %v1595_v40 = vld [vmem:[%s2299_s1 + $0xa4] ss:$8 sps:$4 sm:$0xff]  }
   0xe   :  { %v1591_v37 = vld [vmem:[%s2299_s1 + $0x294] ss:$8 sps:$4 sm:$0xff]   ;;  %v1594_v39 = vld [vmem:[%s2299_s1 + $0x290] ss:$8 sps:$4 sm:$0xff]   ;;  %v1597_v41 = vld [vmem:[%s2299_s1 + $0x2a4] ss:$8 sps:$4 sm:$0xff]  }
   0xf   :  { %1010 = vmatpush1.bf16.msra.mxu1 %v1557_v14  ;;  %v1599_v42 = vld [vmem:[%s2299_s1 + $0xa0] ss:$8 sps:$4 sm:$0xff]   ;;  %v1601_v44 = vld [vmem:[%s2299_s1 + $0xb4] ss:$8 sps:$4 sm:$0xff]   ;;  %v1605_v46 = vld [vmem:[%s2299_s1 + $0xb0] ss:$8 sps:$4 sm:$0xff]  }
  0x10   :  { %1116 = vmatpush1.bf16.msra.mxu0 %v1558_v15  ;;  %1011 = vmatprep.subr.bf16.mxu1 %v1559_v16  ;;  %v1600_v43 = vld [vmem:[%s2299_s1 + $0x2a0] ss:$8 sps:$4 sm:$0xff]   ;;  %v1603_v45 = vld [vmem:[%s2299_s1 + $0x2b4] ss:$8 sps:$4 sm:$0xff]   ;;  %v1606_v47 = vld [vmem:[%s2299_s1 + $0x2b0] ss:$8 sps:$4 sm:$0xff]  }
  0x11   :  { %1117 = vmatprep.subr.bf16.mxu0 %v1561_v17  ;;  %v1633_v48 = vld [vmem:[%s2300_s0 + $0x4] ss:$36 sps:$4 sm:$0xff]   ;;  %v1639_v51 = vld [vmem:[%s2300_s0 + $0x14] ss:$36 sps:$4 sm:$0xff]  }
  0x12   :  { %v1607_v49 = vld [vmem:[%s2299_s1 + $0xc4] ss:$8 sps:$4 sm:$0xff]   ;;  %1035 = vmatprep.mubr.bf16.mxu1 %v1633_v48  ;;  %v1611_v52 = vld [vmem:[%s2299_s1 + $0xc0] ss:$8 sps:$4 sm:$0xff]   ;;  %v1613_v54 = vld [vmem:[%s2299_s1 + $0xd4] ss:$8 sps:$4 sm:$0xff]   ;;  %1141 = vmatprep.mubr.bf16.mxu0 %v1639_v51 }
  0x13   :  { %1012 = vmatpush1.bf16.msra.mxu1 %v1563_v18  ;;  %v1609_v50 = vld [vmem:[%s2299_s1 + $0x2c4] ss:$8 sps:$4 sm:$0xff]   ;;  %v1612_v53 = vld [vmem:[%s2299_s1 + $0x2c0] ss:$8 sps:$4 sm:$0xff]   ;;  %v1615_v55 = vld [vmem:[%s2299_s1 + $0x2d4] ss:$8 sps:$4 sm:$0xff]  }
  0x14   :  { %1118 = vmatpush1.bf16.msra.mxu0 %v1564_v19  ;;  %1013 = vmatprep.subr.bf16.mxu1 %v1565_v20  ;;  %v1617_v56 = vld [vmem:[%s2299_s1 + $0xd0] ss:$8 sps:$4 sm:$0xff]   ;;  %v1619_v58 = vld [vmem:[%s2299_s1 + $0xe4] ss:$8 sps:$4 sm:$0xff]   ;;  %v1623_v60 = vld [vmem:[%s2299_s1 + $0xe0] ss:$8 sps:$4 sm:$0xff]  }
  0x15   :  { %1119 = vmatprep.subr.bf16.mxu0 %v1567_v21  ;;  %v1618_v57 = vld [vmem:[%s2299_s1 + $0x2d0] ss:$8 sps:$4 sm:$0xff]   ;;  %v1621_v59 = vld [vmem:[%s2299_s1 + $0x2e4] ss:$8 sps:$4 sm:$0xff]   ;;  %v1624_v61 = vld [vmem:[%s2299_s1 + $0x2e0] ss:$8 sps:$4 sm:$0xff]  }
  0x16   :  { %v1625_v62 = vld [vmem:[%s2299_s1 + $0xf4] ss:$8 sps:$4 sm:$0xff]   ;;  %v1629_v0 = vld [vmem:[%s2299_s1 + $0xf0] ss:$8 sps:$4 sm:$0xff]   ;;  %v1636_v2 = vld [vmem:[%s2299_s1 + $0x104] ss:$8 sps:$4 sm:$0xff]  }
  0x17   :  { %1014 = vmatpush1.bf16.msra.mxu1 %v1569_v22  ;;  %v1627_v63 = vld [vmem:[%s2299_s1 + $0x2f4] ss:$8 sps:$4 sm:$0xff]   ;;  %v1630_v1 = vld [vmem:[%s2299_s1 + $0x2f0] ss:$8 sps:$4 sm:$0xff]   ;;  %v1642_v3 = vld [vmem:[%s2299_s1 + $0x304] ss:$8 sps:$4 sm:$0xff]  }
  0x18   :  { %1120 = vmatpush1.bf16.msra.mxu0 %v1570_v23  ;;  %1015 = vmatprep.subr.bf16.mxu1 %v1571_v24  ;;  %v1631_v4 = vld [vmem:[%s2300_s0] ss:$36 sps:$4 sm:$0xff]   ;;  %v1637_v6 = vld [vmem:[%s2300_s0 + $0x10] ss:$36 sps:$4 sm:$0xff]  }
  0x19   :  { %1121 = vmatprep.subr.bf16.mxu0 %v1573_v25  ;;  %v1634_v5 = vld [vmem:[%s2299_s1 + $0x100] ss:$8 sps:$4 sm:$0xff]   ;;  %v1645_v8 = vld [vmem:[%s2299_s1 + $0x114] ss:$8 sps:$4 sm:$0xff]   ;;  %v1643_v10 = vld [vmem:[%s2299_s1 + $0x110] ss:$8 sps:$4 sm:$0xff]  }
  0x1a   :  { %v1640_v7 = vld [vmem:[%s2299_s1 + $0x300] ss:$8 sps:$4 sm:$0xff]   ;;  %v1648_v9 = vld [vmem:[%s2299_s1 + $0x314] ss:$8 sps:$4 sm:$0xff]   ;;  %v1646_v11 = vld [vmem:[%s2299_s1 + $0x310] ss:$8 sps:$4 sm:$0xff]  }
  0x1b   :  { %1016 = vmatpush1.bf16.msra.mxu1 %v1575_v26  ;;  %v1651_v12 = vld [vmem:[%s2299_s1 + $0x124] ss:$8 sps:$4 sm:$0xff]   ;;  %v1649_v14 = vld [vmem:[%s2299_s1 + $0x120] ss:$8 sps:$4 sm:$0xff]   ;;  %v1657_v16 = vld [vmem:[%s2299_s1 + $0x134] ss:$8 sps:$4 sm:$0xff]  }
  0x1c   :  { %1122 = vmatpush1.bf16.msra.mxu0 %v1576_v27  ;;  %1017 = vmatprep.subr.bf16.mxu1 %v1577_v28  ;;  %v1654_v13 = vld [vmem:[%s2299_s1 + $0x324] ss:$8 sps:$4 sm:$0xff]   ;;  %v1652_v15 = vld [vmem:[%s2299_s1 + $0x320] ss:$8 sps:$4 sm:$0xff]   ;;  %v1660_v17 = vld [vmem:[%s2299_s1 + $0x334] ss:$8 sps:$4 sm:$0xff]  }
  0x1d   :  { %1123 = vmatprep.subr.bf16.mxu0 %v1579_v29  ;;  %v1655_v18 = vld [vmem:[%s2299_s1 + $0x130] ss:$8 sps:$4 sm:$0xff]   ;;  %v1663_v20 = vld [vmem:[%s2299_s1 + $0x144] ss:$8 sps:$4 sm:$0xff]   ;;  %v1661_v22 = vld [vmem:[%s2299_s1 + $0x140] ss:$8 sps:$4 sm:$0xff]  }
  0x1e   :  { %v1658_v19 = vld [vmem:[%s2299_s1 + $0x330] ss:$8 sps:$4 sm:$0xff]   ;;  %v1666_v21 = vld [vmem:[%s2299_s1 + $0x344] ss:$8 sps:$4 sm:$0xff]   ;;  %v1664_v23 = vld [vmem:[%s2299_s1 + $0x340] ss:$8 sps:$4 sm:$0xff]  }
  0x1f   :  { %1018 = vmatpush1.bf16.msra.mxu1 %v1581_v30  ;;  %v1669_v24 = vld [vmem:[%s2299_s1 + $0x154] ss:$8 sps:$4 sm:$0xff]   ;;  %v1667_v26 = vld [vmem:[%s2299_s1 + $0x150] ss:$8 sps:$4 sm:$0xff]   ;;  %v1675_v28 = vld [vmem:[%s2299_s1 + $0x164] ss:$8 sps:$4 sm:$0xff]  }
  0x20   :  { %1124 = vmatpush1.bf16.msra.mxu0 %v1582_v31  ;;  %1019 = vmatprep.subr.bf16.mxu1 %v1583_v32  ;;  %v1672_v25 = vld [vmem:[%s2299_s1 + $0x354] ss:$8 sps:$4 sm:$0xff]   ;;  %v1670_v27 = vld [vmem:[%s2299_s1 + $0x350] ss:$8 sps:$4 sm:$0xff]   ;;  %v1725_v31 = vld [vmem:[%s2300_s0 + $0x48] ss:$36 sps:$4 sm:$0xff]  }
  0x21   :  { %1125 = vmatprep.subr.bf16.mxu0 %v1585_v33  ;;  %v1721_v29 = vld [vmem:[%s2300_s0 + $0x4c] ss:$36 sps:$4 sm:$0xff]   ;;  %v1723_v30 = vld [vmem:[%s2300_s0 + $0x5c] ss:$36 sps:$4 sm:$0xff]  }
  0x22   :  { %v1678_v32 = vld [vmem:[%s2299_s1 + $0x364] ss:$8 sps:$4 sm:$0xff]   ;;  %v1729_v33 = vld [vmem:[%s2300_s0 + $0x58] ss:$36 sps:$4 sm:$0xff]  }
  0x23   :  { %1020 = vmatpush1.bf16.msra.mxu1 %v1587_v34  ;;  %v1673_v34 = vld [vmem:[%s2299_s1 + $0x160] ss:$8 sps:$4 sm:$0xff]   ;;  %v1691_v48 = vld [vmem:[%s2299_s1 + $0x190] ss:$8 sps:$4 sm:$0xff]   ;;  %v1702_v51 = vld [vmem:[%s2299_s1 + $0x3a4] ss:$8 sps:$4 sm:$0xff]  }
  0x24   :  { %1126 = vmatpush1.bf16.msra.mxu0 %v1588_v35  ;;  %1021 = vmatprep.subr.bf16.mxu1 %v1589_v36  ;;  %v1676_v35 = vld [vmem:[%s2299_s1 + $0x360] ss:$8 sps:$4 sm:$0xff]   ;;  %v1681_v36 = vld [vmem:[%s2299_s1 + $0x174] ss:$8 sps:$4 sm:$0xff]  }
  0x25   :  { %1127 = vmatprep.subr.bf16.mxu0 %v1591_v37  ;;  %v1684_v37 = vld [vmem:[%s2299_s1 + $0x374] ss:$8 sps:$4 sm:$0xff]  }
  0x27   :  { %1022 = vmatpush1.bf16.msra.mxu1 %v1593_v38  ;;  %v1679_v38 = vld [vmem:[%s2299_s1 + $0x170] ss:$8 sps:$4 sm:$0xff]  }
  0x28   :  { %1128 = vmatpush1.bf16.msra.mxu0 %v1594_v39  ;;  %1023 = vmatprep.subr.bf16.mxu1 %v1595_v40  ;;  %v1682_v39 = vld [vmem:[%s2299_s1 + $0x370] ss:$8 sps:$4 sm:$0xff]   ;;  %v1687_v40 = vld [vmem:[%s2299_s1 + $0x184] ss:$8 sps:$4 sm:$0xff]  }
  0x29   :  { %1129 = vmatprep.subr.bf16.mxu0 %v1597_v41  ;;  %v1741_v41 = vld [vmem:[%s2300_s0 + $0xc] ss:$36 sps:$4 sm:$0xff]  }
  0x2b   :  { %1024 = vmatpush1.bf16.msra.mxu1 %v1599_v42  ;;  %v1690_v42 = vld [vmem:[%s2299_s1 + $0x384] ss:$8 sps:$4 sm:$0xff]  }
  0x2c   :  { %1130 = vmatpush1.bf16.msra.mxu0 %v1600_v43  ;;  %1025 = vmatprep.subr.bf16.mxu1 %v1601_v44  ;;  %v1744_v43 = vld [vmem:[%s2300_s0 + $0x1c] ss:$36 sps:$4 sm:$0xff]  }
  0x2d   :  { %1131 = vmatprep.subr.bf16.mxu0 %v1603_v45  ;;  %v1685_v44 = vld [vmem:[%s2299_s1 + $0x180] ss:$8 sps:$4 sm:$0xff]  }
  0x2e   :  { %v1688_v45 = vld [vmem:[%s2299_s1 + $0x380] ss:$8 sps:$4 sm:$0xff]  }
  0x2f   :  { %1026 = vmatpush1.bf16.msra.mxu1 %v1605_v46  ;;  %v1693_v46 = vld [vmem:[%s2299_s1 + $0x194] ss:$8 sps:$4 sm:$0xff]  }
  0x30   :  { %1132 = vmatpush1.bf16.msra.mxu0 %v1606_v47  ;;  %1027 = vmatprep.subr.bf16.mxu1 %v1607_v49  ;;  %v1696_v47 = vld [vmem:[%s2299_s1 + $0x394] ss:$8 sps:$4 sm:$0xff]   ;;  %v1694_v49 = vld [vmem:[%s2299_s1 + $0x390] ss:$8 sps:$4 sm:$0xff]  }
  0x31   :  { %1133 = vmatprep.subr.bf16.mxu0 %v1609_v50  ;;  %v1699_v50 = vld [vmem:[%s2299_s1 + $0x1a4] ss:$8 sps:$4 sm:$0xff]  }
  0x33   :  { %1028 = vmatpush1.bf16.msra.mxu1 %v1611_v52  ;;  %v1697_v52 = vld [vmem:[%s2299_s1 + $0x1a0] ss:$8 sps:$4 sm:$0xff]  }
  0x34   :  { %1134 = vmatpush1.bf16.msra.mxu0 %v1612_v53  ;;  %1029 = vmatprep.subr.bf16.mxu1 %v1613_v54  ;;  %v1700_v53 = vld [vmem:[%s2299_s1 + $0x3a0] ss:$8 sps:$4 sm:$0xff]   ;;  %v1705_v54 = vld [vmem:[%s2299_s1 + $0x1b4] ss:$8 sps:$4 sm:$0xff]  }
  0x35   :  { %1135 = vmatprep.subr.bf16.mxu0 %v1615_v55  ;;  %v1708_v55 = vld [vmem:[%s2299_s1 + $0x3b4] ss:$8 sps:$4 sm:$0xff]  }
  0x37   :  { %1030 = vmatpush1.bf16.msra.mxu1 %v1617_v56  ;;  %v1703_v56 = vld [vmem:[%s2299_s1 + $0x1b0] ss:$8 sps:$4 sm:$0xff]  }
  0x38   :  { %1136 = vmatpush1.bf16.msra.mxu0 %v1618_v57  ;;  %1031 = vmatprep.subr.bf16.mxu1 %v1619_v58  ;;  %v1706_v57 = vld [vmem:[%s2299_s1 + $0x3b0] ss:$8 sps:$4 sm:$0xff]   ;;  %v1711_v58 = vld [vmem:[%s2299_s1 + $0x1c4] ss:$8 sps:$4 sm:$0xff]  }
  0x39   :  { %1137 = vmatprep.subr.bf16.mxu0 %v1621_v59  ;;  %v1714_v59 = vld [vmem:[%s2299_s1 + $0x3c4] ss:$8 sps:$4 sm:$0xff]  }
  0x3b   :  { %1032 = vmatpush1.bf16.msra.mxu1 %v1623_v60  ;;  %v1709_v60 = vld [vmem:[%s2299_s1 + $0x1c0] ss:$8 sps:$4 sm:$0xff]  }
  0x3c   :  { %1138 = vmatpush1.bf16.msra.mxu0 %v1624_v61  ;;  %1033 = vmatprep.subr.bf16.mxu1 %v1625_v62  ;;  %v1712_v61 = vld [vmem:[%s2299_s1 + $0x3c0] ss:$8 sps:$4 sm:$0xff]   ;;  %v1717_v62 = vld [vmem:[%s2299_s1 + $0x1d4] ss:$8 sps:$4 sm:$0xff]  }
  0x3d   :  { %1139 = vmatprep.subr.bf16.mxu0 %v1627_v63  ;;  %v1720_v63 = vld [vmem:[%s2299_s1 + $0x3d4] ss:$8 sps:$4 sm:$0xff]  }
  0x3f   :  { %1034 = vmatpush1.bf16.msra.mxu1 %v1629_v0  ;;  %v1715_v0 = vld [vmem:[%s2299_s1 + $0x1d0] ss:$8 sps:$4 sm:$0xff]  }
  0x40   :  { %1140 = vmatpush1.bf16.msra.mxu0 %v1630_v1  ;;  %1056 = vmatprep.subr.bf16.mxu1 %v1636_v2  ;;  %v1718_v1 = vld [vmem:[%s2299_s1 + $0x3d0] ss:$8 sps:$4 sm:$0xff]   ;;  %v1728_v2 = vld [vmem:[%s2299_s1 + $0x1e4] ss:$8 sps:$4 sm:$0xff]  }
  0x41   :  { %1162 = vmatprep.subr.bf16.mxu0 %v1642_v3  ;;  %v1732_v3 = vld [vmem:[%s2299_s1 + $0x3e4] ss:$8 sps:$4 sm:$0xff]  }
  0x42   :  { %1036 = vmatmul.mubr.bf16.vlgmr.msra.gmra.mrb[0].mxu1 %v1631_v4  ;;  %v1726_v4 = vld [vmem:[%s2299_s1 + $0x1e0] ss:$8 sps:$4 sm:$0xff]  }
  0x43   :  { %1142 = vmatmul.mubr.bf16.vlgmr.msra.gmra.mrb[0].mxu0 %v1637_v6  ;;  %1057 = vmatpush1.bf16.msra.mxu1 %v1634_v5  ;;  %v1730_v5 = vld [vmem:[%s2299_s1 + $0x3e0] ss:$8 sps:$4 sm:$0xff]   ;;  %v1735_v6 = vld [vmem:[%s2299_s1 + $0x1f4] ss:$8 sps:$4 sm:$0xff]  }
  0x44   :  { %1163 = vmatpush1.bf16.msra.mxu0 %v1640_v7  ;;  %1058 = vmatprep.subr.bf16.mxu1 %v1645_v8  ;;  %v1738_v7 = vld [vmem:[%s2299_s1 + $0x3f4] ss:$8 sps:$4 sm:$0xff]   ;;  %v1733_v8 = vld [vmem:[%s2299_s1 + $0x1f0] ss:$8 sps:$4 sm:$0xff]  }
  0x45   :  { %1164 = vmatprep.subr.bf16.mxu0 %v1648_v9  ;;  %1045 = vmatprep.mubr.bf16.mxu1 %v1721_v29  ;;  %v1736_v9 = vld [vmem:[%s2299_s1 + $0x3f0] ss:$8 sps:$4 sm:$0xff]   ;;  %v1771_v29 = vld [vmem:[%s2299_s1 + $0x464] ss:$8 sps:$4 sm:$0xff]  }
  0x46   :  { %1151 = vmatprep.mubr.bf16.mxu0 %v1723_v30  ;;  %v1769_v30 = vld [vmem:[%s2299_s1 + $0x460] ss:$8 sps:$4 sm:$0xff]  }
  0x47   :  { %1059 = vmatpush1.bf16.msra.mxu1 %v1643_v10  ;;  %v1747_v10 = vld [vmem:[%s2299_s1 + $0x404] ss:$8 sps:$4 sm:$0xff]  }
  0x48   :  { %1165 = vmatpush1.bf16.msra.mxu0 %v1646_v11  ;;  %1060 = vmatprep.subr.bf16.mxu1 %v1651_v12  ;;  %v1739_v11 = vld [vmem:[%s2300_s0 + $0x8] ss:$36 sps:$4 sm:$0xff]   ;;  %v1742_v12 = vld [vmem:[%s2300_s0 + $0x18] ss:$36 sps:$4 sm:$0xff]  }
  0x49   :  { %1166 = vmatprep.subr.bf16.mxu0 %v1654_v13  ;;  %v1745_v13 = vld [vmem:[%s2299_s1 + $0x400] ss:$8 sps:$4 sm:$0xff]  }
  0x4a   :  { %1046 = vmatmul.mubr.bf16.gmra.mrb[4].mxu1 %v1725_v31  ;;  %v1774_v31 = vld [vmem:[%s2299_s1 + $0x474] ss:$8 sps:$4 sm:$0xff]  }
  0x4b   :  { %1061 = vmatpush1.bf16.msra.mxu1 %v1649_v14  ;;  %1152 = vmatmul.mubr.bf16.gmra.mrb[4].mxu0 %v1729_v33  ;;  %v1750_v14 = vld [vmem:[%s2299_s1 + $0x414] ss:$8 sps:$4 sm:$0xff]   ;;  %v1775_v33 = vld [vmem:[%s2300_s0 + $0x20] ss:$36 sps:$4 sm:$0xff]  }
  0x4c   :  { %1167 = vmatpush1.bf16.msra.mxu0 %v1652_v15  ;;  %1062 = vmatprep.subr.bf16.mxu1 %v1657_v16  ;;  %v1751_v15 = vld [vmem:[%s2300_s0 + $0x54] ss:$36 sps:$4 sm:$0xff]   ;;  %v1753_v16 = vld [vmem:[%s2300_s0 + $0x64] ss:$36 sps:$4 sm:$0xff]  }
  0x4d   :  { %1168 = vmatprep.subr.bf16.mxu0 %v1660_v17  ;;  %1088 = vmatprep.mubr.bf16.mxu1 %v1741_v41  ;;  %v1748_v17 = vld [vmem:[%s2299_s1 + $0x410] ss:$8 sps:$4 sm:$0xff]  }
  0x4e   :  { %1194 = vmatprep.mubr.bf16.mxu0 %v1744_v43 }
  0x4f   :  { %1063 = vmatpush1.bf16.msra.mxu1 %v1655_v18  ;;  %v1759_v18 = vld [vmem:[%s2299_s1 + $0x424] ss:$8 sps:$4 sm:$0xff]  }
  0x50   :  { %1169 = vmatpush1.bf16.msra.mxu0 %v1658_v19  ;;  %1064 = vmatprep.subr.bf16.mxu1 %v1663_v20  ;;  %v1755_v19 = vld [vmem:[%s2300_s0 + $0x50] ss:$36 sps:$4 sm:$0xff]   ;;  %v1756_v20 = vld [vmem:[%s2300_s0 + $0x60] ss:$36 sps:$4 sm:$0xff]  }
  0x51   :  { %1170 = vmatprep.subr.bf16.mxu0 %v1666_v21  ;;  %v1757_v21 = vld [vmem:[%s2299_s1 + $0x420] ss:$8 sps:$4 sm:$0xff]  }
  0x53   :  { %1065 = vmatpush1.bf16.msra.mxu1 %v1661_v22  ;;  %v1762_v22 = vld [vmem:[%s2299_s1 + $0x434] ss:$8 sps:$4 sm:$0xff]  }
  0x54   :  { %1171 = vmatpush1.bf16.msra.mxu0 %v1664_v23  ;;  %1066 = vmatprep.subr.bf16.mxu1 %v1669_v24  ;;  %v1760_v23 = vld [vmem:[%s2299_s1 + $0x430] ss:$8 sps:$4 sm:$0xff]   ;;  %v1765_v24 = vld [vmem:[%s2299_s1 + $0x444] ss:$8 sps:$4 sm:$0xff]  }
  0x55   :  { %1172 = vmatprep.subr.bf16.mxu0 %v1672_v25  ;;  %v1777_v25 = vmov 0  }
  0x57   :  { %1067 = vmatpush1.bf16.msra.mxu1 %v1667_v26  ;;  %v1763_v26 = vld [vmem:[%s2299_s1 + $0x440] ss:$8 sps:$4 sm:$0xff]  }
  0x58   :  { %1173 = vmatpush1.bf16.msra.mxu0 %v1670_v27  ;;  %1068 = vmatprep.subr.bf16.mxu1 %v1675_v28  ;;  %v1768_v27 = vld [vmem:[%s2299_s1 + $0x454] ss:$8 sps:$4 sm:$0xff]   ;;  %v1766_v28 = vld [vmem:[%s2299_s1 + $0x450] ss:$8 sps:$4 sm:$0xff]  }
  0x59   :  { %1174 = vmatprep.subr.bf16.mxu0 %v1678_v32  ;;  %v1772_v32 = vld [vmem:[%s2299_s1 + $0x470] ss:$8 sps:$4 sm:$0xff]  }
  0x5b   :  { %1069 = vmatpush1.bf16.msra.mxu1 %v1673_v34  ;;  %v1776_v34 = vld [vmem:[%s2300_s0 + $0x68] ss:$36 sps:$4 sm:$0xff]  }
  0x5c   :  { %1175 = vmatpush1.bf16.msra.mxu0 %v1676_v35  ;;  %1070 = vmatprep.subr.bf16.mxu1 %v1681_v36  ;;  %v181_v35 = vlaneseq }
  0x5d   :  { %1176 = vmatprep.subr.bf16.mxu0 %v1684_v37 }
  0x5e   :  { %v182_v36 = vshrl.u32 %v181_v35, 7 }
  0x5f   :  { %1071 = vmatpush1.bf16.msra.mxu1 %v1679_v38 }
  0x60   :  { %1177 = vmatpush1.bf16.msra.mxu0 %v1682_v39  ;;  %1072 = vmatprep.subr.bf16.mxu1 %v1687_v40  ;;  %v183_v40 = vsub.s32 0, %v182_v36  ;;  %v187_v43 = vsub.s32 1, %v182_v36 }
  0x61   :  { %1178 = vmatprep.subr.bf16.mxu0 %v1690_v42  ;;  %v179_v42 = vld [vmem:[%s2301_s2] sm:$0x3] }
  0x63   :  { %1073 = vmatpush1.bf16.msra.mxu1 %v1685_v44  ;;  %v184_v44 = vrot.slane %v179_v42, %v183_v40 }
  0x64   :  { %1179 = vmatpush1.bf16.msra.mxu0 %v1688_v45  ;;  %1074 = vmatprep.subr.bf16.mxu1 %v1693_v46  ;;  %v188_v45 = vrot.slane %v179_v42, %v187_v43 }
  0x65   :  { %1180 = vmatprep.subr.bf16.mxu0 %v1696_v47 }
  0x67   :  { %1075 = vmatpush1.bf16.msra.mxu1 %v1691_v48 }
  0x68   :  { %1181 = vmatpush1.bf16.msra.mxu0 %v1694_v49  ;;  %1076 = vmatprep.subr.bf16.mxu1 %v1699_v50 }
  0x69   :  { %1182 = vmatprep.subr.bf16.mxu0 %v1702_v51 }
  0x6b   :  { %1077 = vmatpush1.bf16.msra.mxu1 %v1697_v52 }
  0x6c   :  { %1183 = vmatpush1.bf16.msra.mxu0 %v1700_v53  ;;  %1078 = vmatprep.subr.bf16.mxu1 %v1705_v54 }
  0x6d   :  { %1184 = vmatprep.subr.bf16.mxu0 %v1708_v55 }
  0x6f   :  { %1079 = vmatpush1.bf16.msra.mxu1 %v1703_v56 }
  0x70   :  { %1185 = vmatpush1.bf16.msra.mxu0 %v1706_v57  ;;  %1080 = vmatprep.subr.bf16.mxu1 %v1711_v58 }
  0x71   :  { %1186 = vmatprep.subr.bf16.mxu0 %v1714_v59 }
  0x73   :  { %1081 = vmatpush1.bf16.msra.mxu1 %v1709_v60 }
  0x74   :  { %1187 = vmatpush1.bf16.msra.mxu0 %v1712_v61  ;;  %1082 = vmatprep.subr.bf16.mxu1 %v1717_v62 }
  0x75   :  { %1188 = vmatprep.subr.bf16.mxu0 %v1720_v63 }
  0x77   :  { %1083 = vmatpush1.bf16.msra.mxu1 %v1715_v0 }
  0x78   :  { %1189 = vmatpush1.bf16.msra.mxu0 %v1718_v1  ;;  %1084 = vmatprep.subr.bf16.mxu1 %v1728_v2 }
  0x79   :  { %1190 = vmatprep.subr.bf16.mxu0 %v1732_v3 }
  0x7b   :  { %1085 = vmatpush1.bf16.msra.mxu1 %v1726_v4 }
  0x7c   :  { %1191 = vmatpush1.bf16.msra.mxu0 %v1730_v5  ;;  %1086 = vmatprep.subr.bf16.mxu1 %v1735_v6 }
  0x7d   :  { %1192 = vmatprep.subr.bf16.mxu0 %v1738_v7 }
  0x7f   :  { %1087 = vmatpush1.bf16.msra.mxu1 %v1733_v8 }
  0x80   :  { %1193 = vmatpush1.bf16.msra.mxu0 %v1736_v9  ;;  %1478 = vmatprep.subr.bf16.mxu1 %v1747_v10 }
  0x81   :  { %1215 = vmatprep.subr.bf16.mxu0 %v1747_v10 }
  0x82   :  { %1089 = vmatmul.mubr.bf16.vlgmr.msra.gmra.mrb[0].mxu1 %v1739_v11 }
  0x83   :  { %1195 = vmatmul.mubr.bf16.vlgmr.msra.gmra.mrb[0].mxu0 %v1742_v12  ;;  %1486 = vmatpush1.bf16.msra.mxu1 %v1745_v13 }
  0x84   :  { %1216 = vmatpush1.bf16.msra.mxu0 %v1745_v13  ;;  %1479 = vmatprep.subr.bf16.mxu1 %v1750_v14 }
  0x85   :  { %1217 = vmatprep.subr.bf16.mxu0 %v1750_v14  ;;  %1098 = vmatprep.mubr.bf16.mxu1 %v1751_v15 }
  0x86   :  { %1204 = vmatprep.mubr.bf16.mxu0 %v1753_v16 }
  0x87   :  { %1487 = vmatpush1.bf16.msra.mxu1 %v1748_v17 }
  0x88   :  { %1218 = vmatpush1.bf16.msra.mxu0 %v1748_v17  ;;  %1480 = vmatprep.subr.bf16.mxu1 %v1759_v18 }
  0x89   :  { %1219 = vmatprep.subr.bf16.mxu0 %v1759_v18 }
  0x8a   :  { %1099 = vmatmul.mubr.bf16.gmra.mrb[4].mxu1 %v1755_v19 }
  0x8b   :  { %1205 = vmatmul.mubr.bf16.gmra.mrb[4].mxu0 %v1756_v20  ;;  %1488 = vmatpush1.bf16.msra.mxu1 %v1757_v21 }
  0x8c   :  { %1220 = vmatpush1.bf16.msra.mxu0 %v1757_v21  ;;  %1481 = vmatprep.subr.bf16.mxu1 %v1762_v22 }
  0x8d   :  { %1221 = vmatprep.subr.bf16.mxu0 %v1762_v22  ;;  %1247 = vmatprep.mubr.bf16.mxu0 %v1777_v25 }
  0x8e   :  { %1257 = vmatprep.mubr.bf16.mxu1 %v1777_v25 }
  0x8f   :  { %1489 = vmatpush1.bf16.msra.mxu1 %v1760_v23 }
  0x90   :  { %1222 = vmatpush1.bf16.msra.mxu0 %v1760_v23  ;;  %1482 = vmatprep.subr.bf16.mxu1 %v1765_v24 }
  0x91   :  { %1223 = vmatprep.subr.bf16.mxu0 %v1765_v24 }
  0x93   :  { %1490 = vmatpush1.bf16.msra.mxu1 %v1763_v26 }
  0x94   :  { %1224 = vmatpush1.bf16.msra.mxu0 %v1763_v26  ;;  %1483 = vmatprep.subr.bf16.mxu1 %v1768_v27 }
  0x95   :  { %1225 = vmatprep.subr.bf16.mxu0 %v1768_v27 }
  0x97   :  { %1491 = vmatpush1.bf16.msra.mxu1 %v1766_v28 }
  0x98   :  { %1226 = vmatpush1.bf16.msra.mxu0 %v1766_v28  ;;  %1484 = vmatprep.subr.bf16.mxu1 %v1771_v29 }
  0x99   :  { %1227 = vmatprep.subr.bf16.mxu0 %v1771_v29 }
  0x9b   :  { %1492 = vmatpush1.bf16.msra.mxu1 %v1769_v30 }
  0x9c   :  { %1228 = vmatpush1.bf16.msra.mxu0 %v1769_v30  ;;  %1485 = vmatprep.subr.bf16.mxu1 %v1774_v31 }
  0x9d   :  { %1229 = vmatprep.subr.bf16.mxu0 %v1774_v31 }
  0x9f   :  { %1493 = vmatpush1.bf16.msra.mxu1 %v1772_v32 }
  0xa0   :  { %1230 = vmatpush1.bf16.msra.mxu0 %v1772_v32 }
  0xa2   :  { %1258 = vmatmul.mubr.bf16.vlgmr.msra.gmra.mrb[8].mxu1 %v1776_v34 }
  0xa3   :  { %1248 = vmatmul.mubr.bf16.vlgmr.msra.gmra.mrb[0].mxu0 %v1775_v33 }
 0x155   :  { %v1090_v37 = vpop.f32.mrb[0].mxu1 }
 0x156   :  { %v1092_v38 = vpop.f32.mrb[1].mxu1  ;;  %v1494_v62 = vadd.f32 %v1090_v37, %v184_v44 }
 0x157   :  { %v1094_v39 = vpop.f32.mrb[2].mxu1  ;;  %v1496_v63 = vadd.f32 %v1092_v38, %v188_v45 }
 0x158   :  { %v1096_v41 = vpop.f32.mrb[3].mxu1  ;;  %v1498_v2 = vadd.f32 %v1094_v39, %v184_v44 }
 0x159   :  { %v1500_v7 = vadd.f32 %v1096_v41, %v188_v45 }
 0x15d   :  { %v1100_v46 = vpop.f32.mrb[4].mxu1 }
 0x15e   :  { %v1206_v47 = vpop.f32.mrb[4].mxu0  ;;  %v1502_v48 = vadd.f32 %v1100_v46, %v184_v44  ;;  %v1102_v49 = vpop.f32.mrb[5].mxu1 }
 0x15f   :  { %v1208_v50 = vpop.f32.mrb[5].mxu0  ;;  %v1505_v51 = vadd.f32 %v1102_v49, %v188_v45  ;;  %v1104_v52 = vpop.f32.mrb[6].mxu1 }
 0x160   :  { %v1210_v53 = vpop.f32.mrb[6].mxu0  ;;  %v1503_v54 = vadd.f32 %v1502_v48, %v1206_v47  ;;  %v1508_v55 = vadd.f32 %v1104_v52, %v184_v44  ;;  %v1106_v56 = vpop.f32.mrb[7].mxu1 }
 0x161   :  { %v1212_v57 = vpop.f32.mrb[7].mxu0  ;;  %v1506_v58 = vadd.f32 %v1505_v51, %v1208_v50  ;;  %v1511_v59 = vadd.f32 %v1106_v56, %v188_v45 }
 0x162   :  { %v1509_v60 = vadd.f32 %v1508_v55, %v1210_v53 }
 0x163   :  { %v1512_v61 = vadd.f32 %v1511_v59, %v1212_v57 }
 0x175   :  { %v1259_v1 = vpop.f32.mrb[8].mxu1 }
 0x176   :  { %v1249_v0 = vpop.f32.mrb[0].mxu0  ;;  %v1504_v4 = vadd.f32 %v1503_v54, %v1259_v1  ;;  %v1261_v6 = vpop.f32.mrb[9].mxu1 }
 0x177   :  { %v1495_v3 = vadd.f32 %v1494_v62, %v1249_v0  ;;  %v1251_v5 = vpop.f32.mrb[1].mxu0  ;;  %v1507_v9 = vadd.f32 %v1506_v58, %v1261_v6  ;;  %v1263_v11 = vpop.f32.mrb[10].mxu1 }
 0x178   :  { %v1497_v8 = vadd.f32 %v1496_v63, %v1251_v5  ;;  %v1253_v10 = vpop.f32.mrb[2].mxu0  ;;  %v1272_v13 = vmax.f32 %v1504_v4, 0.0  ;;  %v1510_v15 = vadd.f32 %v1509_v60, %v1263_v11  ;;  %v1265_v17 = vpop.f32.mrb[11].mxu1 }
 0x179   :  { %v1268_v12 = vmax.f32 %v1495_v3, 0.0  ;;  %v1499_v14 = vadd.f32 %v1498_v2, %v1253_v10  ;;  %v1255_v16 = vpop.f32.mrb[3].mxu0  ;;  %v1273_v19 = vmax.f32 %v1507_v9, 0.0  ;;  %v1513_v21 = vadd.f32 %v1512_v61, %v1265_v17 }
 0x17a   :  { %v1269_v18 = vmax.f32 %v1497_v8, 0.0  ;;  %v1501_v20 = vadd.f32 %v1500_v7, %v1255_v16  ;;  %v1274_v23 = vmax.f32 %v1510_v15, 0.0 }
 0x17b   :  { %v1270_v22 = vmax.f32 %v1499_v14, 0.0  ;;  %v1476_v25 = vpack.c.bf16 %v1273_v19, %v1272_v13  ;;  %v1275_v27 = vmax.f32 %v1513_v21, 0.0 }
 0x17c   :  { %v1474_v24 = vpack.c.bf16 %v1269_v18, %v1268_v12  ;;  %v1271_v26 = vmax.f32 %v1501_v20, 0.0 }
 0x17d   :  { %1302 = vst [vmem:[%s2302_s3 + $0x10] sm:$0xff] %v1476_v25  ;;  %v1477_v29 = vpack.c.bf16 %v1275_v27, %v1274_v23 }
 0x17e   :  { %1300 = vst [vmem:[%s2302_s3] sm:$0xff] %v1474_v24  ;;  %v1475_v28 = vpack.c.bf16 %v1271_v26, %v1270_v22 }
 0x17f   :  { %1303 = vst [vmem:[%s2302_s3 + $0x18] sm:$0xff] %v1477_v29 }
 0x180   :  { %1301 = vst [vmem:[%s2302_s3 + $0x8] sm:$0xff] %v1475_v28 }

// kernel: conv_encoder_forward.9
= control target key start
LH: loop header
LB: loop body
LE: loop exit
PB: predicated region body
PF: predicated region fallthrough
CT: control target
= control target key end

     0   :  { %s8256_s1 = inlined_call_operand.vmem [shape: bf16[2304,512], index: 1, kind: input, shape index: {}]   ;;  %s8257_s0 = inlined_call_operand.vmem [shape: bf16[8,2304], index: 0, kind: input, shape index: {}]   ;;  %s8258_s3 = inlined_call_operand.vmem [shape: bf16[512,128], index: 3, kind: input, shape index: {}]   ;;  %s8259_s2 = inlined_call_operand.vmem [shape: f32[1,512], index: 2, kind: input, shape index: {}]   ;;  %s8260_s4 = inlined_call_operand.vmem [shape: f32[1,128], index: 4, kind: input, shape index: {}]   ;;  %s8261_s5 = inlined_call_operand.vmem [shape: f32[8,128], index: 5, kind: output, shape index: {}]  }
   0x1   :  { %v5404_v0 = vld [vmem:[%s8256_s1 + $0x4] ss:$16 sps:$4 sm:$0xff]   ;;  %v5406_v1 = vld [vmem:[%s8256_s1 + $0xc] ss:$16 sps:$4 sm:$0xff]   ;;  %v5408_v2 = vld [vmem:[%s8256_s1] ss:$16 sps:$4 sm:$0xff]  }
   0x2   :  { %3571 = vmatprep.subr.bf16.mxu0 %v5404_v0  ;;  %v5409_v3 = vld [vmem:[%s8256_s1 + $0x8] ss:$16 sps:$4 sm:$0xff]   ;;  %3940 = vmatprep.subr.bf16.mxu1 %v5406_v1  ;;  %v5410_v4 = vld [vmem:[%s8256_s1 + $0x24] ss:$16 sps:$4 sm:$0xff]   ;;  %v5412_v5 = vld [vmem:[%s8256_s1 + $0x2c] ss:$16 sps:$4 sm:$0xff]  }
   0x3   :  { %3572 = vmatpush1.bf16.msra.mxu0 %v5408_v2  ;;  %3941 = vmatpush1.bf16.msra.mxu1 %v5409_v3  ;;  %v5414_v6 = vld [vmem:[%s8256_s1 + $0x20] ss:$16 sps:$4 sm:$0xff]   ;;  %v5415_v7 = vld [vmem:[%s8256_s1 + $0x28] ss:$16 sps:$4 sm:$0xff]   ;;  %v5416_v8 = vld [vmem:[%s8256_s1 + $0x44] ss:$16 sps:$4 sm:$0xff]  }
   0x4   :  { %3573 = vmatprep.subr.bf16.mxu0 %v5410_v4  ;;  %3942 = vmatprep.subr.bf16.mxu1 %v5412_v5  ;;  %v5418_v9 = vld [vmem:[%s8256_s1 + $0x4c] ss:$16 sps:$4 sm:$0xff]   ;;  %v5420_v10 = vld [vmem:[%s8256_s1 + $0x40] ss:$16 sps:$4 sm:$0xff]   ;;  %v5421_v11 = vld [vmem:[%s8256_s1 + $0x48] ss:$16 sps:$4 sm:$0xff]  }
   0x5   :  { %v5422_v12 = vld [vmem:[%s8256_s1 + $0x64] ss:$16 sps:$4 sm:$0xff]   ;;  %v5424_v13 = vld [vmem:[%s8256_s1 + $0x6c] ss:$16 sps:$4 sm:$0xff]   ;;  %v5426_v14 = vld [vmem:[%s8256_s1 + $0x60] ss:$16 sps:$4 sm:$0xff]  }
   0x6   :  { %v5427_v15 = vld [vmem:[%s8256_s1 + $0x68] ss:$16 sps:$4 sm:$0xff]   ;;  %v5428_v16 = vld [vmem:[%s8256_s1 + $0x84] ss:$16 sps:$4 sm:$0xff]   ;;  %v5430_v17 = vld [vmem:[%s8256_s1 + $0x8c] ss:$16 sps:$4 sm:$0xff]  }
   0x7   :  { %3574 = vmatpush1.bf16.msra.mxu0 %v5414_v6  ;;  %3943 = vmatpush1.bf16.msra.mxu1 %v5415_v7  ;;  %v5432_v18 = vld [vmem:[%s8256_s1 + $0x80] ss:$16 sps:$4 sm:$0xff]   ;;  %v5433_v19 = vld [vmem:[%s8256_s1 + $0x88] ss:$16 sps:$4 sm:$0xff]   ;;  %v5434_v20 = vld [vmem:[%s8256_s1 + $0xa4] ss:$16 sps:$4 sm:$0xff]  }
   0x8   :  { %3575 = vmatprep.subr.bf16.mxu0 %v5416_v8  ;;  %3944 = vmatprep.subr.bf16.mxu1 %v5418_v9  ;;  %v5436_v21 = vld [vmem:[%s8256_s1 + $0xac] ss:$16 sps:$4 sm:$0xff]   ;;  %v5438_v22 = vld [vmem:[%s8256_s1 + $0xa0] ss:$16 sps:$4 sm:$0xff]   ;;  %v5439_v23 = vld [vmem:[%s8256_s1 + $0xa8] ss:$16 sps:$4 sm:$0xff]  }
   0x9   :  { %v5440_v24 = vld [vmem:[%s8256_s1 + $0xc4] ss:$16 sps:$4 sm:$0xff]   ;;  %v5442_v25 = vld [vmem:[%s8256_s1 + $0xcc] ss:$16 sps:$4 sm:$0xff]   ;;  %v5444_v26 = vld [vmem:[%s8256_s1 + $0xc0] ss:$16 sps:$4 sm:$0xff]  }
   0xa   :  { %v5445_v27 = vld [vmem:[%s8256_s1 + $0xc8] ss:$16 sps:$4 sm:$0xff]   ;;  %v5446_v28 = vld [vmem:[%s8256_s1 + $0xe4] ss:$16 sps:$4 sm:$0xff]   ;;  %v5448_v29 = vld [vmem:[%s8256_s1 + $0xec] ss:$16 sps:$4 sm:$0xff]  }
   0xb   :  { %3576 = vmatpush1.bf16.msra.mxu0 %v5420_v10  ;;  %3945 = vmatpush1.bf16.msra.mxu1 %v5421_v11  ;;  %v5450_v30 = vld [vmem:[%s8256_s1 + $0xe0] ss:$16 sps:$4 sm:$0xff]   ;;  %v5451_v31 = vld [vmem:[%s8256_s1 + $0xe8] ss:$16 sps:$4 sm:$0xff]   ;;  %v5452_v32 = vld [vmem:[%s8256_s1 + $0x104] ss:$16 sps:$4 sm:$0xff]  }
   0xc   :  { %3577 = vmatprep.subr.bf16.mxu0 %v5422_v12  ;;  %3946 = vmatprep.subr.bf16.mxu1 %v5424_v13  ;;  %v5454_v33 = vld [vmem:[%s8256_s1 + $0x10c] ss:$16 sps:$4 sm:$0xff]   ;;  %v5456_v34 = vld [vmem:[%s8256_s1 + $0x100] ss:$16 sps:$4 sm:$0xff]   ;;  %v5457_v35 = vld [vmem:[%s8256_s1 + $0x108] ss:$16 sps:$4 sm:$0xff]  }
   0xd   :  { %v5458_v36 = vld [vmem:[%s8256_s1 + $0x124] ss:$16 sps:$4 sm:$0xff]   ;;  %v5460_v37 = vld [vmem:[%s8256_s1 + $0x12c] ss:$16 sps:$4 sm:$0xff]   ;;  %v5462_v38 = vld [vmem:[%s8256_s1 + $0x120] ss:$16 sps:$4 sm:$0xff]  }
   0xe   :  { %v5463_v39 = vld [vmem:[%s8256_s1 + $0x128] ss:$16 sps:$4 sm:$0xff]   ;;  %v5464_v40 = vld [vmem:[%s8256_s1 + $0x144] ss:$16 sps:$4 sm:$0xff]   ;;  %v5466_v41 = vld [vmem:[%s8256_s1 + $0x14c] ss:$16 sps:$4 sm:$0xff]  }
   0xf   :  { %3578 = vmatpush1.bf16.msra.mxu0 %v5426_v14  ;;  %3947 = vmatpush1.bf16.msra.mxu1 %v5427_v15  ;;  %v5468_v42 = vld [vmem:[%s8256_s1 + $0x140] ss:$16 sps:$4 sm:$0xff]   ;;  %v5469_v43 = vld [vmem:[%s8256_s1 + $0x148] ss:$16 sps:$4 sm:$0xff]   ;;  %v5470_v44 = vld [vmem:[%s8256_s1 + $0x164] ss:$16 sps:$4 sm:$0xff]  }
  0x10   :  { %3579 = vmatprep.subr.bf16.mxu0 %v5428_v16  ;;  %3948 = vmatprep.subr.bf16.mxu1 %v5430_v17  ;;  %v5472_v45 = vld [vmem:[%s8256_s1 + $0x16c] ss:$16 sps:$4 sm:$0xff]   ;;  %v21_v46 = vld [vmem:[%s8257_s0] sm:$0xff]  ;;  %v5475_v49 = vld [vmem:[%s8256_s1 + $0x168] ss:$16 sps:$4 sm:$0xff]  }
  0x11   :  { %v5474_v47 = vld [vmem:[%s8256_s1 + $0x160] ss:$16 sps:$4 sm:$0xff]   ;;  %v4666_v48 = vcombine.high %v21_v46, %v21_v46  ;;  %v5476_v50 = vld [vmem:[%s8256_s1 + $0x184] ss:$16 sps:$4 sm:$0xff]   ;;  %v5478_v51 = vld [vmem:[%s8256_s1 + $0x18c] ss:$16 sps:$4 sm:$0xff]   ;;  %v4665_v4 = vcombine.low %v21_v46, %v21_v46 }
  0x12   :  { %v5480_v52 = vld [vmem:[%s8256_s1 + $0x180] ss:$16 sps:$4 sm:$0xff]   ;;  %v5481_v53 = vld [vmem:[%s8256_s1 + $0x188] ss:$16 sps:$4 sm:$0xff]   ;;  %v5482_v54 = vld [vmem:[%s8256_s1 + $0x1a4] ss:$16 sps:$4 sm:$0xff]  }
  0x13   :  { %3580 = vmatpush1.bf16.msra.mxu0 %v5432_v18  ;;  %3949 = vmatpush1.bf16.msra.mxu1 %v5433_v19  ;;  %v5484_v55 = vld [vmem:[%s8256_s1 + $0x1ac] ss:$16 sps:$4 sm:$0xff]   ;;  %v5486_v56 = vld [vmem:[%s8256_s1 + $0x1a0] ss:$16 sps:$4 sm:$0xff]   ;;  %v5487_v57 = vld [vmem:[%s8256_s1 + $0x1a8] ss:$16 sps:$4 sm:$0xff]  }
  0x14   :  { %3581 = vmatprep.subr.bf16.mxu0 %v5434_v20  ;;  %3950 = vmatprep.subr.bf16.mxu1 %v5436_v21  ;;  %v5488_v58 = vld [vmem:[%s8256_s1 + $0x1c4] ss:$16 sps:$4 sm:$0xff]   ;;  %v5490_v59 = vld [vmem:[%s8256_s1 + $0x1cc] ss:$16 sps:$4 sm:$0xff]   ;;  %v5492_v60 = vld [vmem:[%s8256_s1 + $0x1c0] ss:$16 sps:$4 sm:$0xff]  }
  0x15   :  { %3603 = vmatprep.mubr.bf16.mxu0 %v4666_v48  ;;  %3972 = vmatprep.mubr.bf16.mxu1 %v4666_v48  ;;  %v5493_v61 = vld [vmem:[%s8256_s1 + $0x1c8] ss:$16 sps:$4 sm:$0xff]   ;;  %v5494_v62 = vld [vmem:[%s8256_s1 + $0x1e4] ss:$16 sps:$4 sm:$0xff]   ;;  %v5496_v63 = vld [vmem:[%s8256_s1 + $0x1ec] ss:$16 sps:$4 sm:$0xff]  }
  0x16   :  { %v5498_v0 = vld [vmem:[%s8256_s1 + $0x1e0] ss:$16 sps:$4 sm:$0xff]   ;;  %v5499_v1 = vld [vmem:[%s8256_s1 + $0x1e8] ss:$16 sps:$4 sm:$0xff]   ;;  %v5504_v2 = vld [vmem:[%s8256_s1 + $0x204] ss:$16 sps:$4 sm:$0xff]  }
  0x17   :  { %3582 = vmatpush1.bf16.msra.mxu0 %v5438_v22  ;;  %3951 = vmatpush1.bf16.msra.mxu1 %v5439_v23  ;;  %v5507_v3 = vld [vmem:[%s8256_s1 + $0x20c] ss:$16 sps:$4 sm:$0xff]   ;;  %v5502_v5 = vld [vmem:[%s8256_s1 + $0x200] ss:$16 sps:$4 sm:$0xff]   ;;  %v5505_v6 = vld [vmem:[%s8256_s1 + $0x208] ss:$16 sps:$4 sm:$0xff]  }
  0x18   :  { %3583 = vmatprep.subr.bf16.mxu0 %v5440_v24  ;;  %3952 = vmatprep.subr.bf16.mxu1 %v5442_v25  ;;  %v5510_v7 = vld [vmem:[%s8256_s1 + $0x224] ss:$16 sps:$4 sm:$0xff]   ;;  %v5513_v8 = vld [vmem:[%s8256_s1 + $0x22c] ss:$16 sps:$4 sm:$0xff]   ;;  %v5508_v9 = vld [vmem:[%s8256_s1 + $0x220] ss:$16 sps:$4 sm:$0xff]  }
  0x19   :  { %v5511_v10 = vld [vmem:[%s8256_s1 + $0x228] ss:$16 sps:$4 sm:$0xff]   ;;  %v5516_v11 = vld [vmem:[%s8256_s1 + $0x244] ss:$16 sps:$4 sm:$0xff]   ;;  %v5519_v12 = vld [vmem:[%s8256_s1 + $0x24c] ss:$16 sps:$4 sm:$0xff]  }
  0x1a   :  { %v5514_v13 = vld [vmem:[%s8256_s1 + $0x240] ss:$16 sps:$4 sm:$0xff]   ;;  %v5517_v14 = vld [vmem:[%s8256_s1 + $0x248] ss:$16 sps:$4 sm:$0xff]   ;;  %v5522_v15 = vld [vmem:[%s8256_s1 + $0x264] ss:$16 sps:$4 sm:$0xff]  }
  0x1b   :  { %3584 = vmatpush1.bf16.msra.mxu0 %v5444_v26  ;;  %3953 = vmatpush1.bf16.msra.mxu1 %v5445_v27  ;;  %v5525_v16 = vld [vmem:[%s8256_s1 + $0x26c] ss:$16 sps:$4 sm:$0xff]   ;;  %v5520_v17 = vld [vmem:[%s8256_s1 + $0x260] ss:$16 sps:$4 sm:$0xff]   ;;  %v5523_v18 = vld [vmem:[%s8256_s1 + $0x268] ss:$16 sps:$4 sm:$0xff]  }
  0x1c   :  { %3585 = vmatprep.subr.bf16.mxu0 %v5446_v28  ;;  %3954 = vmatprep.subr.bf16.mxu1 %v5448_v29  ;;  %v5528_v19 = vld [vmem:[%s8256_s1 + $0x284] ss:$16 sps:$4 sm:$0xff]   ;;  %v5531_v20 = vld [vmem:[%s8256_s1 + $0x28c] ss:$16 sps:$4 sm:$0xff]   ;;  %v5526_v21 = vld [vmem:[%s8256_s1 + $0x280] ss:$16 sps:$4 sm:$0xff]  }
  0x1d   :  { %v5529_v22 = vld [vmem:[%s8256_s1 + $0x288] ss:$16 sps:$4 sm:$0xff]   ;;  %v5534_v23 = vld [vmem:[%s8256_s1 + $0x2a4] ss:$16 sps:$4 sm:$0xff]   ;;  %v5537_v24 = vld [vmem:[%s8256_s1 + $0x2ac] ss:$16 sps:$4 sm:$0xff]  }
  0x1e   :  { %v5532_v25 = vld [vmem:[%s8256_s1 + $0x2a0] ss:$16 sps:$4 sm:$0xff]   ;;  %v5535_v26 = vld [vmem:[%s8256_s1 + $0x2a8] ss:$16 sps:$4 sm:$0xff]   ;;  %v5540_v27 = vld [vmem:[%s8256_s1 + $0x2c4] ss:$16 sps:$4 sm:$0xff]  }
  0x1f   :  { %3586 = vmatpush1.bf16.msra.mxu0 %v5450_v30  ;;  %3955 = vmatpush1.bf16.msra.mxu1 %v5451_v31  ;;  %v5543_v28 = vld [vmem:[%s8256_s1 + $0x2cc] ss:$16 sps:$4 sm:$0xff]   ;;  %v5538_v31 = vld [vmem:[%s8256_s1 + $0x2c0] ss:$16 sps:$4 sm:$0xff]   ;;  %v5565_v48 = vld [vmem:[%s8256_s1 + $0x348] ss:$16 sps:$4 sm:$0xff]  }
  0x20   :  { %3587 = vmatprep.subr.bf16.mxu0 %v5452_v32  ;;  %3956 = vmatprep.subr.bf16.mxu1 %v5454_v33  ;;  %v6624_v29 = vld [vmem:[%s8257_s0 + $0x8] sm:$0xff]  ;;  %v5546_v33 = vld [vmem:[%s8256_s1 + $0x2e4] ss:$16 sps:$4 sm:$0xff]  }
  0x21   :  { %v4668_v30 = vcombine.high %v6624_v29, %v6624_v29  ;;  %v5541_v32 = vld [vmem:[%s8256_s1 + $0x2c8] ss:$16 sps:$4 sm:$0xff]   ;;  %v5567_v46 = vld [vmem:[%s8256_s1 + $0x34c] ss:$16 sps:$4 sm:$0xff]  }
  0x23   :  { %3588 = vmatpush1.bf16.msra.mxu0 %v5456_v34  ;;  %3957 = vmatpush1.bf16.msra.mxu1 %v5457_v35  ;;  %v5549_v34 = vld [vmem:[%s8256_s1 + $0x2ec] ss:$16 sps:$4 sm:$0xff]   ;;  %v5544_v35 = vld [vmem:[%s8256_s1 + $0x2e0] ss:$16 sps:$4 sm:$0xff]  }
  0x24   :  { %3589 = vmatprep.subr.bf16.mxu0 %v5458_v36  ;;  %3958 = vmatprep.subr.bf16.mxu1 %v5460_v37  ;;  %v5547_v36 = vld [vmem:[%s8256_s1 + $0x2e8] ss:$16 sps:$4 sm:$0xff]   ;;  %v5552_v37 = vld [vmem:[%s8256_s1 + $0x304] ss:$16 sps:$4 sm:$0xff]  }
  0x27   :  { %3590 = vmatpush1.bf16.msra.mxu0 %v5462_v38  ;;  %3959 = vmatpush1.bf16.msra.mxu1 %v5463_v39  ;;  %v5555_v38 = vld [vmem:[%s8256_s1 + $0x30c] ss:$16 sps:$4 sm:$0xff]   ;;  %v5550_v39 = vld [vmem:[%s8256_s1 + $0x300] ss:$16 sps:$4 sm:$0xff]  }
  0x28   :  { %3591 = vmatprep.subr.bf16.mxu0 %v5464_v40  ;;  %3960 = vmatprep.subr.bf16.mxu1 %v5466_v41  ;;  %v5553_v40 = vld [vmem:[%s8256_s1 + $0x308] ss:$16 sps:$4 sm:$0xff]   ;;  %v5558_v41 = vld [vmem:[%s8256_s1 + $0x324] ss:$16 sps:$4 sm:$0xff]  }
  0x2b   :  { %3592 = vmatpush1.bf16.msra.mxu0 %v5468_v42  ;;  %3961 = vmatpush1.bf16.msra.mxu1 %v5469_v43  ;;  %v5561_v42 = vld [vmem:[%s8256_s1 + $0x32c] ss:$16 sps:$4 sm:$0xff]   ;;  %v5556_v43 = vld [vmem:[%s8256_s1 + $0x320] ss:$16 sps:$4 sm:$0xff]  }
  0x2c   :  { %3593 = vmatprep.subr.bf16.mxu0 %v5470_v44  ;;  %3962 = vmatprep.subr.bf16.mxu1 %v5472_v45  ;;  %v5559_v44 = vld [vmem:[%s8256_s1 + $0x328] ss:$16 sps:$4 sm:$0xff]   ;;  %v5564_v45 = vld [vmem:[%s8256_s1 + $0x344] ss:$16 sps:$4 sm:$0xff]  }
  0x2f   :  { %3594 = vmatpush1.bf16.msra.mxu0 %v5474_v47  ;;  %3963 = vmatpush1.bf16.msra.mxu1 %v5475_v49  ;;  %v5562_v47 = vld [vmem:[%s8256_s1 + $0x340] ss:$16 sps:$4 sm:$0xff]   ;;  %v5570_v49 = vld [vmem:[%s8256_s1 + $0x364] ss:$16 sps:$4 sm:$0xff]  }
  0x30   :  { %3595 = vmatprep.subr.bf16.mxu0 %v5476_v50  ;;  %3964 = vmatprep.subr.bf16.mxu1 %v5478_v51  ;;  %v5573_v50 = vld [vmem:[%s8256_s1 + $0x36c] ss:$16 sps:$4 sm:$0xff]   ;;  %v5568_v51 = vld [vmem:[%s8256_s1 + $0x360] ss:$16 sps:$4 sm:$0xff]  }
  0x33   :  { %3596 = vmatpush1.bf16.msra.mxu0 %v5480_v52  ;;  %3965 = vmatpush1.bf16.msra.mxu1 %v5481_v53  ;;  %v5571_v52 = vld [vmem:[%s8256_s1 + $0x368] ss:$16 sps:$4 sm:$0xff]   ;;  %v5576_v53 = vld [vmem:[%s8256_s1 + $0x384] ss:$16 sps:$4 sm:$0xff]  }
  0x34   :  { %3597 = vmatprep.subr.bf16.mxu0 %v5482_v54  ;;  %3966 = vmatprep.subr.bf16.mxu1 %v5484_v55  ;;  %v5579_v54 = vld [vmem:[%s8256_s1 + $0x38c] ss:$16 sps:$4 sm:$0xff]   ;;  %v5574_v55 = vld [vmem:[%s8256_s1 + $0x380] ss:$16 sps:$4 sm:$0xff]  }
  0x37   :  { %3598 = vmatpush1.bf16.msra.mxu0 %v5486_v56  ;;  %3967 = vmatpush1.bf16.msra.mxu1 %v5487_v57  ;;  %v5577_v56 = vld [vmem:[%s8256_s1 + $0x388] ss:$16 sps:$4 sm:$0xff]   ;;  %v5582_v57 = vld [vmem:[%s8256_s1 + $0x3a4] ss:$16 sps:$4 sm:$0xff]  }
  0x38   :  { %3599 = vmatprep.subr.bf16.mxu0 %v5488_v58  ;;  %3968 = vmatprep.subr.bf16.mxu1 %v5490_v59  ;;  %v5585_v58 = vld [vmem:[%s8256_s1 + $0x3ac] ss:$16 sps:$4 sm:$0xff]   ;;  %v5580_v59 = vld [vmem:[%s8256_s1 + $0x3a0] ss:$16 sps:$4 sm:$0xff]  }
  0x3b   :  { %3600 = vmatpush1.bf16.msra.mxu0 %v5492_v60  ;;  %3969 = vmatpush1.bf16.msra.mxu1 %v5493_v61  ;;  %v5583_v60 = vld [vmem:[%s8256_s1 + $0x3a8] ss:$16 sps:$4 sm:$0xff]   ;;  %v5588_v61 = vld [vmem:[%s8256_s1 + $0x3c4] ss:$16 sps:$4 sm:$0xff]  }
  0x3c   :  { %3601 = vmatprep.subr.bf16.mxu0 %v5494_v62  ;;  %3970 = vmatprep.subr.bf16.mxu1 %v5496_v63  ;;  %v5591_v62 = vld [vmem:[%s8256_s1 + $0x3cc] ss:$16 sps:$4 sm:$0xff]   ;;  %v5586_v63 = vld [vmem:[%s8256_s1 + $0x3c0] ss:$16 sps:$4 sm:$0xff]  }
  0x3f   :  { %3602 = vmatpush1.bf16.msra.mxu0 %v5498_v0  ;;  %3971 = vmatpush1.bf16.msra.mxu1 %v5499_v1  ;;  %v5589_v0 = vld [vmem:[%s8256_s1 + $0x3c8] ss:$16 sps:$4 sm:$0xff]   ;;  %v5594_v1 = vld [vmem:[%s8256_s1 + $0x3e4] ss:$16 sps:$4 sm:$0xff]  }
  0x40   :  { %3612 = vmatprep.subr.bf16.mxu0 %v5504_v2  ;;  %3981 = vmatprep.subr.bf16.mxu1 %v5507_v3  ;;  %v5597_v2 = vld [vmem:[%s8256_s1 + $0x3ec] ss:$16 sps:$4 sm:$0xff]   ;;  %v5592_v3 = vld [vmem:[%s8256_s1 + $0x3e0] ss:$16 sps:$4 sm:$0xff]  }
  0x42   :  { %3604 = vmatmul.mubr.bf16.vlgmr.msra.gmra.mrb[0].mxu0 %v4665_v4  ;;  %3973 = vmatmul.mubr.bf16.vlgmr.msra.gmra.mrb[0].mxu1 %v4665_v4  ;;  %v5595_v4 = vld [vmem:[%s8256_s1 + $0x3e8] ss:$16 sps:$4 sm:$0xff]  }
  0x43   :  { %3613 = vmatpush1.bf16.msra.mxu0 %v5502_v5  ;;  %3982 = vmatpush1.bf16.msra.mxu1 %v5505_v6  ;;  %v5602_v5 = vld [vmem:[%s8256_s1 + $0x404] ss:$16 sps:$4 sm:$0xff]   ;;  %v5605_v6 = vld [vmem:[%s8256_s1 + $0x40c] ss:$16 sps:$4 sm:$0xff]  }
  0x44   :  { %3614 = vmatprep.subr.bf16.mxu0 %v5510_v7  ;;  %3983 = vmatprep.subr.bf16.mxu1 %v5513_v8  ;;  %v4667_v7 = vcombine.low %v6624_v29, %v6624_v29  ;;  %v5600_v8 = vld [vmem:[%s8256_s1 + $0x400] ss:$16 sps:$4 sm:$0xff]   ;;  %v5635_v29 = vld [vmem:[%s8256_s1 + $0x4ac] ss:$16 sps:$4 sm:$0xff]  }
  0x45   :  { %3644 = vmatprep.mubr.bf16.mxu0 %v4668_v30  ;;  %4013 = vmatprep.mubr.bf16.mxu1 %v4668_v30  ;;  %v5630_v30 = vld [vmem:[%s8256_s1 + $0x4a0] ss:$16 sps:$4 sm:$0xff]  }
  0x47   :  { %3615 = vmatpush1.bf16.msra.mxu0 %v5508_v9  ;;  %3984 = vmatpush1.bf16.msra.mxu1 %v5511_v10  ;;  %v5603_v9 = vld [vmem:[%s8256_s1 + $0x408] ss:$16 sps:$4 sm:$0xff]   ;;  %v5608_v10 = vld [vmem:[%s8256_s1 + $0x424] ss:$16 sps:$4 sm:$0xff]  }
  0x48   :  { %3616 = vmatprep.subr.bf16.mxu0 %v5516_v11  ;;  %3985 = vmatprep.subr.bf16.mxu1 %v5519_v12  ;;  %v6762_v11 = vld [vmem:[%s8257_s0 + $0x10] sm:$0xff]  ;;  %v5611_v12 = vld [vmem:[%s8256_s1 + $0x42c] ss:$16 sps:$4 sm:$0xff]  }
  0x4b   :  { %3617 = vmatpush1.bf16.msra.mxu0 %v5514_v13  ;;  %3986 = vmatpush1.bf16.msra.mxu1 %v5517_v14  ;;  %v4670_v13 = vcombine.high %v6762_v11, %v6762_v11  ;;  %v5606_v14 = vld [vmem:[%s8256_s1 + $0x420] ss:$16 sps:$4 sm:$0xff]  }
  0x4c   :  { %3618 = vmatprep.subr.bf16.mxu0 %v5522_v15  ;;  %3987 = vmatprep.subr.bf16.mxu1 %v5525_v16  ;;  %v5609_v15 = vld [vmem:[%s8256_s1 + $0x428] ss:$16 sps:$4 sm:$0xff]   ;;  %v5614_v16 = vld [vmem:[%s8256_s1 + $0x444] ss:$16 sps:$4 sm:$0xff]  }
  0x4f   :  { %3619 = vmatpush1.bf16.msra.mxu0 %v5520_v17  ;;  %3988 = vmatpush1.bf16.msra.mxu1 %v5523_v18  ;;  %v5617_v17 = vld [vmem:[%s8256_s1 + $0x44c] ss:$16 sps:$4 sm:$0xff]   ;;  %v5612_v18 = vld [vmem:[%s8256_s1 + $0x440] ss:$16 sps:$4 sm:$0xff]  }
  0x50   :  { %3620 = vmatprep.subr.bf16.mxu0 %v5528_v19  ;;  %3989 = vmatprep.subr.bf16.mxu1 %v5531_v20  ;;  %v5615_v19 = vld [vmem:[%s8256_s1 + $0x448] ss:$16 sps:$4 sm:$0xff]   ;;  %v5620_v20 = vld [vmem:[%s8256_s1 + $0x464] ss:$16 sps:$4 sm:$0xff]  }
  0x53   :  { %3621 = vmatpush1.bf16.msra.mxu0 %v5526_v21  ;;  %3990 = vmatpush1.bf16.msra.mxu1 %v5529_v22  ;;  %v5623_v21 = vld [vmem:[%s8256_s1 + $0x46c] ss:$16 sps:$4 sm:$0xff]   ;;  %v5618_v22 = vld [vmem:[%s8256_s1 + $0x460] ss:$16 sps:$4 sm:$0xff]  }
  0x54   :  { %3622 = vmatprep.subr.bf16.mxu0 %v5534_v23  ;;  %3991 = vmatprep.subr.bf16.mxu1 %v5537_v24  ;;  %v5621_v23 = vld [vmem:[%s8256_s1 + $0x468] ss:$16 sps:$4 sm:$0xff]   ;;  %v5626_v24 = vld [vmem:[%s8256_s1 + $0x484] ss:$16 sps:$4 sm:$0xff]  }
  0x57   :  { %3623 = vmatpush1.bf16.msra.mxu0 %v5532_v25  ;;  %3992 = vmatpush1.bf16.msra.mxu1 %v5535_v26  ;;  %v5629_v25 = vld [vmem:[%s8256_s1 + $0x48c] ss:$16 sps:$4 sm:$0xff]   ;;  %v5624_v26 = vld [vmem:[%s8256_s1 + $0x480] ss:$16 sps:$4 sm:$0xff]  }
  0x58   :  { %3624 = vmatprep.subr.bf16.mxu0 %v5540_v27  ;;  %3993 = vmatprep.subr.bf16.mxu1 %v5543_v28  ;;  %v5627_v27 = vld [vmem:[%s8256_s1 + $0x488] ss:$16 sps:$4 sm:$0xff]   ;;  %v5632_v28 = vld [vmem:[%s8256_s1 + $0x4a4] ss:$16 sps:$4 sm:$0xff]  }
  0x5b   :  { %3625 = vmatpush1.bf16.msra.mxu0 %v5538_v31  ;;  %3994 = vmatpush1.bf16.msra.mxu1 %v5541_v32  ;;  %v5633_v31 = vld [vmem:[%s8256_s1 + $0x4a8] ss:$16 sps:$4 sm:$0xff]   ;;  %v5638_v32 = vld [vmem:[%s8256_s1 + $0x4c4] ss:$16 sps:$4 sm:$0xff]  }
  0x5c   :  { %3626 = vmatprep.subr.bf16.mxu0 %v5546_v33  ;;  %3995 = vmatprep.subr.bf16.mxu1 %v5549_v34  ;;  %v5641_v33 = vld [vmem:[%s8256_s1 + $0x4cc] ss:$16 sps:$4 sm:$0xff]   ;;  %v5636_v34 = vld [vmem:[%s8256_s1 + $0x4c0] ss:$16 sps:$4 sm:$0xff]  }
  0x5f   :  { %3627 = vmatpush1.bf16.msra.mxu0 %v5544_v35  ;;  %3996 = vmatpush1.bf16.msra.mxu1 %v5547_v36  ;;  %v5639_v35 = vld [vmem:[%s8256_s1 + $0x4c8] ss:$16 sps:$4 sm:$0xff]   ;;  %v5644_v36 = vld [vmem:[%s8256_s1 + $0x4e4] ss:$16 sps:$4 sm:$0xff]  }
  0x60   :  { %3628 = vmatprep.subr.bf16.mxu0 %v5552_v37  ;;  %3997 = vmatprep.subr.bf16.mxu1 %v5555_v38  ;;  %v5647_v37 = vld [vmem:[%s8256_s1 + $0x4ec] ss:$16 sps:$4 sm:$0xff]   ;;  %v5642_v38 = vld [vmem:[%s8256_s1 + $0x4e0] ss:$16 sps:$4 sm:$0xff]  }
  0x63   :  { %3629 = vmatpush1.bf16.msra.mxu0 %v5550_v39  ;;  %3998 = vmatpush1.bf16.msra.mxu1 %v5553_v40  ;;  %v5645_v39 = vld [vmem:[%s8256_s1 + $0x4e8] ss:$16 sps:$4 sm:$0xff]   ;;  %v5650_v40 = vld [vmem:[%s8256_s1 + $0x504] ss:$16 sps:$4 sm:$0xff]  }
  0x64   :  { %3630 = vmatprep.subr.bf16.mxu0 %v5558_v41  ;;  %3999 = vmatprep.subr.bf16.mxu1 %v5561_v42  ;;  %v5653_v41 = vld [vmem:[%s8256_s1 + $0x50c] ss:$16 sps:$4 sm:$0xff]   ;;  %v5648_v42 = vld [vmem:[%s8256_s1 + $0x500] ss:$16 sps:$4 sm:$0xff]  }
  0x67   :  { %3631 = vmatpush1.bf16.msra.mxu0 %v5556_v43  ;;  %4000 = vmatpush1.bf16.msra.mxu1 %v5559_v44  ;;  %v5651_v43 = vld [vmem:[%s8256_s1 + $0x508] ss:$16 sps:$4 sm:$0xff]   ;;  %v5656_v44 = vld [vmem:[%s8256_s1 + $0x524] ss:$16 sps:$4 sm:$0xff]  }
  0x68   :  { %3632 = vmatprep.subr.bf16.mxu0 %v5564_v45  ;;  %4001 = vmatprep.subr.bf16.mxu1 %v5567_v46  ;;  %v5659_v45 = vld [vmem:[%s8256_s1 + $0x52c] ss:$16 sps:$4 sm:$0xff]   ;;  %v5654_v46 = vld [vmem:[%s8256_s1 + $0x520] ss:$16 sps:$4 sm:$0xff]  }
  0x6b   :  { %3633 = vmatpush1.bf16.msra.mxu0 %v5562_v47  ;;  %4002 = vmatpush1.bf16.msra.mxu1 %v5565_v48  ;;  %v5657_v47 = vld [vmem:[%s8256_s1 + $0x528] ss:$16 sps:$4 sm:$0xff]   ;;  %v5662_v48 = vld [vmem:[%s8256_s1 + $0x544] ss:$16 sps:$4 sm:$0xff]  }
  0x6c   :  { %3634 = vmatprep.subr.bf16.mxu0 %v5570_v49  ;;  %4003 = vmatprep.subr.bf16.mxu1 %v5573_v50  ;;  %v5665_v49 = vld [vmem:[%s8256_s1 + $0x54c] ss:$16 sps:$4 sm:$0xff]   ;;  %v5660_v50 = vld [vmem:[%s8256_s1 + $0x540] ss:$16 sps:$4 sm:$0xff]  }
  0x6f   :  { %3635 = vmatpush1.bf16.msra.mxu0 %v5568_v51  ;;  %4004 = vmatpush1.bf16.msra.mxu1 %v5571_v52  ;;  %v5663_v51 = vld [vmem:[%s8256_s1 + $0x548] ss:$16 sps:$4 sm:$0xff]   ;;  %v5668_v52 = vld [vmem:[%s8256_s1 + $0x564] ss:$16 sps:$4 sm:$0xff]  }
  0x70   :  { %3636 = vmatprep.subr.bf16.mxu0 %v5576_v53  ;;  %4005 = vmatprep.subr.bf16.mxu1 %v5579_v54  ;;  %v5671_v53 = vld [vmem:[%s8256_s1 + $0x56c] ss:$16 sps:$4 sm:$0xff]   ;;  %v5666_v54 = vld [vmem:[%s8256_s1 + $0x560] ss:$16 sps:$4 sm:$0xff]  }
  0x73   :  { %3637 = vmatpush1.bf16.msra.mxu0 %v5574_v55  ;;  %4006 = vmatpush1.bf16.msra.mxu1 %v5577_v56  ;;  %v5669_v55 = vld [vmem:[%s8256_s1 + $0x568] ss:$16 sps:$4 sm:$0xff]   ;;  %v5674_v56 = vld [vmem:[%s8256_s1 + $0x584] ss:$16 sps:$4 sm:$0xff]  }
  0x74   :  { %3638 = vmatprep.subr.bf16.mxu0 %v5582_v57  ;;  %4007 = vmatprep.subr.bf16.mxu1 %v5585_v58  ;;  %v5677_v57 = vld [vmem:[%s8256_s1 + $0x58c] ss:$16 sps:$4 sm:$0xff]   ;;  %v5672_v58 = vld [vmem:[%s8256_s1 + $0x580] ss:$16 sps:$4 sm:$0xff]  }
  0x77   :  { %3639 = vmatpush1.bf16.msra.mxu0 %v5580_v59  ;;  %4008 = vmatpush1.bf16.msra.mxu1 %v5583_v60  ;;  %v5675_v59 = vld [vmem:[%s8256_s1 + $0x588] ss:$16 sps:$4 sm:$0xff]   ;;  %v5680_v60 = vld [vmem:[%s8256_s1 + $0x5a4] ss:$16 sps:$4 sm:$0xff]  }
  0x78   :  { %3640 = vmatprep.subr.bf16.mxu0 %v5588_v61  ;;  %4009 = vmatprep.subr.bf16.mxu1 %v5591_v62  ;;  %v5683_v61 = vld [vmem:[%s8256_s1 + $0x5ac] ss:$16 sps:$4 sm:$0xff]   ;;  %v5678_v62 = vld [vmem:[%s8256_s1 + $0x5a0] ss:$16 sps:$4 sm:$0xff]  }
  0x7b   :  { %3641 = vmatpush1.bf16.msra.mxu0 %v5586_v63  ;;  %4010 = vmatpush1.bf16.msra.mxu1 %v5589_v0  ;;  %v5681_v63 = vld [vmem:[%s8256_s1 + $0x5a8] ss:$16 sps:$4 sm:$0xff]   ;;  %v5686_v0 = vld [vmem:[%s8256_s1 + $0x5c4] ss:$16 sps:$4 sm:$0xff]  }
  0x7c   :  { %3642 = vmatprep.subr.bf16.mxu0 %v5594_v1  ;;  %4011 = vmatprep.subr.bf16.mxu1 %v5597_v2  ;;  %v5689_v1 = vld [vmem:[%s8256_s1 + $0x5cc] ss:$16 sps:$4 sm:$0xff]   ;;  %v5684_v2 = vld [vmem:[%s8256_s1 + $0x5c0] ss:$16 sps:$4 sm:$0xff]  }
  0x7f   :  { %3643 = vmatpush1.bf16.msra.mxu0 %v5592_v3  ;;  %4012 = vmatpush1.bf16.msra.mxu1 %v5595_v4  ;;  %v5687_v3 = vld [vmem:[%s8256_s1 + $0x5c8] ss:$16 sps:$4 sm:$0xff]   ;;  %v5692_v4 = vld [vmem:[%s8256_s1 + $0x5e4] ss:$16 sps:$4 sm:$0xff]  }
  0x80   :  { %3653 = vmatprep.subr.bf16.mxu0 %v5602_v5  ;;  %4022 = vmatprep.subr.bf16.mxu1 %v5605_v6  ;;  %v5695_v5 = vld [vmem:[%s8256_s1 + $0x5ec] ss:$16 sps:$4 sm:$0xff]   ;;  %v5690_v6 = vld [vmem:[%s8256_s1 + $0x5e0] ss:$16 sps:$4 sm:$0xff]  }
  0x82   :  { %3645 = vmatmul.mubr.bf16.vlgmr.msra.gmra.mrb[0].mxu0 %v4667_v7  ;;  %4014 = vmatmul.mubr.bf16.vlgmr.msra.gmra.mrb[0].mxu1 %v4667_v7  ;;  %v5693_v7 = vld [vmem:[%s8256_s1 + $0x5e8] ss:$16 sps:$4 sm:$0xff]  }
  0x83   :  { %3654 = vmatpush1.bf16.msra.mxu0 %v5600_v8  ;;  %4023 = vmatpush1.bf16.msra.mxu1 %v5603_v9  ;;  %v5700_v8 = vld [vmem:[%s8256_s1 + $0x604] ss:$16 sps:$4 sm:$0xff]   ;;  %v5703_v9 = vld [vmem:[%s8256_s1 + $0x60c] ss:$16 sps:$4 sm:$0xff]  }
  0x84   :  { %3655 = vmatprep.subr.bf16.mxu0 %v5608_v10  ;;  %4024 = vmatprep.subr.bf16.mxu1 %v5611_v12  ;;  %v5698_v10 = vld [vmem:[%s8256_s1 + $0x600] ss:$16 sps:$4 sm:$0xff]   ;;  %v4669_v12 = vcombine.low %v6762_v11, %v6762_v11  ;;  %v5709_v11 = vld [vmem:[%s8256_s1 + $0x62c] ss:$16 sps:$4 sm:$0xff]  }
  0x85   :  { %3685 = vmatprep.mubr.bf16.mxu0 %v4670_v13  ;;  %4054 = vmatprep.mubr.bf16.mxu1 %v4670_v13  ;;  %v5701_v13 = vld [vmem:[%s8256_s1 + $0x608] ss:$16 sps:$4 sm:$0xff]  }
  0x87   :  { %3656 = vmatpush1.bf16.msra.mxu0 %v5606_v14  ;;  %4025 = vmatpush1.bf16.msra.mxu1 %v5609_v15  ;;  %v6960_v14 = vld [vmem:[%s8257_s0 + $0x18] sm:$0xff]  ;;  %v5706_v15 = vld [vmem:[%s8256_s1 + $0x624] ss:$16 sps:$4 sm:$0xff]  }
  0x88   :  { %3657 = vmatprep.subr.bf16.mxu0 %v5614_v16  ;;  %4026 = vmatprep.subr.bf16.mxu1 %v5617_v17  ;;  %v4672_v16 = vcombine.high %v6960_v14, %v6960_v14  ;;  %v5704_v17 = vld [vmem:[%s8256_s1 + $0x620] ss:$16 sps:$4 sm:$0xff]  }
  0x8b   :  { %3658 = vmatpush1.bf16.msra.mxu0 %v5612_v18  ;;  %4027 = vmatpush1.bf16.msra.mxu1 %v5615_v19  ;;  %v5707_v18 = vld [vmem:[%s8256_s1 + $0x628] ss:$16 sps:$4 sm:$0xff]   ;;  %v5712_v19 = vld [vmem:[%s8256_s1 + $0x644] ss:$16 sps:$4 sm:$0xff]  }
  0x8c   :  { %3659 = vmatprep.subr.bf16.mxu0 %v5620_v20  ;;  %4028 = vmatprep.subr.bf16.mxu1 %v5623_v21  ;;  %v5715_v20 = vld [vmem:[%s8256_s1 + $0x64c] ss:$16 sps:$4 sm:$0xff]   ;;  %v5710_v21 = vld [vmem:[%s8256_s1 + $0x640] ss:$16 sps:$4 sm:$0xff]  }
  0x8f   :  { %3660 = vmatpush1.bf16.msra.mxu0 %v5618_v22  ;;  %4029 = vmatpush1.bf16.msra.mxu1 %v5621_v23  ;;  %v5713_v22 = vld [vmem:[%s8256_s1 + $0x648] ss:$16 sps:$4 sm:$0xff]   ;;  %v5718_v23 = vld [vmem:[%s8256_s1 + $0x664] ss:$16 sps:$4 sm:$0xff]  }
  0x90   :  { %3661 = vmatprep.subr.bf16.mxu0 %v5626_v24  ;;  %4030 = vmatprep.subr.bf16.mxu1 %v5629_v25  ;;  %v5721_v24 = vld [vmem:[%s8256_s1 + $0x66c] ss:$16 sps:$4 sm:$0xff]   ;;  %v5716_v25 = vld [vmem:[%s8256_s1 + $0x660] ss:$16 sps:$4 sm:$0xff]  }
  0x93   :  { %3662 = vmatpush1.bf16.msra.mxu0 %v5624_v26  ;;  %4031 = vmatpush1.bf16.msra.mxu1 %v5627_v27  ;;  %v5719_v26 = vld [vmem:[%s8256_s1 + $0x668] ss:$16 sps:$4 sm:$0xff]   ;;  %v5724_v27 = vld [vmem:[%s8256_s1 + $0x684] ss:$16 sps:$4 sm:$0xff]  }
  0x94   :  { %3663 = vmatprep.subr.bf16.mxu0 %v5632_v28  ;;  %4032 = vmatprep.subr.bf16.mxu1 %v5635_v29  ;;  %v5727_v28 = vld [vmem:[%s8256_s1 + $0x68c] ss:$16 sps:$4 sm:$0xff]   ;;  %v5722_v29 = vld [vmem:[%s8256_s1 + $0x680] ss:$16 sps:$4 sm:$0xff]  }
  0x97   :  { %3664 = vmatpush1.bf16.msra.mxu0 %v5630_v30  ;;  %4033 = vmatpush1.bf16.msra.mxu1 %v5633_v31  ;;  %v5725_v30 = vld [vmem:[%s8256_s1 + $0x688] ss:$16 sps:$4 sm:$0xff]   ;;  %v5730_v31 = vld [vmem:[%s8256_s1 + $0x6a4] ss:$16 sps:$4 sm:$0xff]  }
  0x98   :  { %3665 = vmatprep.subr.bf16.mxu0 %v5638_v32  ;;  %4034 = vmatprep.subr.bf16.mxu1 %v5641_v33  ;;  %v5733_v32 = vld [vmem:[%s8256_s1 + $0x6ac] ss:$16 sps:$4 sm:$0xff]   ;;  %v5728_v33 = vld [vmem:[%s8256_s1 + $0x6a0] ss:$16 sps:$4 sm:$0xff]  }
  0x9b   :  { %3666 = vmatpush1.bf16.msra.mxu0 %v5636_v34  ;;  %4035 = vmatpush1.bf16.msra.mxu1 %v5639_v35  ;;  %v5731_v34 = vld [vmem:[%s8256_s1 + $0x6a8] ss:$16 sps:$4 sm:$0xff]   ;;  %v5736_v35 = vld [vmem:[%s8256_s1 + $0x6c4] ss:$16 sps:$4 sm:$0xff]  }
  0x9c   :  { %3667 = vmatprep.subr.bf16.mxu0 %v5644_v36  ;;  %4036 = vmatprep.subr.bf16.mxu1 %v5647_v37  ;;  %v5739_v36 = vld [vmem:[%s8256_s1 + $0x6cc] ss:$16 sps:$4 sm:$0xff]   ;;  %v5734_v37 = vld [vmem:[%s8256_s1 + $0x6c0] ss:$16 sps:$4 sm:$0xff]  }
  0x9f   :  { %3668 = vmatpush1.bf16.msra.mxu0 %v5642_v38  ;;  %4037 = vmatpush1.bf16.msra.mxu1 %v5645_v39  ;;  %v5737_v38 = vld [vmem:[%s8256_s1 + $0x6c8] ss:$16 sps:$4 sm:$0xff]   ;;  %v5742_v39 = vld [vmem:[%s8256_s1 + $0x6e4] ss:$16 sps:$4 sm:$0xff]  }
  0xa0   :  { %3669 = vmatprep.subr.bf16.mxu0 %v5650_v40  ;;  %4038 = vmatprep.subr.bf16.mxu1 %v5653_v41  ;;  %v5745_v40 = vld [vmem:[%s8256_s1 + $0x6ec] ss:$16 sps:$4 sm:$0xff]   ;;  %v5740_v41 = vld [vmem:[%s8256_s1 + $0x6e0] ss:$16 sps:$4 sm:$0xff]  }
  0xa3   :  { %3670 = vmatpush1.bf16.msra.mxu0 %v5648_v42  ;;  %4039 = vmatpush1.bf16.msra.mxu1 %v5651_v43  ;;  %v5743_v42 = vld [vmem:[%s8256_s1 + $0x6e8] ss:$16 sps:$4 sm:$0xff]   ;;  %v5748_v43 = vld [vmem:[%s8256_s1 + $0x704] ss:$16 sps:$4 sm:$0xff]  }
  0xa4   :  { %3671 = vmatprep.subr.bf16.mxu0 %v5656_v44  ;;  %4040 = vmatprep.subr.bf16.mxu1 %v5659_v45  ;;  %v5751_v44 = vld [vmem:[%s8256_s1 + $0x70c] ss:$16 sps:$4 sm:$0xff]   ;;  %v5746_v45 = vld [vmem:[%s8256_s1 + $0x700] ss:$16 sps:$4 sm:$0xff]  }
  0xa7   :  { %3672 = vmatpush1.bf16.msra.mxu0 %v5654_v46  ;;  %4041 = vmatpush1.bf16.msra.mxu1 %v5657_v47  ;;  %v5749_v46 = vld [vmem:[%s8256_s1 + $0x708] ss:$16 sps:$4 sm:$0xff]   ;;  %v5754_v47 = vld [vmem:[%s8256_s1 + $0x724] ss:$16 sps:$4 sm:$0xff]  }
  0xa8   :  { %3673 = vmatprep.subr.bf16.mxu0 %v5662_v48  ;;  %4042 = vmatprep.subr.bf16.mxu1 %v5665_v49  ;;  %v5757_v48 = vld [vmem:[%s8256_s1 + $0x72c] ss:$16 sps:$4 sm:$0xff]   ;;  %v5752_v49 = vld [vmem:[%s8256_s1 + $0x720] ss:$16 sps:$4 sm:$0xff]  }
  0xab   :  { %3674 = vmatpush1.bf16.msra.mxu0 %v5660_v50  ;;  %4043 = vmatpush1.bf16.msra.mxu1 %v5663_v51  ;;  %v5755_v50 = vld [vmem:[%s8256_s1 + $0x728] ss:$16 sps:$4 sm:$0xff]   ;;  %v5760_v51 = vld [vmem:[%s8256_s1 + $0x744] ss:$16 sps:$4 sm:$0xff]  }
  0xac   :  { %3675 = vmatprep.subr.bf16.mxu0 %v5668_v52  ;;  %4044 = vmatprep.subr.bf16.mxu1 %v5671_v53  ;;  %v5763_v52 = vld [vmem:[%s8256_s1 + $0x74c] ss:$16 sps:$4 sm:$0xff]   ;;  %v5758_v53 = vld [vmem:[%s8256_s1 + $0x740] ss:$16 sps:$4 sm:$0xff]  }
  0xaf   :  { %3676 = vmatpush1.bf16.msra.mxu0 %v5666_v54  ;;  %4045 = vmatpush1.bf16.msra.mxu1 %v5669_v55  ;;  %v5761_v54 = vld [vmem:[%s8256_s1 + $0x748] ss:$16 sps:$4 sm:$0xff]   ;;  %v5766_v55 = vld [vmem:[%s8256_s1 + $0x764] ss:$16 sps:$4 sm:$0xff]  }
  0xb0   :  { %3677 = vmatprep.subr.bf16.mxu0 %v5674_v56  ;;  %4046 = vmatprep.subr.bf16.mxu1 %v5677_v57  ;;  %v5769_v56 = vld [vmem:[%s8256_s1 + $0x76c] ss:$16 sps:$4 sm:$0xff]   ;;  %v5764_v57 = vld [vmem:[%s8256_s1 + $0x760] ss:$16 sps:$4 sm:$0xff]  }
  0xb3   :  { %3678 = vmatpush1.bf16.msra.mxu0 %v5672_v58  ;;  %4047 = vmatpush1.bf16.msra.mxu1 %v5675_v59  ;;  %v5767_v58 = vld [vmem:[%s8256_s1 + $0x768] ss:$16 sps:$4 sm:$0xff]   ;;  %v5772_v59 = vld [vmem:[%s8256_s1 + $0x784] ss:$16 sps:$4 sm:$0xff]  }
  0xb4   :  { %3679 = vmatprep.subr.bf16.mxu0 %v5680_v60  ;;  %4048 = vmatprep.subr.bf16.mxu1 %v5683_v61  ;;  %v5775_v60 = vld [vmem:[%s8256_s1 + $0x78c] ss:$16 sps:$4 sm:$0xff]   ;;  %v5770_v61 = vld [vmem:[%s8256_s1 + $0x780] ss:$16 sps:$4 sm:$0xff]  }
  0xb7   :  { %3680 = vmatpush1.bf16.msra.mxu0 %v5678_v62  ;;  %4049 = vmatpush1.bf16.msra.mxu1 %v5681_v63  ;;  %v5773_v62 = vld [vmem:[%s8256_s1 + $0x788] ss:$16 sps:$4 sm:$0xff]   ;;  %v5778_v63 = vld [vmem:[%s8256_s1 + $0x7a4] ss:$16 sps:$4 sm:$0xff]  }
  0xb8   :  { %3681 = vmatprep.subr.bf16.mxu0 %v5686_v0  ;;  %4050 = vmatprep.subr.bf16.mxu1 %v5689_v1  ;;  %v5781_v0 = vld [vmem:[%s8256_s1 + $0x7ac] ss:$16 sps:$4 sm:$0xff]   ;;  %v5776_v1 = vld [vmem:[%s8256_s1 + $0x7a0] ss:$16 sps:$4 sm:$0xff]  }
  0xbb   :  { %3682 = vmatpush1.bf16.msra.mxu0 %v5684_v2  ;;  %4051 = vmatpush1.bf16.msra.mxu1 %v5687_v3  ;;  %v5779_v2 = vld [vmem:[%s8256_s1 + $0x7a8] ss:$16 sps:$4 sm:$0xff]   ;;  %v5784_v3 = vld [vmem:[%s8256_s1 + $0x7c4] ss:$16 sps:$4 sm:$0xff]  }
  0xbc   :  { %3683 = vmatprep.subr.bf16.mxu0 %v5692_v4  ;;  %4052 = vmatprep.subr.bf16.mxu1 %v5695_v5  ;;  %v5787_v4 = vld [vmem:[%s8256_s1 + $0x7cc] ss:$16 sps:$4 sm:$0xff]   ;;  %v5782_v5 = vld [vmem:[%s8256_s1 + $0x7c0] ss:$16 sps:$4 sm:$0xff]  }
  0xbf   :  { %3684 = vmatpush1.bf16.msra.mxu0 %v5690_v6  ;;  %4053 = vmatpush1.bf16.msra.mxu1 %v5693_v7  ;;  %v5785_v6 = vld [vmem:[%s8256_s1 + $0x7c8] ss:$16 sps:$4 sm:$0xff]   ;;  %v5790_v7 = vld [vmem:[%s8256_s1 + $0x7e4] ss:$16 sps:$4 sm:$0xff]  }
  0xc0   :  { %3694 = vmatprep.subr.bf16.mxu0 %v5700_v8  ;;  %4063 = vmatprep.subr.bf16.mxu1 %v5703_v9  ;;  %v5793_v8 = vld [vmem:[%s8256_s1 + $0x7ec] ss:$16 sps:$4 sm:$0xff]   ;;  %v5788_v9 = vld [vmem:[%s8256_s1 + $0x7e0] ss:$16 sps:$4 sm:$0xff]  }
  0xc2   :  { %3686 = vmatmul.mubr.bf16.vlgmr.msra.gmra.mrb[0].mxu0 %v4669_v12  ;;  %4055 = vmatmul.mubr.bf16.vlgmr.msra.gmra.mrb[0].mxu1 %v4669_v12  ;;  %v5798_v12 = vld [vmem:[%s8256_s1 + $0x804] ss:$16 sps:$4 sm:$0xff]  }
  0xc3   :  { %3695 = vmatpush1.bf16.msra.mxu0 %v5698_v10  ;;  %4064 = vmatpush1.bf16.msra.mxu1 %v5701_v13  ;;  %v5791_v10 = vld [vmem:[%s8256_s1 + $0x7e8] ss:$16 sps:$4 sm:$0xff]   ;;  %v5801_v13 = vld [vmem:[%s8256_s1 + $0x80c] ss:$16 sps:$4 sm:$0xff]  }
  0xc4   :  { %3696 = vmatprep.subr.bf16.mxu0 %v5706_v15  ;;  %4065 = vmatprep.subr.bf16.mxu1 %v5709_v11  ;;  %v5796_v15 = vld [vmem:[%s8256_s1 + $0x800] ss:$16 sps:$4 sm:$0xff]   ;;  %v4671_v11 = vcombine.low %v6960_v14, %v6960_v14  ;;  %v5807_v14 = vld [vmem:[%s8256_s1 + $0x82c] ss:$16 sps:$4 sm:$0xff]  }
  0xc5   :  { %3726 = vmatprep.mubr.bf16.mxu0 %v4672_v16  ;;  %4095 = vmatprep.mubr.bf16.mxu1 %v4672_v16  ;;  %v7158_v16 = vld [vmem:[%s8257_s0 + $0x20] sm:$0xff] }
  0xc7   :  { %3697 = vmatpush1.bf16.msra.mxu0 %v5704_v17  ;;  %4066 = vmatpush1.bf16.msra.mxu1 %v5707_v18  ;;  %v5799_v17 = vld [vmem:[%s8256_s1 + $0x808] ss:$16 sps:$4 sm:$0xff]   ;;  %v5804_v18 = vld [vmem:[%s8256_s1 + $0x824] ss:$16 sps:$4 sm:$0xff]  }
  0xc8   :  { %3698 = vmatprep.subr.bf16.mxu0 %v5712_v19  ;;  %4067 = vmatprep.subr.bf16.mxu1 %v5715_v20  ;;  %v4674_v19 = vcombine.high %v7158_v16, %v7158_v16  ;;  %v5802_v20 = vld [vmem:[%s8256_s1 + $0x820] ss:$16 sps:$4 sm:$0xff]  }
  0xcb   :  { %3699 = vmatpush1.bf16.msra.mxu0 %v5710_v21  ;;  %4068 = vmatpush1.bf16.msra.mxu1 %v5713_v22  ;;  %v5805_v21 = vld [vmem:[%s8256_s1 + $0x828] ss:$16 sps:$4 sm:$0xff]   ;;  %v5810_v22 = vld [vmem:[%s8256_s1 + $0x844] ss:$16 sps:$4 sm:$0xff]  }
  0xcc   :  { %3700 = vmatprep.subr.bf16.mxu0 %v5718_v23  ;;  %4069 = vmatprep.subr.bf16.mxu1 %v5721_v24  ;;  %v5813_v23 = vld [vmem:[%s8256_s1 + $0x84c] ss:$16 sps:$4 sm:$0xff]   ;;  %v5808_v24 = vld [vmem:[%s8256_s1 + $0x840] ss:$16 sps:$4 sm:$0xff]  }
  0xcf   :  { %3701 = vmatpush1.bf16.msra.mxu0 %v5716_v25  ;;  %4070 = vmatpush1.bf16.msra.mxu1 %v5719_v26  ;;  %v5811_v25 = vld [vmem:[%s8256_s1 + $0x848] ss:$16 sps:$4 sm:$0xff]   ;;  %v5816_v26 = vld [vmem:[%s8256_s1 + $0x864] ss:$16 sps:$4 sm:$0xff]  }
  0xd0   :  { %3702 = vmatprep.subr.bf16.mxu0 %v5724_v27  ;;  %4071 = vmatprep.subr.bf16.mxu1 %v5727_v28  ;;  %v5819_v27 = vld [vmem:[%s8256_s1 + $0x86c] ss:$16 sps:$4 sm:$0xff]   ;;  %v5814_v28 = vld [vmem:[%s8256_s1 + $0x860] ss:$16 sps:$4 sm:$0xff]  }
  0xd3   :  { %3703 = vmatpush1.bf16.msra.mxu0 %v5722_v29  ;;  %4072 = vmatpush1.bf16.msra.mxu1 %v5725_v30  ;;  %v5817_v29 = vld [vmem:[%s8256_s1 + $0x868] ss:$16 sps:$4 sm:$0xff]   ;;  %v5822_v30 = vld [vmem:[%s8256_s1 + $0x884] ss:$16 sps:$4 sm:$0xff]  }
  0xd4   :  { %3704 = vmatprep.subr.bf16.mxu0 %v5730_v31  ;;  %4073 = vmatprep.subr.bf16.mxu1 %v5733_v32  ;;  %v5825_v31 = vld [vmem:[%s8256_s1 + $0x88c] ss:$16 sps:$4 sm:$0xff]   ;;  %v5820_v32 = vld [vmem:[%s8256_s1 + $0x880] ss:$16 sps:$4 sm:$0xff]  }
  0xd7   :  { %3705 = vmatpush1.bf16.msra.mxu0 %v5728_v33  ;;  %4074 = vmatpush1.bf16.msra.mxu1 %v5731_v34  ;;  %v5823_v33 = vld [vmem:[%s8256_s1 + $0x888] ss:$16 sps:$4 sm:$0xff]   ;;  %v5828_v34 = vld [vmem:[%s8256_s1 + $0x8a4] ss:$16 sps:$4 sm:$0xff]  }
  0xd8   :  { %3706 = vmatprep.subr.bf16.mxu0 %v5736_v35  ;;  %4075 = vmatprep.subr.bf16.mxu1 %v5739_v36  ;;  %v5831_v35 = vld [vmem:[%s8256_s1 + $0x8ac] ss:$16 sps:$4 sm:$0xff]   ;;  %v5826_v36 = vld [vmem:[%s8256_s1 + $0x8a0] ss:$16 sps:$4 sm:$0xff]  }
  0xdb   :  { %3707 = vmatpush1.bf16.msra.mxu0 %v5734_v37  ;;  %4076 = vmatpush1.bf16.msra.mxu1 %v5737_v38  ;;  %v5829_v37 = vld [vmem:[%s8256_s1 + $0x8a8] ss:$16 sps:$4 sm:$0xff]   ;;  %v5834_v38 = vld [vmem:[%s8256_s1 + $0x8c4] ss:$16 sps:$4 sm:$0xff]  }
  0xdc   :  { %3708 = vmatprep.subr.bf16.mxu0 %v5742_v39  ;;  %4077 = vmatprep.subr.bf16.mxu1 %v5745_v40  ;;  %v5837_v39 = vld [vmem:[%s8256_s1 + $0x8cc] ss:$16 sps:$4 sm:$0xff]   ;;  %v5832_v40 = vld [vmem:[%s8256_s1 + $0x8c0] ss:$16 sps:$4 sm:$0xff]  }
  0xdf   :  { %3709 = vmatpush1.bf16.msra.mxu0 %v5740_v41  ;;  %4078 = vmatpush1.bf16.msra.mxu1 %v5743_v42  ;;  %v5835_v41 = vld [vmem:[%s8256_s1 + $0x8c8] ss:$16 sps:$4 sm:$0xff]   ;;  %v5840_v42 = vld [vmem:[%s8256_s1 + $0x8e4] ss:$16 sps:$4 sm:$0xff]  }
  0xe0   :  { %3710 = vmatprep.subr.bf16.mxu0 %v5748_v43  ;;  %4079 = vmatprep.subr.bf16.mxu1 %v5751_v44  ;;  %v5843_v43 = vld [vmem:[%s8256_s1 + $0x8ec] ss:$16 sps:$4 sm:$0xff]   ;;  %v5838_v44 = vld [vmem:[%s8256_s1 + $0x8e0] ss:$16 sps:$4 sm:$0xff]  }
  0xe3   :  { %3711 = vmatpush1.bf16.msra.mxu0 %v5746_v45  ;;  %4080 = vmatpush1.bf16.msra.mxu1 %v5749_v46  ;;  %v5841_v45 = vld [vmem:[%s8256_s1 + $0x8e8] ss:$16 sps:$4 sm:$0xff]   ;;  %v5846_v46 = vld [vmem:[%s8256_s1 + $0x904] ss:$16 sps:$4 sm:$0xff]  }
  0xe4   :  { %3712 = vmatprep.subr.bf16.mxu0 %v5754_v47  ;;  %4081 = vmatprep.subr.bf16.mxu1 %v5757_v48  ;;  %v5849_v47 = vld [vmem:[%s8256_s1 + $0x90c] ss:$16 sps:$4 sm:$0xff]   ;;  %v5844_v48 = vld [vmem:[%s8256_s1 + $0x900] ss:$16 sps:$4 sm:$0xff]  }
  0xe7   :  { %3713 = vmatpush1.bf16.msra.mxu0 %v5752_v49  ;;  %4082 = vmatpush1.bf16.msra.mxu1 %v5755_v50  ;;  %v5847_v49 = vld [vmem:[%s8256_s1 + $0x908] ss:$16 sps:$4 sm:$0xff]   ;;  %v5852_v50 = vld [vmem:[%s8256_s1 + $0x924] ss:$16 sps:$4 sm:$0xff]  }
  0xe8   :  { %3714 = vmatprep.subr.bf16.mxu0 %v5760_v51  ;;  %4083 = vmatprep.subr.bf16.mxu1 %v5763_v52  ;;  %v5855_v51 = vld [vmem:[%s8256_s1 + $0x92c] ss:$16 sps:$4 sm:$0xff]   ;;  %v5850_v52 = vld [vmem:[%s8256_s1 + $0x920] ss:$16 sps:$4 sm:$0xff]  }
  0xeb   :  { %3715 = vmatpush1.bf16.msra.mxu0 %v5758_v53  ;;  %4084 = vmatpush1.bf16.msra.mxu1 %v5761_v54  ;;  %v5853_v53 = vld [vmem:[%s8256_s1 + $0x928] ss:$16 sps:$4 sm:$0xff]   ;;  %v5858_v54 = vld [vmem:[%s8256_s1 + $0x944] ss:$16 sps:$4 sm:$0xff]  }
  0xec   :  { %3716 = vmatprep.subr.bf16.mxu0 %v5766_v55  ;;  %4085 = vmatprep.subr.bf16.mxu1 %v5769_v56  ;;  %v5861_v55 = vld [vmem:[%s8256_s1 + $0x94c] ss:$16 sps:$4 sm:$0xff]   ;;  %v5856_v56 = vld [vmem:[%s8256_s1 + $0x940] ss:$16 sps:$4 sm:$0xff]  }
  0xef   :  { %3717 = vmatpush1.bf16.msra.mxu0 %v5764_v57  ;;  %4086 = vmatpush1.bf16.msra.mxu1 %v5767_v58  ;;  %v5859_v57 = vld [vmem:[%s8256_s1 + $0x948] ss:$16 sps:$4 sm:$0xff]   ;;  %v5864_v58 = vld [vmem:[%s8256_s1 + $0x964] ss:$16 sps:$4 sm:$0xff]  }
  0xf0   :  { %3718 = vmatprep.subr.bf16.mxu0 %v5772_v59  ;;  %4087 = vmatprep.subr.bf16.mxu1 %v5775_v60  ;;  %v5867_v59 = vld [vmem:[%s8256_s1 + $0x96c] ss:$16 sps:$4 sm:$0xff]   ;;  %v5862_v60 = vld [vmem:[%s8256_s1 + $0x960] ss:$16 sps:$4 sm:$0xff]  }
  0xf3   :  { %3719 = vmatpush1.bf16.msra.mxu0 %v5770_v61  ;;  %4088 = vmatpush1.bf16.msra.mxu1 %v5773_v62  ;;  %v5865_v61 = vld [vmem:[%s8256_s1 + $0x968] ss:$16 sps:$4 sm:$0xff]   ;;  %v5870_v62 = vld [vmem:[%s8256_s1 + $0x984] ss:$16 sps:$4 sm:$0xff]  }
  0xf4   :  { %3720 = vmatprep.subr.bf16.mxu0 %v5778_v63  ;;  %4089 = vmatprep.subr.bf16.mxu1 %v5781_v0  ;;  %v5873_v63 = vld [vmem:[%s8256_s1 + $0x98c] ss:$16 sps:$4 sm:$0xff]   ;;  %v5868_v0 = vld [vmem:[%s8256_s1 + $0x980] ss:$16 sps:$4 sm:$0xff]  }
  0xf7   :  { %3721 = vmatpush1.bf16.msra.mxu0 %v5776_v1  ;;  %4090 = vmatpush1.bf16.msra.mxu1 %v5779_v2  ;;  %v5871_v1 = vld [vmem:[%s8256_s1 + $0x988] ss:$16 sps:$4 sm:$0xff]   ;;  %v5876_v2 = vld [vmem:[%s8256_s1 + $0x9a4] ss:$16 sps:$4 sm:$0xff]  }
  0xf8   :  { %3722 = vmatprep.subr.bf16.mxu0 %v5784_v3  ;;  %4091 = vmatprep.subr.bf16.mxu1 %v5787_v4  ;;  %v5879_v3 = vld [vmem:[%s8256_s1 + $0x9ac] ss:$16 sps:$4 sm:$0xff]   ;;  %v5874_v4 = vld [vmem:[%s8256_s1 + $0x9a0] ss:$16 sps:$4 sm:$0xff]  }
  0xfb   :  { %3723 = vmatpush1.bf16.msra.mxu0 %v5782_v5  ;;  %4092 = vmatpush1.bf16.msra.mxu1 %v5785_v6  ;;  %v5877_v5 = vld [vmem:[%s8256_s1 + $0x9a8] ss:$16 sps:$4 sm:$0xff]   ;;  %v5882_v6 = vld [vmem:[%s8256_s1 + $0x9c4] ss:$16 sps:$4 sm:$0xff]  }
  0xfc   :  { %3724 = vmatprep.subr.bf16.mxu0 %v5790_v7  ;;  %4093 = vmatprep.subr.bf16.mxu1 %v5793_v8  ;;  %v5885_v7 = vld [vmem:[%s8256_s1 + $0x9cc] ss:$16 sps:$4 sm:$0xff]   ;;  %v5880_v8 = vld [vmem:[%s8256_s1 + $0x9c0] ss:$16 sps:$4 sm:$0xff]  }
  0xff   :  { %3725 = vmatpush1.bf16.msra.mxu0 %v5788_v9  ;;  %4094 = vmatpush1.bf16.msra.mxu1 %v5791_v10  ;;  %v5883_v9 = vld [vmem:[%s8256_s1 + $0x9c8] ss:$16 sps:$4 sm:$0xff]   ;;  %v5888_v10 = vld [vmem:[%s8256_s1 + $0x9e4] ss:$16 sps:$4 sm:$0xff]  }
 0x100   :  { %3735 = vmatprep.subr.bf16.mxu0 %v5798_v12  ;;  %4104 = vmatprep.subr.bf16.mxu1 %v5801_v13  ;;  %v5891_v12 = vld [vmem:[%s8256_s1 + $0x9ec] ss:$16 sps:$4 sm:$0xff]   ;;  %v5886_v13 = vld [vmem:[%s8256_s1 + $0x9e0] ss:$16 sps:$4 sm:$0xff]  }
 0x102   :  { %3727 = vmatmul.mubr.bf16.vlgmr.msra.gmra.mrb[0].mxu0 %v4671_v11  ;;  %4096 = vmatmul.mubr.bf16.vlgmr.msra.gmra.mrb[0].mxu1 %v4671_v11  ;;  %v5896_v11 = vld [vmem:[%s8256_s1 + $0xa04] ss:$16 sps:$4 sm:$0xff]  }
 0x103   :  { %3736 = vmatpush1.bf16.msra.mxu0 %v5796_v15  ;;  %4105 = vmatpush1.bf16.msra.mxu1 %v5799_v17  ;;  %v5889_v15 = vld [vmem:[%s8256_s1 + $0x9e8] ss:$16 sps:$4 sm:$0xff]   ;;  %v5899_v17 = vld [vmem:[%s8256_s1 + $0xa0c] ss:$16 sps:$4 sm:$0xff]  }
 0x104   :  { %3737 = vmatprep.subr.bf16.mxu0 %v5804_v18  ;;  %4106 = vmatprep.subr.bf16.mxu1 %v5807_v14  ;;  %v7354_v18 = vld [vmem:[%s8257_s0 + $0x28] sm:$0xff]  ;;  %v4673_v14 = vcombine.low %v7158_v16, %v7158_v16 }
 0x105   :  { %3767 = vmatprep.mubr.bf16.mxu0 %v4674_v19  ;;  %4136 = vmatprep.mubr.bf16.mxu1 %v4674_v19  ;;  %v5894_v19 = vld [vmem:[%s8256_s1 + $0xa00] ss:$16 sps:$4 sm:$0xff]   ;;  %v5905_v16 = vld [vmem:[%s8256_s1 + $0xa2c] ss:$16 sps:$4 sm:$0xff]  }
 0x107   :  { %3738 = vmatpush1.bf16.msra.mxu0 %v5802_v20  ;;  %4107 = vmatpush1.bf16.msra.mxu1 %v5805_v21  ;;  %v5897_v20 = vld [vmem:[%s8256_s1 + $0xa08] ss:$16 sps:$4 sm:$0xff]   ;;  %v5902_v21 = vld [vmem:[%s8256_s1 + $0xa24] ss:$16 sps:$4 sm:$0xff]  }
 0x108   :  { %3739 = vmatprep.subr.bf16.mxu0 %v5810_v22  ;;  %4108 = vmatprep.subr.bf16.mxu1 %v5813_v23  ;;  %v4676_v22 = vcombine.high %v7354_v18, %v7354_v18  ;;  %v5900_v23 = vld [vmem:[%s8256_s1 + $0xa20] ss:$16 sps:$4 sm:$0xff]  }
 0x10b   :  { %3740 = vmatpush1.bf16.msra.mxu0 %v5808_v24  ;;  %4109 = vmatpush1.bf16.msra.mxu1 %v5811_v25  ;;  %v5903_v24 = vld [vmem:[%s8256_s1 + $0xa28] ss:$16 sps:$4 sm:$0xff]   ;;  %v5908_v25 = vld [vmem:[%s8256_s1 + $0xa44] ss:$16 sps:$4 sm:$0xff]  }
 0x10c   :  { %3741 = vmatprep.subr.bf16.mxu0 %v5816_v26  ;;  %4110 = vmatprep.subr.bf16.mxu1 %v5819_v27  ;;  %v5911_v26 = vld [vmem:[%s8256_s1 + $0xa4c] ss:$16 sps:$4 sm:$0xff]   ;;  %v5906_v27 = vld [vmem:[%s8256_s1 + $0xa40] ss:$16 sps:$4 sm:$0xff]  }
 0x10f   :  { %3742 = vmatpush1.bf16.msra.mxu0 %v5814_v28  ;;  %4111 = vmatpush1.bf16.msra.mxu1 %v5817_v29  ;;  %v5909_v28 = vld [vmem:[%s8256_s1 + $0xa48] ss:$16 sps:$4 sm:$0xff]   ;;  %v5914_v29 = vld [vmem:[%s8256_s1 + $0xa64] ss:$16 sps:$4 sm:$0xff]  }
 0x110   :  { %3743 = vmatprep.subr.bf16.mxu0 %v5822_v30  ;;  %4112 = vmatprep.subr.bf16.mxu1 %v5825_v31  ;;  %v5917_v30 = vld [vmem:[%s8256_s1 + $0xa6c] ss:$16 sps:$4 sm:$0xff]   ;;  %v5912_v31 = vld [vmem:[%s8256_s1 + $0xa60] ss:$16 sps:$4 sm:$0xff]  }
 0x113   :  { %3744 = vmatpush1.bf16.msra.mxu0 %v5820_v32  ;;  %4113 = vmatpush1.bf16.msra.mxu1 %v5823_v33  ;;  %v5915_v32 = vld [vmem:[%s8256_s1 + $0xa68] ss:$16 sps:$4 sm:$0xff]   ;;  %v5920_v33 = vld [vmem:[%s8256_s1 + $0xa84] ss:$16 sps:$4 sm:$0xff]  }
 0x114   :  { %3745 = vmatprep.subr.bf16.mxu0 %v5828_v34  ;;  %4114 = vmatprep.subr.bf16.mxu1 %v5831_v35  ;;  %v5923_v34 = vld [vmem:[%s8256_s1 + $0xa8c] ss:$16 sps:$4 sm:$0xff]   ;;  %v5918_v35 = vld [vmem:[%s8256_s1 + $0xa80] ss:$16 sps:$4 sm:$0xff]  }
 0x117   :  { %3746 = vmatpush1.bf16.msra.mxu0 %v5826_v36  ;;  %4115 = vmatpush1.bf16.msra.mxu1 %v5829_v37  ;;  %v5921_v36 = vld [vmem:[%s8256_s1 + $0xa88] ss:$16 sps:$4 sm:$0xff]   ;;  %v5926_v37 = vld [vmem:[%s8256_s1 + $0xaa4] ss:$16 sps:$4 sm:$0xff]  }
 0x118   :  { %3747 = vmatprep.subr.bf16.mxu0 %v5834_v38  ;;  %4116 = vmatprep.subr.bf16.mxu1 %v5837_v39  ;;  %v5929_v38 = vld [vmem:[%s8256_s1 + $0xaac] ss:$16 sps:$4 sm:$0xff]   ;;  %v5924_v39 = vld [vmem:[%s8256_s1 + $0xaa0] ss:$16 sps:$4 sm:$0xff]  }
 0x11b   :  { %3748 = vmatpush1.bf16.msra.mxu0 %v5832_v40  ;;  %4117 = vmatpush1.bf16.msra.mxu1 %v5835_v41  ;;  %v5927_v40 = vld [vmem:[%s8256_s1 + $0xaa8] ss:$16 sps:$4 sm:$0xff]   ;;  %v5932_v41 = vld [vmem:[%s8256_s1 + $0xac4] ss:$16 sps:$4 sm:$0xff]  }
 0x11c   :  { %3749 = vmatprep.subr.bf16.mxu0 %v5840_v42  ;;  %4118 = vmatprep.subr.bf16.mxu1 %v5843_v43  ;;  %v5935_v42 = vld [vmem:[%s8256_s1 + $0xacc] ss:$16 sps:$4 sm:$0xff]   ;;  %v5930_v43 = vld [vmem:[%s8256_s1 + $0xac0] ss:$16 sps:$4 sm:$0xff]  }
 0x11f   :  { %3750 = vmatpush1.bf16.msra.mxu0 %v5838_v44  ;;  %4119 = vmatpush1.bf16.msra.mxu1 %v5841_v45  ;;  %v5933_v44 = vld [vmem:[%s8256_s1 + $0xac8] ss:$16 sps:$4 sm:$0xff]   ;;  %v5938_v45 = vld [vmem:[%s8256_s1 + $0xae4] ss:$16 sps:$4 sm:$0xff]  }
 0x120   :  { %3751 = vmatprep.subr.bf16.mxu0 %v5846_v46  ;;  %4120 = vmatprep.subr.bf16.mxu1 %v5849_v47  ;;  %v5941_v46 = vld [vmem:[%s8256_s1 + $0xaec] ss:$16 sps:$4 sm:$0xff]   ;;  %v5936_v47 = vld [vmem:[%s8256_s1 + $0xae0] ss:$16 sps:$4 sm:$0xff]  }
 0x123   :  { %3752 = vmatpush1.bf16.msra.mxu0 %v5844_v48  ;;  %4121 = vmatpush1.bf16.msra.mxu1 %v5847_v49  ;;  %v5939_v48 = vld [vmem:[%s8256_s1 + $0xae8] ss:$16 sps:$4 sm:$0xff]   ;;  %v5944_v49 = vld [vmem:[%s8256_s1 + $0xb04] ss:$16 sps:$4 sm:$0xff]  }
 0x124   :  { %3753 = vmatprep.subr.bf16.mxu0 %v5852_v50  ;;  %4122 = vmatprep.subr.bf16.mxu1 %v5855_v51  ;;  %v5947_v50 = vld [vmem:[%s8256_s1 + $0xb0c] ss:$16 sps:$4 sm:$0xff]   ;;  %v5942_v51 = vld [vmem:[%s8256_s1 + $0xb00] ss:$16 sps:$4 sm:$0xff]  }
 0x127   :  { %3754 = vmatpush1.bf16.msra.mxu0 %v5850_v52  ;;  %4123 = vmatpush1.bf16.msra.mxu1 %v5853_v53  ;;  %v5945_v52 = vld [vmem:[%s8256_s1 + $0xb08] ss:$16 sps:$4 sm:$0xff]   ;;  %v5950_v53 = vld [vmem:[%s8256_s1 + $0xb24] ss:$16 sps:$4 sm:$0xff]  }
 0x128   :  { %3755 = vmatprep.subr.bf16.mxu0 %v5858_v54  ;;  %4124 = vmatprep.subr.bf16.mxu1 %v5861_v55  ;;  %v5953_v54 = vld [vmem:[%s8256_s1 + $0xb2c] ss:$16 sps:$4 sm:$0xff]   ;;  %v5948_v55 = vld [vmem:[%s8256_s1 + $0xb20] ss:$16 sps:$4 sm:$0xff]  }
 0x12b   :  { %3756 = vmatpush1.bf16.msra.mxu0 %v5856_v56  ;;  %4125 = vmatpush1.bf16.msra.mxu1 %v5859_v57  ;;  %v5951_v56 = vld [vmem:[%s8256_s1 + $0xb28] ss:$16 sps:$4 sm:$0xff]   ;;  %v5956_v57 = vld [vmem:[%s8256_s1 + $0xb44] ss:$16 sps:$4 sm:$0xff]  }
 0x12c   :  { %3757 = vmatprep.subr.bf16.mxu0 %v5864_v58  ;;  %4126 = vmatprep.subr.bf16.mxu1 %v5867_v59  ;;  %v5959_v58 = vld [vmem:[%s8256_s1 + $0xb4c] ss:$16 sps:$4 sm:$0xff]   ;;  %v5954_v59 = vld [vmem:[%s8256_s1 + $0xb40] ss:$16 sps:$4 sm:$0xff]  }
 0x12f   :  { %3758 = vmatpush1.bf16.msra.mxu0 %v5862_v60  ;;  %4127 = vmatpush1.bf16.msra.mxu1 %v5865_v61  ;;  %v5957_v60 = vld [vmem:[%s8256_s1 + $0xb48] ss:$16 sps:$4 sm:$0xff]   ;;  %v5962_v61 = vld [vmem:[%s8256_s1 + $0xb64] ss:$16 sps:$4 sm:$0xff]  }
 0x130   :  { %3759 = vmatprep.subr.bf16.mxu0 %v5870_v62  ;;  %4128 = vmatprep.subr.bf16.mxu1 %v5873_v63  ;;  %v5965_v62 = vld [vmem:[%s8256_s1 + $0xb6c] ss:$16 sps:$4 sm:$0xff]   ;;  %v5960_v63 = vld [vmem:[%s8256_s1 + $0xb60] ss:$16 sps:$4 sm:$0xff]  }
 0x133   :  { %3760 = vmatpush1.bf16.msra.mxu0 %v5868_v0  ;;  %4129 = vmatpush1.bf16.msra.mxu1 %v5871_v1  ;;  %v5963_v0 = vld [vmem:[%s8256_s1 + $0xb68] ss:$16 sps:$4 sm:$0xff]   ;;  %v5968_v1 = vld [vmem:[%s8256_s1 + $0xb84] ss:$16 sps:$4 sm:$0xff]  }
 0x134   :  { %3761 = vmatprep.subr.bf16.mxu0 %v5876_v2  ;;  %4130 = vmatprep.subr.bf16.mxu1 %v5879_v3  ;;  %v5971_v2 = vld [vmem:[%s8256_s1 + $0xb8c] ss:$16 sps:$4 sm:$0xff]   ;;  %v5966_v3 = vld [vmem:[%s8256_s1 + $0xb80] ss:$16 sps:$4 sm:$0xff]  }
 0x137   :  { %3762 = vmatpush1.bf16.msra.mxu0 %v5874_v4  ;;  %4131 = vmatpush1.bf16.msra.mxu1 %v5877_v5  ;;  %v5969_v4 = vld [vmem:[%s8256_s1 + $0xb88] ss:$16 sps:$4 sm:$0xff]   ;;  %v5974_v5 = vld [vmem:[%s8256_s1 + $0xba4] ss:$16 sps:$4 sm:$0xff]  }
 0x138   :  { %3763 = vmatprep.subr.bf16.mxu0 %v5882_v6  ;;  %4132 = vmatprep.subr.bf16.mxu1 %v5885_v7  ;;  %v5977_v6 = vld [vmem:[%s8256_s1 + $0xbac] ss:$16 sps:$4 sm:$0xff]   ;;  %v5972_v7 = vld [vmem:[%s8256_s1 + $0xba0] ss:$16 sps:$4 sm:$0xff]  }
 0x13b   :  { %3764 = vmatpush1.bf16.msra.mxu0 %v5880_v8  ;;  %4133 = vmatpush1.bf16.msra.mxu1 %v5883_v9  ;;  %v5975_v8 = vld [vmem:[%s8256_s1 + $0xba8] ss:$16 sps:$4 sm:$0xff]   ;;  %v5980_v9 = vld [vmem:[%s8256_s1 + $0xbc4] ss:$16 sps:$4 sm:$0xff]  }
 0x13c   :  { %3765 = vmatprep.subr.bf16.mxu0 %v5888_v10  ;;  %4134 = vmatprep.subr.bf16.mxu1 %v5891_v12  ;;  %v5983_v10 = vld [vmem:[%s8256_s1 + $0xbcc] ss:$16 sps:$4 sm:$0xff]   ;;  %v5978_v12 = vld [vmem:[%s8256_s1 + $0xbc0] ss:$16 sps:$4 sm:$0xff]  }
 0x13f   :  { %3766 = vmatpush1.bf16.msra.mxu0 %v5886_v13  ;;  %4135 = vmatpush1.bf16.msra.mxu1 %v5889_v15  ;;  %v5981_v13 = vld [vmem:[%s8256_s1 + $0xbc8] ss:$16 sps:$4 sm:$0xff]   ;;  %v5986_v15 = vld [vmem:[%s8256_s1 + $0xbe4] ss:$16 sps:$4 sm:$0xff]  }
 0x140   :  { %3776 = vmatprep.subr.bf16.mxu0 %v5896_v11  ;;  %4145 = vmatprep.subr.bf16.mxu1 %v5899_v17  ;;  %v5989_v11 = vld [vmem:[%s8256_s1 + $0xbec] ss:$16 sps:$4 sm:$0xff]   ;;  %v5984_v17 = vld [vmem:[%s8256_s1 + $0xbe0] ss:$16 sps:$4 sm:$0xff]  }
 0x142   :  { %3768 = vmatmul.mubr.bf16.vlgmr.msra.gmra.mrb[0].mxu0 %v4673_v14  ;;  %4137 = vmatmul.mubr.bf16.vlgmr.msra.gmra.mrb[0].mxu1 %v4673_v14  ;;  %v5987_v14 = vld [vmem:[%s8256_s1 + $0xbe8] ss:$16 sps:$4 sm:$0xff]  }
 0x143   :  { %3777 = vmatpush1.bf16.msra.mxu0 %v5894_v19  ;;  %4146 = vmatpush1.bf16.msra.mxu1 %v5897_v20  ;;  %v5994_v19 = vld [vmem:[%s8256_s1 + $0xc04] ss:$16 sps:$4 sm:$0xff]   ;;  %v5997_v20 = vld [vmem:[%s8256_s1 + $0xc0c] ss:$16 sps:$4 sm:$0xff]  }
 0x144   :  { %3778 = vmatprep.subr.bf16.mxu0 %v5902_v21  ;;  %4147 = vmatprep.subr.bf16.mxu1 %v5905_v16  ;;  %v4675_v21 = vcombine.low %v7354_v18, %v7354_v18  ;;  %v7557_v16 = vld [vmem:[%s8257_s0 + $0x30] sm:$0xff] }
 0x145   :  { %3808 = vmatprep.mubr.bf16.mxu0 %v4676_v22  ;;  %4177 = vmatprep.mubr.bf16.mxu1 %v4676_v22  ;;  %v5992_v22 = vld [vmem:[%s8256_s1 + $0xc00] ss:$16 sps:$4 sm:$0xff]   ;;  %v6000_v18 = vld [vmem:[%s8256_s1 + $0xc24] ss:$16 sps:$4 sm:$0xff]  }
 0x147   :  { %3779 = vmatpush1.bf16.msra.mxu0 %v5900_v23  ;;  %4148 = vmatpush1.bf16.msra.mxu1 %v5903_v24  ;;  %v5995_v23 = vld [vmem:[%s8256_s1 + $0xc08] ss:$16 sps:$4 sm:$0xff]   ;;  %v6003_v24 = vld [vmem:[%s8256_s1 + $0xc2c] ss:$16 sps:$4 sm:$0xff]  }
 0x148   :  { %3780 = vmatprep.subr.bf16.mxu0 %v5908_v25  ;;  %4149 = vmatprep.subr.bf16.mxu1 %v5911_v26  ;;  %v4678_v25 = vcombine.high %v7557_v16, %v7557_v16  ;;  %v5998_v26 = vld [vmem:[%s8256_s1 + $0xc20] ss:$16 sps:$4 sm:$0xff]  }
 0x14b   :  { %3781 = vmatpush1.bf16.msra.mxu0 %v5906_v27  ;;  %4150 = vmatpush1.bf16.msra.mxu1 %v5909_v28  ;;  %v6001_v27 = vld [vmem:[%s8256_s1 + $0xc28] ss:$16 sps:$4 sm:$0xff]   ;;  %v6006_v28 = vld [vmem:[%s8256_s1 + $0xc44] ss:$16 sps:$4 sm:$0xff]  }
 0x14c   :  { %3782 = vmatprep.subr.bf16.mxu0 %v5914_v29  ;;  %4151 = vmatprep.subr.bf16.mxu1 %v5917_v30  ;;  %v6009_v29 = vld [vmem:[%s8256_s1 + $0xc4c] ss:$16 sps:$4 sm:$0xff]   ;;  %v6004_v30 = vld [vmem:[%s8256_s1 + $0xc40] ss:$16 sps:$4 sm:$0xff]  }
 0x14f   :  { %3783 = vmatpush1.bf16.msra.mxu0 %v5912_v31  ;;  %4152 = vmatpush1.bf16.msra.mxu1 %v5915_v32  ;;  %v6007_v31 = vld [vmem:[%s8256_s1 + $0xc48] ss:$16 sps:$4 sm:$0xff]   ;;  %v6012_v32 = vld [vmem:[%s8256_s1 + $0xc64] ss:$16 sps:$4 sm:$0xff]  }
 0x150   :  { %3784 = vmatprep.subr.bf16.mxu0 %v5920_v33  ;;  %4153 = vmatprep.subr.bf16.mxu1 %v5923_v34  ;;  %v6015_v33 = vld [vmem:[%s8256_s1 + $0xc6c] ss:$16 sps:$4 sm:$0xff]   ;;  %v6010_v34 = vld [vmem:[%s8256_s1 + $0xc60] ss:$16 sps:$4 sm:$0xff]  }
 0x153   :  { %3785 = vmatpush1.bf16.msra.mxu0 %v5918_v35  ;;  %4154 = vmatpush1.bf16.msra.mxu1 %v5921_v36  ;;  %v6013_v35 = vld [vmem:[%s8256_s1 + $0xc68] ss:$16 sps:$4 sm:$0xff]   ;;  %v6018_v36 = vld [vmem:[%s8256_s1 + $0xc84] ss:$16 sps:$4 sm:$0xff]  }
 0x154   :  { %3786 = vmatprep.subr.bf16.mxu0 %v5926_v37  ;;  %4155 = vmatprep.subr.bf16.mxu1 %v5929_v38  ;;  %v6021_v37 = vld [vmem:[%s8256_s1 + $0xc8c] ss:$16 sps:$4 sm:$0xff]   ;;  %v6016_v38 = vld [vmem:[%s8256_s1 + $0xc80] ss:$16 sps:$4 sm:$0xff]  }
 0x157   :  { %3787 = vmatpush1.bf16.msra.mxu0 %v5924_v39  ;;  %4156 = vmatpush1.bf16.msra.mxu1 %v5927_v40  ;;  %v6019_v39 = vld [vmem:[%s8256_s1 + $0xc88] ss:$16 sps:$4 sm:$0xff]   ;;  %v6024_v40 = vld [vmem:[%s8256_s1 + $0xca4] ss:$16 sps:$4 sm:$0xff]  }
 0x158   :  { %3788 = vmatprep.subr.bf16.mxu0 %v5932_v41  ;;  %4157 = vmatprep.subr.bf16.mxu1 %v5935_v42  ;;  %v6027_v41 = vld [vmem:[%s8256_s1 + $0xcac] ss:$16 sps:$4 sm:$0xff]   ;;  %v6022_v42 = vld [vmem:[%s8256_s1 + $0xca0] ss:$16 sps:$4 sm:$0xff]  }
 0x15b   :  { %3789 = vmatpush1.bf16.msra.mxu0 %v5930_v43  ;;  %4158 = vmatpush1.bf16.msra.mxu1 %v5933_v44  ;;  %v6025_v43 = vld [vmem:[%s8256_s1 + $0xca8] ss:$16 sps:$4 sm:$0xff]   ;;  %v6030_v44 = vld [vmem:[%s8256_s1 + $0xcc4] ss:$16 sps:$4 sm:$0xff]  }
 0x15c   :  { %3790 = vmatprep.subr.bf16.mxu0 %v5938_v45  ;;  %4159 = vmatprep.subr.bf16.mxu1 %v5941_v46  ;;  %v6033_v45 = vld [vmem:[%s8256_s1 + $0xccc] ss:$16 sps:$4 sm:$0xff]   ;;  %v6028_v46 = vld [vmem:[%s8256_s1 + $0xcc0] ss:$16 sps:$4 sm:$0xff]  }
 0x15f   :  { %3791 = vmatpush1.bf16.msra.mxu0 %v5936_v47  ;;  %4160 = vmatpush1.bf16.msra.mxu1 %v5939_v48  ;;  %v6031_v47 = vld [vmem:[%s8256_s1 + $0xcc8] ss:$16 sps:$4 sm:$0xff]   ;;  %v6036_v48 = vld [vmem:[%s8256_s1 + $0xce4] ss:$16 sps:$4 sm:$0xff]  }
 0x160   :  { %3792 = vmatprep.subr.bf16.mxu0 %v5944_v49  ;;  %4161 = vmatprep.subr.bf16.mxu1 %v5947_v50  ;;  %v6039_v49 = vld [vmem:[%s8256_s1 + $0xcec] ss:$16 sps:$4 sm:$0xff]   ;;  %v6034_v50 = vld [vmem:[%s8256_s1 + $0xce0] ss:$16 sps:$4 sm:$0xff]  }
 0x163   :  { %3793 = vmatpush1.bf16.msra.mxu0 %v5942_v51  ;;  %4162 = vmatpush1.bf16.msra.mxu1 %v5945_v52  ;;  %v6037_v51 = vld [vmem:[%s8256_s1 + $0xce8] ss:$16 sps:$4 sm:$0xff]   ;;  %v6042_v52 = vld [vmem:[%s8256_s1 + $0xd04] ss:$16 sps:$4 sm:$0xff]  }
 0x164   :  { %3794 = vmatprep.subr.bf16.mxu0 %v5950_v53  ;;  %4163 = vmatprep.subr.bf16.mxu1 %v5953_v54  ;;  %v6045_v53 = vld [vmem:[%s8256_s1 + $0xd0c] ss:$16 sps:$4 sm:$0xff]   ;;  %v6040_v54 = vld [vmem:[%s8256_s1 + $0xd00] ss:$16 sps:$4 sm:$0xff]  }
 0x167   :  { %3795 = vmatpush1.bf16.msra.mxu0 %v5948_v55  ;;  %4164 = vmatpush1.bf16.msra.mxu1 %v5951_v56  ;;  %v6043_v55 = vld [vmem:[%s8256_s1 + $0xd08] ss:$16 sps:$4 sm:$0xff]   ;;  %v6048_v56 = vld [vmem:[%s8256_s1 + $0xd24] ss:$16 sps:$4 sm:$0xff]  }
 0x168   :  { %3796 = vmatprep.subr.bf16.mxu0 %v5956_v57  ;;  %4165 = vmatprep.subr.bf16.mxu1 %v5959_v58  ;;  %v6051_v57 = vld [vmem:[%s8256_s1 + $0xd2c] ss:$16 sps:$4 sm:$0xff]   ;;  %v6046_v58 = vld [vmem:[%s8256_s1 + $0xd20] ss:$16 sps:$4 sm:$0xff]  }
 0x16b   :  { %3797 = vmatpush1.bf16.msra.mxu0 %v5954_v59  ;;  %4166 = vmatpush1.bf16.msra.mxu1 %v5957_v60  ;;  %v6049_v59 = vld [vmem:[%s8256_s1 + $0xd28] ss:$16 sps:$4 sm:$0xff]   ;;  %v6054_v60 = vld [vmem:[%s8256_s1 + $0xd44] ss:$16 sps:$4 sm:$0xff]  }
 0x16c   :  { %3798 = vmatprep.subr.bf16.mxu0 %v5962_v61  ;;  %4167 = vmatprep.subr.bf16.mxu1 %v5965_v62  ;;  %v6057_v61 = vld [vmem:[%s8256_s1 + $0xd4c] ss:$16 sps:$4 sm:$0xff]   ;;  %v6052_v62 = vld [vmem:[%s8256_s1 + $0xd40] ss:$16 sps:$4 sm:$0xff]  }
 0x16f   :  { %3799 = vmatpush1.bf16.msra.mxu0 %v5960_v63  ;;  %4168 = vmatpush1.bf16.msra.mxu1 %v5963_v0  ;;  %v6055_v63 = vld [vmem:[%s8256_s1 + $0xd48] ss:$16 sps:$4 sm:$0xff]   ;;  %v6060_v0 = vld [vmem:[%s8256_s1 + $0xd64] ss:$16 sps:$4 sm:$0xff]  }
 0x170   :  { %3800 = vmatprep.subr.bf16.mxu0 %v5968_v1  ;;  %4169 = vmatprep.subr.bf16.mxu1 %v5971_v2  ;;  %v6063_v1 = vld [vmem:[%s8256_s1 + $0xd6c] ss:$16 sps:$4 sm:$0xff]   ;;  %v6058_v2 = vld [vmem:[%s8256_s1 + $0xd60] ss:$16 sps:$4 sm:$0xff]  }
 0x173   :  { %3801 = vmatpush1.bf16.msra.mxu0 %v5966_v3  ;;  %4170 = vmatpush1.bf16.msra.mxu1 %v5969_v4  ;;  %v6061_v3 = vld [vmem:[%s8256_s1 + $0xd68] ss:$16 sps:$4 sm:$0xff]   ;;  %v6066_v4 = vld [vmem:[%s8256_s1 + $0xd84] ss:$16 sps:$4 sm:$0xff]  }
 0x174   :  { %3802 = vmatprep.subr.bf16.mxu0 %v5974_v5  ;;  %4171 = vmatprep.subr.bf16.mxu1 %v5977_v6  ;;  %v6069_v5 = vld [vmem:[%s8256_s1 + $0xd8c] ss:$16 sps:$4 sm:$0xff]   ;;  %v6064_v6 = vld [vmem:[%s8256_s1 + $0xd80] ss:$16 sps:$4 sm:$0xff]  }
 0x177   :  { %3803 = vmatpush1.bf16.msra.mxu0 %v5972_v7  ;;  %4172 = vmatpush1.bf16.msra.mxu1 %v5975_v8  ;;  %v6067_v7 = vld [vmem:[%s8256_s1 + $0xd88] ss:$16 sps:$4 sm:$0xff]   ;;  %v6072_v8 = vld [vmem:[%s8256_s1 + $0xda4] ss:$16 sps:$4 sm:$0xff]  }
 0x178   :  { %3804 = vmatprep.subr.bf16.mxu0 %v5980_v9  ;;  %4173 = vmatprep.subr.bf16.mxu1 %v5983_v10  ;;  %v6075_v9 = vld [vmem:[%s8256_s1 + $0xdac] ss:$16 sps:$4 sm:$0xff]   ;;  %v6070_v10 = vld [vmem:[%s8256_s1 + $0xda0] ss:$16 sps:$4 sm:$0xff]  }
 0x17b   :  { %3805 = vmatpush1.bf16.msra.mxu0 %v5978_v12  ;;  %4174 = vmatpush1.bf16.msra.mxu1 %v5981_v13  ;;  %v6073_v12 = vld [vmem:[%s8256_s1 + $0xda8] ss:$16 sps:$4 sm:$0xff]   ;;  %v6078_v13 = vld [vmem:[%s8256_s1 + $0xdc4] ss:$16 sps:$4 sm:$0xff]  }
 0x17c   :  { %3806 = vmatprep.subr.bf16.mxu0 %v5986_v15  ;;  %4175 = vmatprep.subr.bf16.mxu1 %v5989_v11  ;;  %v6081_v15 = vld [vmem:[%s8256_s1 + $0xdcc] ss:$16 sps:$4 sm:$0xff]   ;;  %v6076_v11 = vld [vmem:[%s8256_s1 + $0xdc0] ss:$16 sps:$4 sm:$0xff]  }
 0x17f   :  { %3807 = vmatpush1.bf16.msra.mxu0 %v5984_v17  ;;  %4176 = vmatpush1.bf16.msra.mxu1 %v5987_v14  ;;  %v6079_v17 = vld [vmem:[%s8256_s1 + $0xdc8] ss:$16 sps:$4 sm:$0xff]   ;;  %v6084_v14 = vld [vmem:[%s8256_s1 + $0xde4] ss:$16 sps:$4 sm:$0xff]  }
 0x180   :  { %3817 = vmatprep.subr.bf16.mxu0 %v5994_v19  ;;  %4186 = vmatprep.subr.bf16.mxu1 %v5997_v20  ;;  %v6087_v19 = vld [vmem:[%s8256_s1 + $0xdec] ss:$16 sps:$4 sm:$0xff]   ;;  %v6082_v20 = vld [vmem:[%s8256_s1 + $0xde0] ss:$16 sps:$4 sm:$0xff]  }
 0x182   :  { %3809 = vmatmul.mubr.bf16.vlgmr.msra.gmra.mrb[0].mxu0 %v4675_v21  ;;  %4178 = vmatmul.mubr.bf16.vlgmr.msra.gmra.mrb[0].mxu1 %v4675_v21  ;;  %v6085_v21 = vld [vmem:[%s8256_s1 + $0xde8] ss:$16 sps:$4 sm:$0xff]  }
 0x183   :  { %3818 = vmatpush1.bf16.msra.mxu0 %v5992_v22  ;;  %4187 = vmatpush1.bf16.msra.mxu1 %v5995_v23  ;;  %v6092_v22 = vld [vmem:[%s8256_s1 + $0xe04] ss:$16 sps:$4 sm:$0xff]   ;;  %v6095_v23 = vld [vmem:[%s8256_s1 + $0xe0c] ss:$16 sps:$4 sm:$0xff]  }
 0x184   :  { %3819 = vmatprep.subr.bf16.mxu0 %v6000_v18  ;;  %4188 = vmatprep.subr.bf16.mxu1 %v6003_v24  ;;  %v4677_v18 = vcombine.low %v7557_v16, %v7557_v16  ;;  %v7758_v24 = vld [vmem:[%s8257_s0 + $0x38] sm:$0xff]  ;;  %v6098_v16 = vld [vmem:[%s8256_s1 + $0xe24] ss:$16 sps:$4 sm:$0xff]  }
 0x185   :  { %3849 = vmatprep.mubr.bf16.mxu0 %v4678_v25  ;;  %4218 = vmatprep.mubr.bf16.mxu1 %v4678_v25  ;;  %v6090_v25 = vld [vmem:[%s8256_s1 + $0xe00] ss:$16 sps:$4 sm:$0xff]  }
 0x187   :  { %3820 = vmatpush1.bf16.msra.mxu0 %v5998_v26  ;;  %4189 = vmatpush1.bf16.msra.mxu1 %v6001_v27  ;;  %v6093_v26 = vld [vmem:[%s8256_s1 + $0xe08] ss:$16 sps:$4 sm:$0xff]   ;;  %v6101_v27 = vld [vmem:[%s8256_s1 + $0xe2c] ss:$16 sps:$4 sm:$0xff]  }
 0x188   :  { %3821 = vmatprep.subr.bf16.mxu0 %v6006_v28  ;;  %4190 = vmatprep.subr.bf16.mxu1 %v6009_v29  ;;  %v4680_v28 = vcombine.high %v7758_v24, %v7758_v24  ;;  %v6096_v29 = vld [vmem:[%s8256_s1 + $0xe20] ss:$16 sps:$4 sm:$0xff]  }
 0x18b   :  { %3822 = vmatpush1.bf16.msra.mxu0 %v6004_v30  ;;  %4191 = vmatpush1.bf16.msra.mxu1 %v6007_v31  ;;  %v6099_v30 = vld [vmem:[%s8256_s1 + $0xe28] ss:$16 sps:$4 sm:$0xff]   ;;  %v6104_v31 = vld [vmem:[%s8256_s1 + $0xe44] ss:$16 sps:$4 sm:$0xff]  }
 0x18c   :  { %3823 = vmatprep.subr.bf16.mxu0 %v6012_v32  ;;  %4192 = vmatprep.subr.bf16.mxu1 %v6015_v33  ;;  %v6107_v32 = vld [vmem:[%s8256_s1 + $0xe4c] ss:$16 sps:$4 sm:$0xff]   ;;  %v6102_v33 = vld [vmem:[%s8256_s1 + $0xe40] ss:$16 sps:$4 sm:$0xff]  }
 0x18f   :  { %3824 = vmatpush1.bf16.msra.mxu0 %v6010_v34  ;;  %4193 = vmatpush1.bf16.msra.mxu1 %v6013_v35  ;;  %v6105_v34 = vld [vmem:[%s8256_s1 + $0xe48] ss:$16 sps:$4 sm:$0xff]   ;;  %v6110_v35 = vld [vmem:[%s8256_s1 + $0xe64] ss:$16 sps:$4 sm:$0xff]  }
 0x190   :  { %3825 = vmatprep.subr.bf16.mxu0 %v6018_v36  ;;  %4194 = vmatprep.subr.bf16.mxu1 %v6021_v37  ;;  %v6113_v36 = vld [vmem:[%s8256_s1 + $0xe6c] ss:$16 sps:$4 sm:$0xff]   ;;  %v6108_v37 = vld [vmem:[%s8256_s1 + $0xe60] ss:$16 sps:$4 sm:$0xff]  }
 0x193   :  { %3826 = vmatpush1.bf16.msra.mxu0 %v6016_v38  ;;  %4195 = vmatpush1.bf16.msra.mxu1 %v6019_v39  ;;  %v6111_v38 = vld [vmem:[%s8256_s1 + $0xe68] ss:$16 sps:$4 sm:$0xff]   ;;  %v6116_v39 = vld [vmem:[%s8256_s1 + $0xe84] ss:$16 sps:$4 sm:$0xff]  }
 0x194   :  { %3827 = vmatprep.subr.bf16.mxu0 %v6024_v40  ;;  %4196 = vmatprep.subr.bf16.mxu1 %v6027_v41  ;;  %v6119_v40 = vld [vmem:[%s8256_s1 + $0xe8c] ss:$16 sps:$4 sm:$0xff]   ;;  %v6114_v41 = vld [vmem:[%s8256_s1 + $0xe80] ss:$16 sps:$4 sm:$0xff]  }
 0x197   :  { %3828 = vmatpush1.bf16.msra.mxu0 %v6022_v42  ;;  %4197 = vmatpush1.bf16.msra.mxu1 %v6025_v43  ;;  %v6117_v42 = vld [vmem:[%s8256_s1 + $0xe88] ss:$16 sps:$4 sm:$0xff]   ;;  %v6122_v43 = vld [vmem:[%s8256_s1 + $0xea4] ss:$16 sps:$4 sm:$0xff]  }
 0x198   :  { %3829 = vmatprep.subr.bf16.mxu0 %v6030_v44  ;;  %4198 = vmatprep.subr.bf16.mxu1 %v6033_v45  ;;  %v6125_v44 = vld [vmem:[%s8256_s1 + $0xeac] ss:$16 sps:$4 sm:$0xff]   ;;  %v6120_v45 = vld [vmem:[%s8256_s1 + $0xea0] ss:$16 sps:$4 sm:$0xff]  }
 0x19b   :  { %3830 = vmatpush1.bf16.msra.mxu0 %v6028_v46  ;;  %4199 = vmatpush1.bf16.msra.mxu1 %v6031_v47  ;;  %v6123_v46 = vld [vmem:[%s8256_s1 + $0xea8] ss:$16 sps:$4 sm:$0xff]   ;;  %v6128_v47 = vld [vmem:[%s8256_s1 + $0xec4] ss:$16 sps:$4 sm:$0xff]  }
 0x19c   :  { %3831 = vmatprep.subr.bf16.mxu0 %v6036_v48  ;;  %4200 = vmatprep.subr.bf16.mxu1 %v6039_v49  ;;  %v6131_v48 = vld [vmem:[%s8256_s1 + $0xecc] ss:$16 sps:$4 sm:$0xff]   ;;  %v6126_v49 = vld [vmem:[%s8256_s1 + $0xec0] ss:$16 sps:$4 sm:$0xff]  }
 0x19f   :  { %3832 = vmatpush1.bf16.msra.mxu0 %v6034_v50  ;;  %4201 = vmatpush1.bf16.msra.mxu1 %v6037_v51  ;;  %v6129_v50 = vld [vmem:[%s8256_s1 + $0xec8] ss:$16 sps:$4 sm:$0xff]   ;;  %v6134_v51 = vld [vmem:[%s8256_s1 + $0xee4] ss:$16 sps:$4 sm:$0xff]  }
 0x1a0   :  { %3833 = vmatprep.subr.bf16.mxu0 %v6042_v52  ;;  %4202 = vmatprep.subr.bf16.mxu1 %v6045_v53  ;;  %v6137_v52 = vld [vmem:[%s8256_s1 + $0xeec] ss:$16 sps:$4 sm:$0xff]   ;;  %v6132_v53 = vld [vmem:[%s8256_s1 + $0xee0] ss:$16 sps:$4 sm:$0xff]  }
 0x1a3   :  { %3834 = vmatpush1.bf16.msra.mxu0 %v6040_v54  ;;  %4203 = vmatpush1.bf16.msra.mxu1 %v6043_v55  ;;  %v6135_v54 = vld [vmem:[%s8256_s1 + $0xee8] ss:$16 sps:$4 sm:$0xff]   ;;  %v6140_v55 = vld [vmem:[%s8256_s1 + $0xf04] ss:$16 sps:$4 sm:$0xff]  }
 0x1a4   :  { %3835 = vmatprep.subr.bf16.mxu0 %v6048_v56  ;;  %4204 = vmatprep.subr.bf16.mxu1 %v6051_v57  ;;  %v6143_v56 = vld [vmem:[%s8256_s1 + $0xf0c] ss:$16 sps:$4 sm:$0xff]   ;;  %v6138_v57 = vld [vmem:[%s8256_s1 + $0xf00] ss:$16 sps:$4 sm:$0xff]  }
 0x1a7   :  { %3836 = vmatpush1.bf16.msra.mxu0 %v6046_v58  ;;  %4205 = vmatpush1.bf16.msra.mxu1 %v6049_v59  ;;  %v6141_v58 = vld [vmem:[%s8256_s1 + $0xf08] ss:$16 sps:$4 sm:$0xff]   ;;  %v6146_v59 = vld [vmem:[%s8256_s1 + $0xf24] ss:$16 sps:$4 sm:$0xff]  }
 0x1a8   :  { %3837 = vmatprep.subr.bf16.mxu0 %v6054_v60  ;;  %4206 = vmatprep.subr.bf16.mxu1 %v6057_v61  ;;  %v6149_v60 = vld [vmem:[%s8256_s1 + $0xf2c] ss:$16 sps:$4 sm:$0xff]   ;;  %v6144_v61 = vld [vmem:[%s8256_s1 + $0xf20] ss:$16 sps:$4 sm:$0xff]  }
 0x1ab   :  { %3838 = vmatpush1.bf16.msra.mxu0 %v6052_v62  ;;  %4207 = vmatpush1.bf16.msra.mxu1 %v6055_v63  ;;  %v6147_v62 = vld [vmem:[%s8256_s1 + $0xf28] ss:$16 sps:$4 sm:$0xff]   ;;  %v6152_v63 = vld [vmem:[%s8256_s1 + $0xf44] ss:$16 sps:$4 sm:$0xff]  }
 0x1ac   :  { %3839 = vmatprep.subr.bf16.mxu0 %v6060_v0  ;;  %4208 = vmatprep.subr.bf16.mxu1 %v6063_v1  ;;  %v6155_v0 = vld [vmem:[%s8256_s1 + $0xf4c] ss:$16 sps:$4 sm:$0xff]   ;;  %v6150_v1 = vld [vmem:[%s8256_s1 + $0xf40] ss:$16 sps:$4 sm:$0xff]  }
 0x1af   :  { %3840 = vmatpush1.bf16.msra.mxu0 %v6058_v2  ;;  %4209 = vmatpush1.bf16.msra.mxu1 %v6061_v3  ;;  %v6153_v2 = vld [vmem:[%s8256_s1 + $0xf48] ss:$16 sps:$4 sm:$0xff]   ;;  %v6158_v3 = vld [vmem:[%s8256_s1 + $0xf64] ss:$16 sps:$4 sm:$0xff]  }
 0x1b0   :  { %3841 = vmatprep.subr.bf16.mxu0 %v6066_v4  ;;  %4210 = vmatprep.subr.bf16.mxu1 %v6069_v5  ;;  %v6161_v4 = vld [vmem:[%s8256_s1 + $0xf6c] ss:$16 sps:$4 sm:$0xff]   ;;  %v6156_v5 = vld [vmem:[%s8256_s1 + $0xf60] ss:$16 sps:$4 sm:$0xff]  }
 0x1b3   :  { %3842 = vmatpush1.bf16.msra.mxu0 %v6064_v6  ;;  %4211 = vmatpush1.bf16.msra.mxu1 %v6067_v7  ;;  %v6159_v6 = vld [vmem:[%s8256_s1 + $0xf68] ss:$16 sps:$4 sm:$0xff]   ;;  %v6164_v7 = vld [vmem:[%s8256_s1 + $0xf84] ss:$16 sps:$4 sm:$0xff]  }
 0x1b4   :  { %3843 = vmatprep.subr.bf16.mxu0 %v6072_v8  ;;  %4212 = vmatprep.subr.bf16.mxu1 %v6075_v9  ;;  %v6167_v8 = vld [vmem:[%s8256_s1 + $0xf8c] ss:$16 sps:$4 sm:$0xff]   ;;  %v6162_v9 = vld [vmem:[%s8256_s1 + $0xf80] ss:$16 sps:$4 sm:$0xff]  }
 0x1b7   :  { %3844 = vmatpush1.bf16.msra.mxu0 %v6070_v10  ;;  %4213 = vmatpush1.bf16.msra.mxu1 %v6073_v12  ;;  %v6165_v10 = vld [vmem:[%s8256_s1 + $0xf88] ss:$16 sps:$4 sm:$0xff]   ;;  %v6170_v12 = vld [vmem:[%s8256_s1 + $0xfa4] ss:$16 sps:$4 sm:$0xff]  }
 0x1b8   :  { %3845 = vmatprep.subr.bf16.mxu0 %v6078_v13  ;;  %4214 = vmatprep.subr.bf16.mxu1 %v6081_v15  ;;  %v6173_v13 = vld [vmem:[%s8256_s1 + $0xfac] ss:$16 sps:$4 sm:$0xff]   ;;  %v6168_v15 = vld [vmem:[%s8256_s1 + $0xfa0] ss:$16 sps:$4 sm:$0xff]  }
 0x1bb   :  { %3846 = vmatpush1.bf16.msra.mxu0 %v6076_v11  ;;  %4215 = vmatpush1.bf16.msra.mxu1 %v6079_v17  ;;  %v6171_v11 = vld [vmem:[%s8256_s1 + $0xfa8] ss:$16 sps:$4 sm:$0xff]   ;;  %v6176_v17 = vld [vmem:[%s8256_s1 + $0xfc4] ss:$16 sps:$4 sm:$0xff]  }
 0x1bc   :  { %3847 = vmatprep.subr.bf16.mxu0 %v6084_v14  ;;  %4216 = vmatprep.subr.bf16.mxu1 %v6087_v19  ;;  %v6179_v14 = vld [vmem:[%s8256_s1 + $0xfcc] ss:$16 sps:$4 sm:$0xff]   ;;  %v6174_v19 = vld [vmem:[%s8256_s1 + $0xfc0] ss:$16 sps:$4 sm:$0xff]  }
 0x1bf   :  { %3848 = vmatpush1.bf16.msra.mxu0 %v6082_v20  ;;  %4217 = vmatpush1.bf16.msra.mxu1 %v6085_v21  ;;  %v6177_v20 = vld [vmem:[%s8256_s1 + $0xfc8] ss:$16 sps:$4 sm:$0xff]   ;;  %v6182_v21 = vld [vmem:[%s8256_s1 + $0xfe4] ss:$16 sps:$4 sm:$0xff]  }
 0x1c0   :  { %3858 = vmatprep.subr.bf16.mxu0 %v6092_v22  ;;  %4227 = vmatprep.subr.bf16.mxu1 %v6095_v23  ;;  %v6185_v22 = vld [vmem:[%s8256_s1 + $0xfec] ss:$16 sps:$4 sm:$0xff]   ;;  %v6180_v23 = vld [vmem:[%s8256_s1 + $0xfe0] ss:$16 sps:$4 sm:$0xff]  }
 0x1c2   :  { %3850 = vmatmul.mubr.bf16.vlgmr.msra.gmra.mrb[0].mxu0 %v4677_v18  ;;  %4219 = vmatmul.mubr.bf16.vlgmr.msra.gmra.mrb[0].mxu1 %v4677_v18  ;;  %v6183_v18 = vld [vmem:[%s8256_s1 + $0xfe8] ss:$16 sps:$4 sm:$0xff]  }
 0x1c3   :  { %3859 = vmatpush1.bf16.msra.mxu0 %v6090_v25  ;;  %4228 = vmatpush1.bf16.msra.mxu1 %v6093_v26  ;;  %v6190_v25 = vld [vmem:[%s8256_s1 + $0x1004] ss:$16 sps:$4 sm:$0xff]   ;;  %v6193_v26 = vld [vmem:[%s8256_s1 + $0x100c] ss:$16 sps:$4 sm:$0xff]  }
 0x1c4   :  { %3860 = vmatprep.subr.bf16.mxu0 %v6098_v16  ;;  %4229 = vmatprep.subr.bf16.mxu1 %v6101_v27  ;;  %v4679_v16 = vcombine.low %v7758_v24, %v7758_v24  ;;  %v7959_v27 = vld [vmem:[%s8257_s0 + $0x40] sm:$0xff] }
 0x1c5   :  { %3890 = vmatprep.mubr.bf16.mxu0 %v4680_v28  ;;  %4259 = vmatprep.mubr.bf16.mxu1 %v4680_v28  ;;  %v6188_v28 = vld [vmem:[%s8256_s1 + $0x1000] ss:$16 sps:$4 sm:$0xff]   ;;  %v6196_v24 = vld [vmem:[%s8256_s1 + $0x1024] ss:$16 sps:$4 sm:$0xff]  }
 0x1c7   :  { %3861 = vmatpush1.bf16.msra.mxu0 %v6096_v29  ;;  %4230 = vmatpush1.bf16.msra.mxu1 %v6099_v30  ;;  %v6191_v29 = vld [vmem:[%s8256_s1 + $0x1008] ss:$16 sps:$4 sm:$0xff]   ;;  %v6199_v30 = vld [vmem:[%s8256_s1 + $0x102c] ss:$16 sps:$4 sm:$0xff]  }
 0x1c8   :  { %3862 = vmatprep.subr.bf16.mxu0 %v6104_v31  ;;  %4231 = vmatprep.subr.bf16.mxu1 %v6107_v32  ;;  %v4682_v31 = vcombine.high %v7959_v27, %v7959_v27  ;;  %v6194_v32 = vld [vmem:[%s8256_s1 + $0x1020] ss:$16 sps:$4 sm:$0xff]  }
 0x1cb   :  { %3863 = vmatpush1.bf16.msra.mxu0 %v6102_v33  ;;  %4232 = vmatpush1.bf16.msra.mxu1 %v6105_v34  ;;  %v6197_v33 = vld [vmem:[%s8256_s1 + $0x1028] ss:$16 sps:$4 sm:$0xff]   ;;  %v6202_v34 = vld [vmem:[%s8256_s1 + $0x1044] ss:$16 sps:$4 sm:$0xff]  }
 0x1cc   :  { %3864 = vmatprep.subr.bf16.mxu0 %v6110_v35  ;;  %4233 = vmatprep.subr.bf16.mxu1 %v6113_v36  ;;  %v6205_v35 = vld [vmem:[%s8256_s1 + $0x104c] ss:$16 sps:$4 sm:$0xff]   ;;  %v6200_v36 = vld [vmem:[%s8256_s1 + $0x1040] ss:$16 sps:$4 sm:$0xff]  }
 0x1cf   :  { %3865 = vmatpush1.bf16.msra.mxu0 %v6108_v37  ;;  %4234 = vmatpush1.bf16.msra.mxu1 %v6111_v38  ;;  %v6203_v37 = vld [vmem:[%s8256_s1 + $0x1048] ss:$16 sps:$4 sm:$0xff]   ;;  %v6208_v38 = vld [vmem:[%s8256_s1 + $0x1064] ss:$16 sps:$4 sm:$0xff]  }
 0x1d0   :  { %3866 = vmatprep.subr.bf16.mxu0 %v6116_v39  ;;  %4235 = vmatprep.subr.bf16.mxu1 %v6119_v40  ;;  %v6211_v39 = vld [vmem:[%s8256_s1 + $0x106c] ss:$16 sps:$4 sm:$0xff]   ;;  %v6206_v40 = vld [vmem:[%s8256_s1 + $0x1060] ss:$16 sps:$4 sm:$0xff]  }
 0x1d3   :  { %3867 = vmatpush1.bf16.msra.mxu0 %v6114_v41  ;;  %4236 = vmatpush1.bf16.msra.mxu1 %v6117_v42  ;;  %v6209_v41 = vld [vmem:[%s8256_s1 + $0x1068] ss:$16 sps:$4 sm:$0xff]   ;;  %v6214_v42 = vld [vmem:[%s8256_s1 + $0x1084] ss:$16 sps:$4 sm:$0xff]  }
 0x1d4   :  { %3868 = vmatprep.subr.bf16.mxu0 %v6122_v43  ;;  %4237 = vmatprep.subr.bf16.mxu1 %v6125_v44  ;;  %v6217_v43 = vld [vmem:[%s8256_s1 + $0x108c] ss:$16 sps:$4 sm:$0xff]   ;;  %v6212_v44 = vld [vmem:[%s8256_s1 + $0x1080] ss:$16 sps:$4 sm:$0xff]  }
 0x1d7   :  { %3869 = vmatpush1.bf16.msra.mxu0 %v6120_v45  ;;  %4238 = vmatpush1.bf16.msra.mxu1 %v6123_v46  ;;  %v6215_v45 = vld [vmem:[%s8256_s1 + $0x1088] ss:$16 sps:$4 sm:$0xff]   ;;  %v6220_v46 = vld [vmem:[%s8256_s1 + $0x10a4] ss:$16 sps:$4 sm:$0xff]  }
 0x1d8   :  { %3870 = vmatprep.subr.bf16.mxu0 %v6128_v47  ;;  %4239 = vmatprep.subr.bf16.mxu1 %v6131_v48  ;;  %v6223_v47 = vld [vmem:[%s8256_s1 + $0x10ac] ss:$16 sps:$4 sm:$0xff]   ;;  %v6218_v48 = vld [vmem:[%s8256_s1 + $0x10a0] ss:$16 sps:$4 sm:$0xff]  }
 0x1db   :  { %3871 = vmatpush1.bf16.msra.mxu0 %v6126_v49  ;;  %4240 = vmatpush1.bf16.msra.mxu1 %v6129_v50  ;;  %v6221_v49 = vld [vmem:[%s8256_s1 + $0x10a8] ss:$16 sps:$4 sm:$0xff]   ;;  %v6226_v50 = vld [vmem:[%s8256_s1 + $0x10c4] ss:$16 sps:$4 sm:$0xff]  }
 0x1dc   :  { %3872 = vmatprep.subr.bf16.mxu0 %v6134_v51  ;;  %4241 = vmatprep.subr.bf16.mxu1 %v6137_v52  ;;  %v6229_v51 = vld [vmem:[%s8256_s1 + $0x10cc] ss:$16 sps:$4 sm:$0xff]   ;;  %v6224_v52 = vld [vmem:[%s8256_s1 + $0x10c0] ss:$16 sps:$4 sm:$0xff]  }
 0x1df   :  { %3873 = vmatpush1.bf16.msra.mxu0 %v6132_v53  ;;  %4242 = vmatpush1.bf16.msra.mxu1 %v6135_v54  ;;  %v6227_v53 = vld [vmem:[%s8256_s1 + $0x10c8] ss:$16 sps:$4 sm:$0xff]   ;;  %v6232_v54 = vld [vmem:[%s8256_s1 + $0x10e4] ss:$16 sps:$4 sm:$0xff]  }
 0x1e0   :  { %3874 = vmatprep.subr.bf16.mxu0 %v6140_v55  ;;  %4243 = vmatprep.subr.bf16.mxu1 %v6143_v56  ;;  %v6235_v55 = vld [vmem:[%s8256_s1 + $0x10ec] ss:$16 sps:$4 sm:$0xff]   ;;  %v6230_v56 = vld [vmem:[%s8256_s1 + $0x10e0] ss:$16 sps:$4 sm:$0xff]  }
 0x1e3   :  { %3875 = vmatpush1.bf16.msra.mxu0 %v6138_v57  ;;  %4244 = vmatpush1.bf16.msra.mxu1 %v6141_v58  ;;  %v6233_v57 = vld [vmem:[%s8256_s1 + $0x10e8] ss:$16 sps:$4 sm:$0xff]   ;;  %v6238_v58 = vld [vmem:[%s8256_s1 + $0x1104] ss:$16 sps:$4 sm:$0xff]  }
 0x1e4   :  { %3876 = vmatprep.subr.bf16.mxu0 %v6146_v59  ;;  %4245 = vmatprep.subr.bf16.mxu1 %v6149_v60  ;;  %v6241_v59 = vld [vmem:[%s8256_s1 + $0x110c] ss:$16 sps:$4 sm:$0xff]   ;;  %v6236_v60 = vld [vmem:[%s8256_s1 + $0x1100] ss:$16 sps:$4 sm:$0xff]  }
 0x1e7   :  { %3877 = vmatpush1.bf16.msra.mxu0 %v6144_v61  ;;  %4246 = vmatpush1.bf16.msra.mxu1 %v6147_v62  ;;  %v6239_v61 = vld [vmem:[%s8256_s1 + $0x1108] ss:$16 sps:$4 sm:$0xff]   ;;  %v6244_v62 = vld [vmem:[%s8256_s1 + $0x1124] ss:$16 sps:$4 sm:$0xff]  }
 0x1e8   :  { %3878 = vmatprep.subr.bf16.mxu0 %v6152_v63  ;;  %4247 = vmatprep.subr.bf16.mxu1 %v6155_v0  ;;  %v6247_v63 = vld [vmem:[%s8256_s1 + $0x112c] ss:$16 sps:$4 sm:$0xff]   ;;  %v6242_v0 = vld [vmem:[%s8256_s1 + $0x1120] ss:$16 sps:$4 sm:$0xff]  }
 0x1eb   :  { %3879 = vmatpush1.bf16.msra.mxu0 %v6150_v1  ;;  %4248 = vmatpush1.bf16.msra.mxu1 %v6153_v2  ;;  %v6245_v1 = vld [vmem:[%s8256_s1 + $0x1128] ss:$16 sps:$4 sm:$0xff]   ;;  %v6250_v2 = vld [vmem:[%s8256_s1 + $0x1144] ss:$16 sps:$4 sm:$0xff]  }
 0x1ec   :  { %3880 = vmatprep.subr.bf16.mxu0 %v6158_v3  ;;  %4249 = vmatprep.subr.bf16.mxu1 %v6161_v4  ;;  %v6253_v3 = vld [vmem:[%s8256_s1 + $0x114c] ss:$16 sps:$4 sm:$0xff]   ;;  %v6248_v4 = vld [vmem:[%s8256_s1 + $0x1140] ss:$16 sps:$4 sm:$0xff]  }
 0x1ef   :  { %3881 = vmatpush1.bf16.msra.mxu0 %v6156_v5  ;;  %4250 = vmatpush1.bf16.msra.mxu1 %v6159_v6  ;;  %v6251_v5 = vld [vmem:[%s8256_s1 + $0x1148] ss:$16 sps:$4 sm:$0xff]   ;;  %v6256_v6 = vld [vmem:[%s8256_s1 + $0x1164] ss:$16 sps:$4 sm:$0xff]  }
 0x1f0   :  { %3882 = vmatprep.subr.bf16.mxu0 %v6164_v7  ;;  %4251 = vmatprep.subr.bf16.mxu1 %v6167_v8  ;;  %v6259_v7 = vld [vmem:[%s8256_s1 + $0x116c] ss:$16 sps:$4 sm:$0xff]   ;;  %v6254_v8 = vld [vmem:[%s8256_s1 + $0x1160] ss:$16 sps:$4 sm:$0xff]  }
 0x1f3   :  { %3883 = vmatpush1.bf16.msra.mxu0 %v6162_v9  ;;  %4252 = vmatpush1.bf16.msra.mxu1 %v6165_v10  ;;  %v6257_v9 = vld [vmem:[%s8256_s1 + $0x1168] ss:$16 sps:$4 sm:$0xff]   ;;  %v6262_v10 = vld [vmem:[%s8256_s1 + $0x1184] ss:$16 sps:$4 sm:$0xff]  }
 0x1f4   :  { %3884 = vmatprep.subr.bf16.mxu0 %v6170_v12  ;;  %4253 = vmatprep.subr.bf16.mxu1 %v6173_v13  ;;  %v6265_v12 = vld [vmem:[%s8256_s1 + $0x118c] ss:$16 sps:$4 sm:$0xff]   ;;  %v6260_v13 = vld [vmem:[%s8256_s1 + $0x1180] ss:$16 sps:$4 sm:$0xff]  }
 0x1f7   :  { %3885 = vmatpush1.bf16.msra.mxu0 %v6168_v15  ;;  %4254 = vmatpush1.bf16.msra.mxu1 %v6171_v11  ;;  %v6263_v15 = vld [vmem:[%s8256_s1 + $0x1188] ss:$16 sps:$4 sm:$0xff]   ;;  %v6268_v11 = vld [vmem:[%s8256_s1 + $0x11a4] ss:$16 sps:$4 sm:$0xff]  }
 0x1f8   :  { %3886 = vmatprep.subr.bf16.mxu0 %v6176_v17  ;;  %4255 = vmatprep.subr.bf16.mxu1 %v6179_v14  ;;  %v6271_v17 = vld [vmem:[%s8256_s1 + $0x11ac] ss:$16 sps:$4 sm:$0xff]   ;;  %v6266_v14 = vld [vmem:[%s8256_s1 + $0x11a0] ss:$16 sps:$4 sm:$0xff]  }
 0x1fb   :  { %3887 = vmatpush1.bf16.msra.mxu0 %v6174_v19  ;;  %4256 = vmatpush1.bf16.msra.mxu1 %v6177_v20  ;;  %v6269_v19 = vld [vmem:[%s8256_s1 + $0x11a8] ss:$16 sps:$4 sm:$0xff]   ;;  %v6274_v20 = vld [vmem:[%s8256_s1 + $0x11c4] ss:$16 sps:$4 sm:$0xff]  }
 0x1fc   :  { %3888 = vmatprep.subr.bf16.mxu0 %v6182_v21  ;;  %4257 = vmatprep.subr.bf16.mxu1 %v6185_v22  ;;  %v6277_v21 = vld [vmem:[%s8256_s1 + $0x11cc] ss:$16 sps:$4 sm:$0xff]   ;;  %v6272_v22 = vld [vmem:[%s8256_s1 + $0x11c0] ss:$16 sps:$4 sm:$0xff]  }
 0x1ff   :  { %3889 = vmatpush1.bf16.msra.mxu0 %v6180_v23  ;;  %4258 = vmatpush1.bf16.msra.mxu1 %v6183_v18  ;;  %v6275_v23 = vld [vmem:[%s8256_s1 + $0x11c8] ss:$16 sps:$4 sm:$0xff]   ;;  %v6280_v18 = vld [vmem:[%s8256_s1 + $0x11e4] ss:$16 sps:$4 sm:$0xff]  }
 0x200   :  { %3899 = vmatprep.subr.bf16.mxu0 %v6190_v25  ;;  %4268 = vmatprep.subr.bf16.mxu1 %v6193_v26  ;;  %v6283_v25 = vld [vmem:[%s8256_s1 + $0x11ec] ss:$16 sps:$4 sm:$0xff]   ;;  %v6278_v26 = vld [vmem:[%s8256_s1 + $0x11e0] ss:$16 sps:$4 sm:$0xff]  }
 0x202   :  { %3891 = vmatmul.mubr.bf16.vlgmr.msra.gmra.mrb[0].mxu0 %v4679_v16  ;;  %4260 = vmatmul.mubr.bf16.vlgmr.msra.gmra.mrb[0].mxu1 %v4679_v16  ;;  %v6281_v16 = vld [vmem:[%s8256_s1 + $0x11e8] ss:$16 sps:$4 sm:$0xff]  }
 0x203   :  { %3900 = vmatpush1.bf16.msra.mxu0 %v6188_v28  ;;  %4269 = vmatpush1.bf16.msra.mxu1 %v6191_v29  ;;  %v6286_v28 = vld [vmem:[%s8258_s3 + $0x40] sm:$0xff]  }
 0x204   :  { %3901 = vmatprep.subr.bf16.mxu0 %v6196_v24  ;;  %4270 = vmatprep.subr.bf16.mxu1 %v6199_v30  ;;  %v6287_v29 = vld [vmem:[%s8258_s3 + $0xc0] sm:$0xff]   ;;  %v4681_v24 = vcombine.low %v7959_v27, %v7959_v27  ;;  %v6291_v27 = vld [vmem:[%s8258_s3 + $0xc8] sm:$0xff]  }
 0x205   :  { %3931 = vmatprep.mubr.bf16.mxu0 %v4682_v31  ;;  %4300 = vmatprep.mubr.bf16.mxu1 %v4682_v31  ;;  %v6288_v30 = vld [vmem:[%s8258_s3] sm:$0xff]  }
 0x206   :  { %v6289_v31 = vld [vmem:[%s8258_s3 + $0x80] sm:$0xff]  }
 0x207   :  { %3902 = vmatpush1.bf16.msra.mxu0 %v6194_v32  ;;  %4271 = vmatpush1.bf16.msra.mxu1 %v6197_v33  ;;  %v6290_v32 = vld [vmem:[%s8258_s3 + $0x48] sm:$0xff]  }
 0x208   :  { %3903 = vmatprep.subr.bf16.mxu0 %v6202_v34  ;;  %4272 = vmatprep.subr.bf16.mxu1 %v6205_v35  ;;  %v6292_v33 = vld [vmem:[%s8258_s3 + $0x8] sm:$0xff]   ;;  %v6294_v35 = vld [vmem:[%s8258_s3 + $0x50] sm:$0xff]  }
 0x209   :  { %v6293_v34 = vld [vmem:[%s8258_s3 + $0x88] sm:$0xff]  }
 0x20b   :  { %3904 = vmatpush1.bf16.msra.mxu0 %v6200_v36  ;;  %4273 = vmatpush1.bf16.msra.mxu1 %v6203_v37  ;;  %v6295_v36 = vld [vmem:[%s8258_s3 + $0xd0] sm:$0xff]  }
 0x20c   :  { %3905 = vmatprep.subr.bf16.mxu0 %v6208_v38  ;;  %4274 = vmatprep.subr.bf16.mxu1 %v6211_v39  ;;  %v6296_v37 = vld [vmem:[%s8258_s3 + $0x10] sm:$0xff]   ;;  %v6298_v39 = vld [vmem:[%s8258_s3 + $0x58] sm:$0xff]  }
 0x20d   :  { %v6297_v38 = vld [vmem:[%s8258_s3 + $0x90] sm:$0xff]  }
 0x20f   :  { %3906 = vmatpush1.bf16.msra.mxu0 %v6206_v40  ;;  %4275 = vmatpush1.bf16.msra.mxu1 %v6209_v41  ;;  %v6299_v40 = vld [vmem:[%s8258_s3 + $0xd8] sm:$0xff]  }
 0x210   :  { %3907 = vmatprep.subr.bf16.mxu0 %v6214_v42  ;;  %4276 = vmatprep.subr.bf16.mxu1 %v6217_v43  ;;  %v6300_v41 = vld [vmem:[%s8258_s3 + $0x18] sm:$0xff]   ;;  %v6302_v43 = vld [vmem:[%s8258_s3 + $0x60] sm:$0xff]  }
 0x211   :  { %v6301_v42 = vld [vmem:[%s8258_s3 + $0x98] sm:$0xff]  }
 0x213   :  { %3908 = vmatpush1.bf16.msra.mxu0 %v6212_v44  ;;  %4277 = vmatpush1.bf16.msra.mxu1 %v6215_v45  ;;  %v6303_v44 = vld [vmem:[%s8258_s3 + $0xe0] sm:$0xff]  }
 0x214   :  { %3909 = vmatprep.subr.bf16.mxu0 %v6220_v46  ;;  %4278 = vmatprep.subr.bf16.mxu1 %v6223_v47  ;;  %v6304_v45 = vld [vmem:[%s8258_s3 + $0x20] sm:$0xff]   ;;  %v6306_v47 = vld [vmem:[%s8258_s3 + $0x68] sm:$0xff]  }
 0x215   :  { %v6305_v46 = vld [vmem:[%s8258_s3 + $0xa0] sm:$0xff]  }
 0x217   :  { %3910 = vmatpush1.bf16.msra.mxu0 %v6218_v48  ;;  %4279 = vmatpush1.bf16.msra.mxu1 %v6221_v49  ;;  %v6307_v48 = vld [vmem:[%s8258_s3 + $0xe8] sm:$0xff]  }
 0x218   :  { %3911 = vmatprep.subr.bf16.mxu0 %v6226_v50  ;;  %4280 = vmatprep.subr.bf16.mxu1 %v6229_v51  ;;  %v6308_v49 = vld [vmem:[%s8258_s3 + $0x28] sm:$0xff]   ;;  %v6310_v51 = vld [vmem:[%s8258_s3 + $0x70] sm:$0xff]  }
 0x219   :  { %v6309_v50 = vld [vmem:[%s8258_s3 + $0xa8] sm:$0xff]  }
 0x21b   :  { %3912 = vmatpush1.bf16.msra.mxu0 %v6224_v52  ;;  %4281 = vmatpush1.bf16.msra.mxu1 %v6227_v53  ;;  %v6311_v52 = vld [vmem:[%s8258_s3 + $0xf0] sm:$0xff]  }
 0x21c   :  { %3913 = vmatprep.subr.bf16.mxu0 %v6232_v54  ;;  %4282 = vmatprep.subr.bf16.mxu1 %v6235_v55  ;;  %v6312_v53 = vld [vmem:[%s8258_s3 + $0x30] sm:$0xff]   ;;  %v6314_v55 = vld [vmem:[%s8258_s3 + $0x78] sm:$0xff]  }
 0x21d   :  { %v6313_v54 = vld [vmem:[%s8258_s3 + $0xb0] sm:$0xff]  }
 0x21f   :  { %3914 = vmatpush1.bf16.msra.mxu0 %v6230_v56  ;;  %4283 = vmatpush1.bf16.msra.mxu1 %v6233_v57  ;;  %v6315_v56 = vld [vmem:[%s8258_s3 + $0xf8] sm:$0xff]  }
 0x220   :  { %3915 = vmatprep.subr.bf16.mxu0 %v6238_v58  ;;  %4284 = vmatprep.subr.bf16.mxu1 %v6241_v59  ;;  %v6316_v57 = vld [vmem:[%s8258_s3 + $0x38] sm:$0xff]   ;;  %v608_v59 = vlaneseq }
 0x221   :  { %v6317_v58 = vld [vmem:[%s8258_s3 + $0xb8] sm:$0xff]  }
 0x223   :  { %3916 = vmatpush1.bf16.msra.mxu0 %v6236_v60  ;;  %4285 = vmatpush1.bf16.msra.mxu1 %v6239_v61  ;;  %v609_v60 = vshrl.u32 %v608_v59, 7 }
 0x224   :  { %3917 = vmatprep.subr.bf16.mxu0 %v6244_v62  ;;  %4286 = vmatprep.subr.bf16.mxu1 %v6247_v63  ;;  %v606_v63 = vld [vmem:[%s8259_s2] sm:$0xf] }
 0x225   :  { %v610_v61 = vsub.s32 0, %v609_v60  ;;  %v618_v62 = vsub.s32 2, %v609_v60 }
 0x227   :  { %3918 = vmatpush1.bf16.msra.mxu0 %v6242_v0  ;;  %4287 = vmatpush1.bf16.msra.mxu1 %v6245_v1  ;;  %v614_v0 = vsub.s32 1, %v609_v60  ;;  %v622_v1 = vsub.s32 3, %v609_v60 }
 0x228   :  { %3919 = vmatprep.subr.bf16.mxu0 %v6250_v2  ;;  %4288 = vmatprep.subr.bf16.mxu1 %v6253_v3  ;;  %v611_v2 = vrot.slane %v606_v63, %v610_v61  ;;  %v619_v3 = vrot.slane %v606_v63, %v618_v62 }
 0x22b   :  { %3920 = vmatpush1.bf16.msra.mxu0 %v6248_v4  ;;  %4289 = vmatpush1.bf16.msra.mxu1 %v6251_v5  ;;  %v615_v4 = vrot.slane %v606_v63, %v614_v0  ;;  %v623_v5 = vrot.slane %v606_v63, %v622_v1 }
 0x22c   :  { %3921 = vmatprep.subr.bf16.mxu0 %v6256_v6  ;;  %4290 = vmatprep.subr.bf16.mxu1 %v6259_v7 }
 0x22f   :  { %3922 = vmatpush1.bf16.msra.mxu0 %v6254_v8  ;;  %4291 = vmatpush1.bf16.msra.mxu1 %v6257_v9 }
 0x230   :  { %3923 = vmatprep.subr.bf16.mxu0 %v6262_v10  ;;  %4292 = vmatprep.subr.bf16.mxu1 %v6265_v12 }
 0x233   :  { %3924 = vmatpush1.bf16.msra.mxu0 %v6260_v13  ;;  %4293 = vmatpush1.bf16.msra.mxu1 %v6263_v15 }
 0x234   :  { %3925 = vmatprep.subr.bf16.mxu0 %v6268_v11  ;;  %4294 = vmatprep.subr.bf16.mxu1 %v6271_v17 }
 0x237   :  { %3926 = vmatpush1.bf16.msra.mxu0 %v6266_v14  ;;  %4295 = vmatpush1.bf16.msra.mxu1 %v6269_v19 }
 0x238   :  { %3927 = vmatprep.subr.bf16.mxu0 %v6274_v20  ;;  %4296 = vmatprep.subr.bf16.mxu1 %v6277_v21 }
 0x23b   :  { %3928 = vmatpush1.bf16.msra.mxu0 %v6272_v22  ;;  %4297 = vmatpush1.bf16.msra.mxu1 %v6275_v23 }
 0x23c   :  { %3929 = vmatprep.subr.bf16.mxu0 %v6280_v18  ;;  %4298 = vmatprep.subr.bf16.mxu1 %v6283_v25 }
 0x23f   :  { %3930 = vmatpush1.bf16.msra.mxu0 %v6278_v26  ;;  %4299 = vmatpush1.bf16.msra.mxu1 %v6281_v16 }
 0x240   :  { %5292 = vmatprep.subr.bf16.mxu0 %v6286_v28  ;;  %5314 = vmatprep.subr.bf16.mxu1 %v6287_v29 }
 0x242   :  { %3932 = vmatmul.mubr.bf16.vlgmr.msra.gmra.mrb[0].mxu0 %v4681_v24  ;;  %4301 = vmatmul.mubr.bf16.vlgmr.msra.gmra.mrb[0].mxu1 %v4681_v24  ;;  %v5259_v24 = vld [vmem:[%s8260_s4] ss:$0 sm:$0xff] }
 0x243   :  { %5293 = vmatpush3.bf16.msra.mxu0 %v6288_v30  ;;  %5315 = vmatpush3.bf16.msra.mxu1 %v6289_v31 }
 0x244   :  { %5294 = vmatprep.subr.bf16.mxu0 %v6290_v32  ;;  %5316 = vmatprep.subr.bf16.mxu1 %v6291_v27 }
 0x247   :  { %5295 = vmatpush3.bf16.msra.mxu0 %v6292_v33  ;;  %5317 = vmatpush3.bf16.msra.mxu1 %v6293_v34 }
 0x248   :  { %5296 = vmatprep.subr.bf16.mxu0 %v6294_v35  ;;  %5318 = vmatprep.subr.bf16.mxu1 %v6295_v36 }
 0x24b   :  { %5297 = vmatpush3.bf16.msra.mxu0 %v6296_v37  ;;  %5319 = vmatpush3.bf16.msra.mxu1 %v6297_v38 }
 0x24c   :  { %5298 = vmatprep.subr.bf16.mxu0 %v6298_v39  ;;  %5320 = vmatprep.subr.bf16.mxu1 %v6299_v40 }
 0x24f   :  { %5299 = vmatpush3.bf16.msra.mxu0 %v6300_v41  ;;  %5321 = vmatpush3.bf16.msra.mxu1 %v6301_v42 }
 0x250   :  { %5300 = vmatprep.subr.bf16.mxu0 %v6302_v43  ;;  %5322 = vmatprep.subr.bf16.mxu1 %v6303_v44 }
 0x253   :  { %5301 = vmatpush3.bf16.msra.mxu0 %v6304_v45  ;;  %5323 = vmatpush3.bf16.msra.mxu1 %v6305_v46 }
 0x254   :  { %5302 = vmatprep.subr.bf16.mxu0 %v6306_v47  ;;  %5324 = vmatprep.subr.bf16.mxu1 %v6307_v48 }
 0x257   :  { %5303 = vmatpush3.bf16.msra.mxu0 %v6308_v49  ;;  %5325 = vmatpush3.bf16.msra.mxu1 %v6309_v50 }
 0x258   :  { %5304 = vmatprep.subr.bf16.mxu0 %v6310_v51  ;;  %5326 = vmatprep.subr.bf16.mxu1 %v6311_v52 }
 0x25b   :  { %5305 = vmatpush3.bf16.msra.mxu0 %v6312_v53  ;;  %5327 = vmatpush3.bf16.msra.mxu1 %v6313_v54 }
 0x25c   :  { %5306 = vmatprep.subr.bf16.mxu0 %v6314_v55  ;;  %5328 = vmatprep.subr.bf16.mxu1 %v6315_v56 }
 0x25f   :  { %5307 = vmatpush3.bf16.msra.mxu0 %v6316_v57  ;;  %5329 = vmatpush3.bf16.msra.mxu1 %v6317_v58 }
 0x315   :  { %v3933_v6 = vpop.f32.mrb[0].mxu0  ;;  %v4302_v7 = vpop.f32.mrb[0].mxu1 }
 0x316   :  { %v5336_v8 = vadd.f32 %v3933_v6, %v611_v2  ;;  %v5338_v9 = vadd.f32 %v4302_v7, %v619_v3  ;;  %v3935_v10 = vpop.f32.mrb[1].mxu0  ;;  %v4304_v12 = vpop.f32.mrb[1].mxu1 }
 0x317   :  { %v5337_v13 = vadd.f32 %v3935_v10, %v615_v4  ;;  %v5339_v15 = vadd.f32 %v4304_v12, %v623_v5  ;;  %v3937_v11 = vpop.f32.mrb[2].mxu0  ;;  %v4306_v17 = vpop.f32.mrb[2].mxu1 }
 0x318   :  { %v4309_v14 = vmax.f32 %v5336_v8, 0.0  ;;  %v4311_v19 = vmax.f32 %v5338_v9, 0.0  ;;  %v3938_v20 = vpop.f32.mrb[3].mxu0  ;;  %v4307_v21 = vpop.f32.mrb[3].mxu1 }
 0x319   :  { %v4310_v22 = vmax.f32 %v5337_v13, 0.0  ;;  %v4312_v23 = vmax.f32 %v5339_v15, 0.0 }
 0x31a   :  { %v4313_v26 = vpack.c.bf16 %v4309_v14, %v4309_v14  ;;  %v4315_v16 = vpack.c.bf16 %v4311_v19, %v4311_v19 }
 0x31b   :  { %v4314_v18 = vpack.c.bf16 %v4310_v22, %v4310_v22  ;;  %v4316_v25 = vpack.c.bf16 %v4312_v23, %v4312_v23 }
 0x31d   :  { %4612 = vmatprep.mubr.bf16.mxu0 %v4314_v18  ;;  %4652 = vmatprep.mubr.bf16.mxu1 %v4316_v25 }
 0x31e   :  { %4613 = vmatmul.mubr.bf16.vlgmr.msra.gmra.mrb[4].mxu0 %v4313_v26  ;;  %4653 = vmatmul.mubr.bf16.vlgmr.msra.gmra.mrb[4].mxu1 %v4315_v16 }
 0x3f1   :  { %v5308_v28 = vpop.f32.mrb[4].mxu0  ;;  %v5330_v29 = vpop.f32.mrb[4].mxu1 }
 0x3f2   :  { %v5309_v30 = vpop.f32.mrb[5].mxu0  ;;  %v5331_v31 = vpop.f32.mrb[5].mxu1 }
 0x3f3   :  { %v5310_v32 = vadd.f32 %v5309_v30, %v5308_v28  ;;  %v5332_v27 = vadd.f32 %v5331_v31, %v5330_v29  ;;  %v5311_v33 = vpop.f32.mrb[6].mxu0  ;;  %v5333_v34 = vpop.f32.mrb[6].mxu1 }
 0x3f4   :  { %v5312_v35 = vpop.f32.mrb[7].mxu0  ;;  %v5334_v36 = vpop.f32.mrb[7].mxu1 }
 0x3f5   :  { %v4615_v37 = vadd.f32 %v5310_v32, %v5259_v24 }
 0x3f7   :  { %v4655_v38 = vadd.f32 %v5332_v27, %v4615_v37 }
 0x3f9   :  { %4660 = vst [vmem:[%s8261_s5] sm:$0xff] %v4655_v38 }

</bundles_post_ra>
